<compile_context>
chip_gen: v7x
topology: tpu7x:2x2x1
jax: 0.10.0
libtpu: 0.0.40
codegen_flags: <defaults>
</compile_context>

<pallas_src>
import functools
import math

import jax
import jax.numpy as jnp
from jax.experimental import pallas as pl
from jax.experimental.pallas import tpu as pltpu

BN_EPS = 1e-5
LANE = 128                              # channel storage width (lane-dense)
VMEM_LIMIT_BYTES = 48 * 1024 * 1024     # > 16/32 MiB defaults, < v7x 64 MiB


# ---------------------------------------------------------------------------
# Pallas kernels
# ---------------------------------------------------------------------------
def _stem_kernel(kh, stride, wo, x_ref, w_ref, b_ref, o_ref):
    """7x7/s2 conv + folded-BN bias + ReLU, whole output map per grid step.

    x_ref : (phases, Hh*Wo, kw*cin) bf16 width-unrolled / phase-split input.
    w_ref : (kh, kw*cin, 128) bf16 per-row-tap weight slabs (BN folded).
    """
    m = o_ref.shape[1]
    acc = jnp.zeros((m, o_ref.shape[2]), jnp.float32)
    for ki in range(kh):
        phase = ki % stride
        start = (ki // stride) * wo
        lhs = x_ref[phase, start:start + m, :]           # (m, kw*cin) bf16
        acc = acc + jnp.dot(lhs, w_ref[ki], preferred_element_type=jnp.float32)
    o_ref[0] = jnp.maximum(acc + b_ref[...], 0.0).astype(o_ref.dtype)


def _block_kernel(stride, ho, wo, has_down, x_ref, w1_ref, b1_ref, w2_ref,
                  b2_ref, aux_ref, o_ref, y1u_ref):
    """Fused ResNet BasicBlock (conv1 + conv2 + downsample/residual + ReLUs).

    conv1 (and the folded 1x1/s downsample, as extra GEMM columns) runs as 3
    accumulating row-tap GEMMs on the width-unrolled HBM input.  Its bf16
    activation is written (zero-padded + width-unrolled) into the VMEM scratch
    `y1u_ref`, over which conv2 runs as 3 more row-tap GEMMs.  The epilogue
    adds bias + identity and applies the final ReLU in f32.
    """
    m = ho * wo
    cpad = o_ref.shape[2]                                 # 128

    # --- conv1 (3x3, stride s) [+ fused 1x1/s downsample in extra N cols] ----
    ngemm = w1_ref.shape[2]                               # 128, or 256 if fused
    acc = jnp.zeros((m, ngemm), jnp.float32)
    for ki in range(3):
        phase = ki % stride
        start = (ki // stride) * wo
        lhs = x_ref[phase, start:start + m, :]            # (m, 3*cin) bf16
        acc = acc + jnp.dot(lhs, w1_ref[ki], preferred_element_type=jnp.float32)
    y1 = jnp.maximum(acc[:, :cpad] + b1_ref[...], 0.0).astype(jnp.bfloat16)
    if has_down:
        identity = acc[:, cpad:] + aux_ref[...]           # f32 (m, 128)
    else:
        identity = aux_ref[0].astype(jnp.float32)         # stored residual x

    # --- build zero-padded, width-unrolled conv1 output in VMEM scratch ------
    # y1u[ip*wo + j, kj*128:(kj+1)*128] = y1_padded[ip, j + kj]   (pad = 1)
    y1u_ref[...] = jnp.zeros_like(y1u_ref)
    y1u_ref[wo:wo + m, cpad:2 * cpad] = y1                             # kj = 1
    ridx = jax.lax.broadcasted_iota(jnp.int32, (m, 1), 0)
    left = jnp.where((ridx % wo) != (wo - 1), y1, jnp.zeros_like(y1))
    y1u_ref[wo + 1:wo + 1 + m, 0:cpad] = left                          # kj = 0
    right = jnp.where((ridx % wo) != 0, y1, jnp.zeros_like(y1))
    y1u_ref[wo - 1:wo - 1 + m, 2 * cpad:3 * cpad] = right              # kj = 2

    # --- conv2 (3x3, stride 1): 3 row-tap GEMMs over the VMEM intermediate ---
    acc2 = jnp.zeros((m, cpad), jnp.float32)
    for ki in range(3):
        lhs = y1u_ref[ki * wo:ki * wo + m, :]             # (m, 3*128) bf16
        acc2 = acc2 + jnp.dot(lhs, w2_ref[ki], preferred_element_type=jnp.float32)

    o_ref[0] = jnp.maximum(acc2 + b2_ref[...] + identity, 0.0).astype(o_ref.dtype)


def _maxpool_kernel(x_ref, o_ref):
    """3x3 / stride-2 / pad-1 max pool over a 2x2 space-to-depth input (bf16).

    x_ref: (4, Hh, Wh, C) row/col phases of the -inf padded input (VMEM).
    o_ref: (1, Ho, Wo, C).  Max of the 9 shifted in-VMEM views.
    """
    ho, wo = o_ref.shape[1], o_ref.shape[2]
    result = None
    for ki in range(3):
        for kj in range(3):
            phase = (ki % 2) * 2 + (kj % 2)
            v = x_ref[phase, ki // 2:ki // 2 + ho, kj // 2:kj // 2 + wo, :]
            result = v if result is None else jnp.maximum(result, v)
    o_ref[0] = result


# ---------------------------------------------------------------------------
# XLA-side layout prep (per fused block, not per conv) + pallas_call wrappers
# ---------------------------------------------------------------------------
def _conv_input_prep(x, kh, kw, stride, padding):
    """Pad + width-unroll (+ stride-2 row-phase split) + flatten, in XLA.

    Returns (x_flat, phases, ho, wo): x_flat is (N*P, Hh*Wo, kw*Cin) bf16 with
    every kernel-row tap a contiguous row slice.
    """
    n, h, w, c = x.shape
    ho = (h + 2 * padding - kh) // stride + 1
    wo = (w + 2 * padding - kw) // stride + 1
    xp = jnp.pad(x, ((0, 0), (padding, padding), (padding, padding), (0, 0)))
    cols = [xp[:, :, j:j + (wo - 1) * stride + 1:stride, :] for j in range(kw)]
    xc = jnp.concatenate(cols, axis=-1)                   # (N, Hp, Wo, kw*C)
    if stride == 1:
        ph = xc[:, None]
    else:
        assert stride == 2, "only stride 1/2 convs appear in this backbone"
        if xc.shape[1] % 2:
            xc = jnp.pad(xc, ((0, 0), (0, 1), (0, 0), (0, 0)))
        ph = jnp.stack([xc[:, 0::2], xc[:, 1::2]], axis=1)
    p, hh = ph.shape[1], ph.shape[2]
    return ph.reshape(n * p, hh * wo, kw * c), p, ho, wo


def _stem_conv(x, w_taps, b):
    """conv1(7x7/s2/p3) + folded BN + ReLU -> (N, 16, 16, 128) bf16."""
    n = x.shape[0]
    x_flat, phases, ho, wo = _conv_input_prep(x, 7, 7, 2, 3)
    m = ho * wo
    out = pl.pallas_call(
        functools.partial(_stem_kernel, 7, 2, wo),
        grid=(n,),
        in_specs=[
            pl.BlockSpec((phases, x_flat.shape[1], x_flat.shape[2]),
                         lambda i: (i, 0, 0)),
            pl.BlockSpec(w_taps.shape, lambda i: (0, 0, 0)),
            pl.BlockSpec((1, LANE), lambda i: (0, 0)),
        ],
        out_specs=pl.BlockSpec((1, m, LANE), lambda i: (i, 0, 0)),
        out_shape=jax.ShapeDtypeStruct((n, m, LANE), jnp.bfloat16),
        compiler_params=pltpu.CompilerParams(
            dimension_semantics=("parallel",),
            vmem_limit_bytes=VMEM_LIMIT_BYTES),
    )(x_flat, w_taps, b)
    return out.reshape(n, ho, wo, LANE)


def _maxpool(x):
    n, h, w, c = x.shape
    ho, wo = (h - 1) // 2 + 1, (w - 1) // 2 + 1
    xp = jnp.pad(x, ((0, 0), (1, 1), (1, 1), (0, 0)), constant_values=-jnp.inf)
    xp = jnp.pad(xp, ((0, 0), (0, xp.shape[1] % 2), (0, xp.shape[2] % 2), (0, 0)),
                 constant_values=-jnp.inf)
    phases = jnp.stack([xp[:, di::2, dj::2, :] for di in (0, 1) for dj in (0, 1)],
                       axis=1)                            # (N, 4, Hh, Wh, C)
    hh, wh = phases.shape[2], phases.shape[3]
    return pl.pallas_call(
        _maxpool_kernel,
        grid=(n,),
        in_specs=[pl.BlockSpec((4, hh, wh, c), lambda i: (i, 0, 0, 0))],
        out_specs=pl.BlockSpec((1, ho, wo, c), lambda i: (i, 0, 0, 0)),
        out_shape=jax.ShapeDtypeStruct((n, ho, wo, c), jnp.bfloat16),
        compiler_params=pltpu.CompilerParams(
            dimension_semantics=("parallel",),
            vmem_limit_bytes=VMEM_LIMIT_BYTES),
    )(phases.reshape(n * 4, hh, wh, c))


def _basic_block(x, p, stride):
    """One fused BasicBlock pallas_call.  x: (N, H, W, 128) bf16 stored."""
    n, h, w, _ = x.shape
    cin = p["w1"].shape[1] // 3                           # true input channels
    x_flat, phases, ho, wo = _conv_input_prep(x[..., :cin], 3, 3, stride, 1)
    m = ho * wo
    has_down = "bd" in p

    in_specs = [
        pl.BlockSpec((phases, x_flat.shape[1], 3 * cin), lambda i: (i, 0, 0)),
        pl.BlockSpec(p["w1"].shape, lambda i: (0, 0, 0)),
        pl.BlockSpec((1, LANE), lambda i: (0, 0)),
        pl.BlockSpec(p["w2"].shape, lambda i: (0, 0, 0)),
        pl.BlockSpec((1, LANE), lambda i: (0, 0)),
    ]
    args = [x_flat, p["w1"], p["b1"], p["w2"], p["b2"]]
    if has_down:
        in_specs.append(pl.BlockSpec((1, LANE), lambda i: (0, 0)))
        args.append(p["bd"])
    else:
        in_specs.append(pl.BlockSpec((1, m, LANE), lambda i: (i, 0, 0)))
        args.append(x.reshape(n, h * w, LANE))            # residual (128 ch)

    out = pl.pallas_call(
        functools.partial(_block_kernel, stride, ho, wo, has_down),
        grid=(n,),
        in_specs=in_specs,
        out_specs=pl.BlockSpec((1, m, LANE), lambda i: (i, 0, 0)),
        out_shape=jax.ShapeDtypeStruct((n, m, LANE), jnp.bfloat16),
        scratch_shapes=[pltpu.VMEM(((ho + 2) * wo, 3 * LANE), jnp.bfloat16)],
        compiler_params=pltpu.CompilerParams(
            dimension_semantics=("parallel",),
            vmem_limit_bytes=VMEM_LIMIT_BYTES),
    )(*args)
    return out.reshape(n, ho, wo, LANE)


def _layer(x, blocks, stride):
    x = _basic_block(x, blocks[0], stride)
    for bp in blocks[1:]:
        x = _basic_block(x, bp, 1)
    return x


def encode_uv(x_nchw, params, *, channels):
    """channels = true (unpadded) channel widths of (x0, x1, x2, x3, x4)."""
    x = jnp.transpose(x_nchw, (0, 2, 3, 1)).astype(jnp.bfloat16)   # NCHW -> NHWC
    x0 = _stem_conv(x, params["conv1_w"], params["conv1_b"])
    xm = _maxpool(x0)
    x1 = _layer(xm, params["layer1"], 1)
    x2 = _layer(x1, params["layer2"], 2)
    x3 = _layer(x2, params["layer3"], 2)
    x4 = _layer(x3, params["layer4"], 2)

    def to_nchw(t, c):          # drop channel padding, back to NCHW float32
        return jnp.transpose(t[..., :c], (0, 3, 1, 2)).astype(jnp.float32)

    return (to_nchw(x0, channels[0]), to_nchw(x4, channels[4]),
            to_nchw(x3, channels[3]), to_nchw(x2, channels[2]),
            to_nchw(x1, channels[1]))


# ---------------------------------------------------------------------------
# Parameter init (synthetic ResNet-18-style backbone), BN folding and packing
# into kernel layouts (lane-padded Cout, per-row-tap slabs, fused downsample).
# ---------------------------------------------------------------------------
def _conv_w(key, kh, kw, cin, cout):
    return jax.random.normal(key, (kh, kw, cin, cout), jnp.float32) / math.sqrt(kh * kw * cin)


def _bn_stats(key, c):
    k1, k2, k3, k4 = jax.random.split(key, 4)
    gamma = 1.0 + 0.1 * jax.random.normal(k1, (c,), jnp.float32)
    beta = 0.1 * jax.random.normal(k2, (c,), jnp.float32)
    mean = 0.1 * jax.random.normal(k3, (c,), jnp.float32)
    var = 1.0 + 0.1 * jnp.abs(jax.random.normal(k4, (c,), jnp.float32))
    return gamma, beta, mean, var


def _fold(w, bn):
    gamma, beta, mean, var = bn
    scale = gamma / jnp.sqrt(var + BN_EPS)
    return w * scale, beta - mean * scale


def _block_raw(key, cin, cout, stride):
    ks = jax.random.split(key, 6)
    w1, b1 = _fold(_conv_w(ks[0], 3, 3, cin, cout), _bn_stats(ks[1], cout))
    w2, b2 = _fold(_conv_w(ks[2], 3, 3, cout, cout), _bn_stats(ks[3], cout))
    d = {"w1": w1, "b1": b1, "w2": w2, "b2": b2}
    if stride != 1 or cin != cout:
        wd, bd = _fold(_conv_w(ks[4], 1, 1, cin, cout), _bn_stats(ks[5], cout))
        d["wd"], d["bd"] = wd, bd
    return d


def _layer_raw(key, cin, cout, blocks, stride):
    keys = jax.random.split(key, blocks)
    out = [_block_raw(keys[0], cin, cout, stride)]
    for k in keys[1:]:
        out.append(_block_raw(k, cout, cout, 1))
    return out


def init_encode_uv_params(key, in_ch=3, base=16, blocks_per_layer=2):
    keys = jax.random.split(key, 6)
    c1, c2, c3, c4 = base, base * 2, base * 4, base * 8
    w0, b0 = _fold(_conv_w(keys[0], 7, 7, in_ch, base), _bn_stats(keys[1], base))
    raw = {
        "conv1": {"w": w0, "b": b0},
        "layer1": _layer_raw(keys[2], c1, c1, blocks_per_layer, 1),
        "layer2": _layer_raw(keys[3], c1, c2, blocks_per_layer, 2),
        "layer3": _layer_raw(keys[4], c2, c3, blocks_per_layer, 2),
        "layer4": _layer_raw(keys[5], c3, c4, blocks_per_layer, 2),
    }
    return raw, (base, c1, c2, c3, c4)


def _pack_stem(w, b):
    kh, kw, cin, cout = w.shape
    assert cout <= LANE
    wp = jnp.pad(w, ((0, 0), (0, 0), (0, 0), (0, LANE - cout))).astype(jnp.bfloat16)
    return (wp.reshape(kh, kw * cin, LANE),
            jnp.pad(b, (0, LANE - cout)).reshape(1, LANE).astype(jnp.float32))


def _pack_block(bp):
    kh, kw, cin, cmid = bp["w1"].shape
    cout = bp["w2"].shape[3]
    assert cmid <= LANE and cout <= LANE
    w1p = jnp.pad(bp["w1"], ((0, 0), (0, 0), (0, 0), (0, LANE - cmid))).astype(jnp.bfloat16)
    w1t = w1p.reshape(kh, kw * cin, LANE)
    w2p = jnp.pad(bp["w2"], ((0, 0), (0, 0), (0, LANE - cmid),
                             (0, LANE - cout))).astype(jnp.bfloat16)
    p = {
        "b1": jnp.pad(bp["b1"], (0, LANE - cmid)).reshape(1, LANE).astype(jnp.float32),
        "b2": jnp.pad(bp["b2"], (0, LANE - cout)).reshape(1, LANE).astype(jnp.float32),
        "w2": w2p.reshape(kh, kw * LANE, LANE),
    }
    if "wd" in bp:
        # Fold the 1x1/stride-s downsample into conv1's centre tap as extra
        # GEMM output columns (N = 256).
        wdp = jnp.pad(bp["wd"][0, 0], ((0, 0), (0, LANE - cout))).astype(jnp.bfloat16)
        extra = jnp.zeros((kh, kw * cin, LANE), jnp.bfloat16)
        extra = extra.at[1, cin:2 * cin, :].set(wdp)
        w1t = jnp.concatenate([w1t, extra], axis=-1)
        p["bd"] = jnp.pad(bp["bd"], (0, LANE - cout)).reshape(1, LANE).astype(jnp.float32)
    p["w1"] = w1t
    return p


def pack_params(raw):
    cw, cb = _pack_stem(raw["conv1"]["w"], raw["conv1"]["b"])
    packed = {"conv1_w": cw, "conv1_b": cb}
    for name in ("layer1", "layer2", "layer3", "layer4"):
        packed[name] = [_pack_block(bp) for bp in raw[name]]
    return packed


# ---------------------------------------------------------------------------
# Pure-JAX reference (mirrors the kernels' bf16 rounding points)
# ---------------------------------------------------------------------------
def _ref_conv(x, w, b, stride, padding):
    y = jax.lax.conv_general_dilated(
        x.astype(jnp.float32),
        w.astype(jnp.bfloat16).astype(jnp.float32),
        window_strides=(stride, stride),
        padding=[(padding, padding), (padding, padding)],
        dimension_numbers=("NHWC", "HWIO", "NHWC"),
        precision=jax.lax.Precision.HIGHEST)
    return y + b.astype(jnp.float32).reshape(1, 1, 1, -1)


def _ref_pool(x):
    y = jax.lax.reduce_window(
        x.astype(jnp.float32), -jnp.inf, jax.lax.max,
        (1, 3, 3, 1), (1, 2, 2, 1), [(0, 0), (1, 1), (1, 1), (0, 0)])
    return y.astype(jnp.bfloat16)


def _ref_block(x, bp, stride):
    y1 = jnp.maximum(_ref_conv(x, bp["w1"], bp["b1"], stride, 1), 0.0).astype(jnp.bfloat16)
    y2 = _ref_conv(y1, bp["w2"], bp["b2"], 1, 1)
    if "wd" in bp:
        identity = _ref_conv(x, bp["wd"], bp["bd"], stride, 0)
    else:
        identity = x.astype(jnp.float32)
    return jnp.maximum(y2 + identity, 0.0).astype(jnp.bfloat16)


def _ref_layer(x, blocks, stride):
    x = _ref_block(x, blocks[0], stride)
    for bp in blocks[1:]:
        x = _ref_block(x, bp, 1)
    return x


def encode_uv_reference(x_nchw, raw, *, channels):
    x = jnp.transpose(x_nchw, (0, 2, 3, 1)).astype(jnp.bfloat16)
    x0 = jnp.maximum(_ref_conv(x, raw["conv1"]["w"], raw["conv1"]["b"], 2, 3),
                     0.0).astype(jnp.bfloat16)
    xm = _ref_pool(x0)
    x1 = _ref_layer(xm, raw["layer1"], 1)
    x2 = _ref_layer(x1, raw["layer2"], 2)
    x3 = _ref_layer(x2, raw["layer3"], 2)
    x4 = _ref_layer(x3, raw["layer4"], 2)

    def to_nchw(t, c):
        return jnp.transpose(t[..., :c], (0, 3, 1, 2)).astype(jnp.float32)

    return (to_nchw(x0, channels[0]), to_nchw(x4, channels[4]),
            to_nchw(x3, channels[3]), to_nchw(x2, channels[2]),
            to_nchw(x1, channels[1]))


if __name__ == "__main__":
    key = jax.random.PRNGKey(0)
    kp, kx = jax.random.split(key)
    raw_params, channels = init_encode_uv_params(kp)
    params = pack_params(raw_params)
    x = jax.random.normal(kx, (2, 3, 32, 32), jnp.float32)    # NCHW like PyTorch

    fwd = jax.jit(functools.partial(encode_uv, channels=channels))
    outs = jax.block_until_ready(fwd(x, params))

    # (x0, x4, x3, x2, x1) with the ResNet spatial pyramid.
    expected = [(2, 16, 16, 16), (2, 128, 1, 1), (2, 64, 2, 2),
                (2, 32, 4, 4), (2, 16, 8, 8)]
    assert [tuple(o.shape) for o in outs] == expected, [tuple(o.shape) for o in outs]
    assert all(bool(jnp.all(jnp.isfinite(o))) for o in outs)

    # Numerical check against a pure-JAX reference with identical bf16 rounding
    # points (remaining differences are f32 summation order only).
    refs = jax.jit(functools.partial(encode_uv_reference, channels=channels))(x, raw_params)
    for o, r in zip(outs, refs):
        err = float(jnp.max(jnp.abs(o - r)) / (jnp.max(jnp.abs(r)) + 1e-6))
        assert err < 0.05, err

    print("KERNEL_OK")
</pallas_src>

<mosaic_0001>
module attributes {stable_mosaic.version = 11 : i64} {
  func.func @_stem_kernel(%arg0: i32, %arg1: memref<2x304x21xbf16, #tpu.memory_space<vmem>>, %arg2: memref<7x21x128xbf16, #tpu.memory_space<vmem>>, %arg3: memref<1x128xf32, #tpu.memory_space<vmem>>, %arg4: memref<1x256x128xbf16, #tpu.memory_space<vmem>>) attributes {dimension_semantics = [#tpu.dimension_semantics<parallel>], iteration_bounds = array<i64: 2>, scalar_prefetch = 0 : i64, scratch_operands = 0 : i64, tpu.core_type = #tpu.core_type<tc>, window_params = [{transform_indices = @transform_0, window_bounds = array<i64: 2, 304, 21>}, {pipeline_mode = #tpu.pipeline_mode<synchronous>, transform_indices = @transform_1, window_bounds = array<i64: 7, 21, 128>}, {pipeline_mode = #tpu.pipeline_mode<synchronous>, transform_indices = @transform_2, window_bounds = array<i64: 1, 128>}, {transform_indices = @transform_3, window_bounds = array<i64: 1, 256, 128>}]} {
    %cst = arith.constant 0.000000e+00 : f32
    %0 = vector.broadcast %cst : f32 to vector<256x128xf32>
    %c0 = arith.constant 0 : index
    %c0_0 = arith.constant 0 : index
    %c0_1 = arith.constant 0 : index
    %1 = vector.load %arg1[%c0, %c0_0, %c0_1] : memref<2x304x21xbf16, #tpu.memory_space<vmem>>, vector<1x256x21xbf16>
    %2 = vector.shape_cast %1 : vector<1x256x21xbf16> to vector<256x21xbf16>
    %c0_2 = arith.constant 0 : index
    %c0_3 = arith.constant 0 : index
    %c0_4 = arith.constant 0 : index
    %3 = vector.load %arg2[%c0_2, %c0_3, %c0_4] : memref<7x21x128xbf16, #tpu.memory_space<vmem>>, vector<1x21x128xbf16>
    %4 = vector.shape_cast %3 : vector<1x21x128xbf16> to vector<21x128xbf16>
    %cst_5 = arith.constant dense<0.000000e+00> : vector<256x128xf32>
    %5 = tpu.matmul %2, %4, %cst_5 {dimension_numbers = #tpu.dot_dimension_numbers<[1], [0], [0], [1], [0, 0, 1, 1], [], []>} : vector<256x21xbf16>, vector<21x128xbf16>, vector<256x128xf32> -> vector<256x128xf32>
    %6 = arith.addf %0, %5 : vector<256x128xf32>
    %c1 = arith.constant 1 : index
    %c0_6 = arith.constant 0 : index
    %c0_7 = arith.constant 0 : index
    %7 = vector.load %arg1[%c1, %c0_6, %c0_7] : memref<2x304x21xbf16, #tpu.memory_space<vmem>>, vector<1x256x21xbf16>
    %8 = vector.shape_cast %7 : vector<1x256x21xbf16> to vector<256x21xbf16>
    %c1_8 = arith.constant 1 : index
    %c0_9 = arith.constant 0 : index
    %c0_10 = arith.constant 0 : index
    %9 = vector.load %arg2[%c1_8, %c0_9, %c0_10] : memref<7x21x128xbf16, #tpu.memory_space<vmem>>, vector<1x21x128xbf16>
    %10 = vector.shape_cast %9 : vector<1x21x128xbf16> to vector<21x128xbf16>
    %cst_11 = arith.constant dense<0.000000e+00> : vector<256x128xf32>
    %11 = tpu.matmul %8, %10, %cst_11 {dimension_numbers = #tpu.dot_dimension_numbers<[1], [0], [0], [1], [0, 0, 1, 1], [], []>} : vector<256x21xbf16>, vector<21x128xbf16>, vector<256x128xf32> -> vector<256x128xf32>
    %12 = arith.addf %6, %11 : vector<256x128xf32>
    %c0_12 = arith.constant 0 : index
    %c16 = arith.constant 16 : index
    %c0_13 = arith.constant 0 : index
    %13 = vector.load %arg1[%c0_12, %c16, %c0_13] : memref<2x304x21xbf16, #tpu.memory_space<vmem>>, vector<1x256x21xbf16>
    %14 = vector.shape_cast %13 : vector<1x256x21xbf16> to vector<256x21xbf16>
    %c2 = arith.constant 2 : index
    %c0_14 = arith.constant 0 : index
    %c0_15 = arith.constant 0 : index
    %15 = vector.load %arg2[%c2, %c0_14, %c0_15] : memref<7x21x128xbf16, #tpu.memory_space<vmem>>, vector<1x21x128xbf16>
    %16 = vector.shape_cast %15 : vector<1x21x128xbf16> to vector<21x128xbf16>
    %cst_16 = arith.constant dense<0.000000e+00> : vector<256x128xf32>
    %17 = tpu.matmul %14, %16, %cst_16 {dimension_numbers = #tpu.dot_dimension_numbers<[1], [0], [0], [1], [0, 0, 1, 1], [], []>} : vector<256x21xbf16>, vector<21x128xbf16>, vector<256x128xf32> -> vector<256x128xf32>
    %18 = arith.addf %12, %17 : vector<256x128xf32>
    %c1_17 = arith.constant 1 : index
    %c16_18 = arith.constant 16 : index
    %c0_19 = arith.constant 0 : index
    %19 = vector.load %arg1[%c1_17, %c16_18, %c0_19] : memref<2x304x21xbf16, #tpu.memory_space<vmem>>, vector<1x256x21xbf16>
    %20 = vector.shape_cast %19 : vector<1x256x21xbf16> to vector<256x21xbf16>
    %c3 = arith.constant 3 : index
    %c0_20 = arith.constant 0 : index
    %c0_21 = arith.constant 0 : index
    %21 = vector.load %arg2[%c3, %c0_20, %c0_21] : memref<7x21x128xbf16, #tpu.memory_space<vmem>>, vector<1x21x128xbf16>
    %22 = vector.shape_cast %21 : vector<1x21x128xbf16> to vector<21x128xbf16>
    %cst_22 = arith.constant dense<0.000000e+00> : vector<256x128xf32>
    %23 = tpu.matmul %20, %22, %cst_22 {dimension_numbers = #tpu.dot_dimension_numbers<[1], [0], [0], [1], [0, 0, 1, 1], [], []>} : vector<256x21xbf16>, vector<21x128xbf16>, vector<256x128xf32> -> vector<256x128xf32>
    %24 = arith.addf %18, %23 : vector<256x128xf32>
    %c0_23 = arith.constant 0 : index
    %c32 = arith.constant 32 : index
    %c0_24 = arith.constant 0 : index
    %25 = vector.load %arg1[%c0_23, %c32, %c0_24] : memref<2x304x21xbf16, #tpu.memory_space<vmem>>, vector<1x256x21xbf16>
    %26 = vector.shape_cast %25 : vector<1x256x21xbf16> to vector<256x21xbf16>
    %c4 = arith.constant 4 : index
    %c0_25 = arith.constant 0 : index
    %c0_26 = arith.constant 0 : index
    %27 = vector.load %arg2[%c4, %c0_25, %c0_26] : memref<7x21x128xbf16, #tpu.memory_space<vmem>>, vector<1x21x128xbf16>
    %28 = vector.shape_cast %27 : vector<1x21x128xbf16> to vector<21x128xbf16>
    %cst_27 = arith.constant dense<0.000000e+00> : vector<256x128xf32>
    %29 = tpu.matmul %26, %28, %cst_27 {dimension_numbers = #tpu.dot_dimension_numbers<[1], [0], [0], [1], [0, 0, 1, 1], [], []>} : vector<256x21xbf16>, vector<21x128xbf16>, vector<256x128xf32> -> vector<256x128xf32>
    %30 = arith.addf %24, %29 : vector<256x128xf32>
    %c1_28 = arith.constant 1 : index
    %c32_29 = arith.constant 32 : index
    %c0_30 = arith.constant 0 : index
    %31 = vector.load %arg1[%c1_28, %c32_29, %c0_30] : memref<2x304x21xbf16, #tpu.memory_space<vmem>>, vector<1x256x21xbf16>
    %32 = vector.shape_cast %31 : vector<1x256x21xbf16> to vector<256x21xbf16>
    %c5 = arith.constant 5 : index
    %c0_31 = arith.constant 0 : index
    %c0_32 = arith.constant 0 : index
    %33 = vector.load %arg2[%c5, %c0_31, %c0_32] : memref<7x21x128xbf16, #tpu.memory_space<vmem>>, vector<1x21x128xbf16>
    %34 = vector.shape_cast %33 : vector<1x21x128xbf16> to vector<21x128xbf16>
    %cst_33 = arith.constant dense<0.000000e+00> : vector<256x128xf32>
    %35 = tpu.matmul %32, %34, %cst_33 {dimension_numbers = #tpu.dot_dimension_numbers<[1], [0], [0], [1], [0, 0, 1, 1], [], []>} : vector<256x21xbf16>, vector<21x128xbf16>, vector<256x128xf32> -> vector<256x128xf32>
    %36 = arith.addf %30, %35 : vector<256x128xf32>
    %c0_34 = arith.constant 0 : index
    %c48 = arith.constant 48 : index
    %c0_35 = arith.constant 0 : index
    %37 = vector.load %arg1[%c0_34, %c48, %c0_35] : memref<2x304x21xbf16, #tpu.memory_space<vmem>>, vector<1x256x21xbf16>
    %38 = vector.shape_cast %37 : vector<1x256x21xbf16> to vector<256x21xbf16>
    %c6 = arith.constant 6 : index
    %c0_36 = arith.constant 0 : index
    %c0_37 = arith.constant 0 : index
    %39 = vector.load %arg2[%c6, %c0_36, %c0_37] : memref<7x21x128xbf16, #tpu.memory_space<vmem>>, vector<1x21x128xbf16>
    %40 = vector.shape_cast %39 : vector<1x21x128xbf16> to vector<21x128xbf16>
    %cst_38 = arith.constant dense<0.000000e+00> : vector<256x128xf32>
    %41 = tpu.matmul %38, %40, %cst_38 {dimension_numbers = #tpu.dot_dimension_numbers<[1], [0], [0], [1], [0, 0, 1, 1], [], []>} : vector<256x21xbf16>, vector<21x128xbf16>, vector<256x128xf32> -> vector<256x128xf32>
    %42 = arith.addf %36, %41 : vector<256x128xf32>
    %c0_39 = arith.constant 0 : index
    %c0_40 = arith.constant 0 : index
    %43 = vector.load %arg3[%c0_39, %c0_40] : memref<1x128xf32, #tpu.memory_space<vmem>>, vector<1x128xf32>
    %44 = vector.broadcast %43 : vector<1x128xf32> to vector<256x128xf32>
    %45 = arith.addf %42, %44 : vector<256x128xf32>
    %cst_41 = arith.constant 0.000000e+00 : f32
    %46 = vector.broadcast %cst_41 : f32 to vector<256x128xf32>
    %47 = arith.maximumf %45, %46 : vector<256x128xf32>
    %48 = arith.truncf %47 : vector<256x128xf32> to vector<256x128xbf16>
    %c0_42 = arith.constant 0 : index
    %c0_43 = arith.constant 0 : index
    %c0_44 = arith.constant 0 : index
    %49 = vector.load %arg4[%c0_42, %c0_43, %c0_44] : memref<1x256x128xbf16, #tpu.memory_space<vmem>>, vector<1x256x128xbf16>
    %50 = vector.shape_cast %49 : vector<1x256x128xbf16> to vector<256x128xbf16>
    %51 = vector.shape_cast %48 : vector<256x128xbf16> to vector<1x256x128xbf16>
    tpu.vector_store %arg4[%c0_42, %c0_43, %c0_44], %51 {strides = array<i32>} : memref<1x256x128xbf16, #tpu.memory_space<vmem>>, vector<1x256x128xbf16>,
    return
  }
  func.func @transform_0(%arg0: i32) -> (i32, i32, i32) {
    %c0_i32 = arith.constant 0 : i32
    %c0_i32_0 = arith.constant 0 : i32
    %c0_i32_1 = arith.constant 0 : i32
    return %arg0, %c0_i32, %c0_i32_0 : i32, i32, i32
  }
  func.func @transform_1(%arg0: i32) -> (i32, i32, i32) {
    %c0_i32 = arith.constant 0 : i32
    %c0_i32_0 = arith.constant 0 : i32
    %c0_i32_1 = arith.constant 0 : i32
    %c0_i32_2 = arith.constant 0 : i32
    return %c0_i32, %c0_i32_0, %c0_i32_1 : i32, i32, i32
  }
  func.func @transform_2(%arg0: i32) -> (i32, i32) {
    %c0_i32 = arith.constant 0 : i32
    %c0_i32_0 = arith.constant 0 : i32
    %c0_i32_1 = arith.constant 0 : i32
    return %c0_i32, %c0_i32_0 : i32, i32
  }
  func.func @transform_3(%arg0: i32) -> (i32, i32, i32) {
    %c0_i32 = arith.constant 0 : i32
    %c0_i32_0 = arith.constant 0 : i32
    %c0_i32_1 = arith.constant 0 : i32
    return %arg0, %c0_i32, %c0_i32_0 : i32, i32, i32
  }
}

module attributes {stable_mosaic.version = 11 : i64} {
  func.func @_maxpool_kernel(%arg0: i32, %arg1: memref<4x9x9x128xbf16, #tpu.memory_space<vmem>>, %arg2: memref<1x8x8x128xbf16, #tpu.memory_space<vmem>>) attributes {dimension_semantics = [#tpu.dimension_semantics<parallel>], iteration_bounds = array<i64: 2>, scalar_prefetch = 0 : i64, scratch_operands = 0 : i64, tpu.core_type = #tpu.core_type<tc>, window_params = [{transform_indices = @transform_0, window_bounds = array<i64: 4, 9, 9, 128>}, {transform_indices = @transform_1, window_bounds = array<i64: 1, 8, 8, 128>}]} {
    %c0 = arith.constant 0 : index
    %c0_0 = arith.constant 0 : index
    %c0_1 = arith.constant 0 : index
    %c0_2 = arith.constant 0 : index
    %0 = vector.load %arg1[%c0, %c0_0, %c0_1, %c0_2] : memref<4x9x9x128xbf16, #tpu.memory_space<vmem>>, vector<1x8x8x128xbf16>
    %1 = vector.shape_cast %0 : vector<1x8x8x128xbf16> to vector<8x8x128xbf16>
    %c1 = arith.constant 1 : index
    %c0_3 = arith.constant 0 : index
    %c0_4 = arith.constant 0 : index
    %c0_5 = arith.constant 0 : index
    %2 = vector.load %arg1[%c1, %c0_3, %c0_4, %c0_5] : memref<4x9x9x128xbf16, #tpu.memory_space<vmem>>, vector<1x8x8x128xbf16>
    %3 = vector.shape_cast %2 : vector<1x8x8x128xbf16> to vector<8x8x128xbf16>
    %4 = arith.maximumf %1, %3 : vector<8x8x128xbf16>
    %c0_6 = arith.constant 0 : index
    %c0_7 = arith.constant 0 : index
    %c1_8 = arith.constant 1 : index
    %c0_9 = arith.constant 0 : index
    %5 = vector.load %arg1[%c0_6, %c0_7, %c1_8, %c0_9] : memref<4x9x9x128xbf16, #tpu.memory_space<vmem>>, vector<1x8x8x128xbf16>
    %6 = vector.shape_cast %5 : vector<1x8x8x128xbf16> to vector<8x8x128xbf16>
    %7 = arith.maximumf %4, %6 : vector<8x8x128xbf16>
    %c2 = arith.constant 2 : index
    %c0_10 = arith.constant 0 : index
    %c0_11 = arith.constant 0 : index
    %c0_12 = arith.constant 0 : index
    %8 = vector.load %arg1[%c2, %c0_10, %c0_11, %c0_12] : memref<4x9x9x128xbf16, #tpu.memory_space<vmem>>, vector<1x8x8x128xbf16>
    %9 = vector.shape_cast %8 : vector<1x8x8x128xbf16> to vector<8x8x128xbf16>
    %10 = arith.maximumf %7, %9 : vector<8x8x128xbf16>
    %c3 = arith.constant 3 : index
    %c0_13 = arith.constant 0 : index
    %c0_14 = arith.constant 0 : index
    %c0_15 = arith.constant 0 : index
    %11 = vector.load %arg1[%c3, %c0_13, %c0_14, %c0_15] : memref<4x9x9x128xbf16, #tpu.memory_space<vmem>>, vector<1x8x8x128xbf16>
    %12 = vector.shape_cast %11 : vector<1x8x8x128xbf16> to vector<8x8x128xbf16>
    %13 = arith.maximumf %10, %12 : vector<8x8x128xbf16>
    %c2_16 = arith.constant 2 : index
    %c0_17 = arith.constant 0 : index
    %c1_18 = arith.constant 1 : index
    %c0_19 = arith.constant 0 : index
    %14 = vector.load %arg1[%c2_16, %c0_17, %c1_18, %c0_19] : memref<4x9x9x128xbf16, #tpu.memory_space<vmem>>, vector<1x8x8x128xbf16>
    %15 = vector.shape_cast %14 : vector<1x8x8x128xbf16> to vector<8x8x128xbf16>
    %16 = arith.maximumf %13, %15 : vector<8x8x128xbf16>
    %c0_20 = arith.constant 0 : index
    %c1_21 = arith.constant 1 : index
    %c0_22 = arith.constant 0 : index
    %c0_23 = arith.constant 0 : index
    %17 = vector.load %arg1[%c0_20, %c1_21, %c0_22, %c0_23] : memref<4x9x9x128xbf16, #tpu.memory_space<vmem>>, vector<1x8x8x128xbf16>
    %18 = vector.shape_cast %17 : vector<1x8x8x128xbf16> to vector<8x8x128xbf16>
    %19 = arith.maximumf %16, %18 : vector<8x8x128xbf16>
    %c1_24 = arith.constant 1 : index
    %c1_25 = arith.constant 1 : index
    %c0_26 = arith.constant 0 : index
    %c0_27 = arith.constant 0 : index
    %20 = vector.load %arg1[%c1_24, %c1_25, %c0_26, %c0_27] : memref<4x9x9x128xbf16, #tpu.memory_space<vmem>>, vector<1x8x8x128xbf16>
    %21 = vector.shape_cast %20 : vector<1x8x8x128xbf16> to vector<8x8x128xbf16>
    %22 = arith.maximumf %19, %21 : vector<8x8x128xbf16>
    %c0_28 = arith.constant 0 : index
    %c1_29 = arith.constant 1 : index
    %c1_30 = arith.constant 1 : index
    %c0_31 = arith.constant 0 : index
    %23 = vector.load %arg1[%c0_28, %c1_29, %c1_30, %c0_31] : memref<4x9x9x128xbf16, #tpu.memory_space<vmem>>, vector<1x8x8x128xbf16>
    %24 = vector.shape_cast %23 : vector<1x8x8x128xbf16> to vector<8x8x128xbf16>
    %25 = arith.maximumf %22, %24 : vector<8x8x128xbf16>
    %c0_32 = arith.constant 0 : index
    %c0_33 = arith.constant 0 : index
    %c0_34 = arith.constant 0 : index
    %c0_35 = arith.constant 0 : index
    %26 = vector.load %arg2[%c0_32, %c0_33, %c0_34, %c0_35] : memref<1x8x8x128xbf16, #tpu.memory_space<vmem>>, vector<1x8x8x128xbf16>
    %27 = vector.shape_cast %26 : vector<1x8x8x128xbf16> to vector<8x8x128xbf16>
    %28 = vector.shape_cast %25 : vector<8x8x128xbf16> to vector<1x8x8x128xbf16>
    tpu.vector_store %arg2[%c0_32, %c0_33, %c0_34, %c0_35], %28 {strides = array<i32>} : memref<1x8x8x128xbf16, #tpu.memory_space<vmem>>, vector<1x8x8x128xbf16>,
    return
  }
  func.func @transform_0(%arg0: i32) -> (i32, i32, i32, i32) {
    %c0_i32 = arith.constant 0 : i32
    %c0_i32_0 = arith.constant 0 : i32
    %c0_i32_1 = arith.constant 0 : i32
    %c0_i32_2 = arith.constant 0 : i32
    return %arg0, %c0_i32, %c0_i32_0, %c0_i32_1 : i32, i32, i32, i32
  }
  func.func @transform_1(%arg0: i32) -> (i32, i32, i32, i32) {
    %c0_i32 = arith.constant 0 : i32
    %c0_i32_0 = arith.constant 0 : i32
    %c0_i32_1 = arith.constant 0 : i32
    %c0_i32_2 = arith.constant 0 : i32
    return %arg0, %c0_i32, %c0_i32_0, %c0_i32_1 : i32, i32, i32, i32
  }
}

module attributes {stable_mosaic.version = 11 : i64} {
  func.func @_block_kernel(%arg0: i32, %arg1: memref<1x80x48xbf16, #tpu.memory_space<vmem>>, %arg2: memref<3x48x128xbf16, #tpu.memory_space<vmem>>, %arg3: memref<1x128xf32, #tpu.memory_space<vmem>>, %arg4: memref<3x384x128xbf16, #tpu.memory_space<vmem>>, %arg5: memref<1x128xf32, #tpu.memory_space<vmem>>, %arg6: memref<1x64x128xbf16, #tpu.memory_space<vmem>>, %arg7: memref<1x64x128xbf16, #tpu.memory_space<vmem>>, %arg8: memref<80x384xbf16, #tpu.memory_space<vmem>>) attributes {dimension_semantics = [#tpu.dimension_semantics<parallel>], iteration_bounds = array<i64: 2>, scalar_prefetch = 0 : i64, scratch_operands = 1 : i64, tpu.core_type = #tpu.core_type<tc>, window_params = [{transform_indices = @transform_0, window_bounds = array<i64: 1, 80, 48>}, {pipeline_mode = #tpu.pipeline_mode<synchronous>, transform_indices = @transform_1, window_bounds = array<i64: 3, 48, 128>}, {pipeline_mode = #tpu.pipeline_mode<synchronous>, transform_indices = @transform_2, window_bounds = array<i64: 1, 128>}, {pipeline_mode = #tpu.pipeline_mode<synchronous>, transform_indices = @transform_3, window_bounds = array<i64: 3, 384, 128>}, {pipeline_mode = #tpu.pipeline_mode<synchronous>, transform_indices = @transform_4, window_bounds = array<i64: 1, 128>}, {transform_indices = @transform_5, window_bounds = array<i64: 1, 64, 128>}, {transform_indices = @transform_6, window_bounds = array<i64: 1, 64, 128>}]} {
    %cst = arith.constant 0.000000e+00 : f32
    %0 = vector.broadcast %cst : f32 to vector<64x128xf32>
    %c0 = arith.constant 0 : index
    %c0_0 = arith.constant 0 : index
    %c0_1 = arith.constant 0 : index
    %1 = vector.load %arg1[%c0, %c0_0, %c0_1] : memref<1x80x48xbf16, #tpu.memory_space<vmem>>, vector<1x64x48xbf16>
    %2 = vector.shape_cast %1 : vector<1x64x48xbf16> to vector<64x48xbf16>
    %c0_2 = arith.constant 0 : index
    %c0_3 = arith.constant 0 : index
    %c0_4 = arith.constant 0 : index
    %3 = vector.load %arg2[%c0_2, %c0_3, %c0_4] : memref<3x48x128xbf16, #tpu.memory_space<vmem>>, vector<1x48x128xbf16>
    %4 = vector.shape_cast %3 : vector<1x48x128xbf16> to vector<48x128xbf16>
    %cst_5 = arith.constant dense<0.000000e+00> : vector<64x128xf32>
    %5 = tpu.matmul %2, %4, %cst_5 {dimension_numbers = #tpu.dot_dimension_numbers<[1], [0], [0], [1], [0, 0, 1, 1], [], []>} : vector<64x48xbf16>, vector<48x128xbf16>, vector<64x128xf32> -> vector<64x128xf32>
    %6 = arith.addf %0, %5 : vector<64x128xf32>
    %c0_6 = arith.constant 0 : index
    %c8 = arith.constant 8 : index
    %c0_7 = arith.constant 0 : index
    %7 = vector.load %arg1[%c0_6, %c8, %c0_7] : memref<1x80x48xbf16, #tpu.memory_space<vmem>>, vector<1x64x48xbf16>
    %8 = vector.shape_cast %7 : vector<1x64x48xbf16> to vector<64x48xbf16>
    %c1 = arith.constant 1 : index
    %c0_8 = arith.constant 0 : index
    %c0_9 = arith.constant 0 : index
    %9 = vector.load %arg2[%c1, %c0_8, %c0_9] : memref<3x48x128xbf16, #tpu.memory_space<vmem>>, vector<1x48x128xbf16>
    %10 = vector.shape_cast %9 : vector<1x48x128xbf16> to vector<48x128xbf16>
    %cst_10 = arith.constant dense<0.000000e+00> : vector<64x128xf32>
    %11 = tpu.matmul %8, %10, %cst_10 {dimension_numbers = #tpu.dot_dimension_numbers<[1], [0], [0], [1], [0, 0, 1, 1], [], []>} : vector<64x48xbf16>, vector<48x128xbf16>, vector<64x128xf32> -> vector<64x128xf32>
    %12 = arith.addf %6, %11 : vector<64x128xf32>
    %c0_11 = arith.constant 0 : index
    %c16 = arith.constant 16 : index
    %c0_12 = arith.constant 0 : index
    %13 = vector.load %arg1[%c0_11, %c16, %c0_12] : memref<1x80x48xbf16, #tpu.memory_space<vmem>>, vector<1x64x48xbf16>
    %14 = vector.shape_cast %13 : vector<1x64x48xbf16> to vector<64x48xbf16>
    %c2 = arith.constant 2 : index
    %c0_13 = arith.constant 0 : index
    %c0_14 = arith.constant 0 : index
    %15 = vector.load %arg2[%c2, %c0_13, %c0_14] : memref<3x48x128xbf16, #tpu.memory_space<vmem>>, vector<1x48x128xbf16>
    %16 = vector.shape_cast %15 : vector<1x48x128xbf16> to vector<48x128xbf16>
    %cst_15 = arith.constant dense<0.000000e+00> : vector<64x128xf32>
    %17 = tpu.matmul %14, %16, %cst_15 {dimension_numbers = #tpu.dot_dimension_numbers<[1], [0], [0], [1], [0, 0, 1, 1], [], []>} : vector<64x48xbf16>, vector<48x128xbf16>, vector<64x128xf32> -> vector<64x128xf32>
    %18 = arith.addf %12, %17 : vector<64x128xf32>
    %c0_16 = arith.constant 0 : index
    %c0_17 = arith.constant 0 : index
    %19 = vector.load %arg3[%c0_16, %c0_17] : memref<1x128xf32, #tpu.memory_space<vmem>>, vector<1x128xf32>
    %20 = vector.broadcast %19 : vector<1x128xf32> to vector<64x128xf32>
    %21 = arith.addf %18, %20 : vector<64x128xf32>
    %cst_18 = arith.constant 0.000000e+00 : f32
    %22 = vector.broadcast %cst_18 : f32 to vector<64x128xf32>
    %23 = arith.maximumf %21, %22 : vector<64x128xf32>
    %24 = arith.truncf %23 : vector<64x128xf32> to vector<64x128xbf16>
    %c0_19 = arith.constant 0 : index
    %c0_20 = arith.constant 0 : index
    %c0_21 = arith.constant 0 : index
    %25 = vector.load %arg6[%c0_19, %c0_20, %c0_21] : memref<1x64x128xbf16, #tpu.memory_space<vmem>>, vector<1x64x128xbf16>
    %26 = vector.shape_cast %25 : vector<1x64x128xbf16> to vector<64x128xbf16>
    %27 = arith.extf %26 : vector<64x128xbf16> to vector<64x128xf32>
    %cst_22 = arith.constant 0.000000e+00 : bf16
    %28 = vector.broadcast %cst_22 : bf16 to vector<80x384xbf16>
    %c0_23 = arith.constant 0 : index
    %c0_24 = arith.constant 0 : index
    %29 = vector.load %arg8[%c0_23, %c0_24] : memref<80x384xbf16, #tpu.memory_space<vmem>>, vector<80x384xbf16>
    tpu.vector_store %arg8[%c0_23, %c0_24], %28 {strides = array<i32>} : memref<80x384xbf16, #tpu.memory_space<vmem>>, vector<80x384xbf16>,
    %c8_25 = arith.constant 8 : index
    %c128 = arith.constant 128 : index
    %30 = vector.load %arg8[%c8_25, %c128] : memref<80x384xbf16, #tpu.memory_space<vmem>>, vector<64x128xbf16>
    tpu.vector_store %arg8[%c8_25, %c128], %24 {strides = array<i32>} : memref<80x384xbf16, #tpu.memory_space<vmem>>, vector<64x128xbf16>,
    %31 = tpu.iota {dimensions = array<i32: 0>} : vector<64x1xi32>
    %c8_i32 = arith.constant 8 : i32
    %c0_i32 = arith.constant 0 : i32
    %32 = arith.cmpi eq, %c8_i32, %c0_i32 : i32
    %c1_i32 = arith.constant 1 : i32
    %33 = arith.select %32, %c1_i32, %c8_i32 : i32
    %34 = vector.broadcast %33 : i32 to vector<64x1xi32>
    %35 = arith.remsi %31, %34 : vector<64x1xi32>
    %c0_i32_26 = arith.constant 0 : i32
    %36 = vector.broadcast %c0_i32_26 : i32 to vector<64x1xi32>
    %37 = arith.cmpi ne, %35, %36 : vector<64x1xi32>
    %c0_i32_27 = arith.constant 0 : i32
    %38 = vector.broadcast %c0_i32_27 : i32 to vector<64x1xi32>
    %39 = arith.cmpi slt, %35, %38 : vector<64x1xi32>
    %c0_i32_28 = arith.constant 0 : i32
    %40 = arith.cmpi slt, %33, %c0_i32_28 : i32
    %41 = vector.broadcast %40 : i1 to vector<64x1xi1>
    %42 = vector.broadcast %41 : vector<64x1xi1> to vector<64x1xi1>
    %43 = arith.xori %39, %42 : vector<64x1xi1>
    %44 = arith.andi %43, %37 : vector<64x1xi1>
    %45 = vector.broadcast %33 : i32 to vector<64x1xi32>
    %46 = arith.addi %35, %45 : vector<64x1xi32>
    %47 = arith.select %44, %46, %35 : vector<64x1xi1>, vector<64x1xi32>
    %c7_i32 = arith.constant 7 : i32
    %48 = vector.broadcast %c7_i32 : i32 to vector<64x1xi32>
    %49 = arith.cmpi ne, %47, %48 : vector<64x1xi32>
    %cst_29 = arith.constant 0.000000e+00 : bf16
    %50 = vector.broadcast %cst_29 : bf16 to vector<64x128xbf16>
    %51 = vector.shape_cast %49 : vector<64x1xi1> to vector<64x1xi1>
    %52 = vector.broadcast %51 : vector<64x1xi1> to vector<64x128xi1>
    %53 = arith.select %52, %24, %50 : vector<64x128xi1>, vector<64x128xbf16>
    %c9 = arith.constant 9 : index
    %c0_30 = arith.constant 0 : index
    %54 = vector.load %arg8[%c9, %c0_30] : memref<80x384xbf16, #tpu.memory_space<vmem>>, vector<64x128xbf16>
    tpu.vector_store %arg8[%c9, %c0_30], %53 {strides = array<i32>} : memref<80x384xbf16, #tpu.memory_space<vmem>>, vector<64x128xbf16>,
    %c8_i32_31 = arith.constant 8 : i32
    %c0_i32_32 = arith.constant 0 : i32
    %55 = arith.cmpi eq, %c8_i32_31, %c0_i32_32 : i32
    %c1_i32_33 = arith.constant 1 : i32
    %56 = arith.select %55, %c1_i32_33, %c8_i32_31 : i32
    %57 = vector.broadcast %56 : i32 to vector<64x1xi32>
    %58 = arith.remsi %31, %57 : vector<64x1xi32>
    %c0_i32_34 = arith.constant 0 : i32
    %59 = vector.broadcast %c0_i32_34 : i32 to vector<64x1xi32>
    %60 = arith.cmpi ne, %58, %59 : vector<64x1xi32>
    %c0_i32_35 = arith.constant 0 : i32
    %61 = vector.broadcast %c0_i32_35 : i32 to vector<64x1xi32>
    %62 = arith.cmpi slt, %58, %61 : vector<64x1xi32>
    %c0_i32_36 = arith.constant 0 : i32
    %63 = arith.cmpi slt, %56, %c0_i32_36 : i32
    %64 = vector.broadcast %63 : i1 to vector<64x1xi1>
    %65 = vector.broadcast %64 : vector<64x1xi1> to vector<64x1xi1>
    %66 = arith.xori %62, %65 : vector<64x1xi1>
    %67 = arith.andi %66, %60 : vector<64x1xi1>
    %68 = vector.broadcast %56 : i32 to vector<64x1xi32>
    %69 = arith.addi %58, %68 : vector<64x1xi32>
    %70 = arith.select %67, %69, %58 : vector<64x1xi1>, vector<64x1xi32>
    %c0_i32_37 = arith.constant 0 : i32
    %71 = vector.broadcast %c0_i32_37 : i32 to vector<64x1xi32>
    %72 = arith.cmpi ne, %70, %71 : vector<64x1xi32>
    %cst_38 = arith.constant 0.000000e+00 : bf16
    %73 = vector.broadcast %cst_38 : bf16 to vector<64x128xbf16>
    %74 = vector.shape_cast %72 : vector<64x1xi1> to vector<64x1xi1>
    %75 = vector.broadcast %74 : vector<64x1xi1> to vector<64x128xi1>
    %76 = arith.select %75, %24, %73 : vector<64x128xi1>, vector<64x128xbf16>
    %c7 = arith.constant 7 : index
    %c256 = arith.constant 256 : index
    %77 = vector.load %arg8[%c7, %c256] : memref<80x384xbf16, #tpu.memory_space<vmem>>, vector<64x128xbf16>
    tpu.vector_store %arg8[%c7, %c256], %76 {strides = array<i32>} : memref<80x384xbf16, #tpu.memory_space<vmem>>, vector<64x128xbf16>,
    %cst_39 = arith.constant 0.000000e+00 : f32
    %78 = vector.broadcast %cst_39 : f32 to vector<64x128xf32>
    %c0_40 = arith.constant 0 : index
    %c0_41 = arith.constant 0 : index
    %79 = vector.load %arg8[%c0_40, %c0_41] : memref<80x384xbf16, #tpu.memory_space<vmem>>, vector<64x384xbf16>
    %c0_42 = arith.constant 0 : index
    %c0_43 = arith.constant 0 : index
    %c0_44 = arith.constant 0 : index
    %80 = vector.load %arg4[%c0_42, %c0_43, %c0_44] : memref<3x384x128xbf16, #tpu.memory_space<vmem>>, vector<1x384x128xbf16>
    %81 = vector.shape_cast %80 : vector<1x384x128xbf16> to vector<384x128xbf16>
    %cst_45 = arith.constant dense<0.000000e+00> : vector<64x128xf32>
    %82 = tpu.matmul %79, %81, %cst_45 {dimension_numbers = #tpu.dot_dimension_numbers<[1], [0], [0], [1], [0, 0, 1, 1], [], []>} : vector<64x384xbf16>, vector<384x128xbf16>, vector<64x128xf32> -> vector<64x128xf32>
    %83 = arith.addf %78, %82 : vector<64x128xf32>
    %c8_46 = arith.constant 8 : index
    %c0_47 = arith.constant 0 : index
    %84 = vector.load %arg8[%c8_46, %c0_47] : memref<80x384xbf16, #tpu.memory_space<vmem>>, vector<64x384xbf16>
    %c1_48 = arith.constant 1 : index
    %c0_49 = arith.constant 0 : index
    %c0_50 = arith.constant 0 : index
    %85 = vector.load %arg4[%c1_48, %c0_49, %c0_50] : memref<3x384x128xbf16, #tpu.memory_space<vmem>>, vector<1x384x128xbf16>
    %86 = vector.shape_cast %85 : vector<1x384x128xbf16> to vector<384x128xbf16>
    %cst_51 = arith.constant dense<0.000000e+00> : vector<64x128xf32>
    %87 = tpu.matmul %84, %86, %cst_51 {dimension_numbers = #tpu.dot_dimension_numbers<[1], [0], [0], [1], [0, 0, 1, 1], [], []>} : vector<64x384xbf16>, vector<384x128xbf16>, vector<64x128xf32> -> vector<64x128xf32>
    %88 = arith.addf %83, %87 : vector<64x128xf32>
    %c16_52 = arith.constant 16 : index
    %c0_53 = arith.constant 0 : index
    %89 = vector.load %arg8[%c16_52, %c0_53] : memref<80x384xbf16, #tpu.memory_space<vmem>>, vector<64x384xbf16>
    %c2_54 = arith.constant 2 : index
    %c0_55 = arith.constant 0 : index
    %c0_56 = arith.constant 0 : index
    %90 = vector.load %arg4[%c2_54, %c0_55, %c0_56] : memref<3x384x128xbf16, #tpu.memory_space<vmem>>, vector<1x384x128xbf16>
    %91 = vector.shape_cast %90 : vector<1x384x128xbf16> to vector<384x128xbf16>
    %cst_57 = arith.constant dense<0.000000e+00> : vector<64x128xf32>
    %92 = tpu.matmul %89, %91, %cst_57 {dimension_numbers = #tpu.dot_dimension_numbers<[1], [0], [0], [1], [0, 0, 1, 1], [], []>} : vector<64x384xbf16>, vector<384x128xbf16>, vector<64x128xf32> -> vector<64x128xf32>
    %93 = arith.addf %88, %92 : vector<64x128xf32>
    %c0_58 = arith.constant 0 : index
    %c0_59 = arith.constant 0 : index
    %94 = vector.load %arg5[%c0_58, %c0_59] : memref<1x128xf32, #tpu.memory_space<vmem>>, vector<1x128xf32>
    %95 = vector.broadcast %94 : vector<1x128xf32> to vector<64x128xf32>
    %96 = arith.addf %93, %95 : vector<64x128xf32>
    %97 = arith.addf %96, %27 : vector<64x128xf32>
    %cst_60 = arith.constant 0.000000e+00 : f32
    %98 = vector.broadcast %cst_60 : f32 to vector<64x128xf32>
    %99 = arith.maximumf %97, %98 : vector<64x128xf32>
    %100 = arith.truncf %99 : vector<64x128xf32> to vector<64x128xbf16>
    %c0_61 = arith.constant 0 : index
    %c0_62 = arith.constant 0 : index
    %c0_63 = arith.constant 0 : index
    %101 = vector.load %arg7[%c0_61, %c0_62, %c0_63] : memref<1x64x128xbf16, #tpu.memory_space<vmem>>, vector<1x64x128xbf16>
    %102 = vector.shape_cast %101 : vector<1x64x128xbf16> to vector<64x128xbf16>
    %103 = vector.shape_cast %100 : vector<64x128xbf16> to vector<1x64x128xbf16>
    tpu.vector_store %arg7[%c0_61, %c0_62, %c0_63], %103 {strides = array<i32>} : memref<1x64x128xbf16, #tpu.memory_space<vmem>>, vector<1x64x128xbf16>,
    return
  }
  func.func @transform_0(%arg0: i32) -> (i32, i32, i32) {
    %c0_i32 = arith.constant 0 : i32
    %c0_i32_0 = arith.constant 0 : i32
    %c0_i32_1 = arith.constant 0 : i32
    return %arg0, %c0_i32, %c0_i32_0 : i32, i32, i32
  }
  func.func @transform_1(%arg0: i32) -> (i32, i32, i32) {
    %c0_i32 = arith.constant 0 : i32
    %c0_i32_0 = arith.constant 0 : i32
    %c0_i32_1 = arith.constant 0 : i32
    %c0_i32_2 = arith.constant 0 : i32
    return %c0_i32, %c0_i32_0, %c0_i32_1 : i32, i32, i32
  }
  func.func @transform_2(%arg0: i32) -> (i32, i32) {
    %c0_i32 = arith.constant 0 : i32
    %c0_i32_0 = arith.constant 0 : i32
    %c0_i32_1 = arith.constant 0 : i32
    return %c0_i32, %c0_i32_0 : i32, i32
  }
  func.func @transform_3(%arg0: i32) -> (i32, i32, i32) {
    %c0_i32 = arith.constant 0 : i32
    %c0_i32_0 = arith.constant 0 : i32
    %c0_i32_1 = arith.constant 0 : i32
    %c0_i32_2 = arith.constant 0 : i32
    return %c0_i32, %c0_i32_0, %c0_i32_1 : i32, i32, i32
  }
  func.func @transform_4(%arg0: i32) -> (i32, i32) {
    %c0_i32 = arith.constant 0 : i32
    %c0_i32_0 = arith.constant 0 : i32
    %c0_i32_1 = arith.constant 0 : i32
    return %c0_i32, %c0_i32_0 : i32, i32
  }
  func.func @transform_5(%arg0: i32) -> (i32, i32, i32) {
    %c0_i32 = arith.constant 0 : i32
    %c0_i32_0 = arith.constant 0 : i32
    %c0_i32_1 = arith.constant 0 : i32
    return %arg0, %c0_i32, %c0_i32_0 : i32, i32, i32
  }
  func.func @transform_6(%arg0: i32) -> (i32, i32, i32) {
    %c0_i32 = arith.constant 0 : i32
    %c0_i32_0 = arith.constant 0 : i32
    %c0_i32_1 = arith.constant 0 : i32
    return %arg0, %c0_i32, %c0_i32_0 : i32, i32, i32
  }
}

module attributes {stable_mosaic.version = 11 : i64} {
  func.func @_block_kernel(%arg0: i32, %arg1: memref<2x20x48xbf16, #tpu.memory_space<vmem>>, %arg2: memref<3x48x256xbf16, #tpu.memory_space<vmem>>, %arg3: memref<1x128xf32, #tpu.memory_space<vmem>>, %arg4: memref<3x384x128xbf16, #tpu.memory_space<vmem>>, %arg5: memref<1x128xf32, #tpu.memory_space<vmem>>, %arg6: memref<1x128xf32, #tpu.memory_space<vmem>>, %arg7: memref<1x16x128xbf16, #tpu.memory_space<vmem>>, %arg8: memref<24x384xbf16, #tpu.memory_space<vmem>>) attributes {dimension_semantics = [#tpu.dimension_semantics<parallel>], iteration_bounds = array<i64: 2>, scalar_prefetch = 0 : i64, scratch_operands = 1 : i64, tpu.core_type = #tpu.core_type<tc>, window_params = [{transform_indices = @transform_0, window_bounds = array<i64: 2, 20, 48>}, {pipeline_mode = #tpu.pipeline_mode<synchronous>, transform_indices = @transform_1, window_bounds = array<i64: 3, 48, 256>}, {pipeline_mode = #tpu.pipeline_mode<synchronous>, transform_indices = @transform_2, window_bounds = array<i64: 1, 128>}, {pipeline_mode = #tpu.pipeline_mode<synchronous>, transform_indices = @transform_3, window_bounds = array<i64: 3, 384, 128>}, {pipeline_mode = #tpu.pipeline_mode<synchronous>, transform_indices = @transform_4, window_bounds = array<i64: 1, 128>}, {pipeline_mode = #tpu.pipeline_mode<synchronous>, transform_indices = @transform_5, window_bounds = array<i64: 1, 128>}, {transform_indices = @transform_6, window_bounds = array<i64: 1, 16, 128>}]} {
    %cst = arith.constant 0.000000e+00 : f32
    %0 = vector.broadcast %cst : f32 to vector<16x256xf32>
    %c0 = arith.constant 0 : index
    %c0_0 = arith.constant 0 : index
    %c0_1 = arith.constant 0 : index
    %1 = vector.load %arg1[%c0, %c0_0, %c0_1] : memref<2x20x48xbf16, #tpu.memory_space<vmem>>, vector<1x16x48xbf16>
    %2 = vector.shape_cast %1 : vector<1x16x48xbf16> to vector<16x48xbf16>
    %c0_2 = arith.constant 0 : index
    %c0_3 = arith.constant 0 : index
    %c0_4 = arith.constant 0 : index
    %3 = vector.load %arg2[%c0_2, %c0_3, %c0_4] : memref<3x48x256xbf16, #tpu.memory_space<vmem>>, vector<1x48x256xbf16>
    %4 = vector.shape_cast %3 : vector<1x48x256xbf16> to vector<48x256xbf16>
    %cst_5 = arith.constant dense<0.000000e+00> : vector<16x256xf32>
    %5 = tpu.matmul %2, %4, %cst_5 {dimension_numbers = #tpu.dot_dimension_numbers<[1], [0], [0], [1], [0, 0, 1, 1], [], []>} : vector<16x48xbf16>, vector<48x256xbf16>, vector<16x256xf32> -> vector<16x256xf32>
    %6 = arith.addf %0, %5 : vector<16x256xf32>
    %c1 = arith.constant 1 : index
    %c0_6 = arith.constant 0 : index
    %c0_7 = arith.constant 0 : index
    %7 = vector.load %arg1[%c1, %c0_6, %c0_7] : memref<2x20x48xbf16, #tpu.memory_space<vmem>>, vector<1x16x48xbf16>
    %8 = vector.shape_cast %7 : vector<1x16x48xbf16> to vector<16x48xbf16>
    %c1_8 = arith.constant 1 : index
    %c0_9 = arith.constant 0 : index
    %c0_10 = arith.constant 0 : index
    %9 = vector.load %arg2[%c1_8, %c0_9, %c0_10] : memref<3x48x256xbf16, #tpu.memory_space<vmem>>, vector<1x48x256xbf16>
    %10 = vector.shape_cast %9 : vector<1x48x256xbf16> to vector<48x256xbf16>
    %cst_11 = arith.constant dense<0.000000e+00> : vector<16x256xf32>
    %11 = tpu.matmul %8, %10, %cst_11 {dimension_numbers = #tpu.dot_dimension_numbers<[1], [0], [0], [1], [0, 0, 1, 1], [], []>} : vector<16x48xbf16>, vector<48x256xbf16>, vector<16x256xf32> -> vector<16x256xf32>
    %12 = arith.addf %6, %11 : vector<16x256xf32>
    %c0_12 = arith.constant 0 : index
    %c4 = arith.constant 4 : index
    %c0_13 = arith.constant 0 : index
    %13 = vector.load %arg1[%c0_12, %c4, %c0_13] : memref<2x20x48xbf16, #tpu.memory_space<vmem>>, vector<1x16x48xbf16>
    %14 = vector.shape_cast %13 : vector<1x16x48xbf16> to vector<16x48xbf16>
    %c2 = arith.constant 2 : index
    %c0_14 = arith.constant 0 : index
    %c0_15 = arith.constant 0 : index
    %15 = vector.load %arg2[%c2, %c0_14, %c0_15] : memref<3x48x256xbf16, #tpu.memory_space<vmem>>, vector<1x48x256xbf16>
    %16 = vector.shape_cast %15 : vector<1x48x256xbf16> to vector<48x256xbf16>
    %cst_16 = arith.constant dense<0.000000e+00> : vector<16x256xf32>
    %17 = tpu.matmul %14, %16, %cst_16 {dimension_numbers = #tpu.dot_dimension_numbers<[1], [0], [0], [1], [0, 0, 1, 1], [], []>} : vector<16x48xbf16>, vector<48x256xbf16>, vector<16x256xf32> -> vector<16x256xf32>
    %18 = arith.addf %12, %17 : vector<16x256xf32>
    %19 = vector.extract_strided_slice %18 {offsets = [0, 0], sizes = [16, 128], strides = [1, 1]} : vector<16x256xf32> to vector<16x128xf32>
    %c0_17 = arith.constant 0 : index
    %c0_18 = arith.constant 0 : index
    %20 = vector.load %arg3[%c0_17, %c0_18] : memref<1x128xf32, #tpu.memory_space<vmem>>, vector<1x128xf32>
    %21 = vector.broadcast %20 : vector<1x128xf32> to vector<16x128xf32>
    %22 = arith.addf %19, %21 : vector<16x128xf32>
    %cst_19 = arith.constant 0.000000e+00 : f32
    %23 = vector.broadcast %cst_19 : f32 to vector<16x128xf32>
    %24 = arith.maximumf %22, %23 : vector<16x128xf32>
    %25 = arith.truncf %24 : vector<16x128xf32> to vector<16x128xbf16>
    %26 = vector.extract_strided_slice %18 {offsets = [0, 128], sizes = [16, 128], strides = [1, 1]} : vector<16x256xf32> to vector<16x128xf32>
    %c0_20 = arith.constant 0 : index
    %c0_21 = arith.constant 0 : index
    %27 = vector.load %arg6[%c0_20, %c0_21] : memref<1x128xf32, #tpu.memory_space<vmem>>, vector<1x128xf32>
    %28 = vector.broadcast %27 : vector<1x128xf32> to vector<16x128xf32>
    %29 = arith.addf %26, %28 : vector<16x128xf32>
    %cst_22 = arith.constant 0.000000e+00 : bf16
    %30 = vector.broadcast %cst_22 : bf16 to vector<24x384xbf16>
    %c0_23 = arith.constant 0 : index
    %c0_24 = arith.constant 0 : index
    %31 = vector.load %arg8[%c0_23, %c0_24] : memref<24x384xbf16, #tpu.memory_space<vmem>>, vector<24x384xbf16>
    tpu.vector_store %arg8[%c0_23, %c0_24], %30 {strides = array<i32>} : memref<24x384xbf16, #tpu.memory_space<vmem>>, vector<24x384xbf16>,
    %c4_25 = arith.constant 4 : index
    %c128 = arith.constant 128 : index
    %32 = vector.load %arg8[%c4_25, %c128] : memref<24x384xbf16, #tpu.memory_space<vmem>>, vector<16x128xbf16>
    tpu.vector_store %arg8[%c4_25, %c128], %25 {strides = array<i32>} : memref<24x384xbf16, #tpu.memory_space<vmem>>, vector<16x128xbf16>,
    %33 = tpu.iota {dimensions = array<i32: 0>} : vector<16x1xi32>
    %c4_i32 = arith.constant 4 : i32
    %c0_i32 = arith.constant 0 : i32
    %34 = arith.cmpi eq, %c4_i32, %c0_i32 : i32
    %c1_i32 = arith.constant 1 : i32
    %35 = arith.select %34, %c1_i32, %c4_i32 : i32
    %36 = vector.broadcast %35 : i32 to vector<16x1xi32>
    %37 = arith.remsi %33, %36 : vector<16x1xi32>
    %c0_i32_26 = arith.constant 0 : i32
    %38 = vector.broadcast %c0_i32_26 : i32 to vector<16x1xi32>
    %39 = arith.cmpi ne, %37, %38 : vector<16x1xi32>
    %c0_i32_27 = arith.constant 0 : i32
    %40 = vector.broadcast %c0_i32_27 : i32 to vector<16x1xi32>
    %41 = arith.cmpi slt, %37, %40 : vector<16x1xi32>
    %c0_i32_28 = arith.constant 0 : i32
    %42 = arith.cmpi slt, %35, %c0_i32_28 : i32
    %43 = vector.broadcast %42 : i1 to vector<16x1xi1>
    %44 = vector.broadcast %43 : vector<16x1xi1> to vector<16x1xi1>
    %45 = arith.xori %41, %44 : vector<16x1xi1>
    %46 = arith.andi %45, %39 : vector<16x1xi1>
    %47 = vector.broadcast %35 : i32 to vector<16x1xi32>
    %48 = arith.addi %37, %47 : vector<16x1xi32>
    %49 = arith.select %46, %48, %37 : vector<16x1xi1>, vector<16x1xi32>
    %c3_i32 = arith.constant 3 : i32
    %50 = vector.broadcast %c3_i32 : i32 to vector<16x1xi32>
    %51 = arith.cmpi ne, %49, %50 : vector<16x1xi32>
    %cst_29 = arith.constant 0.000000e+00 : bf16
    %52 = vector.broadcast %cst_29 : bf16 to vector<16x128xbf16>
    %53 = vector.shape_cast %51 : vector<16x1xi1> to vector<16x1xi1>
    %54 = vector.broadcast %53 : vector<16x1xi1> to vector<16x128xi1>
    %55 = arith.select %54, %25, %52 : vector<16x128xi1>, vector<16x128xbf16>
    %c5 = arith.constant 5 : index
    %c0_30 = arith.constant 0 : index
    %56 = vector.load %arg8[%c5, %c0_30] : memref<24x384xbf16, #tpu.memory_space<vmem>>, vector<16x128xbf16>
    tpu.vector_store %arg8[%c5, %c0_30], %55 {strides = array<i32>} : memref<24x384xbf16, #tpu.memory_space<vmem>>, vector<16x128xbf16>,
    %c4_i32_31 = arith.constant 4 : i32
    %c0_i32_32 = arith.constant 0 : i32
    %57 = arith.cmpi eq, %c4_i32_31, %c0_i32_32 : i32
    %c1_i32_33 = arith.constant 1 : i32
    %58 = arith.select %57, %c1_i32_33, %c4_i32_31 : i32
    %59 = vector.broadcast %58 : i32 to vector<16x1xi32>
    %60 = arith.remsi %33, %59 : vector<16x1xi32>
    %c0_i32_34 = arith.constant 0 : i32
    %61 = vector.broadcast %c0_i32_34 : i32 to vector<16x1xi32>
    %62 = arith.cmpi ne, %60, %61 : vector<16x1xi32>
    %c0_i32_35 = arith.constant 0 : i32
    %63 = vector.broadcast %c0_i32_35 : i32 to vector<16x1xi32>
    %64 = arith.cmpi slt, %60, %63 : vector<16x1xi32>
    %c0_i32_36 = arith.constant 0 : i32
    %65 = arith.cmpi slt, %58, %c0_i32_36 : i32
    %66 = vector.broadcast %65 : i1 to vector<16x1xi1>
    %67 = vector.broadcast %66 : vector<16x1xi1> to vector<16x1xi1>
    %68 = arith.xori %64, %67 : vector<16x1xi1>
    %69 = arith.andi %68, %62 : vector<16x1xi1>
    %70 = vector.broadcast %58 : i32 to vector<16x1xi32>
    %71 = arith.addi %60, %70 : vector<16x1xi32>
    %72 = arith.select %69, %71, %60 : vector<16x1xi1>, vector<16x1xi32>
    %c0_i32_37 = arith.constant 0 : i32
    %73 = vector.broadcast %c0_i32_37 : i32 to vector<16x1xi32>
    %74 = arith.cmpi ne, %72, %73 : vector<16x1xi32>
    %cst_38 = arith.constant 0.000000e+00 : bf16
    %75 = vector.broadcast %cst_38 : bf16 to vector<16x128xbf16>
    %76 = vector.shape_cast %74 : vector<16x1xi1> to vector<16x1xi1>
    %77 = vector.broadcast %76 : vector<16x1xi1> to vector<16x128xi1>
    %78 = arith.select %77, %25, %75 : vector<16x128xi1>, vector<16x128xbf16>
    %c3 = arith.constant 3 : index
    %c256 = arith.constant 256 : index
    %79 = vector.load %arg8[%c3, %c256] : memref<24x384xbf16, #tpu.memory_space<vmem>>, vector<16x128xbf16>
    tpu.vector_store %arg8[%c3, %c256], %78 {strides = array<i32>} : memref<24x384xbf16, #tpu.memory_space<vmem>>, vector<16x128xbf16>,
    %cst_39 = arith.constant 0.000000e+00 : f32
    %80 = vector.broadcast %cst_39 : f32 to vector<16x128xf32>
    %c0_40 = arith.constant 0 : index
    %c0_41 = arith.constant 0 : index
    %81 = vector.load %arg8[%c0_40, %c0_41] : memref<24x384xbf16, #tpu.memory_space<vmem>>, vector<16x384xbf16>
    %c0_42 = arith.constant 0 : index
    %c0_43 = arith.constant 0 : index
    %c0_44 = arith.constant 0 : index
    %82 = vector.load %arg4[%c0_42, %c0_43, %c0_44] : memref<3x384x128xbf16, #tpu.memory_space<vmem>>, vector<1x384x128xbf16>
    %83 = vector.shape_cast %82 : vector<1x384x128xbf16> to vector<384x128xbf16>
    %cst_45 = arith.constant dense<0.000000e+00> : vector<16x128xf32>
    %84 = tpu.matmul %81, %83, %cst_45 {dimension_numbers = #tpu.dot_dimension_numbers<[1], [0], [0], [1], [0, 0, 1, 1], [], []>} : vector<16x384xbf16>, vector<384x128xbf16>, vector<16x128xf32> -> vector<16x128xf32>
    %85 = arith.addf %80, %84 : vector<16x128xf32>
    %c4_46 = arith.constant 4 : index
    %c0_47 = arith.constant 0 : index
    %86 = vector.load %arg8[%c4_46, %c0_47] : memref<24x384xbf16, #tpu.memory_space<vmem>>, vector<16x384xbf16>
    %c1_48 = arith.constant 1 : index
    %c0_49 = arith.constant 0 : index
    %c0_50 = arith.constant 0 : index
    %87 = vector.load %arg4[%c1_48, %c0_49, %c0_50] : memref<3x384x128xbf16, #tpu.memory_space<vmem>>, vector<1x384x128xbf16>
    %88 = vector.shape_cast %87 : vector<1x384x128xbf16> to vector<384x128xbf16>
    %cst_51 = arith.constant dense<0.000000e+00> : vector<16x128xf32>
    %89 = tpu.matmul %86, %88, %cst_51 {dimension_numbers = #tpu.dot_dimension_numbers<[1], [0], [0], [1], [0, 0, 1, 1], [], []>} : vector<16x384xbf16>, vector<384x128xbf16>, vector<16x128xf32> -> vector<16x128xf32>
    %90 = arith.addf %85, %89 : vector<16x128xf32>
    %c8 = arith.constant 8 : index
    %c0_52 = arith.constant 0 : index
    %91 = vector.load %arg8[%c8, %c0_52] : memref<24x384xbf16, #tpu.memory_space<vmem>>, vector<16x384xbf16>
    %c2_53 = arith.constant 2 : index
    %c0_54 = arith.constant 0 : index
    %c0_55 = arith.constant 0 : index
    %92 = vector.load %arg4[%c2_53, %c0_54, %c0_55] : memref<3x384x128xbf16, #tpu.memory_space<vmem>>, vector<1x384x128xbf16>
    %93 = vector.shape_cast %92 : vector<1x384x128xbf16> to vector<384x128xbf16>
    %cst_56 = arith.constant dense<0.000000e+00> : vector<16x128xf32>
    %94 = tpu.matmul %91, %93, %cst_56 {dimension_numbers = #tpu.dot_dimension_numbers<[1], [0], [0], [1], [0, 0, 1, 1], [], []>} : vector<16x384xbf16>, vector<384x128xbf16>, vector<16x128xf32> -> vector<16x128xf32>
    %95 = arith.addf %90, %94 : vector<16x128xf32>
    %c0_57 = arith.constant 0 : index
    %c0_58 = arith.constant 0 : index
    %96 = vector.load %arg5[%c0_57, %c0_58] : memref<1x128xf32, #tpu.memory_space<vmem>>, vector<1x128xf32>
    %97 = vector.broadcast %96 : vector<1x128xf32> to vector<16x128xf32>
    %98 = arith.addf %95, %97 : vector<16x128xf32>
    %99 = arith.addf %98, %29 : vector<16x128xf32>
    %cst_59 = arith.constant 0.000000e+00 : f32
    %100 = vector.broadcast %cst_59 : f32 to vector<16x128xf32>
    %101 = arith.maximumf %99, %100 : vector<16x128xf32>
    %102 = arith.truncf %101 : vector<16x128xf32> to vector<16x128xbf16>
    %c0_60 = arith.constant 0 : index
    %c0_61 = arith.constant 0 : index
    %c0_62 = arith.constant 0 : index
    %103 = vector.load %arg7[%c0_60, %c0_61, %c0_62] : memref<1x16x128xbf16, #tpu.memory_space<vmem>>, vector<1x16x128xbf16>
    %104 = vector.shape_cast %103 : vector<1x16x128xbf16> to vector<16x128xbf16>
    %105 = vector.shape_cast %102 : vector<16x128xbf16> to vector<1x16x128xbf16>
    tpu.vector_store %arg7[%c0_60, %c0_61, %c0_62], %105 {strides = array<i32>} : memref<1x16x128xbf16, #tpu.memory_space<vmem>>, vector<1x16x128xbf16>,
    return
  }
  func.func @transform_0(%arg0: i32) -> (i32, i32, i32) {
    %c0_i32 = arith.constant 0 : i32
    %c0_i32_0 = arith.constant 0 : i32
    %c0_i32_1 = arith.constant 0 : i32
    return %arg0, %c0_i32, %c0_i32_0 : i32, i32, i32
  }
  func.func @transform_1(%arg0: i32) -> (i32, i32, i32) {
    %c0_i32 = arith.constant 0 : i32
    %c0_i32_0 = arith.constant 0 : i32
    %c0_i32_1 = arith.constant 0 : i32
    %c0_i32_2 = arith.constant 0 : i32
    return %c0_i32, %c0_i32_0, %c0_i32_1 : i32, i32, i32
  }
  func.func @transform_2(%arg0: i32) -> (i32, i32) {
    %c0_i32 = arith.constant 0 : i32
    %c0_i32_0 = arith.constant 0 : i32
    %c0_i32_1 = arith.constant 0 : i32
    return %c0_i32, %c0_i32_0 : i32, i32
  }
  func.func @transform_3(%arg0: i32) -> (i32, i32, i32) {
    %c0_i32 = arith.constant 0 : i32
    %c0_i32_0 = arith.constant 0 : i32
    %c0_i32_1 = arith.constant 0 : i32
    %c0_i32_2 = arith.constant 0 : i32
    return %c0_i32, %c0_i32_0, %c0_i32_1 : i32, i32, i32
  }
  func.func @transform_4(%arg0: i32) -> (i32, i32) {
    %c0_i32 = arith.constant 0 : i32
    %c0_i32_0 = arith.constant 0 : i32
    %c0_i32_1 = arith.constant 0 : i32
    return %c0_i32, %c0_i32_0 : i32, i32
  }
  func.func @transform_5(%arg0: i32) -> (i32, i32) {
    %c0_i32 = arith.constant 0 : i32
    %c0_i32_0 = arith.constant 0 : i32
    %c0_i32_1 = arith.constant 0 : i32
    return %c0_i32, %c0_i32_0 : i32, i32
  }
  func.func @transform_6(%arg0: i32) -> (i32, i32, i32) {
    %c0_i32 = arith.constant 0 : i32
    %c0_i32_0 = arith.constant 0 : i32
    %c0_i32_1 = arith.constant 0 : i32
    return %arg0, %c0_i32, %c0_i32_0 : i32, i32, i32
  }
}

module attributes {stable_mosaic.version = 11 : i64} {
  func.func @_block_kernel(%arg0: i32, %arg1: memref<1x24x96xbf16, #tpu.memory_space<vmem>>, %arg2: memref<3x96x128xbf16, #tpu.memory_space<vmem>>, %arg3: memref<1x128xf32, #tpu.memory_space<vmem>>, %arg4: memref<3x384x128xbf16, #tpu.memory_space<vmem>>, %arg5: memref<1x128xf32, #tpu.memory_space<vmem>>, %arg6: memref<1x16x128xbf16, #tpu.memory_space<vmem>>, %arg7: memref<1x16x128xbf16, #tpu.memory_space<vmem>>, %arg8: memref<24x384xbf16, #tpu.memory_space<vmem>>) attributes {dimension_semantics = [#tpu.dimension_semantics<parallel>], iteration_bounds = array<i64: 2>, scalar_prefetch = 0 : i64, scratch_operands = 1 : i64, tpu.core_type = #tpu.core_type<tc>, window_params = [{transform_indices = @transform_0, window_bounds = array<i64: 1, 24, 96>}, {pipeline_mode = #tpu.pipeline_mode<synchronous>, transform_indices = @transform_1, window_bounds = array<i64: 3, 96, 128>}, {pipeline_mode = #tpu.pipeline_mode<synchronous>, transform_indices = @transform_2, window_bounds = array<i64: 1, 128>}, {pipeline_mode = #tpu.pipeline_mode<synchronous>, transform_indices = @transform_3, window_bounds = array<i64: 3, 384, 128>}, {pipeline_mode = #tpu.pipeline_mode<synchronous>, transform_indices = @transform_4, window_bounds = array<i64: 1, 128>}, {transform_indices = @transform_5, window_bounds = array<i64: 1, 16, 128>}, {transform_indices = @transform_6, window_bounds = array<i64: 1, 16, 128>}]} {
    %cst = arith.constant 0.000000e+00 : f32
    %0 = vector.broadcast %cst : f32 to vector<16x128xf32>
    %c0 = arith.constant 0 : index
    %c0_0 = arith.constant 0 : index
    %c0_1 = arith.constant 0 : index
    %1 = vector.load %arg1[%c0, %c0_0, %c0_1] : memref<1x24x96xbf16, #tpu.memory_space<vmem>>, vector<1x16x96xbf16>
    %2 = vector.shape_cast %1 : vector<1x16x96xbf16> to vector<16x96xbf16>
    %c0_2 = arith.constant 0 : index
    %c0_3 = arith.constant 0 : index
    %c0_4 = arith.constant 0 : index
    %3 = vector.load %arg2[%c0_2, %c0_3, %c0_4] : memref<3x96x128xbf16, #tpu.memory_space<vmem>>, vector<1x96x128xbf16>
    %4 = vector.shape_cast %3 : vector<1x96x128xbf16> to vector<96x128xbf16>
    %cst_5 = arith.constant dense<0.000000e+00> : vector<16x128xf32>
    %5 = tpu.matmul %2, %4, %cst_5 {dimension_numbers = #tpu.dot_dimension_numbers<[1], [0], [0], [1], [0, 0, 1, 1], [], []>} : vector<16x96xbf16>, vector<96x128xbf16>, vector<16x128xf32> -> vector<16x128xf32>
    %6 = arith.addf %0, %5 : vector<16x128xf32>
    %c0_6 = arith.constant 0 : index
    %c4 = arith.constant 4 : index
    %c0_7 = arith.constant 0 : index
    %7 = vector.load %arg1[%c0_6, %c4, %c0_7] : memref<1x24x96xbf16, #tpu.memory_space<vmem>>, vector<1x16x96xbf16>
    %8 = vector.shape_cast %7 : vector<1x16x96xbf16> to vector<16x96xbf16>
    %c1 = arith.constant 1 : index
    %c0_8 = arith.constant 0 : index
    %c0_9 = arith.constant 0 : index
    %9 = vector.load %arg2[%c1, %c0_8, %c0_9] : memref<3x96x128xbf16, #tpu.memory_space<vmem>>, vector<1x96x128xbf16>
    %10 = vector.shape_cast %9 : vector<1x96x128xbf16> to vector<96x128xbf16>
    %cst_10 = arith.constant dense<0.000000e+00> : vector<16x128xf32>
    %11 = tpu.matmul %8, %10, %cst_10 {dimension_numbers = #tpu.dot_dimension_numbers<[1], [0], [0], [1], [0, 0, 1, 1], [], []>} : vector<16x96xbf16>, vector<96x128xbf16>, vector<16x128xf32> -> vector<16x128xf32>
    %12 = arith.addf %6, %11 : vector<16x128xf32>
    %c0_11 = arith.constant 0 : index
    %c8 = arith.constant 8 : index
    %c0_12 = arith.constant 0 : index
    %13 = vector.load %arg1[%c0_11, %c8, %c0_12] : memref<1x24x96xbf16, #tpu.memory_space<vmem>>, vector<1x16x96xbf16>
    %14 = vector.shape_cast %13 : vector<1x16x96xbf16> to vector<16x96xbf16>
    %c2 = arith.constant 2 : index
    %c0_13 = arith.constant 0 : index
    %c0_14 = arith.constant 0 : index
    %15 = vector.load %arg2[%c2, %c0_13, %c0_14] : memref<3x96x128xbf16, #tpu.memory_space<vmem>>, vector<1x96x128xbf16>
    %16 = vector.shape_cast %15 : vector<1x96x128xbf16> to vector<96x128xbf16>
    %cst_15 = arith.constant dense<0.000000e+00> : vector<16x128xf32>
    %17 = tpu.matmul %14, %16, %cst_15 {dimension_numbers = #tpu.dot_dimension_numbers<[1], [0], [0], [1], [0, 0, 1, 1], [], []>} : vector<16x96xbf16>, vector<96x128xbf16>, vector<16x128xf32> -> vector<16x128xf32>
    %18 = arith.addf %12, %17 : vector<16x128xf32>
    %c0_16 = arith.constant 0 : index
    %c0_17 = arith.constant 0 : index
    %19 = vector.load %arg3[%c0_16, %c0_17] : memref<1x128xf32, #tpu.memory_space<vmem>>, vector<1x128xf32>
    %20 = vector.broadcast %19 : vector<1x128xf32> to vector<16x128xf32>
    %21 = arith.addf %18, %20 : vector<16x128xf32>
    %cst_18 = arith.constant 0.000000e+00 : f32
    %22 = vector.broadcast %cst_18 : f32 to vector<16x128xf32>
    %23 = arith.maximumf %21, %22 : vector<16x128xf32>
    %24 = arith.truncf %23 : vector<16x128xf32> to vector<16x128xbf16>
    %c0_19 = arith.constant 0 : index
    %c0_20 = arith.constant 0 : index
    %c0_21 = arith.constant 0 : index
    %25 = vector.load %arg6[%c0_19, %c0_20, %c0_21] : memref<1x16x128xbf16, #tpu.memory_space<vmem>>, vector<1x16x128xbf16>
    %26 = vector.shape_cast %25 : vector<1x16x128xbf16> to vector<16x128xbf16>
    %27 = arith.extf %26 : vector<16x128xbf16> to vector<16x128xf32>
    %cst_22 = arith.constant 0.000000e+00 : bf16
    %28 = vector.broadcast %cst_22 : bf16 to vector<24x384xbf16>
    %c0_23 = arith.constant 0 : index
    %c0_24 = arith.constant 0 : index
    %29 = vector.load %arg8[%c0_23, %c0_24] : memref<24x384xbf16, #tpu.memory_space<vmem>>, vector<24x384xbf16>
    tpu.vector_store %arg8[%c0_23, %c0_24], %28 {strides = array<i32>} : memref<24x384xbf16, #tpu.memory_space<vmem>>, vector<24x384xbf16>,
    %c4_25 = arith.constant 4 : index
    %c128 = arith.constant 128 : index
    %30 = vector.load %arg8[%c4_25, %c128] : memref<24x384xbf16, #tpu.memory_space<vmem>>, vector<16x128xbf16>
    tpu.vector_store %arg8[%c4_25, %c128], %24 {strides = array<i32>} : memref<24x384xbf16, #tpu.memory_space<vmem>>, vector<16x128xbf16>,
    %31 = tpu.iota {dimensions = array<i32: 0>} : vector<16x1xi32>
    %c4_i32 = arith.constant 4 : i32
    %c0_i32 = arith.constant 0 : i32
    %32 = arith.cmpi eq, %c4_i32, %c0_i32 : i32
    %c1_i32 = arith.constant 1 : i32
    %33 = arith.select %32, %c1_i32, %c4_i32 : i32
    %34 = vector.broadcast %33 : i32 to vector<16x1xi32>
    %35 = arith.remsi %31, %34 : vector<16x1xi32>
    %c0_i32_26 = arith.constant 0 : i32
    %36 = vector.broadcast %c0_i32_26 : i32 to vector<16x1xi32>
    %37 = arith.cmpi ne, %35, %36 : vector<16x1xi32>
    %c0_i32_27 = arith.constant 0 : i32
    %38 = vector.broadcast %c0_i32_27 : i32 to vector<16x1xi32>
    %39 = arith.cmpi slt, %35, %38 : vector<16x1xi32>
    %c0_i32_28 = arith.constant 0 : i32
    %40 = arith.cmpi slt, %33, %c0_i32_28 : i32
    %41 = vector.broadcast %40 : i1 to vector<16x1xi1>
    %42 = vector.broadcast %41 : vector<16x1xi1> to vector<16x1xi1>
    %43 = arith.xori %39, %42 : vector<16x1xi1>
    %44 = arith.andi %43, %37 : vector<16x1xi1>
    %45 = vector.broadcast %33 : i32 to vector<16x1xi32>
    %46 = arith.addi %35, %45 : vector<16x1xi32>
    %47 = arith.select %44, %46, %35 : vector<16x1xi1>, vector<16x1xi32>
    %c3_i32 = arith.constant 3 : i32
    %48 = vector.broadcast %c3_i32 : i32 to vector<16x1xi32>
    %49 = arith.cmpi ne, %47, %48 : vector<16x1xi32>
    %cst_29 = arith.constant 0.000000e+00 : bf16
    %50 = vector.broadcast %cst_29 : bf16 to vector<16x128xbf16>
    %51 = vector.shape_cast %49 : vector<16x1xi1> to vector<16x1xi1>
    %52 = vector.broadcast %51 : vector<16x1xi1> to vector<16x128xi1>
    %53 = arith.select %52, %24, %50 : vector<16x128xi1>, vector<16x128xbf16>
    %c5 = arith.constant 5 : index
    %c0_30 = arith.constant 0 : index
    %54 = vector.load %arg8[%c5, %c0_30] : memref<24x384xbf16, #tpu.memory_space<vmem>>, vector<16x128xbf16>
    tpu.vector_store %arg8[%c5, %c0_30], %53 {strides = array<i32>} : memref<24x384xbf16, #tpu.memory_space<vmem>>, vector<16x128xbf16>,
    %c4_i32_31 = arith.constant 4 : i32
    %c0_i32_32 = arith.constant 0 : i32
    %55 = arith.cmpi eq, %c4_i32_31, %c0_i32_32 : i32
    %c1_i32_33 = arith.constant 1 : i32
    %56 = arith.select %55, %c1_i32_33, %c4_i32_31 : i32
    %57 = vector.broadcast %56 : i32 to vector<16x1xi32>
    %58 = arith.remsi %31, %57 : vector<16x1xi32>
    %c0_i32_34 = arith.constant 0 : i32
    %59 = vector.broadcast %c0_i32_34 : i32 to vector<16x1xi32>
    %60 = arith.cmpi ne, %58, %59 : vector<16x1xi32>
    %c0_i32_35 = arith.constant 0 : i32
    %61 = vector.broadcast %c0_i32_35 : i32 to vector<16x1xi32>
    %62 = arith.cmpi slt, %58, %61 : vector<16x1xi32>
    %c0_i32_36 = arith.constant 0 : i32
    %63 = arith.cmpi slt, %56, %c0_i32_36 : i32
    %64 = vector.broadcast %63 : i1 to vector<16x1xi1>
    %65 = vector.broadcast %64 : vector<16x1xi1> to vector<16x1xi1>
    %66 = arith.xori %62, %65 : vector<16x1xi1>
    %67 = arith.andi %66, %60 : vector<16x1xi1>
    %68 = vector.broadcast %56 : i32 to vector<16x1xi32>
    %69 = arith.addi %58, %68 : vector<16x1xi32>
    %70 = arith.select %67, %69, %58 : vector<16x1xi1>, vector<16x1xi32>
    %c0_i32_37 = arith.constant 0 : i32
    %71 = vector.broadcast %c0_i32_37 : i32 to vector<16x1xi32>
    %72 = arith.cmpi ne, %70, %71 : vector<16x1xi32>
    %cst_38 = arith.constant 0.000000e+00 : bf16
    %73 = vector.broadcast %cst_38 : bf16 to vector<16x128xbf16>
    %74 = vector.shape_cast %72 : vector<16x1xi1> to vector<16x1xi1>
    %75 = vector.broadcast %74 : vector<16x1xi1> to vector<16x128xi1>
    %76 = arith.select %75, %24, %73 : vector<16x128xi1>, vector<16x128xbf16>
    %c3 = arith.constant 3 : index
    %c256 = arith.constant 256 : index
    %77 = vector.load %arg8[%c3, %c256] : memref<24x384xbf16, #tpu.memory_space<vmem>>, vector<16x128xbf16>
    tpu.vector_store %arg8[%c3, %c256], %76 {strides = array<i32>} : memref<24x384xbf16, #tpu.memory_space<vmem>>, vector<16x128xbf16>,
    %cst_39 = arith.constant 0.000000e+00 : f32
    %78 = vector.broadcast %cst_39 : f32 to vector<16x128xf32>
    %c0_40 = arith.constant 0 : index
    %c0_41 = arith.constant 0 : index
    %79 = vector.load %arg8[%c0_40, %c0_41] : memref<24x384xbf16, #tpu.memory_space<vmem>>, vector<16x384xbf16>
    %c0_42 = arith.constant 0 : index
    %c0_43 = arith.constant 0 : index
    %c0_44 = arith.constant 0 : index
    %80 = vector.load %arg4[%c0_42, %c0_43, %c0_44] : memref<3x384x128xbf16, #tpu.memory_space<vmem>>, vector<1x384x128xbf16>
    %81 = vector.shape_cast %80 : vector<1x384x128xbf16> to vector<384x128xbf16>
    %cst_45 = arith.constant dense<0.000000e+00> : vector<16x128xf32>
    %82 = tpu.matmul %79, %81, %cst_45 {dimension_numbers = #tpu.dot_dimension_numbers<[1], [0], [0], [1], [0, 0, 1, 1], [], []>} : vector<16x384xbf16>, vector<384x128xbf16>, vector<16x128xf32> -> vector<16x128xf32>
    %83 = arith.addf %78, %82 : vector<16x128xf32>
    %c4_46 = arith.constant 4 : index
    %c0_47 = arith.constant 0 : index
    %84 = vector.load %arg8[%c4_46, %c0_47] : memref<24x384xbf16, #tpu.memory_space<vmem>>, vector<16x384xbf16>
    %c1_48 = arith.constant 1 : index
    %c0_49 = arith.constant 0 : index
    %c0_50 = arith.constant 0 : index
    %85 = vector.load %arg4[%c1_48, %c0_49, %c0_50] : memref<3x384x128xbf16, #tpu.memory_space<vmem>>, vector<1x384x128xbf16>
    %86 = vector.shape_cast %85 : vector<1x384x128xbf16> to vector<384x128xbf16>
    %cst_51 = arith.constant dense<0.000000e+00> : vector<16x128xf32>
    %87 = tpu.matmul %84, %86, %cst_51 {dimension_numbers = #tpu.dot_dimension_numbers<[1], [0], [0], [1], [0, 0, 1, 1], [], []>} : vector<16x384xbf16>, vector<384x128xbf16>, vector<16x128xf32> -> vector<16x128xf32>
    %88 = arith.addf %83, %87 : vector<16x128xf32>
    %c8_52 = arith.constant 8 : index
    %c0_53 = arith.constant 0 : index
    %89 = vector.load %arg8[%c8_52, %c0_53] : memref<24x384xbf16, #tpu.memory_space<vmem>>, vector<16x384xbf16>
    %c2_54 = arith.constant 2 : index
    %c0_55 = arith.constant 0 : index
    %c0_56 = arith.constant 0 : index
    %90 = vector.load %arg4[%c2_54, %c0_55, %c0_56] : memref<3x384x128xbf16, #tpu.memory_space<vmem>>, vector<1x384x128xbf16>
    %91 = vector.shape_cast %90 : vector<1x384x128xbf16> to vector<384x128xbf16>
    %cst_57 = arith.constant dense<0.000000e+00> : vector<16x128xf32>
    %92 = tpu.matmul %89, %91, %cst_57 {dimension_numbers = #tpu.dot_dimension_numbers<[1], [0], [0], [1], [0, 0, 1, 1], [], []>} : vector<16x384xbf16>, vector<384x128xbf16>, vector<16x128xf32> -> vector<16x128xf32>
    %93 = arith.addf %88, %92 : vector<16x128xf32>
    %c0_58 = arith.constant 0 : index
    %c0_59 = arith.constant 0 : index
    %94 = vector.load %arg5[%c0_58, %c0_59] : memref<1x128xf32, #tpu.memory_space<vmem>>, vector<1x128xf32>
    %95 = vector.broadcast %94 : vector<1x128xf32> to vector<16x128xf32>
    %96 = arith.addf %93, %95 : vector<16x128xf32>
    %97 = arith.addf %96, %27 : vector<16x128xf32>
    %cst_60 = arith.constant 0.000000e+00 : f32
    %98 = vector.broadcast %cst_60 : f32 to vector<16x128xf32>
    %99 = arith.maximumf %97, %98 : vector<16x128xf32>
    %100 = arith.truncf %99 : vector<16x128xf32> to vector<16x128xbf16>
    %c0_61 = arith.constant 0 : index
    %c0_62 = arith.constant 0 : index
    %c0_63 = arith.constant 0 : index
    %101 = vector.load %arg7[%c0_61, %c0_62, %c0_63] : memref<1x16x128xbf16, #tpu.memory_space<vmem>>, vector<1x16x128xbf16>
    %102 = vector.shape_cast %101 : vector<1x16x128xbf16> to vector<16x128xbf16>
    %103 = vector.shape_cast %100 : vector<16x128xbf16> to vector<1x16x128xbf16>
    tpu.vector_store %arg7[%c0_61, %c0_62, %c0_63], %103 {strides = array<i32>} : memref<1x16x128xbf16, #tpu.memory_space<vmem>>, vector<1x16x128xbf16>,
    return
  }
  func.func @transform_0(%arg0: i32) -> (i32, i32, i32) {
    %c0_i32 = arith.constant 0 : i32
    %c0_i32_0 = arith.constant 0 : i32
    %c0_i32_1 = arith.constant 0 : i32
    return %arg0, %c0_i32, %c0_i32_0 : i32, i32, i32
  }
  func.func @transform_1(%arg0: i32) -> (i32, i32, i32) {
    %c0_i32 = arith.constant 0 : i32
    %c0_i32_0 = arith.constant 0 : i32
    %c0_i32_1 = arith.constant 0 : i32
    %c0_i32_2 = arith.constant 0 : i32
    return %c0_i32, %c0_i32_0, %c0_i32_1 : i32, i32, i32
  }
  func.func @transform_2(%arg0: i32) -> (i32, i32) {
    %c0_i32 = arith.constant 0 : i32
    %c0_i32_0 = arith.constant 0 : i32
    %c0_i32_1 = arith.constant 0 : i32
    return %c0_i32, %c0_i32_0 : i32, i32
  }
  func.func @transform_3(%arg0: i32) -> (i32, i32, i32) {
    %c0_i32 = arith.constant 0 : i32
    %c0_i32_0 = arith.constant 0 : i32
    %c0_i32_1 = arith.constant 0 : i32
    %c0_i32_2 = arith.constant 0 : i32
    return %c0_i32, %c0_i32_0, %c0_i32_1 : i32, i32, i32
  }
  func.func @transform_4(%arg0: i32) -> (i32, i32) {
    %c0_i32 = arith.constant 0 : i32
    %c0_i32_0 = arith.constant 0 : i32
    %c0_i32_1 = arith.constant 0 : i32
    return %c0_i32, %c0_i32_0 : i32, i32
  }
  func.func @transform_5(%arg0: i32) -> (i32, i32, i32) {
    %c0_i32 = arith.constant 0 : i32
    %c0_i32_0 = arith.constant 0 : i32
    %c0_i32_1 = arith.constant 0 : i32
    return %arg0, %c0_i32, %c0_i32_0 : i32, i32, i32
  }
  func.func @transform_6(%arg0: i32) -> (i32, i32, i32) {
    %c0_i32 = arith.constant 0 : i32
    %c0_i32_0 = arith.constant 0 : i32
    %c0_i32_1 = arith.constant 0 : i32
    return %arg0, %c0_i32, %c0_i32_0 : i32, i32, i32
  }
}

module attributes {stable_mosaic.version = 11 : i64} {
  func.func @_block_kernel(%arg0: i32, %arg1: memref<2x6x96xbf16, #tpu.memory_space<vmem>>, %arg2: memref<3x96x256xbf16, #tpu.memory_space<vmem>>, %arg3: memref<1x128xf32, #tpu.memory_space<vmem>>, %arg4: memref<3x384x128xbf16, #tpu.memory_space<vmem>>, %arg5: memref<1x128xf32, #tpu.memory_space<vmem>>, %arg6: memref<1x128xf32, #tpu.memory_space<vmem>>, %arg7: memref<1x4x128xbf16, #tpu.memory_space<vmem>>, %arg8: memref<8x384xbf16, #tpu.memory_space<vmem>>) attributes {dimension_semantics = [#tpu.dimension_semantics<parallel>], iteration_bounds = array<i64: 2>, scalar_prefetch = 0 : i64, scratch_operands = 1 : i64, tpu.core_type = #tpu.core_type<tc>, window_params = [{transform_indices = @transform_0, window_bounds = array<i64: 2, 6, 96>}, {pipeline_mode = #tpu.pipeline_mode<synchronous>, transform_indices = @transform_1, window_bounds = array<i64: 3, 96, 256>}, {pipeline_mode = #tpu.pipeline_mode<synchronous>, transform_indices = @transform_2, window_bounds = array<i64: 1, 128>}, {pipeline_mode = #tpu.pipeline_mode<synchronous>, transform_indices = @transform_3, window_bounds = array<i64: 3, 384, 128>}, {pipeline_mode = #tpu.pipeline_mode<synchronous>, transform_indices = @transform_4, window_bounds = array<i64: 1, 128>}, {pipeline_mode = #tpu.pipeline_mode<synchronous>, transform_indices = @transform_5, window_bounds = array<i64: 1, 128>}, {transform_indices = @transform_6, window_bounds = array<i64: 1, 4, 128>}]} {
    %cst = arith.constant 0.000000e+00 : f32
    %0 = vector.broadcast %cst : f32 to vector<4x256xf32>
    %c0 = arith.constant 0 : index
    %c0_0 = arith.constant 0 : index
    %c0_1 = arith.constant 0 : index
    %1 = vector.load %arg1[%c0, %c0_0, %c0_1] : memref<2x6x96xbf16, #tpu.memory_space<vmem>>, vector<1x4x96xbf16>
    %2 = vector.shape_cast %1 : vector<1x4x96xbf16> to vector<4x96xbf16>
    %c0_2 = arith.constant 0 : index
    %c0_3 = arith.constant 0 : index
    %c0_4 = arith.constant 0 : index
    %3 = vector.load %arg2[%c0_2, %c0_3, %c0_4] : memref<3x96x256xbf16, #tpu.memory_space<vmem>>, vector<1x96x256xbf16>
    %4 = vector.shape_cast %3 : vector<1x96x256xbf16> to vector<96x256xbf16>
    %cst_5 = arith.constant dense<0.000000e+00> : vector<4x256xf32>
    %5 = tpu.matmul %2, %4, %cst_5 {dimension_numbers = #tpu.dot_dimension_numbers<[1], [0], [0], [1], [0, 0, 1, 1], [], []>} : vector<4x96xbf16>, vector<96x256xbf16>, vector<4x256xf32> -> vector<4x256xf32>
    %6 = arith.addf %0, %5 : vector<4x256xf32>
    %c1 = arith.constant 1 : index
    %c0_6 = arith.constant 0 : index
    %c0_7 = arith.constant 0 : index
    %7 = vector.load %arg1[%c1, %c0_6, %c0_7] : memref<2x6x96xbf16, #tpu.memory_space<vmem>>, vector<1x4x96xbf16>
    %8 = vector.shape_cast %7 : vector<1x4x96xbf16> to vector<4x96xbf16>
    %c1_8 = arith.constant 1 : index
    %c0_9 = arith.constant 0 : index
    %c0_10 = arith.constant 0 : index
    %9 = vector.load %arg2[%c1_8, %c0_9, %c0_10] : memref<3x96x256xbf16, #tpu.memory_space<vmem>>, vector<1x96x256xbf16>
    %10 = vector.shape_cast %9 : vector<1x96x256xbf16> to vector<96x256xbf16>
    %cst_11 = arith.constant dense<0.000000e+00> : vector<4x256xf32>
    %11 = tpu.matmul %8, %10, %cst_11 {dimension_numbers = #tpu.dot_dimension_numbers<[1], [0], [0], [1], [0, 0, 1, 1], [], []>} : vector<4x96xbf16>, vector<96x256xbf16>, vector<4x256xf32> -> vector<4x256xf32>
    %12 = arith.addf %6, %11 : vector<4x256xf32>
    %c0_12 = arith.constant 0 : index
    %c2 = arith.constant 2 : index
    %c0_13 = arith.constant 0 : index
    %13 = vector.load %arg1[%c0_12, %c2, %c0_13] : memref<2x6x96xbf16, #tpu.memory_space<vmem>>, vector<1x4x96xbf16>
    %14 = vector.shape_cast %13 : vector<1x4x96xbf16> to vector<4x96xbf16>
    %c2_14 = arith.constant 2 : index
    %c0_15 = arith.constant 0 : index
    %c0_16 = arith.constant 0 : index
    %15 = vector.load %arg2[%c2_14, %c0_15, %c0_16] : memref<3x96x256xbf16, #tpu.memory_space<vmem>>, vector<1x96x256xbf16>
    %16 = vector.shape_cast %15 : vector<1x96x256xbf16> to vector<96x256xbf16>
    %cst_17 = arith.constant dense<0.000000e+00> : vector<4x256xf32>
    %17 = tpu.matmul %14, %16, %cst_17 {dimension_numbers = #tpu.dot_dimension_numbers<[1], [0], [0], [1], [0, 0, 1, 1], [], []>} : vector<4x96xbf16>, vector<96x256xbf16>, vector<4x256xf32> -> vector<4x256xf32>
    %18 = arith.addf %12, %17 : vector<4x256xf32>
    %19 = vector.extract_strided_slice %18 {offsets = [0, 0], sizes = [4, 128], strides = [1, 1]} : vector<4x256xf32> to vector<4x128xf32>
    %c0_18 = arith.constant 0 : index
    %c0_19 = arith.constant 0 : index
    %20 = vector.load %arg3[%c0_18, %c0_19] : memref<1x128xf32, #tpu.memory_space<vmem>>, vector<1x128xf32>
    %21 = vector.broadcast %20 : vector<1x128xf32> to vector<4x128xf32>
    %22 = arith.addf %19, %21 : vector<4x128xf32>
    %cst_20 = arith.constant 0.000000e+00 : f32
    %23 = vector.broadcast %cst_20 : f32 to vector<4x128xf32>
    %24 = arith.maximumf %22, %23 : vector<4x128xf32>
    %25 = arith.truncf %24 : vector<4x128xf32> to vector<4x128xbf16>
    %26 = vector.extract_strided_slice %18 {offsets = [0, 128], sizes = [4, 128], strides = [1, 1]} : vector<4x256xf32> to vector<4x128xf32>
    %c0_21 = arith.constant 0 : index
    %c0_22 = arith.constant 0 : index
    %27 = vector.load %arg6[%c0_21, %c0_22] : memref<1x128xf32, #tpu.memory_space<vmem>>, vector<1x128xf32>
    %28 = vector.broadcast %27 : vector<1x128xf32> to vector<4x128xf32>
    %29 = arith.addf %26, %28 : vector<4x128xf32>
    %cst_23 = arith.constant 0.000000e+00 : bf16
    %30 = vector.broadcast %cst_23 : bf16 to vector<8x384xbf16>
    %c0_24 = arith.constant 0 : index
    %c0_25 = arith.constant 0 : index
    %31 = vector.load %arg8[%c0_24, %c0_25] : memref<8x384xbf16, #tpu.memory_space<vmem>>, vector<8x384xbf16>
    tpu.vector_store %arg8[%c0_24, %c0_25], %30 {strides = array<i32>} : memref<8x384xbf16, #tpu.memory_space<vmem>>, vector<8x384xbf16>,
    %c2_26 = arith.constant 2 : index
    %c128 = arith.constant 128 : index
    %32 = vector.load %arg8[%c2_26, %c128] : memref<8x384xbf16, #tpu.memory_space<vmem>>, vector<4x128xbf16>
    tpu.vector_store %arg8[%c2_26, %c128], %25 {strides = array<i32>} : memref<8x384xbf16, #tpu.memory_space<vmem>>, vector<4x128xbf16>,
    %33 = tpu.iota {dimensions = array<i32: 0>} : vector<4x1xi32>
    %c2_i32 = arith.constant 2 : i32
    %c0_i32 = arith.constant 0 : i32
    %34 = arith.cmpi eq, %c2_i32, %c0_i32 : i32
    %c1_i32 = arith.constant 1 : i32
    %35 = arith.select %34, %c1_i32, %c2_i32 : i32
    %36 = vector.broadcast %35 : i32 to vector<4x1xi32>
    %37 = arith.remsi %33, %36 : vector<4x1xi32>
    %c0_i32_27 = arith.constant 0 : i32
    %38 = vector.broadcast %c0_i32_27 : i32 to vector<4x1xi32>
    %39 = arith.cmpi ne, %37, %38 : vector<4x1xi32>
    %c0_i32_28 = arith.constant 0 : i32
    %40 = vector.broadcast %c0_i32_28 : i32 to vector<4x1xi32>
    %41 = arith.cmpi slt, %37, %40 : vector<4x1xi32>
    %c0_i32_29 = arith.constant 0 : i32
    %42 = arith.cmpi slt, %35, %c0_i32_29 : i32
    %43 = vector.broadcast %42 : i1 to vector<4x1xi1>
    %44 = vector.broadcast %43 : vector<4x1xi1> to vector<4x1xi1>
    %45 = arith.xori %41, %44 : vector<4x1xi1>
    %46 = arith.andi %45, %39 : vector<4x1xi1>
    %47 = vector.broadcast %35 : i32 to vector<4x1xi32>
    %48 = arith.addi %37, %47 : vector<4x1xi32>
    %49 = arith.select %46, %48, %37 : vector<4x1xi1>, vector<4x1xi32>
    %c1_i32_30 = arith.constant 1 : i32
    %50 = vector.broadcast %c1_i32_30 : i32 to vector<4x1xi32>
    %51 = arith.cmpi ne, %49, %50 : vector<4x1xi32>
    %cst_31 = arith.constant 0.000000e+00 : bf16
    %52 = vector.broadcast %cst_31 : bf16 to vector<4x128xbf16>
    %53 = vector.shape_cast %51 : vector<4x1xi1> to vector<4x1xi1>
    %54 = vector.broadcast %53 : vector<4x1xi1> to vector<4x128xi1>
    %55 = arith.select %54, %25, %52 : vector<4x128xi1>, vector<4x128xbf16>
    %c3 = arith.constant 3 : index
    %c0_32 = arith.constant 0 : index
    %56 = vector.load %arg8[%c3, %c0_32] : memref<8x384xbf16, #tpu.memory_space<vmem>>, vector<4x128xbf16>
    tpu.vector_store %arg8[%c3, %c0_32], %55 {strides = array<i32>} : memref<8x384xbf16, #tpu.memory_space<vmem>>, vector<4x128xbf16>,
    %c2_i32_33 = arith.constant 2 : i32
    %c0_i32_34 = arith.constant 0 : i32
    %57 = arith.cmpi eq, %c2_i32_33, %c0_i32_34 : i32
    %c1_i32_35 = arith.constant 1 : i32
    %58 = arith.select %57, %c1_i32_35, %c2_i32_33 : i32
    %59 = vector.broadcast %58 : i32 to vector<4x1xi32>
    %60 = arith.remsi %33, %59 : vector<4x1xi32>
    %c0_i32_36 = arith.constant 0 : i32
    %61 = vector.broadcast %c0_i32_36 : i32 to vector<4x1xi32>
    %62 = arith.cmpi ne, %60, %61 : vector<4x1xi32>
    %c0_i32_37 = arith.constant 0 : i32
    %63 = vector.broadcast %c0_i32_37 : i32 to vector<4x1xi32>
    %64 = arith.cmpi slt, %60, %63 : vector<4x1xi32>
    %c0_i32_38 = arith.constant 0 : i32
    %65 = arith.cmpi slt, %58, %c0_i32_38 : i32
    %66 = vector.broadcast %65 : i1 to vector<4x1xi1>
    %67 = vector.broadcast %66 : vector<4x1xi1> to vector<4x1xi1>
    %68 = arith.xori %64, %67 : vector<4x1xi1>
    %69 = arith.andi %68, %62 : vector<4x1xi1>
    %70 = vector.broadcast %58 : i32 to vector<4x1xi32>
    %71 = arith.addi %60, %70 : vector<4x1xi32>
    %72 = arith.select %69, %71, %60 : vector<4x1xi1>, vector<4x1xi32>
    %c0_i32_39 = arith.constant 0 : i32
    %73 = vector.broadcast %c0_i32_39 : i32 to vector<4x1xi32>
    %74 = arith.cmpi ne, %72, %73 : vector<4x1xi32>
    %cst_40 = arith.constant 0.000000e+00 : bf16
    %75 = vector.broadcast %cst_40 : bf16 to vector<4x128xbf16>
    %76 = vector.shape_cast %74 : vector<4x1xi1> to vector<4x1xi1>
    %77 = vector.broadcast %76 : vector<4x1xi1> to vector<4x128xi1>
    %78 = arith.select %77, %25, %75 : vector<4x128xi1>, vector<4x128xbf16>
    %c1_41 = arith.constant 1 : index
    %c256 = arith.constant 256 : index
    %79 = vector.load %arg8[%c1_41, %c256] : memref<8x384xbf16, #tpu.memory_space<vmem>>, vector<4x128xbf16>
    tpu.vector_store %arg8[%c1_41, %c256], %78 {strides = array<i32>} : memref<8x384xbf16, #tpu.memory_space<vmem>>, vector<4x128xbf16>,
    %cst_42 = arith.constant 0.000000e+00 : f32
    %80 = vector.broadcast %cst_42 : f32 to vector<4x128xf32>
    %c0_43 = arith.constant 0 : index
    %c0_44 = arith.constant 0 : index
    %81 = vector.load %arg8[%c0_43, %c0_44] : memref<8x384xbf16, #tpu.memory_space<vmem>>, vector<4x384xbf16>
    %c0_45 = arith.constant 0 : index
    %c0_46 = arith.constant 0 : index
    %c0_47 = arith.constant 0 : index
    %82 = vector.load %arg4[%c0_45, %c0_46, %c0_47] : memref<3x384x128xbf16, #tpu.memory_space<vmem>>, vector<1x384x128xbf16>
    %83 = vector.shape_cast %82 : vector<1x384x128xbf16> to vector<384x128xbf16>
    %cst_48 = arith.constant dense<0.000000e+00> : vector<4x128xf32>
    %84 = tpu.matmul %81, %83, %cst_48 {dimension_numbers = #tpu.dot_dimension_numbers<[1], [0], [0], [1], [0, 0, 1, 1], [], []>} : vector<4x384xbf16>, vector<384x128xbf16>, vector<4x128xf32> -> vector<4x128xf32>
    %85 = arith.addf %80, %84 : vector<4x128xf32>
    %c2_49 = arith.constant 2 : index
    %c0_50 = arith.constant 0 : index
    %86 = vector.load %arg8[%c2_49, %c0_50] : memref<8x384xbf16, #tpu.memory_space<vmem>>, vector<4x384xbf16>
    %c1_51 = arith.constant 1 : index
    %c0_52 = arith.constant 0 : index
    %c0_53 = arith.constant 0 : index
    %87 = vector.load %arg4[%c1_51, %c0_52, %c0_53] : memref<3x384x128xbf16, #tpu.memory_space<vmem>>, vector<1x384x128xbf16>
    %88 = vector.shape_cast %87 : vector<1x384x128xbf16> to vector<384x128xbf16>
    %cst_54 = arith.constant dense<0.000000e+00> : vector<4x128xf32>
    %89 = tpu.matmul %86, %88, %cst_54 {dimension_numbers = #tpu.dot_dimension_numbers<[1], [0], [0], [1], [0, 0, 1, 1], [], []>} : vector<4x384xbf16>, vector<384x128xbf16>, vector<4x128xf32> -> vector<4x128xf32>
    %90 = arith.addf %85, %89 : vector<4x128xf32>
    %c4 = arith.constant 4 : index
    %c0_55 = arith.constant 0 : index
    %91 = vector.load %arg8[%c4, %c0_55] : memref<8x384xbf16, #tpu.memory_space<vmem>>, vector<4x384xbf16>
    %c2_56 = arith.constant 2 : index
    %c0_57 = arith.constant 0 : index
    %c0_58 = arith.constant 0 : index
    %92 = vector.load %arg4[%c2_56, %c0_57, %c0_58] : memref<3x384x128xbf16, #tpu.memory_space<vmem>>, vector<1x384x128xbf16>
    %93 = vector.shape_cast %92 : vector<1x384x128xbf16> to vector<384x128xbf16>
    %cst_59 = arith.constant dense<0.000000e+00> : vector<4x128xf32>
    %94 = tpu.matmul %91, %93, %cst_59 {dimension_numbers = #tpu.dot_dimension_numbers<[1], [0], [0], [1], [0, 0, 1, 1], [], []>} : vector<4x384xbf16>, vector<384x128xbf16>, vector<4x128xf32> -> vector<4x128xf32>
    %95 = arith.addf %90, %94 : vector<4x128xf32>
    %c0_60 = arith.constant 0 : index
    %c0_61 = arith.constant 0 : index
    %96 = vector.load %arg5[%c0_60, %c0_61] : memref<1x128xf32, #tpu.memory_space<vmem>>, vector<1x128xf32>
    %97 = vector.broadcast %96 : vector<1x128xf32> to vector<4x128xf32>
    %98 = arith.addf %95, %97 : vector<4x128xf32>
    %99 = arith.addf %98, %29 : vector<4x128xf32>
    %cst_62 = arith.constant 0.000000e+00 : f32
    %100 = vector.broadcast %cst_62 : f32 to vector<4x128xf32>
    %101 = arith.maximumf %99, %100 : vector<4x128xf32>
    %102 = arith.truncf %101 : vector<4x128xf32> to vector<4x128xbf16>
    %c0_63 = arith.constant 0 : index
    %c0_64 = arith.constant 0 : index
    %c0_65 = arith.constant 0 : index
    %103 = vector.load %arg7[%c0_63, %c0_64, %c0_65] : memref<1x4x128xbf16, #tpu.memory_space<vmem>>, vector<1x4x128xbf16>
    %104 = vector.shape_cast %103 : vector<1x4x128xbf16> to vector<4x128xbf16>
    %105 = vector.shape_cast %102 : vector<4x128xbf16> to vector<1x4x128xbf16>
    tpu.vector_store %arg7[%c0_63, %c0_64, %c0_65], %105 {strides = array<i32>} : memref<1x4x128xbf16, #tpu.memory_space<vmem>>, vector<1x4x128xbf16>,
    return
  }
  func.func @transform_0(%arg0: i32) -> (i32, i32, i32) {
    %c0_i32 = arith.constant 0 : i32
    %c0_i32_0 = arith.constant 0 : i32
    %c0_i32_1 = arith.constant 0 : i32
    return %arg0, %c0_i32, %c0_i32_0 : i32, i32, i32
  }
  func.func @transform_1(%arg0: i32) -> (i32, i32, i32) {
    %c0_i32 = arith.constant 0 : i32
    %c0_i32_0 = arith.constant 0 : i32
    %c0_i32_1 = arith.constant 0 : i32
    %c0_i32_2 = arith.constant 0 : i32
    return %c0_i32, %c0_i32_0, %c0_i32_1 : i32, i32, i32
  }
  func.func @transform_2(%arg0: i32) -> (i32, i32) {
    %c0_i32 = arith.constant 0 : i32
    %c0_i32_0 = arith.constant 0 : i32
    %c0_i32_1 = arith.constant 0 : i32
    return %c0_i32, %c0_i32_0 : i32, i32
  }
  func.func @transform_3(%arg0: i32) -> (i32, i32, i32) {
    %c0_i32 = arith.constant 0 : i32
    %c0_i32_0 = arith.constant 0 : i32
    %c0_i32_1 = arith.constant 0 : i32
    %c0_i32_2 = arith.constant 0 : i32
    return %c0_i32, %c0_i32_0, %c0_i32_1 : i32, i32, i32
  }
  func.func @transform_4(%arg0: i32) -> (i32, i32) {
    %c0_i32 = arith.constant 0 : i32
    %c0_i32_0 = arith.constant 0 : i32
    %c0_i32_1 = arith.constant 0 : i32
    return %c0_i32, %c0_i32_0 : i32, i32
  }
  func.func @transform_5(%arg0: i32) -> (i32, i32) {
    %c0_i32 = arith.constant 0 : i32
    %c0_i32_0 = arith.constant 0 : i32
    %c0_i32_1 = arith.constant 0 : i32
    return %c0_i32, %c0_i32_0 : i32, i32
  }
  func.func @transform_6(%arg0: i32) -> (i32, i32, i32) {
    %c0_i32 = arith.constant 0 : i32
    %c0_i32_0 = arith.constant 0 : i32
    %c0_i32_1 = arith.constant 0 : i32
    return %arg0, %c0_i32, %c0_i32_0 : i32, i32, i32
  }
}

module attributes {stable_mosaic.version = 11 : i64} {
  func.func @_block_kernel(%arg0: i32, %arg1: memref<1x8x192xbf16, #tpu.memory_space<vmem>>, %arg2: memref<3x192x128xbf16, #tpu.memory_space<vmem>>, %arg3: memref<1x128xf32, #tpu.memory_space<vmem>>, %arg4: memref<3x384x128xbf16, #tpu.memory_space<vmem>>, %arg5: memref<1x128xf32, #tpu.memory_space<vmem>>, %arg6: memref<1x4x128xbf16, #tpu.memory_space<vmem>>, %arg7: memref<1x4x128xbf16, #tpu.memory_space<vmem>>, %arg8: memref<8x384xbf16, #tpu.memory_space<vmem>>) attributes {dimension_semantics = [#tpu.dimension_semantics<parallel>], iteration_bounds = array<i64: 2>, scalar_prefetch = 0 : i64, scratch_operands = 1 : i64, tpu.core_type = #tpu.core_type<tc>, window_params = [{transform_indices = @transform_0, window_bounds = array<i64: 1, 8, 192>}, {pipeline_mode = #tpu.pipeline_mode<synchronous>, transform_indices = @transform_1, window_bounds = array<i64: 3, 192, 128>}, {pipeline_mode = #tpu.pipeline_mode<synchronous>, transform_indices = @transform_2, window_bounds = array<i64: 1, 128>}, {pipeline_mode = #tpu.pipeline_mode<synchronous>, transform_indices = @transform_3, window_bounds = array<i64: 3, 384, 128>}, {pipeline_mode = #tpu.pipeline_mode<synchronous>, transform_indices = @transform_4, window_bounds = array<i64: 1, 128>}, {transform_indices = @transform_5, window_bounds = array<i64: 1, 4, 128>}, {transform_indices = @transform_6, window_bounds = array<i64: 1, 4, 128>}]} {
    %cst = arith.constant 0.000000e+00 : f32
    %0 = vector.broadcast %cst : f32 to vector<4x128xf32>
    %c0 = arith.constant 0 : index
    %c0_0 = arith.constant 0 : index
    %c0_1 = arith.constant 0 : index
    %1 = vector.load %arg1[%c0, %c0_0, %c0_1] : memref<1x8x192xbf16, #tpu.memory_space<vmem>>, vector<1x4x192xbf16>
    %2 = vector.shape_cast %1 : vector<1x4x192xbf16> to vector<4x192xbf16>
    %c0_2 = arith.constant 0 : index
    %c0_3 = arith.constant 0 : index
    %c0_4 = arith.constant 0 : index
    %3 = vector.load %arg2[%c0_2, %c0_3, %c0_4] : memref<3x192x128xbf16, #tpu.memory_space<vmem>>, vector<1x192x128xbf16>
    %4 = vector.shape_cast %3 : vector<1x192x128xbf16> to vector<192x128xbf16>
    %cst_5 = arith.constant dense<0.000000e+00> : vector<4x128xf32>
    %5 = tpu.matmul %2, %4, %cst_5 {dimension_numbers = #tpu.dot_dimension_numbers<[1], [0], [0], [1], [0, 0, 1, 1], [], []>} : vector<4x192xbf16>, vector<192x128xbf16>, vector<4x128xf32> -> vector<4x128xf32>
    %6 = arith.addf %0, %5 : vector<4x128xf32>
    %c0_6 = arith.constant 0 : index
    %c2 = arith.constant 2 : index
    %c0_7 = arith.constant 0 : index
    %7 = vector.load %arg1[%c0_6, %c2, %c0_7] : memref<1x8x192xbf16, #tpu.memory_space<vmem>>, vector<1x4x192xbf16>
    %8 = vector.shape_cast %7 : vector<1x4x192xbf16> to vector<4x192xbf16>
    %c1 = arith.constant 1 : index
    %c0_8 = arith.constant 0 : index
    %c0_9 = arith.constant 0 : index
    %9 = vector.load %arg2[%c1, %c0_8, %c0_9] : memref<3x192x128xbf16, #tpu.memory_space<vmem>>, vector<1x192x128xbf16>
    %10 = vector.shape_cast %9 : vector<1x192x128xbf16> to vector<192x128xbf16>
    %cst_10 = arith.constant dense<0.000000e+00> : vector<4x128xf32>
    %11 = tpu.matmul %8, %10, %cst_10 {dimension_numbers = #tpu.dot_dimension_numbers<[1], [0], [0], [1], [0, 0, 1, 1], [], []>} : vector<4x192xbf16>, vector<192x128xbf16>, vector<4x128xf32> -> vector<4x128xf32>
    %12 = arith.addf %6, %11 : vector<4x128xf32>
    %c0_11 = arith.constant 0 : index
    %c4 = arith.constant 4 : index
    %c0_12 = arith.constant 0 : index
    %13 = vector.load %arg1[%c0_11, %c4, %c0_12] : memref<1x8x192xbf16, #tpu.memory_space<vmem>>, vector<1x4x192xbf16>
    %14 = vector.shape_cast %13 : vector<1x4x192xbf16> to vector<4x192xbf16>
    %c2_13 = arith.constant 2 : index
    %c0_14 = arith.constant 0 : index
    %c0_15 = arith.constant 0 : index
    %15 = vector.load %arg2[%c2_13, %c0_14, %c0_15] : memref<3x192x128xbf16, #tpu.memory_space<vmem>>, vector<1x192x128xbf16>
    %16 = vector.shape_cast %15 : vector<1x192x128xbf16> to vector<192x128xbf16>
    %cst_16 = arith.constant dense<0.000000e+00> : vector<4x128xf32>
    %17 = tpu.matmul %14, %16, %cst_16 {dimension_numbers = #tpu.dot_dimension_numbers<[1], [0], [0], [1], [0, 0, 1, 1], [], []>} : vector<4x192xbf16>, vector<192x128xbf16>, vector<4x128xf32> -> vector<4x128xf32>
    %18 = arith.addf %12, %17 : vector<4x128xf32>
    %c0_17 = arith.constant 0 : index
    %c0_18 = arith.constant 0 : index
    %19 = vector.load %arg3[%c0_17, %c0_18] : memref<1x128xf32, #tpu.memory_space<vmem>>, vector<1x128xf32>
    %20 = vector.broadcast %19 : vector<1x128xf32> to vector<4x128xf32>
    %21 = arith.addf %18, %20 : vector<4x128xf32>
    %cst_19 = arith.constant 0.000000e+00 : f32
    %22 = vector.broadcast %cst_19 : f32 to vector<4x128xf32>
    %23 = arith.maximumf %21, %22 : vector<4x128xf32>
    %24 = arith.truncf %23 : vector<4x128xf32> to vector<4x128xbf16>
    %c0_20 = arith.constant 0 : index
    %c0_21 = arith.constant 0 : index
    %c0_22 = arith.constant 0 : index
    %25 = vector.load %arg6[%c0_20, %c0_21, %c0_22] : memref<1x4x128xbf16, #tpu.memory_space<vmem>>, vector<1x4x128xbf16>
    %26 = vector.shape_cast %25 : vector<1x4x128xbf16> to vector<4x128xbf16>
    %27 = arith.extf %26 : vector<4x128xbf16> to vector<4x128xf32>
    %cst_23 = arith.constant 0.000000e+00 : bf16
    %28 = vector.broadcast %cst_23 : bf16 to vector<8x384xbf16>
    %c0_24 = arith.constant 0 : index
    %c0_25 = arith.constant 0 : index
    %29 = vector.load %arg8[%c0_24, %c0_25] : memref<8x384xbf16, #tpu.memory_space<vmem>>, vector<8x384xbf16>
    tpu.vector_store %arg8[%c0_24, %c0_25], %28 {strides = array<i32>} : memref<8x384xbf16, #tpu.memory_space<vmem>>, vector<8x384xbf16>,
    %c2_26 = arith.constant 2 : index
    %c128 = arith.constant 128 : index
    %30 = vector.load %arg8[%c2_26, %c128] : memref<8x384xbf16, #tpu.memory_space<vmem>>, vector<4x128xbf16>
    tpu.vector_store %arg8[%c2_26, %c128], %24 {strides = array<i32>} : memref<8x384xbf16, #tpu.memory_space<vmem>>, vector<4x128xbf16>,
    %31 = tpu.iota {dimensions = array<i32: 0>} : vector<4x1xi32>
    %c2_i32 = arith.constant 2 : i32
    %c0_i32 = arith.constant 0 : i32
    %32 = arith.cmpi eq, %c2_i32, %c0_i32 : i32
    %c1_i32 = arith.constant 1 : i32
    %33 = arith.select %32, %c1_i32, %c2_i32 : i32
    %34 = vector.broadcast %33 : i32 to vector<4x1xi32>
    %35 = arith.remsi %31, %34 : vector<4x1xi32>
    %c0_i32_27 = arith.constant 0 : i32
    %36 = vector.broadcast %c0_i32_27 : i32 to vector<4x1xi32>
    %37 = arith.cmpi ne, %35, %36 : vector<4x1xi32>
    %c0_i32_28 = arith.constant 0 : i32
    %38 = vector.broadcast %c0_i32_28 : i32 to vector<4x1xi32>
    %39 = arith.cmpi slt, %35, %38 : vector<4x1xi32>
    %c0_i32_29 = arith.constant 0 : i32
    %40 = arith.cmpi slt, %33, %c0_i32_29 : i32
    %41 = vector.broadcast %40 : i1 to vector<4x1xi1>
    %42 = vector.broadcast %41 : vector<4x1xi1> to vector<4x1xi1>
    %43 = arith.xori %39, %42 : vector<4x1xi1>
    %44 = arith.andi %43, %37 : vector<4x1xi1>
    %45 = vector.broadcast %33 : i32 to vector<4x1xi32>
    %46 = arith.addi %35, %45 : vector<4x1xi32>
    %47 = arith.select %44, %46, %35 : vector<4x1xi1>, vector<4x1xi32>
    %c1_i32_30 = arith.constant 1 : i32
    %48 = vector.broadcast %c1_i32_30 : i32 to vector<4x1xi32>
    %49 = arith.cmpi ne, %47, %48 : vector<4x1xi32>
    %cst_31 = arith.constant 0.000000e+00 : bf16
    %50 = vector.broadcast %cst_31 : bf16 to vector<4x128xbf16>
    %51 = vector.shape_cast %49 : vector<4x1xi1> to vector<4x1xi1>
    %52 = vector.broadcast %51 : vector<4x1xi1> to vector<4x128xi1>
    %53 = arith.select %52, %24, %50 : vector<4x128xi1>, vector<4x128xbf16>
    %c3 = arith.constant 3 : index
    %c0_32 = arith.constant 0 : index
    %54 = vector.load %arg8[%c3, %c0_32] : memref<8x384xbf16, #tpu.memory_space<vmem>>, vector<4x128xbf16>
    tpu.vector_store %arg8[%c3, %c0_32], %53 {strides = array<i32>} : memref<8x384xbf16, #tpu.memory_space<vmem>>, vector<4x128xbf16>,
    %c2_i32_33 = arith.constant 2 : i32
    %c0_i32_34 = arith.constant 0 : i32
    %55 = arith.cmpi eq, %c2_i32_33, %c0_i32_34 : i32
    %c1_i32_35 = arith.constant 1 : i32
    %56 = arith.select %55, %c1_i32_35, %c2_i32_33 : i32
    %57 = vector.broadcast %56 : i32 to vector<4x1xi32>
    %58 = arith.remsi %31, %57 : vector<4x1xi32>
    %c0_i32_36 = arith.constant 0 : i32
    %59 = vector.broadcast %c0_i32_36 : i32 to vector<4x1xi32>
    %60 = arith.cmpi ne, %58, %59 : vector<4x1xi32>
    %c0_i32_37 = arith.constant 0 : i32
    %61 = vector.broadcast %c0_i32_37 : i32 to vector<4x1xi32>
    %62 = arith.cmpi slt, %58, %61 : vector<4x1xi32>
    %c0_i32_38 = arith.constant 0 : i32
    %63 = arith.cmpi slt, %56, %c0_i32_38 : i32
    %64 = vector.broadcast %63 : i1 to vector<4x1xi1>
    %65 = vector.broadcast %64 : vector<4x1xi1> to vector<4x1xi1>
    %66 = arith.xori %62, %65 : vector<4x1xi1>
    %67 = arith.andi %66, %60 : vector<4x1xi1>
    %68 = vector.broadcast %56 : i32 to vector<4x1xi32>
    %69 = arith.addi %58, %68 : vector<4x1xi32>
    %70 = arith.select %67, %69, %58 : vector<4x1xi1>, vector<4x1xi32>
    %c0_i32_39 = arith.constant 0 : i32
    %71 = vector.broadcast %c0_i32_39 : i32 to vector<4x1xi32>
    %72 = arith.cmpi ne, %70, %71 : vector<4x1xi32>
    %cst_40 = arith.constant 0.000000e+00 : bf16
    %73 = vector.broadcast %cst_40 : bf16 to vector<4x128xbf16>
    %74 = vector.shape_cast %72 : vector<4x1xi1> to vector<4x1xi1>
    %75 = vector.broadcast %74 : vector<4x1xi1> to vector<4x128xi1>
    %76 = arith.select %75, %24, %73 : vector<4x128xi1>, vector<4x128xbf16>
    %c1_41 = arith.constant 1 : index
    %c256 = arith.constant 256 : index
    %77 = vector.load %arg8[%c1_41, %c256] : memref<8x384xbf16, #tpu.memory_space<vmem>>, vector<4x128xbf16>
    tpu.vector_store %arg8[%c1_41, %c256], %76 {strides = array<i32>} : memref<8x384xbf16, #tpu.memory_space<vmem>>, vector<4x128xbf16>,
    %cst_42 = arith.constant 0.000000e+00 : f32
    %78 = vector.broadcast %cst_42 : f32 to vector<4x128xf32>
    %c0_43 = arith.constant 0 : index
    %c0_44 = arith.constant 0 : index
    %79 = vector.load %arg8[%c0_43, %c0_44] : memref<8x384xbf16, #tpu.memory_space<vmem>>, vector<4x384xbf16>
    %c0_45 = arith.constant 0 : index
    %c0_46 = arith.constant 0 : index
    %c0_47 = arith.constant 0 : index
    %80 = vector.load %arg4[%c0_45, %c0_46, %c0_47] : memref<3x384x128xbf16, #tpu.memory_space<vmem>>, vector<1x384x128xbf16>
    %81 = vector.shape_cast %80 : vector<1x384x128xbf16> to vector<384x128xbf16>
    %cst_48 = arith.constant dense<0.000000e+00> : vector<4x128xf32>
    %82 = tpu.matmul %79, %81, %cst_48 {dimension_numbers = #tpu.dot_dimension_numbers<[1], [0], [0], [1], [0, 0, 1, 1], [], []>} : vector<4x384xbf16>, vector<384x128xbf16>, vector<4x128xf32> -> vector<4x128xf32>
    %83 = arith.addf %78, %82 : vector<4x128xf32>
    %c2_49 = arith.constant 2 : index
    %c0_50 = arith.constant 0 : index
    %84 = vector.load %arg8[%c2_49, %c0_50] : memref<8x384xbf16, #tpu.memory_space<vmem>>, vector<4x384xbf16>
    %c1_51 = arith.constant 1 : index
    %c0_52 = arith.constant 0 : index
    %c0_53 = arith.constant 0 : index
    %85 = vector.load %arg4[%c1_51, %c0_52, %c0_53] : memref<3x384x128xbf16, #tpu.memory_space<vmem>>, vector<1x384x128xbf16>
    %86 = vector.shape_cast %85 : vector<1x384x128xbf16> to vector<384x128xbf16>
    %cst_54 = arith.constant dense<0.000000e+00> : vector<4x128xf32>
    %87 = tpu.matmul %84, %86, %cst_54 {dimension_numbers = #tpu.dot_dimension_numbers<[1], [0], [0], [1], [0, 0, 1, 1], [], []>} : vector<4x384xbf16>, vector<384x128xbf16>, vector<4x128xf32> -> vector<4x128xf32>
    %88 = arith.addf %83, %87 : vector<4x128xf32>
    %c4_55 = arith.constant 4 : index
    %c0_56 = arith.constant 0 : index
    %89 = vector.load %arg8[%c4_55, %c0_56] : memref<8x384xbf16, #tpu.memory_space<vmem>>, vector<4x384xbf16>
    %c2_57 = arith.constant 2 : index
    %c0_58 = arith.constant 0 : index
    %c0_59 = arith.constant 0 : index
    %90 = vector.load %arg4[%c2_57, %c0_58, %c0_59] : memref<3x384x128xbf16, #tpu.memory_space<vmem>>, vector<1x384x128xbf16>
    %91 = vector.shape_cast %90 : vector<1x384x128xbf16> to vector<384x128xbf16>
    %cst_60 = arith.constant dense<0.000000e+00> : vector<4x128xf32>
    %92 = tpu.matmul %89, %91, %cst_60 {dimension_numbers = #tpu.dot_dimension_numbers<[1], [0], [0], [1], [0, 0, 1, 1], [], []>} : vector<4x384xbf16>, vector<384x128xbf16>, vector<4x128xf32> -> vector<4x128xf32>
    %93 = arith.addf %88, %92 : vector<4x128xf32>
    %c0_61 = arith.constant 0 : index
    %c0_62 = arith.constant 0 : index
    %94 = vector.load %arg5[%c0_61, %c0_62] : memref<1x128xf32, #tpu.memory_space<vmem>>, vector<1x128xf32>
    %95 = vector.broadcast %94 : vector<1x128xf32> to vector<4x128xf32>
    %96 = arith.addf %93, %95 : vector<4x128xf32>
    %97 = arith.addf %96, %27 : vector<4x128xf32>
    %cst_63 = arith.constant 0.000000e+00 : f32
    %98 = vector.broadcast %cst_63 : f32 to vector<4x128xf32>
    %99 = arith.maximumf %97, %98 : vector<4x128xf32>
    %100 = arith.truncf %99 : vector<4x128xf32> to vector<4x128xbf16>
    %c0_64 = arith.constant 0 : index
    %c0_65 = arith.constant 0 : index
    %c0_66 = arith.constant 0 : index
    %101 = vector.load %arg7[%c0_64, %c0_65, %c0_66] : memref<1x4x128xbf16, #tpu.memory_space<vmem>>, vector<1x4x128xbf16>
    %102 = vector.shape_cast %101 : vector<1x4x128xbf16> to vector<4x128xbf16>
    %103 = vector.shape_cast %100 : vector<4x128xbf16> to vector<1x4x128xbf16>
    tpu.vector_store %arg7[%c0_64, %c0_65, %c0_66], %103 {strides = array<i32>} : memref<1x4x128xbf16, #tpu.memory_space<vmem>>, vector<1x4x128xbf16>,
    return
  }
  func.func @transform_0(%arg0: i32) -> (i32, i32, i32) {
    %c0_i32 = arith.constant 0 : i32
    %c0_i32_0 = arith.constant 0 : i32
    %c0_i32_1 = arith.constant 0 : i32
    return %arg0, %c0_i32, %c0_i32_0 : i32, i32, i32
  }
  func.func @transform_1(%arg0: i32) -> (i32, i32, i32) {
    %c0_i32 = arith.constant 0 : i32
    %c0_i32_0 = arith.constant 0 : i32
    %c0_i32_1 = arith.constant 0 : i32
    %c0_i32_2 = arith.constant 0 : i32
    return %c0_i32, %c0_i32_0, %c0_i32_1 : i32, i32, i32
  }
  func.func @transform_2(%arg0: i32) -> (i32, i32) {
    %c0_i32 = arith.constant 0 : i32
    %c0_i32_0 = arith.constant 0 : i32
    %c0_i32_1 = arith.constant 0 : i32
    return %c0_i32, %c0_i32_0 : i32, i32
  }
  func.func @transform_3(%arg0: i32) -> (i32, i32, i32) {
    %c0_i32 = arith.constant 0 : i32
    %c0_i32_0 = arith.constant 0 : i32
    %c0_i32_1 = arith.constant 0 : i32
    %c0_i32_2 = arith.constant 0 : i32
    return %c0_i32, %c0_i32_0, %c0_i32_1 : i32, i32, i32
  }
  func.func @transform_4(%arg0: i32) -> (i32, i32) {
    %c0_i32 = arith.constant 0 : i32
    %c0_i32_0 = arith.constant 0 : i32
    %c0_i32_1 = arith.constant 0 : i32
    return %c0_i32, %c0_i32_0 : i32, i32
  }
  func.func @transform_5(%arg0: i32) -> (i32, i32, i32) {
    %c0_i32 = arith.constant 0 : i32
    %c0_i32_0 = arith.constant 0 : i32
    %c0_i32_1 = arith.constant 0 : i32
    return %arg0, %c0_i32, %c0_i32_0 : i32, i32, i32
  }
  func.func @transform_6(%arg0: i32) -> (i32, i32, i32) {
    %c0_i32 = arith.constant 0 : i32
    %c0_i32_0 = arith.constant 0 : i32
    %c0_i32_1 = arith.constant 0 : i32
    return %arg0, %c0_i32, %c0_i32_0 : i32, i32, i32
  }
}

module attributes {stable_mosaic.version = 11 : i64} {
  func.func @_block_kernel(%arg0: i32, %arg1: memref<2x2x192xbf16, #tpu.memory_space<vmem>>, %arg2: memref<3x192x256xbf16, #tpu.memory_space<vmem>>, %arg3: memref<1x128xf32, #tpu.memory_space<vmem>>, %arg4: memref<3x384x128xbf16, #tpu.memory_space<vmem>>, %arg5: memref<1x128xf32, #tpu.memory_space<vmem>>, %arg6: memref<1x128xf32, #tpu.memory_space<vmem>>, %arg7: memref<1x1x128xbf16, #tpu.memory_space<vmem>>, %arg8: memref<3x384xbf16, #tpu.memory_space<vmem>>) attributes {dimension_semantics = [#tpu.dimension_semantics<parallel>], iteration_bounds = array<i64: 2>, scalar_prefetch = 0 : i64, scratch_operands = 1 : i64, tpu.core_type = #tpu.core_type<tc>, window_params = [{transform_indices = @transform_0, window_bounds = array<i64: 2, 2, 192>}, {pipeline_mode = #tpu.pipeline_mode<synchronous>, transform_indices = @transform_1, window_bounds = array<i64: 3, 192, 256>}, {pipeline_mode = #tpu.pipeline_mode<synchronous>, transform_indices = @transform_2, window_bounds = array<i64: 1, 128>}, {pipeline_mode = #tpu.pipeline_mode<synchronous>, transform_indices = @transform_3, window_bounds = array<i64: 3, 384, 128>}, {pipeline_mode = #tpu.pipeline_mode<synchronous>, transform_indices = @transform_4, window_bounds = array<i64: 1, 128>}, {pipeline_mode = #tpu.pipeline_mode<synchronous>, transform_indices = @transform_5, window_bounds = array<i64: 1, 128>}, {transform_indices = @transform_6, window_bounds = array<i64: 1, 1, 128>}]} {
    %cst = arith.constant 0.000000e+00 : f32
    %0 = vector.broadcast %cst : f32 to vector<1x256xf32>
    %c0 = arith.constant 0 : index
    %c0_0 = arith.constant 0 : index
    %c0_1 = arith.constant 0 : index
    %1 = vector.load %arg1[%c0, %c0_0, %c0_1] : memref<2x2x192xbf16, #tpu.memory_space<vmem>>, vector<1x1x192xbf16>
    %2 = vector.shape_cast %1 : vector<1x1x192xbf16> to vector<1x192xbf16>
    %c0_2 = arith.constant 0 : index
    %c0_3 = arith.constant 0 : index
    %c0_4 = arith.constant 0 : index
    %3 = vector.load %arg2[%c0_2, %c0_3, %c0_4] : memref<3x192x256xbf16, #tpu.memory_space<vmem>>, vector<1x192x256xbf16>
    %4 = vector.shape_cast %3 : vector<1x192x256xbf16> to vector<192x256xbf16>
    %cst_5 = arith.constant dense<0.000000e+00> : vector<1x256xf32>
    %5 = tpu.matmul %2, %4, %cst_5 {dimension_numbers = #tpu.dot_dimension_numbers<[1], [0], [0], [1], [0, 0, 1, 1], [], []>} : vector<1x192xbf16>, vector<192x256xbf16>, vector<1x256xf32> -> vector<1x256xf32>
    %6 = arith.addf %0, %5 : vector<1x256xf32>
    %c1 = arith.constant 1 : index
    %c0_6 = arith.constant 0 : index
    %c0_7 = arith.constant 0 : index
    %7 = vector.load %arg1[%c1, %c0_6, %c0_7] : memref<2x2x192xbf16, #tpu.memory_space<vmem>>, vector<1x1x192xbf16>
    %8 = vector.shape_cast %7 : vector<1x1x192xbf16> to vector<1x192xbf16>
    %c1_8 = arith.constant 1 : index
    %c0_9 = arith.constant 0 : index
    %c0_10 = arith.constant 0 : index
    %9 = vector.load %arg2[%c1_8, %c0_9, %c0_10] : memref<3x192x256xbf16, #tpu.memory_space<vmem>>, vector<1x192x256xbf16>
    %10 = vector.shape_cast %9 : vector<1x192x256xbf16> to vector<192x256xbf16>
    %cst_11 = arith.constant dense<0.000000e+00> : vector<1x256xf32>
    %11 = tpu.matmul %8, %10, %cst_11 {dimension_numbers = #tpu.dot_dimension_numbers<[1], [0], [0], [1], [0, 0, 1, 1], [], []>} : vector<1x192xbf16>, vector<192x256xbf16>, vector<1x256xf32> -> vector<1x256xf32>
    %12 = arith.addf %6, %11 : vector<1x256xf32>
    %c0_12 = arith.constant 0 : index
    %c1_13 = arith.constant 1 : index
    %c0_14 = arith.constant 0 : index
    %13 = vector.load %arg1[%c0_12, %c1_13, %c0_14] : memref<2x2x192xbf16, #tpu.memory_space<vmem>>, vector<1x1x192xbf16>
    %14 = vector.shape_cast %13 : vector<1x1x192xbf16> to vector<1x192xbf16>
    %c2 = arith.constant 2 : index
    %c0_15 = arith.constant 0 : index
    %c0_16 = arith.constant 0 : index
    %15 = vector.load %arg2[%c2, %c0_15, %c0_16] : memref<3x192x256xbf16, #tpu.memory_space<vmem>>, vector<1x192x256xbf16>
    %16 = vector.shape_cast %15 : vector<1x192x256xbf16> to vector<192x256xbf16>
    %cst_17 = arith.constant dense<0.000000e+00> : vector<1x256xf32>
    %17 = tpu.matmul %14, %16, %cst_17 {dimension_numbers = #tpu.dot_dimension_numbers<[1], [0], [0], [1], [0, 0, 1, 1], [], []>} : vector<1x192xbf16>, vector<192x256xbf16>, vector<1x256xf32> -> vector<1x256xf32>
    %18 = arith.addf %12, %17 : vector<1x256xf32>
    %19 = vector.extract_strided_slice %18 {offsets = [0, 0], sizes = [1, 128], strides = [1, 1]} : vector<1x256xf32> to vector<1x128xf32>
    %c0_18 = arith.constant 0 : index
    %c0_19 = arith.constant 0 : index
    %20 = vector.load %arg3[%c0_18, %c0_19] : memref<1x128xf32, #tpu.memory_space<vmem>>, vector<1x128xf32>
    %21 = arith.addf %19, %20 : vector<1x128xf32>
    %cst_20 = arith.constant 0.000000e+00 : f32
    %22 = vector.broadcast %cst_20 : f32 to vector<1x128xf32>
    %23 = arith.maximumf %21, %22 : vector<1x128xf32>
    %24 = arith.truncf %23 : vector<1x128xf32> to vector<1x128xbf16>
    %25 = vector.extract_strided_slice %18 {offsets = [0, 128], sizes = [1, 128], strides = [1, 1]} : vector<1x256xf32> to vector<1x128xf32>
    %c0_21 = arith.constant 0 : index
    %c0_22 = arith.constant 0 : index
    %26 = vector.load %arg6[%c0_21, %c0_22] : memref<1x128xf32, #tpu.memory_space<vmem>>, vector<1x128xf32>
    %27 = arith.addf %25, %26 : vector<1x128xf32>
    %cst_23 = arith.constant 0.000000e+00 : bf16
    %28 = vector.broadcast %cst_23 : bf16 to vector<3x384xbf16>
    %c0_24 = arith.constant 0 : index
    %c0_25 = arith.constant 0 : index
    %29 = vector.load %arg8[%c0_24, %c0_25] : memref<3x384xbf16, #tpu.memory_space<vmem>>, vector<3x384xbf16>
    tpu.vector_store %arg8[%c0_24, %c0_25], %28 {strides = array<i32>} : memref<3x384xbf16, #tpu.memory_space<vmem>>, vector<3x384xbf16>,
    %c1_26 = arith.constant 1 : index
    %c128 = arith.constant 128 : index
    %30 = vector.load %arg8[%c1_26, %c128] : memref<3x384xbf16, #tpu.memory_space<vmem>>, vector<1x128xbf16>
    tpu.vector_store %arg8[%c1_26, %c128], %24 {strides = array<i32>} : memref<3x384xbf16, #tpu.memory_space<vmem>>, vector<1x128xbf16>,
    %31 = tpu.iota {dimensions = array<i32: 0>} : vector<1x1xi32>
    %c1_i32 = arith.constant 1 : i32
    %c0_i32 = arith.constant 0 : i32
    %32 = arith.cmpi eq, %c1_i32, %c0_i32 : i32
    %c1_i32_27 = arith.constant 1 : i32
    %33 = arith.select %32, %c1_i32_27, %c1_i32 : i32
    %34 = vector.broadcast %33 : i32 to vector<1x1xi32>
    %35 = arith.remsi %31, %34 : vector<1x1xi32>
    %c0_i32_28 = arith.constant 0 : i32
    %36 = vector.broadcast %c0_i32_28 : i32 to vector<1x1xi32>
    %37 = arith.cmpi ne, %35, %36 : vector<1x1xi32>
    %c0_i32_29 = arith.constant 0 : i32
    %38 = vector.broadcast %c0_i32_29 : i32 to vector<1x1xi32>
    %39 = arith.cmpi slt, %35, %38 : vector<1x1xi32>
    %c0_i32_30 = arith.constant 0 : i32
    %40 = arith.cmpi slt, %33, %c0_i32_30 : i32
    %41 = vector.broadcast %40 : i1 to vector<1x1xi1>
    %42 = vector.broadcast %41 : vector<1x1xi1> to vector<1x1xi1>
    %43 = arith.xori %39, %42 : vector<1x1xi1>
    %44 = arith.andi %43, %37 : vector<1x1xi1>
    %45 = vector.broadcast %33 : i32 to vector<1x1xi32>
    %46 = arith.addi %35, %45 : vector<1x1xi32>
    %47 = arith.select %44, %46, %35 : vector<1x1xi1>, vector<1x1xi32>
    %c0_i32_31 = arith.constant 0 : i32
    %48 = vector.broadcast %c0_i32_31 : i32 to vector<1x1xi32>
    %49 = arith.cmpi ne, %47, %48 : vector<1x1xi32>
    %cst_32 = arith.constant 0.000000e+00 : bf16
    %50 = vector.broadcast %cst_32 : bf16 to vector<1x128xbf16>
    %51 = vector.shape_cast %49 : vector<1x1xi1> to vector<1x1xi1>
    %52 = vector.broadcast %51 : vector<1x1xi1> to vector<1x128xi1>
    %53 = arith.select %52, %24, %50 : vector<1x128xi1>, vector<1x128xbf16>
    %c2_33 = arith.constant 2 : index
    %c0_34 = arith.constant 0 : index
    %54 = vector.load %arg8[%c2_33, %c0_34] : memref<3x384xbf16, #tpu.memory_space<vmem>>, vector<1x128xbf16>
    tpu.vector_store %arg8[%c2_33, %c0_34], %53 {strides = array<i32>} : memref<3x384xbf16, #tpu.memory_space<vmem>>, vector<1x128xbf16>,
    %c1_i32_35 = arith.constant 1 : i32
    %c0_i32_36 = arith.constant 0 : i32
    %55 = arith.cmpi eq, %c1_i32_35, %c0_i32_36 : i32
    %c1_i32_37 = arith.constant 1 : i32
    %56 = arith.select %55, %c1_i32_37, %c1_i32_35 : i32
    %57 = vector.broadcast %56 : i32 to vector<1x1xi32>
    %58 = arith.remsi %31, %57 : vector<1x1xi32>
    %c0_i32_38 = arith.constant 0 : i32
    %59 = vector.broadcast %c0_i32_38 : i32 to vector<1x1xi32>
    %60 = arith.cmpi ne, %58, %59 : vector<1x1xi32>
    %c0_i32_39 = arith.constant 0 : i32
    %61 = vector.broadcast %c0_i32_39 : i32 to vector<1x1xi32>
    %62 = arith.cmpi slt, %58, %61 : vector<1x1xi32>
    %c0_i32_40 = arith.constant 0 : i32
    %63 = arith.cmpi slt, %56, %c0_i32_40 : i32
    %64 = vector.broadcast %63 : i1 to vector<1x1xi1>
    %65 = vector.broadcast %64 : vector<1x1xi1> to vector<1x1xi1>
    %66 = arith.xori %62, %65 : vector<1x1xi1>
    %67 = arith.andi %66, %60 : vector<1x1xi1>
    %68 = vector.broadcast %56 : i32 to vector<1x1xi32>
    %69 = arith.addi %58, %68 : vector<1x1xi32>
    %70 = arith.select %67, %69, %58 : vector<1x1xi1>, vector<1x1xi32>
    %c0_i32_41 = arith.constant 0 : i32
    %71 = vector.broadcast %c0_i32_41 : i32 to vector<1x1xi32>
    %72 = arith.cmpi ne, %70, %71 : vector<1x1xi32>
    %cst_42 = arith.constant 0.000000e+00 : bf16
    %73 = vector.broadcast %cst_42 : bf16 to vector<1x128xbf16>
    %74 = vector.shape_cast %72 : vector<1x1xi1> to vector<1x1xi1>
    %75 = vector.broadcast %74 : vector<1x1xi1> to vector<1x128xi1>
    %76 = arith.select %75, %24, %73 : vector<1x128xi1>, vector<1x128xbf16>
    %c0_43 = arith.constant 0 : index
    %c256 = arith.constant 256 : index
    %77 = vector.load %arg8[%c0_43, %c256] : memref<3x384xbf16, #tpu.memory_space<vmem>>, vector<1x128xbf16>
    tpu.vector_store %arg8[%c0_43, %c256], %76 {strides = array<i32>} : memref<3x384xbf16, #tpu.memory_space<vmem>>, vector<1x128xbf16>,
    %cst_44 = arith.constant 0.000000e+00 : f32
    %78 = vector.broadcast %cst_44 : f32 to vector<1x128xf32>
    %c0_45 = arith.constant 0 : index
    %c0_46 = arith.constant 0 : index
    %79 = vector.load %arg8[%c0_45, %c0_46] : memref<3x384xbf16, #tpu.memory_space<vmem>>, vector<1x384xbf16>
    %c0_47 = arith.constant 0 : index
    %c0_48 = arith.constant 0 : index
    %c0_49 = arith.constant 0 : index
    %80 = vector.load %arg4[%c0_47, %c0_48, %c0_49] : memref<3x384x128xbf16, #tpu.memory_space<vmem>>, vector<1x384x128xbf16>
    %81 = vector.shape_cast %80 : vector<1x384x128xbf16> to vector<384x128xbf16>
    %cst_50 = arith.constant dense<0.000000e+00> : vector<1x128xf32>
    %82 = tpu.matmul %79, %81, %cst_50 {dimension_numbers = #tpu.dot_dimension_numbers<[1], [0], [0], [1], [0, 0, 1, 1], [], []>} : vector<1x384xbf16>, vector<384x128xbf16>, vector<1x128xf32> -> vector<1x128xf32>
    %83 = arith.addf %78, %82 : vector<1x128xf32>
    %c1_51 = arith.constant 1 : index
    %c0_52 = arith.constant 0 : index
    %84 = vector.load %arg8[%c1_51, %c0_52] : memref<3x384xbf16, #tpu.memory_space<vmem>>, vector<1x384xbf16>
    %c1_53 = arith.constant 1 : index
    %c0_54 = arith.constant 0 : index
    %c0_55 = arith.constant 0 : index
    %85 = vector.load %arg4[%c1_53, %c0_54, %c0_55] : memref<3x384x128xbf16, #tpu.memory_space<vmem>>, vector<1x384x128xbf16>
    %86 = vector.shape_cast %85 : vector<1x384x128xbf16> to vector<384x128xbf16>
    %cst_56 = arith.constant dense<0.000000e+00> : vector<1x128xf32>
    %87 = tpu.matmul %84, %86, %cst_56 {dimension_numbers = #tpu.dot_dimension_numbers<[1], [0], [0], [1], [0, 0, 1, 1], [], []>} : vector<1x384xbf16>, vector<384x128xbf16>, vector<1x128xf32> -> vector<1x128xf32>
    %88 = arith.addf %83, %87 : vector<1x128xf32>
    %c2_57 = arith.constant 2 : index
    %c0_58 = arith.constant 0 : index
    %89 = vector.load %arg8[%c2_57, %c0_58] : memref<3x384xbf16, #tpu.memory_space<vmem>>, vector<1x384xbf16>
    %c2_59 = arith.constant 2 : index
    %c0_60 = arith.constant 0 : index
    %c0_61 = arith.constant 0 : index
    %90 = vector.load %arg4[%c2_59, %c0_60, %c0_61] : memref<3x384x128xbf16, #tpu.memory_space<vmem>>, vector<1x384x128xbf16>
    %91 = vector.shape_cast %90 : vector<1x384x128xbf16> to vector<384x128xbf16>
    %cst_62 = arith.constant dense<0.000000e+00> : vector<1x128xf32>
    %92 = tpu.matmul %89, %91, %cst_62 {dimension_numbers = #tpu.dot_dimension_numbers<[1], [0], [0], [1], [0, 0, 1, 1], [], []>} : vector<1x384xbf16>, vector<384x128xbf16>, vector<1x128xf32> -> vector<1x128xf32>
    %93 = arith.addf %88, %92 : vector<1x128xf32>
    %c0_63 = arith.constant 0 : index
    %c0_64 = arith.constant 0 : index
    %94 = vector.load %arg5[%c0_63, %c0_64] : memref<1x128xf32, #tpu.memory_space<vmem>>, vector<1x128xf32>
    %95 = arith.addf %93, %94 : vector<1x128xf32>
    %96 = arith.addf %95, %27 : vector<1x128xf32>
    %cst_65 = arith.constant 0.000000e+00 : f32
    %97 = vector.broadcast %cst_65 : f32 to vector<1x128xf32>
    %98 = arith.maximumf %96, %97 : vector<1x128xf32>
    %99 = arith.truncf %98 : vector<1x128xf32> to vector<1x128xbf16>
    %c0_66 = arith.constant 0 : index
    %c0_67 = arith.constant 0 : index
    %c0_68 = arith.constant 0 : index
    %100 = vector.load %arg7[%c0_66, %c0_67, %c0_68] : memref<1x1x128xbf16, #tpu.memory_space<vmem>>, vector<1x1x128xbf16>
    %101 = vector.shape_cast %100 : vector<1x1x128xbf16> to vector<1x128xbf16>
    %102 = vector.shape_cast %99 : vector<1x128xbf16> to vector<1x1x128xbf16>
    tpu.vector_store %arg7[%c0_66, %c0_67, %c0_68], %102 {strides = array<i32>} : memref<1x1x128xbf16, #tpu.memory_space<vmem>>, vector<1x1x128xbf16>,
    return
  }
  func.func @transform_0(%arg0: i32) -> (i32, i32, i32) {
    %c0_i32 = arith.constant 0 : i32
    %c0_i32_0 = arith.constant 0 : i32
    %c0_i32_1 = arith.constant 0 : i32
    return %arg0, %c0_i32, %c0_i32_0 : i32, i32, i32
  }
  func.func @transform_1(%arg0: i32) -> (i32, i32, i32) {
    %c0_i32 = arith.constant 0 : i32
    %c0_i32_0 = arith.constant 0 : i32
    %c0_i32_1 = arith.constant 0 : i32
    %c0_i32_2 = arith.constant 0 : i32
    return %c0_i32, %c0_i32_0, %c0_i32_1 : i32, i32, i32
  }
  func.func @transform_2(%arg0: i32) -> (i32, i32) {
    %c0_i32 = arith.constant 0 : i32
    %c0_i32_0 = arith.constant 0 : i32
    %c0_i32_1 = arith.constant 0 : i32
    return %c0_i32, %c0_i32_0 : i32, i32
  }
  func.func @transform_3(%arg0: i32) -> (i32, i32, i32) {
    %c0_i32 = arith.constant 0 : i32
    %c0_i32_0 = arith.constant 0 : i32
    %c0_i32_1 = arith.constant 0 : i32
    %c0_i32_2 = arith.constant 0 : i32
    return %c0_i32, %c0_i32_0, %c0_i32_1 : i32, i32, i32
  }
  func.func @transform_4(%arg0: i32) -> (i32, i32) {
    %c0_i32 = arith.constant 0 : i32
    %c0_i32_0 = arith.constant 0 : i32
    %c0_i32_1 = arith.constant 0 : i32
    return %c0_i32, %c0_i32_0 : i32, i32
  }
  func.func @transform_5(%arg0: i32) -> (i32, i32) {
    %c0_i32 = arith.constant 0 : i32
    %c0_i32_0 = arith.constant 0 : i32
    %c0_i32_1 = arith.constant 0 : i32
    return %c0_i32, %c0_i32_0 : i32, i32
  }
  func.func @transform_6(%arg0: i32) -> (i32, i32, i32) {
    %c0_i32 = arith.constant 0 : i32
    %c0_i32_0 = arith.constant 0 : i32
    %c0_i32_1 = arith.constant 0 : i32
    return %arg0, %c0_i32, %c0_i32_0 : i32, i32, i32
  }
}

module attributes {stable_mosaic.version = 11 : i64} {
  func.func @_block_kernel(%arg0: i32, %arg1: memref<1x3x384xbf16, #tpu.memory_space<vmem>>, %arg2: memref<3x384x128xbf16, #tpu.memory_space<vmem>>, %arg3: memref<1x128xf32, #tpu.memory_space<vmem>>, %arg4: memref<3x384x128xbf16, #tpu.memory_space<vmem>>, %arg5: memref<1x128xf32, #tpu.memory_space<vmem>>, %arg6: memref<1x1x128xbf16, #tpu.memory_space<vmem>>, %arg7: memref<1x1x128xbf16, #tpu.memory_space<vmem>>, %arg8: memref<3x384xbf16, #tpu.memory_space<vmem>>) attributes {dimension_semantics = [#tpu.dimension_semantics<parallel>], iteration_bounds = array<i64: 2>, scalar_prefetch = 0 : i64, scratch_operands = 1 : i64, tpu.core_type = #tpu.core_type<tc>, window_params = [{transform_indices = @transform_0, window_bounds = array<i64: 1, 3, 384>}, {pipeline_mode = #tpu.pipeline_mode<synchronous>, transform_indices = @transform_1, window_bounds = array<i64: 3, 384, 128>}, {pipeline_mode = #tpu.pipeline_mode<synchronous>, transform_indices = @transform_2, window_bounds = array<i64: 1, 128>}, {pipeline_mode = #tpu.pipeline_mode<synchronous>, transform_indices = @transform_3, window_bounds = array<i64: 3, 384, 128>}, {pipeline_mode = #tpu.pipeline_mode<synchronous>, transform_indices = @transform_4, window_bounds = array<i64: 1, 128>}, {transform_indices = @transform_5, window_bounds = array<i64: 1, 1, 128>}, {transform_indices = @transform_6, window_bounds = array<i64: 1, 1, 128>}]} {
    %cst = arith.constant 0.000000e+00 : f32
    %0 = vector.broadcast %cst : f32 to vector<1x128xf32>
    %c0 = arith.constant 0 : index
    %c0_0 = arith.constant 0 : index
    %c0_1 = arith.constant 0 : index
    %1 = vector.load %arg1[%c0, %c0_0, %c0_1] : memref<1x3x384xbf16, #tpu.memory_space<vmem>>, vector<1x1x384xbf16>
    %2 = vector.shape_cast %1 : vector<1x1x384xbf16> to vector<1x384xbf16>
    %c0_2 = arith.constant 0 : index
    %c0_3 = arith.constant 0 : index
    %c0_4 = arith.constant 0 : index
    %3 = vector.load %arg2[%c0_2, %c0_3, %c0_4] : memref<3x384x128xbf16, #tpu.memory_space<vmem>>, vector<1x384x128xbf16>
    %4 = vector.shape_cast %3 : vector<1x384x128xbf16> to vector<384x128xbf16>
    %cst_5 = arith.constant dense<0.000000e+00> : vector<1x128xf32>
    %5 = tpu.matmul %2, %4, %cst_5 {dimension_numbers = #tpu.dot_dimension_numbers<[1], [0], [0], [1], [0, 0, 1, 1], [], []>} : vector<1x384xbf16>, vector<384x128xbf16>, vector<1x128xf32> -> vector<1x128xf32>
    %6 = arith.addf %0, %5 : vector<1x128xf32>
    %c0_6 = arith.constant 0 : index
    %c1 = arith.constant 1 : index
    %c0_7 = arith.constant 0 : index
    %7 = vector.load %arg1[%c0_6, %c1, %c0_7] : memref<1x3x384xbf16, #tpu.memory_space<vmem>>, vector<1x1x384xbf16>
    %8 = vector.shape_cast %7 : vector<1x1x384xbf16> to vector<1x384xbf16>
    %c1_8 = arith.constant 1 : index
    %c0_9 = arith.constant 0 : index
    %c0_10 = arith.constant 0 : index
    %9 = vector.load %arg2[%c1_8, %c0_9, %c0_10] : memref<3x384x128xbf16, #tpu.memory_space<vmem>>, vector<1x384x128xbf16>
    %10 = vector.shape_cast %9 : vector<1x384x128xbf16> to vector<384x128xbf16>
    %cst_11 = arith.constant dense<0.000000e+00> : vector<1x128xf32>
    %11 = tpu.matmul %8, %10, %cst_11 {dimension_numbers = #tpu.dot_dimension_numbers<[1], [0], [0], [1], [0, 0, 1, 1], [], []>} : vector<1x384xbf16>, vector<384x128xbf16>, vector<1x128xf32> -> vector<1x128xf32>
    %12 = arith.addf %6, %11 : vector<1x128xf32>
    %c0_12 = arith.constant 0 : index
    %c2 = arith.constant 2 : index
    %c0_13 = arith.constant 0 : index
    %13 = vector.load %arg1[%c0_12, %c2, %c0_13] : memref<1x3x384xbf16, #tpu.memory_space<vmem>>, vector<1x1x384xbf16>
    %14 = vector.shape_cast %13 : vector<1x1x384xbf16> to vector<1x384xbf16>
    %c2_14 = arith.constant 2 : index
    %c0_15 = arith.constant 0 : index
    %c0_16 = arith.constant 0 : index
    %15 = vector.load %arg2[%c2_14, %c0_15, %c0_16] : memref<3x384x128xbf16, #tpu.memory_space<vmem>>, vector<1x384x128xbf16>
    %16 = vector.shape_cast %15 : vector<1x384x128xbf16> to vector<384x128xbf16>
    %cst_17 = arith.constant dense<0.000000e+00> : vector<1x128xf32>
    %17 = tpu.matmul %14, %16, %cst_17 {dimension_numbers = #tpu.dot_dimension_numbers<[1], [0], [0], [1], [0, 0, 1, 1], [], []>} : vector<1x384xbf16>, vector<384x128xbf16>, vector<1x128xf32> -> vector<1x128xf32>
    %18 = arith.addf %12, %17 : vector<1x128xf32>
    %c0_18 = arith.constant 0 : index
    %c0_19 = arith.constant 0 : index
    %19 = vector.load %arg3[%c0_18, %c0_19] : memref<1x128xf32, #tpu.memory_space<vmem>>, vector<1x128xf32>
    %20 = arith.addf %18, %19 : vector<1x128xf32>
    %cst_20 = arith.constant 0.000000e+00 : f32
    %21 = vector.broadcast %cst_20 : f32 to vector<1x128xf32>
    %22 = arith.maximumf %20, %21 : vector<1x128xf32>
    %23 = arith.truncf %22 : vector<1x128xf32> to vector<1x128xbf16>
    %c0_21 = arith.constant 0 : index
    %c0_22 = arith.constant 0 : index
    %c0_23 = arith.constant 0 : index
    %24 = vector.load %arg6[%c0_21, %c0_22, %c0_23] : memref<1x1x128xbf16, #tpu.memory_space<vmem>>, vector<1x1x128xbf16>
    %25 = vector.shape_cast %24 : vector<1x1x128xbf16> to vector<1x128xbf16>
    %26 = arith.extf %25 : vector<1x128xbf16> to vector<1x128xf32>
    %cst_24 = arith.constant 0.000000e+00 : bf16
    %27 = vector.broadcast %cst_24 : bf16 to vector<3x384xbf16>
    %c0_25 = arith.constant 0 : index
    %c0_26 = arith.constant 0 : index
    %28 = vector.load %arg8[%c0_25, %c0_26] : memref<3x384xbf16, #tpu.memory_space<vmem>>, vector<3x384xbf16>
    tpu.vector_store %arg8[%c0_25, %c0_26], %27 {strides = array<i32>} : memref<3x384xbf16, #tpu.memory_space<vmem>>, vector<3x384xbf16>,
    %c1_27 = arith.constant 1 : index
    %c128 = arith.constant 128 : index
    %29 = vector.load %arg8[%c1_27, %c128] : memref<3x384xbf16, #tpu.memory_space<vmem>>, vector<1x128xbf16>
    tpu.vector_store %arg8[%c1_27, %c128], %23 {strides = array<i32>} : memref<3x384xbf16, #tpu.memory_space<vmem>>, vector<1x128xbf16>,
    %30 = tpu.iota {dimensions = array<i32: 0>} : vector<1x1xi32>
    %c1_i32 = arith.constant 1 : i32
    %c0_i32 = arith.constant 0 : i32
    %31 = arith.cmpi eq, %c1_i32, %c0_i32 : i32
    %c1_i32_28 = arith.constant 1 : i32
    %32 = arith.select %31, %c1_i32_28, %c1_i32 : i32
    %33 = vector.broadcast %32 : i32 to vector<1x1xi32>
    %34 = arith.remsi %30, %33 : vector<1x1xi32>
    %c0_i32_29 = arith.constant 0 : i32
    %35 = vector.broadcast %c0_i32_29 : i32 to vector<1x1xi32>
    %36 = arith.cmpi ne, %34, %35 : vector<1x1xi32>
    %c0_i32_30 = arith.constant 0 : i32
    %37 = vector.broadcast %c0_i32_30 : i32 to vector<1x1xi32>
    %38 = arith.cmpi slt, %34, %37 : vector<1x1xi32>
    %c0_i32_31 = arith.constant 0 : i32
    %39 = arith.cmpi slt, %32, %c0_i32_31 : i32
    %40 = vector.broadcast %39 : i1 to vector<1x1xi1>
    %41 = vector.broadcast %40 : vector<1x1xi1> to vector<1x1xi1>
    %42 = arith.xori %38, %41 : vector<1x1xi1>
    %43 = arith.andi %42, %36 : vector<1x1xi1>
    %44 = vector.broadcast %32 : i32 to vector<1x1xi32>
    %45 = arith.addi %34, %44 : vector<1x1xi32>
    %46 = arith.select %43, %45, %34 : vector<1x1xi1>, vector<1x1xi32>
    %c0_i32_32 = arith.constant 0 : i32
    %47 = vector.broadcast %c0_i32_32 : i32 to vector<1x1xi32>
    %48 = arith.cmpi ne, %46, %47 : vector<1x1xi32>
    %cst_33 = arith.constant 0.000000e+00 : bf16
    %49 = vector.broadcast %cst_33 : bf16 to vector<1x128xbf16>
    %50 = vector.shape_cast %48 : vector<1x1xi1> to vector<1x1xi1>
    %51 = vector.broadcast %50 : vector<1x1xi1> to vector<1x128xi1>
    %52 = arith.select %51, %23, %49 : vector<1x128xi1>, vector<1x128xbf16>
    %c2_34 = arith.constant 2 : index
    %c0_35 = arith.constant 0 : index
    %53 = vector.load %arg8[%c2_34, %c0_35] : memref<3x384xbf16, #tpu.memory_space<vmem>>, vector<1x128xbf16>
    tpu.vector_store %arg8[%c2_34, %c0_35], %52 {strides = array<i32>} : memref<3x384xbf16, #tpu.memory_space<vmem>>, vector<1x128xbf16>,
    %c1_i32_36 = arith.constant 1 : i32
    %c0_i32_37 = arith.constant 0 : i32
    %54 = arith.cmpi eq, %c1_i32_36, %c0_i32_37 : i32
    %c1_i32_38 = arith.constant 1 : i32
    %55 = arith.select %54, %c1_i32_38, %c1_i32_36 : i32
    %56 = vector.broadcast %55 : i32 to vector<1x1xi32>
    %57 = arith.remsi %30, %56 : vector<1x1xi32>
    %c0_i32_39 = arith.constant 0 : i32
    %58 = vector.broadcast %c0_i32_39 : i32 to vector<1x1xi32>
    %59 = arith.cmpi ne, %57, %58 : vector<1x1xi32>
    %c0_i32_40 = arith.constant 0 : i32
    %60 = vector.broadcast %c0_i32_40 : i32 to vector<1x1xi32>
    %61 = arith.cmpi slt, %57, %60 : vector<1x1xi32>
    %c0_i32_41 = arith.constant 0 : i32
    %62 = arith.cmpi slt, %55, %c0_i32_41 : i32
    %63 = vector.broadcast %62 : i1 to vector<1x1xi1>
    %64 = vector.broadcast %63 : vector<1x1xi1> to vector<1x1xi1>
    %65 = arith.xori %61, %64 : vector<1x1xi1>
    %66 = arith.andi %65, %59 : vector<1x1xi1>
    %67 = vector.broadcast %55 : i32 to vector<1x1xi32>
    %68 = arith.addi %57, %67 : vector<1x1xi32>
    %69 = arith.select %66, %68, %57 : vector<1x1xi1>, vector<1x1xi32>
    %c0_i32_42 = arith.constant 0 : i32
    %70 = vector.broadcast %c0_i32_42 : i32 to vector<1x1xi32>
    %71 = arith.cmpi ne, %69, %70 : vector<1x1xi32>
    %cst_43 = arith.constant 0.000000e+00 : bf16
    %72 = vector.broadcast %cst_43 : bf16 to vector<1x128xbf16>
    %73 = vector.shape_cast %71 : vector<1x1xi1> to vector<1x1xi1>
    %74 = vector.broadcast %73 : vector<1x1xi1> to vector<1x128xi1>
    %75 = arith.select %74, %23, %72 : vector<1x128xi1>, vector<1x128xbf16>
    %c0_44 = arith.constant 0 : index
    %c256 = arith.constant 256 : index
    %76 = vector.load %arg8[%c0_44, %c256] : memref<3x384xbf16, #tpu.memory_space<vmem>>, vector<1x128xbf16>
    tpu.vector_store %arg8[%c0_44, %c256], %75 {strides = array<i32>} : memref<3x384xbf16, #tpu.memory_space<vmem>>, vector<1x128xbf16>,
    %cst_45 = arith.constant 0.000000e+00 : f32
    %77 = vector.broadcast %cst_45 : f32 to vector<1x128xf32>
    %c0_46 = arith.constant 0 : index
    %c0_47 = arith.constant 0 : index
    %78 = vector.load %arg8[%c0_46, %c0_47] : memref<3x384xbf16, #tpu.memory_space<vmem>>, vector<1x384xbf16>
    %c0_48 = arith.constant 0 : index
    %c0_49 = arith.constant 0 : index
    %c0_50 = arith.constant 0 : index
    %79 = vector.load %arg4[%c0_48, %c0_49, %c0_50] : memref<3x384x128xbf16, #tpu.memory_space<vmem>>, vector<1x384x128xbf16>
    %80 = vector.shape_cast %79 : vector<1x384x128xbf16> to vector<384x128xbf16>
    %cst_51 = arith.constant dense<0.000000e+00> : vector<1x128xf32>
    %81 = tpu.matmul %78, %80, %cst_51 {dimension_numbers = #tpu.dot_dimension_numbers<[1], [0], [0], [1], [0, 0, 1, 1], [], []>} : vector<1x384xbf16>, vector<384x128xbf16>, vector<1x128xf32> -> vector<1x128xf32>
    %82 = arith.addf %77, %81 : vector<1x128xf32>
    %c1_52 = arith.constant 1 : index
    %c0_53 = arith.constant 0 : index
    %83 = vector.load %arg8[%c1_52, %c0_53] : memref<3x384xbf16, #tpu.memory_space<vmem>>, vector<1x384xbf16>
    %c1_54 = arith.constant 1 : index
    %c0_55 = arith.constant 0 : index
    %c0_56 = arith.constant 0 : index
    %84 = vector.load %arg4[%c1_54, %c0_55, %c0_56] : memref<3x384x128xbf16, #tpu.memory_space<vmem>>, vector<1x384x128xbf16>
    %85 = vector.shape_cast %84 : vector<1x384x128xbf16> to vector<384x128xbf16>
    %cst_57 = arith.constant dense<0.000000e+00> : vector<1x128xf32>
    %86 = tpu.matmul %83, %85, %cst_57 {dimension_numbers = #tpu.dot_dimension_numbers<[1], [0], [0], [1], [0, 0, 1, 1], [], []>} : vector<1x384xbf16>, vector<384x128xbf16>, vector<1x128xf32> -> vector<1x128xf32>
    %87 = arith.addf %82, %86 : vector<1x128xf32>
    %c2_58 = arith.constant 2 : index
    %c0_59 = arith.constant 0 : index
    %88 = vector.load %arg8[%c2_58, %c0_59] : memref<3x384xbf16, #tpu.memory_space<vmem>>, vector<1x384xbf16>
    %c2_60 = arith.constant 2 : index
    %c0_61 = arith.constant 0 : index
    %c0_62 = arith.constant 0 : index
    %89 = vector.load %arg4[%c2_60, %c0_61, %c0_62] : memref<3x384x128xbf16, #tpu.memory_space<vmem>>, vector<1x384x128xbf16>
    %90 = vector.shape_cast %89 : vector<1x384x128xbf16> to vector<384x128xbf16>
    %cst_63 = arith.constant dense<0.000000e+00> : vector<1x128xf32>
    %91 = tpu.matmul %88, %90, %cst_63 {dimension_numbers = #tpu.dot_dimension_numbers<[1], [0], [0], [1], [0, 0, 1, 1], [], []>} : vector<1x384xbf16>, vector<384x128xbf16>, vector<1x128xf32> -> vector<1x128xf32>
    %92 = arith.addf %87, %91 : vector<1x128xf32>
    %c0_64 = arith.constant 0 : index
    %c0_65 = arith.constant 0 : index
    %93 = vector.load %arg5[%c0_64, %c0_65] : memref<1x128xf32, #tpu.memory_space<vmem>>, vector<1x128xf32>
    %94 = arith.addf %92, %93 : vector<1x128xf32>
    %95 = arith.addf %94, %26 : vector<1x128xf32>
    %cst_66 = arith.constant 0.000000e+00 : f32
    %96 = vector.broadcast %cst_66 : f32 to vector<1x128xf32>
    %97 = arith.maximumf %95, %96 : vector<1x128xf32>
    %98 = arith.truncf %97 : vector<1x128xf32> to vector<1x128xbf16>
    %c0_67 = arith.constant 0 : index
    %c0_68 = arith.constant 0 : index
    %c0_69 = arith.constant 0 : index
    %99 = vector.load %arg7[%c0_67, %c0_68, %c0_69] : memref<1x1x128xbf16, #tpu.memory_space<vmem>>, vector<1x1x128xbf16>
    %100 = vector.shape_cast %99 : vector<1x1x128xbf16> to vector<1x128xbf16>
    %101 = vector.shape_cast %98 : vector<1x128xbf16> to vector<1x1x128xbf16>
    tpu.vector_store %arg7[%c0_67, %c0_68, %c0_69], %101 {strides = array<i32>} : memref<1x1x128xbf16, #tpu.memory_space<vmem>>, vector<1x1x128xbf16>,
    return
  }
  func.func @transform_0(%arg0: i32) -> (i32, i32, i32) {
    %c0_i32 = arith.constant 0 : i32
    %c0_i32_0 = arith.constant 0 : i32
    %c0_i32_1 = arith.constant 0 : i32
    return %arg0, %c0_i32, %c0_i32_0 : i32, i32, i32
  }
  func.func @transform_1(%arg0: i32) -> (i32, i32, i32) {
    %c0_i32 = arith.constant 0 : i32
    %c0_i32_0 = arith.constant 0 : i32
    %c0_i32_1 = arith.constant 0 : i32
    %c0_i32_2 = arith.constant 0 : i32
    return %c0_i32, %c0_i32_0, %c0_i32_1 : i32, i32, i32
  }
  func.func @transform_2(%arg0: i32) -> (i32, i32) {
    %c0_i32 = arith.constant 0 : i32
    %c0_i32_0 = arith.constant 0 : i32
    %c0_i32_1 = arith.constant 0 : i32
    return %c0_i32, %c0_i32_0 : i32, i32
  }
  func.func @transform_3(%arg0: i32) -> (i32, i32, i32) {
    %c0_i32 = arith.constant 0 : i32
    %c0_i32_0 = arith.constant 0 : i32
    %c0_i32_1 = arith.constant 0 : i32
    %c0_i32_2 = arith.constant 0 : i32
    return %c0_i32, %c0_i32_0, %c0_i32_1 : i32, i32, i32
  }
  func.func @transform_4(%arg0: i32) -> (i32, i32) {
    %c0_i32 = arith.constant 0 : i32
    %c0_i32_0 = arith.constant 0 : i32
    %c0_i32_1 = arith.constant 0 : i32
    return %c0_i32, %c0_i32_0 : i32, i32
  }
  func.func @transform_5(%arg0: i32) -> (i32, i32, i32) {
    %c0_i32 = arith.constant 0 : i32
    %c0_i32_0 = arith.constant 0 : i32
    %c0_i32_1 = arith.constant 0 : i32
    return %arg0, %c0_i32, %c0_i32_0 : i32, i32, i32
  }
  func.func @transform_6(%arg0: i32) -> (i32, i32, i32) {
    %c0_i32 = arith.constant 0 : i32
    %c0_i32_0 = arith.constant 0 : i32
    %c0_i32_1 = arith.constant 0 : i32
    return %arg0, %c0_i32, %c0_i32_0 : i32, i32, i32
  }
}

</mosaic_0001>

<bundles_post_ra>
// kernel: encode_uv.11
= control target key start
LH: loop header
LB: loop body
LE: loop exit
PB: predicated region body
PF: predicated region fallthrough
CT: control target
= control target key end

     0   :  { %s811_s6 = smov 0   ;;  %s1171_s0 = inlined_call_operand.vmem [shape: bf16[8,9,9,128], index: 0, kind: input, shape index: {}]   ;;  %s1172_s1 = inlined_call_operand.vmem [shape: bf16[2,8,8,128], index: 1, kind: output, shape index: {}]  }
   0x1 LB: > { %s817_s7 = sadd.s32 4294967295, %s799_s6   ;;  %p693_p0 = scmp.ge.s32.totalorder %s799_s6, 1  ;;  %s799_s6 = sphi %s811_s6, %s11_s6  }
   0x2   : > { %p89_p1 = scmp.lt.s32.totalorder %s799_s6, 3 }
   0x4   : > { %p90_p2 = pnand %p693_p0, %p89_p1 }
   0x5   : > { %s694_s8 = sshll.u32 (!%p90_p2), %s817_s7, 2  ;;  %vm155_vm0 = vsmask.f32 (!%p90_p2), 3328  ;;  %vm156_vm1 = vsmask.f32 (!%p90_p2), 7440  ;;  %p117_p4 = scmp.lt.s32.totalorder (!%p90_p2), %s817_s7, 1 }
   0x6   : > { %93 = sbr.rel (%p90_p2) target bundleno = 99 (0x63), region = 24  ;;  %p111_p3 = scmp.lt.s32.totalorder (!%p90_p2), %s694_s8, 7  ;;  %vm906_vm2 = vmor (!%p90_p2), %vm155_vm0, %vm156_vm1 }
   0xd   : > { %s1176_s8 = smov (!%p111_p3, %s694_s8), 7  ;;  %s1178_s7 = smov (!%p117_p4, %s817_s7), 1 }
   0xe   : > { %s784_s9 = smul.u32 72, %s1176_s8  ;;  %s756_s13 = sshll.u32 %s1178_s7, 5 }
   0xf   : > { %s121_s16 = scalar_lea.vmem %s1172_s1, %s756_s13 }
  0x10   : > { %s825_s12 = scalar_lea.vmem %s1171_s0, %s784_s9 }
  0x11   : > { %v828_v0 = vld [vmem:[%s825_s12 + $0x48] sm:$0xf]  ;;  %v831_v1 = vld [vmem:[%s825_s12] sm:$0xf]  ;;  %v837_v3 = vld [vmem:[%s825_s12 + $0x10] sm:$0xf] }
  0x12   : > { %v834_v2 = vld [vmem:[%s825_s12 + $0x8] sm:$0xf]  ;;  %v840_v4 = vld [vmem:[%s825_s12 + $0x18] sm:$0xf]  ;;  %v843_v5 = vld [vmem:[%s825_s12 + $0x50] sm:$0xf]  ;;  %v139_v17 = vmax.bf16 %v828_v0, %v831_v1 }
  0x13   : > { %v846_v6 = vld [vmem:[%s825_s12 + $0x58] sm:$0xf]  ;;  %v849_v7 = vld [vmem:[%s825_s12 + $0x60] sm:$0xf]  ;;  %v855_v9 = vld [vmem:[%s825_s12 + $0x68] sm:$0xf]  ;;  %v140_v18 = vmax.bf16 %v843_v5, %v834_v2 }
  0x14   : > { %v852_v8 = vld [vmem:[%s825_s12 + $0x20] sm:$0xf]  ;;  %v858_v10 = vld [vmem:[%s825_s12 + $0x70] sm:$0xf]  ;;  %v861_v11 = vld [vmem:[%s825_s12 + $0x78] sm:$0xf]  ;;  %v141_v19 = vmax.bf16 %v846_v6, %v837_v3  ;;  %v142_v20 = vmax.bf16 %v849_v7, %v840_v4 }
  0x15   : > { %v864_v12 = vld [vmem:[%s825_s12 + $0x28] sm:$0xf]  ;;  %v867_v13 = vld [vmem:[%s825_s12 + $0x80] sm:$0xf]  ;;  %v147_v14 = vld [vmem:[%s825_s12 + $0x4] sm:$0x1]  ;;  %v143_v22 = vmax.bf16 %v855_v9, %v852_v8 }
  0x16   : > { %v871_v15 = vld [vmem:[%s825_s12 + $0x30] sm:$0xf]  ;;  %v874_v16 = vld [vmem:[%s825_s12 + $0x38] sm:$0xf]  ;;  %v148_v21 = vld [vmem:[%s825_s12 + $0xc] sm:$0x1]  ;;  %v144_v23 = vmax.bf16 %v858_v10, %v864_v12 }
  0x17   : > { %v145_v24 = vmax.bf16 %v861_v11, %v871_v15  ;;  %v146_v25 = vmax.bf16 %v867_v13, %v874_v16  ;;  %v159_v26 = vshrl.u32 %v831_v1, 16  ;;  %v162_v27 = vshll.u32 %v831_v1, 16  ;;  %v149_v30 = vld [vmem:[%s825_s12 + $0x14] sm:$0x1]  ;;  %v150_v35 = vld [vmem:[%s825_s12 + $0x1c] sm:$0x1] }
  0x18   : > { %v168_v28 = vshll.u32 %v147_v14, 16  ;;  %v173_v29 = vshrl.u32 %v834_v2, 16  ;;  %v176_v31 = vshll.u32 %v834_v2, 16  ;;  %v182_v32 = vshll.u32 %v148_v21, 16  ;;  %v151_v48 = vld [vmem:[%s825_s12 + $0x24] sm:$0x1] }
  0x19   : > { %v187_v33 = vshrl.u32 %v837_v3, 16  ;;  %v190_v34 = vshll.u32 %v837_v3, 16  ;;  %v161_v36 = vrot.slane %v159_v26, 4  ;;  %v164_v37 = vrot.slane %v162_v27, 5  ;;  %v152_v58 = vld [vmem:[%s825_s12 + $0x2c] sm:$0x1] }
  0x1a   : > { %v170_v38 = vrot.slane %v168_v28, 5  ;;  %v175_v39 = vrot.slane %v173_v29, 4  ;;  %v178_v40 = vrot.slane %v176_v31, 5  ;;  %v184_v41 = vrot.slane %v182_v32, 5  ;;  %v153_v27 = vld [vmem:[%s825_s12 + $0x34] sm:$0x1] }
  0x1b   : > { %v189_v42 = vrot.slane %v187_v33, 4  ;;  %v192_v43 = vrot.slane %v190_v34, 5  ;;  %v165_v44 = vor.u32 %v164_v37, %v161_v36  ;;  %v196_v45 = vshll.u32 %v149_v30, 16  ;;  %v154_v36 = vld [vmem:[%s825_s12 + $0x3c] sm:$0x1] }
  0x1c   : > { %v201_v46 = vshrl.u32 %v840_v4, 16  ;;  %v204_v47 = vshll.u32 %v840_v4, 16  ;;  %v179_v50 = vor.u32 %v178_v40, %v175_v39  ;;  %v210_v52 = vshll.u32 %v150_v35, 16  ;;  %v954_v5 = vld [vmem:[%s825_s12 + $0xb0] sm:$0xf] }
  0x1d   : > { %v193_v51 = vor.u32 %v192_v43, %v189_v42  ;;  %v215_v53 = vshrl.u32 %v852_v8, 16  ;;  %v166_v54 = vrot.slane %v165_v44, 4  ;;  %v198_v55 = vrot.slane %v196_v45, 5  ;;  %v715_v6 = vld [vmem:[%s825_s12 + $0xe0] sm:$0xf] }
  0x1e   : > { %v203_v56 = vrot.slane %v201_v46, 4  ;;  %v206_v57 = vrot.slane %v204_v47, 5  ;;  %v180_v59 = vrot.slane %v179_v50, 4  ;;  %v212_v61 = vrot.slane %v210_v52, 5  ;;  %v716_v4 = vld [vmem:[%s825_s12 + $0xe8] sm:$0xf] }
  0x1f   : > { %v194_v60 = vrot.slane %v193_v51, 4  ;;  %v217_v62 = vrot.slane %v215_v53, 4  ;;  %v171_v63 = vsel %vm906_vm2, %v166_v54, %v170_v38  ;;  %v218_v21 = vshll.u32 %v852_v8, 16  ;;  %v717_v7 = vld [vmem:[%s825_s12 + $0xf0] sm:$0xf] }
  0x20   : > { %v207_v14 = vor.u32 %v206_v57, %v203_v56  ;;  %v224_v26 = vshll.u32 %v151_v48, 16  ;;  %v185_v28 = vsel %vm906_vm2, %v180_v59, %v184_v41  ;;  %v229_v30 = vshrl.u32 %v864_v12, 16  ;;  %v718_v10 = vld [vmem:[%s825_s12 + $0xf8] sm:$0xf]  ;;  %v723_v11 = vld [vmem:[%s825_s12 + $0x9c] sm:$0x1] }
  0x21   : > { %v199_v29 = vsel %vm906_vm2, %v194_v60, %v198_v55  ;;  %v232_v31 = vshll.u32 %v864_v12, 16  ;;  %v220_v33 = vrot.slane %v218_v21, 5  ;;  %v238_v35 = vshll.u32 %v152_v58, 16  ;;  %v706_v58 = vld [vmem:[%s825_s12 + $0x90] sm:$0xf] }
  0x22   : > { %v208_v32 = vrot.slane %v207_v14, 4  ;;  %v226_v34 = vrot.slane %v224_v26, 5  ;;  %v231_v37 = vrot.slane %v229_v30, 4  ;;  %v243_v39 = vshrl.u32 %v871_v15, 16  ;;  %v707_v14 = vld [vmem:[%s825_s12 + $0x98] sm:$0xf] }
  0x23   : > { %v234_v38 = vrot.slane %v232_v31, 5  ;;  %v246_v40 = vshll.u32 %v871_v15, 16  ;;  %v221_v42 = vor.u32 %v220_v33, %v217_v62  ;;  %v240_v43 = vrot.slane %v238_v35, 5  ;;  %v940_v21 = vld [vmem:[%s825_s12 + $0xa0] sm:$0xf] }
  0x24   : > { %v213_v41 = vsel %vm906_vm2, %v208_v32, %v212_v61  ;;  %v252_v44 = vshll.u32 %v153_v27, 16  ;;  %v245_v46 = vrot.slane %v243_v39, 4  ;;  %v257_v48 = vshrl.u32 %v874_v16, 16  ;;  %v943_v26 = vld [vmem:[%s825_s12 + $0xa8] sm:$0xf] }
  0x25   : > { %v235_v45 = vor.u32 %v234_v38, %v231_v37  ;;  %v248_v47 = vrot.slane %v246_v40, 5  ;;  %v222_v50 = vrot.slane %v221_v42, 4  ;;  %v260_v52 = vshll.u32 %v874_v16, 16  ;;  %v719_v12 = vld [vmem:[%s825_s12 + $0x100] sm:$0xf] }
  0x26   : > { %v254_v51 = vrot.slane %v252_v44, 5  ;;  %v266_v53 = vshll.u32 %v154_v36, 16  ;;  %v259_v56 = vrot.slane %v257_v48, 4  ;;  %v278_v57 = vmax.bf16 %v171_v63, %v139_v17  ;;  %v722_v32 = vld [vmem:[%s825_s12 + $0x94] sm:$0x1] }
  0x27   : > { %v236_v54 = vrot.slane %v235_v45, 4  ;;  %v249_v55 = vor.u32 %v248_v47, %v245_v46  ;;  %v227_v59 = vsel %vm906_vm2, %v222_v50, %v226_v34  ;;  %v262_v60 = vrot.slane %v260_v52, 5  ;;  %v982_v33 = vld [vmem:[%s825_s12 + $0xc0] sm:$0xf]  ;;  %v720_v34 = vld [vmem:[%s825_s12 + $0x108] sm:$0xf] }
  0x28   : > { %v268_v61 = vrot.slane %v266_v53, 5  ;;  %v279_v62 = vmax.bf16 %v185_v28, %v140_v18  ;;  %v280_v17 = vmax.bf16 %v199_v29, %v141_v19  ;;  %v281_v2 = vmax.bf16 %v213_v41, %v142_v20  ;;  %v714_v18 = vld [vmem:[%s825_s12 + $0xd8] sm:$0xf]  ;;  %v724_v48 = vld [vmem:[%s825_s12 + $0xa4] sm:$0x1] }
  0x29   : > { %v241_v0 = vsel %vm906_vm2, %v236_v54, %v240_v43  ;;  %v250_v1 = vrot.slane %v249_v55, 4  ;;  %v263_v63 = vor.u32 %v262_v60, %v259_v56  ;;  %v282_v27 = vmax.bf16 %v227_v59, %v143_v22  ;;  %v969_v20 = vld [vmem:[%s825_s12 + $0xb8] sm:$0xf]  ;;  %v721_v43 = vld [vmem:[%s825_s12 + $0x110] sm:$0xf] }
  0x2a   : > { %v283_v28 = vmax.bf16 %v241_v0, %v144_v23  ;;  %v295_v3 = vmax.bf16 %v706_v58, %v278_v57  ;;  %v296_v29 = vmax.bf16 %v707_v14, %v279_v62  ;;  %v297_v8 = vmax.bf16 %v940_v21, %v280_v17  ;;  %v725_v57 = vld [vmem:[%s825_s12 + $0xac] sm:$0x1] }
  0x2b   : > { %v255_v19 = vsel %vm906_vm2, %v250_v1, %v254_v51  ;;  %v298_v9 = vmax.bf16 %v943_v26, %v281_v2  ;;  %v264_v22 = vrot.slane %v263_v63, 4  ;;  %v299_v30 = vmax.bf16 %v954_v5, %v282_v27  ;;  %v726_v2 = vld [vmem:[%s825_s12 + $0xb4] sm:$0x1] }
  0x2c   : > { %v284_v23 = vmax.bf16 %v255_v19, %v145_v24  ;;  %v300_v31 = vmax.bf16 %v969_v20, %v283_v28  ;;  %v985_v35 = vmax.bf16 %v714_v18, %v295_v3  ;;  %v987_v36 = vmax.bf16 %v715_v6, %v296_v29  ;;  %v997_v24 = vld [vmem:[%s825_s12 + $0xc8] sm:$0xf]  ;;  %v727_v19 = vld [vmem:[%s825_s12 + $0xbc] sm:$0x1] }
  0x2d   : > { %v989_v37 = vmax.bf16 %v716_v4, %v297_v8  ;;  %v991_v38 = vmax.bf16 %v717_v7, %v298_v9  ;;  %v269_v15 = vsel %vm906_vm2, %v264_v22, %v268_v61  ;;  %v1000_v40 = vmax.bf16 %v718_v10, %v299_v30 }
  0x2e   : > { %v301_v39 = vmax.bf16 %v982_v33, %v284_v23  ;;  %v1002_v41 = vmax.bf16 %v719_v12, %v300_v31  ;;  %v285_v42 = vmax.bf16 %v269_v15, %v146_v25  ;;  %v329_v44 = vshrl.u32 %v706_v58, 16 }
  0x2f   : > { %v332_v45 = vshll.u32 %v706_v58, 16  ;;  %v338_v46 = vshll.u32 %v722_v32, 16  ;;  %v343_v50 = vshrl.u32 %v707_v14, 16  ;;  %v346_v51 = vshll.u32 %v707_v14, 16 }
  0x30   : > { %v1008_v47 = vmax.bf16 %v720_v34, %v301_v39  ;;  %v352_v52 = vshll.u32 %v723_v11, 16  ;;  %v302_v53 = vmax.bf16 %v997_v24, %v285_v42  ;;  %v331_v54 = vrot.slane %v329_v44, 4  ;;  %v728_v34 = vld [vmem:[%s825_s12 + $0xc4] sm:$0x1] }
  0x31   : > { %v334_v55 = vrot.slane %v332_v45, 5  ;;  %v340_v56 = vrot.slane %v338_v46, 5  ;;  %v345_v59 = vrot.slane %v343_v50, 4  ;;  %v348_v13 = vrot.slane %v346_v51, 5 }
  0x32   : > { %v1013_v16 = vrot.slane %v352_v52, 5  ;;  %v357_v25 = vshrl.u32 %v940_v21, 16  ;;  %v1016_v58 = vmax.bf16 %v721_v43, %v302_v53  ;;  %v360_v61 = vshll.u32 %v940_v21, 16 }
  0x33   : > { %v335_v60 = vor.u32 %v334_v55, %v331_v54  ;;  %v366_v62 = vshll.u32 %v724_v48, 16  ;;  %v349_v14 = vor.u32 %v348_v13, %v345_v59  ;;  %v371_v1 = vshrl.u32 %v943_v26, 16 }
  0x34   : > { %v359_v0 = vrot.slane %v357_v25, 4  ;;  %v374_v17 = vshll.u32 %v943_v26, 16  ;;  %v362_v63 = vrot.slane %v360_v61, 5  ;;  %v380_v28 = vshll.u32 %v725_v57, 16  ;;  %v730_v61 = vld [vmem:[%s825_s12 + $0x8] sm:$0xf] }
  0x35   : > { %v336_v18 = vrot.slane %v335_v60, 4  ;;  %v368_v27 = vrot.slane %v366_v62, 5  ;;  %v350_v3 = vrot.slane %v349_v14, 4  ;;  %v373_v6 = vrot.slane %v371_v1, 4  ;;  %v731_v1 = vld [vmem:[%s825_s12 + $0x10] sm:$0xf] }
  0x36   : > { %v376_v4 = vrot.slane %v374_v17, 5  ;;  %v385_v7 = vshrl.u32 %v954_v5, 16  ;;  %v363_v29 = vor.u32 %v362_v63, %v359_v0  ;;  %v382_v8 = vrot.slane %v380_v28, 5  ;;  %v1060_v28 = vld [vmem:[%s825_s12 + $0x28] sm:$0xf] }
  0x37   : > { %v341_v21 = vsel %vm906_vm2, %v336_v18, %v340_v56  ;;  %v388_v26 = vshll.u32 %v954_v5, 16  ;;  %v355_v9 = vsel %vm906_vm2, %v350_v3, %v1013_v16  ;;  %v394_v22 = vshll.u32 %v726_v2, 16  ;;  %v729_v5 = vld [vmem:[%s825_s12 + $0xcc] sm:$0x1] }
  0x38   : > { %v377_v10 = vor.u32 %v376_v4, %v373_v6  ;;  %v387_v12 = vrot.slane %v385_v7, 4  ;;  %v364_v23 = vrot.slane %v363_v29, 4  ;;  %v399_v31 = vshrl.u32 %v969_v20, 16 }
  0x39   : > { %v390_v30 = vrot.slane %v388_v26, 5  ;;  %v402_v32 = vshll.u32 %v969_v20, 16  ;;  %v396_v15 = vrot.slane %v394_v22, 5  ;;  %v408_v39 = vshll.u32 %v727_v19, 16  ;;  %v739_v19 = vld [vmem:[%s825_s12 + $0x58] sm:$0xf] }
  0x3a   : > { %v378_v11 = vrot.slane %v377_v10, 4  ;;  %v413_v42 = vshrl.u32 %v982_v33, 16  ;;  %v369_v43 = vsel %vm906_vm2, %v364_v23, %v368_v27  ;;  %v401_v45 = vrot.slane %v399_v31, 4  ;;  %v1057_v27 = vld [vmem:[%s825_s12 + $0x20] sm:$0xf] }
  0x3b   : > { %v391_v44 = vor.u32 %v390_v30, %v387_v12  ;;  %v404_v46 = vrot.slane %v402_v32, 5  ;;  %v410_v50 = vrot.slane %v408_v39, 5  ;;  %v416_v20 = vshll.u32 %v982_v33, 16  ;;  %v741_v26 = vld [vmem:[%s825_s12 + $0x68] sm:$0xf] }
  0x3c   : > { %v383_v48 = vsel %vm906_vm2, %v378_v11, %v382_v8  ;;  %v415_v51 = vrot.slane %v413_v42, 4  ;;  %v422_v54 = vshll.u32 %v728_v34, 16  ;;  %v427_v55 = vshrl.u32 %v997_v24, 16  ;;  %v746_v22 = vld [vmem:[%s825_s12 + $0xc] sm:$0x1] }
  0x3d   : > { %v392_v52 = vrot.slane %v391_v44, 4  ;;  %v405_v53 = vor.u32 %v404_v46, %v401_v45  ;;  %v418_v56 = vrot.slane %v416_v20, 5  ;;  %v430_v57 = vshll.u32 %v997_v24, 16  ;;  %v1080_v30 = vld [vmem:[%s825_s12 + $0x38] sm:$0xf] }
  0x3e   : > { %v436_v59 = vshll.u32 %v729_v5, 16  ;;  %v448_v13 = vmax.bf16 %v341_v21, %v985_v35  ;;  %v424_v33 = vrot.slane %v422_v54, 5  ;;  %v429_v60 = vrot.slane %v427_v55, 4  ;;  %v1049_v35 = vld [vmem:[%s825_s12 + $0x18] sm:$0xf] }
  0x3f   : > { %v397_v16 = vsel %vm906_vm2, %v392_v52, %v396_v15  ;;  %v406_v25 = vrot.slane %v405_v53, 4  ;;  %v419_v62 = vor.u32 %v418_v56, %v415_v51  ;;  %v432_v14 = vrot.slane %v430_v57, 5  ;;  %v1067_v21 = vld [vmem:[%s825_s12 + $0x30] sm:$0xf]  ;;  %v747_v11 = vld [vmem:[%s825_s12 + $0x14] sm:$0x1] }
  0x40   : > { %v438_v0 = vrot.slane %v436_v59, 5  ;;  %v449_v24 = vmax.bf16 %v355_v9, %v987_v36  ;;  %v450_v2 = vmax.bf16 %v369_v43, %v989_v37  ;;  %v451_v18 = vmax.bf16 %v383_v48, %v991_v38  ;;  %v738_v36 = vld [vmem:[%s825_s12 + $0x50] sm:$0xf]  ;;  %v740_v37 = vld [vmem:[%s825_s12 + $0x60] sm:$0xf] }
  0x41   : > { %v411_v17 = vsel %vm906_vm2, %v406_v25, %v410_v50  ;;  %v452_v63 = vmax.bf16 %v397_v16, %v1000_v40  ;;  %v420_v3 = vrot.slane %v419_v62, 4  ;;  %v433_v6 = vor.u32 %v432_v14, %v429_v60  ;;  %v742_v9 = vld [vmem:[%s825_s12 + $0x70] sm:$0xf]  ;;  %v743_v39 = vld [vmem:[%s825_s12 + $0x78] sm:$0xf] }
  0x42   : > { %v453_v4 = vmax.bf16 %v411_v17, %v1002_v41  ;;  %v465_v7 = vmax.bf16 %v730_v61, %v448_v13  ;;  %v466_v38 = vmax.bf16 %v731_v1, %v449_v24  ;;  %v467_v40 = vmax.bf16 %v1049_v35, %v450_v2  ;;  %v744_v42 = vld [vmem:[%s825_s12 + $0x80] sm:$0xf]  ;;  %v748_v51 = vld [vmem:[%s825_s12 + $0x1c] sm:$0x1]  ;;  %v749_v59 = vld [vmem:[%s825_s12 + $0x24] sm:$0x1] }
  0x43   : > { %v468_v29 = vmax.bf16 %v1057_v27, %v451_v18  ;;  %v469_v8 = vmax.bf16 %v1060_v28, %v452_v63  ;;  %v425_v41 = vsel %vm906_vm2, %v420_v3, %v424_v33  ;;  %v434_v10 = vrot.slane %v433_v6, 4  ;;  %v1101_v45 = vld [vmem:[%s825_s12 + $0x40] sm:$0xf]  ;;  %v750_v2 = vld [vmem:[%s825_s12 + $0x2c] sm:$0x1] }
  0x44   : > { %v470_v12 = vmax.bf16 %v1067_v21, %v453_v4  ;;  %v454_v23 = vmax.bf16 %v425_v41, %v1008_v47  ;;  %v1082_v31 = vmax.bf16 %v738_v36, %v465_v7  ;;  %v1084_v32 = vmax.bf16 %v739_v19, %v466_v38  ;;  %v751_v19 = vld [vmem:[%s825_s12 + $0x34] sm:$0x1] }
  0x45   : > { %v1086_v34 = vmax.bf16 %v740_v37, %v467_v40  ;;  %v439_v15 = vsel %vm906_vm2, %v434_v10, %v438_v0  ;;  %v1093_v5 = vmax.bf16 %v741_v26, %v468_v29  ;;  %v1095_v43 = vmax.bf16 %v742_v9, %v469_v8 }
  0x46   : > { %v499_v47 = vshrl.u32 %v730_v61, 16  ;;  %v1098_v44 = vmax.bf16 %v439_v15, %v1016_v58  ;;  %v471_v46 = vmax.bf16 %v1080_v30, %v454_v23  ;;  %v502_v48 = vshll.u32 %v730_v61, 16  ;;  %v752_v23 = vld [vmem:[%s825_s12 + $0x3c] sm:$0x1] }
  0x47   : > { %v508_v50 = vshll.u32 %v746_v22, 16  ;;  %v513_v52 = vshrl.u32 %v731_v1, 16  ;;  %v516_v53 = vshll.u32 %v731_v1, 16  ;;  %v522_v54 = vshll.u32 %v747_v11, 16 }
  0x48   : > { %v501_v20 = vrot.slane %v499_v47, 4  ;;  %v472_v55 = vmax.bf16 %v1101_v45, %v1098_v44  ;;  %v1107_v56 = vmax.bf16 %v743_v39, %v470_v12  ;;  %v1109_v57 = vmax.bf16 %v744_v42, %v471_v46  ;;  %v753_v42 = vld [vmem:[%s825_s12 + $0x44] sm:$0x1] }
  0x49   : > { %v504_v58 = vrot.slane %v502_v48, 5  ;;  %v510_v13 = vrot.slane %v508_v50, 5  ;;  %v515_v16 = vrot.slane %v513_v52, 4  ;;  %v518_v25 = vrot.slane %v516_v53, 5 }
  0x4a   : > { %v527_v33 = vshrl.u32 %v1049_v35, 16  ;;  %v1113_v61 = vrot.slane %v522_v54, 5  ;;  %v530_v62 = vshll.u32 %v1049_v35, 16  ;;  %v536_v14 = vshll.u32 %v748_v51, 16 }
  0x4b   : > { %v505_v60 = vor.u32 %v504_v58, %v501_v20  ;;  %v519_v0 = vor.u32 %v518_v25, %v515_v16  ;;  %v541_v1 = vshrl.u32 %v1057_v27, 16  ;;  %v544_v17 = vshll.u32 %v1057_v27, 16 }
  0x4c   : > { %v529_v24 = vrot.slane %v527_v33, 4  ;;  %v532_v63 = vrot.slane %v530_v62, 5  ;;  %v538_v36 = vrot.slane %v536_v14, 5  ;;  %v550_v3 = vshll.u32 %v749_v59, 16 }
  0x4d   : > { %v506_v18 = vrot.slane %v505_v60, 4  ;;  %v520_v6 = vrot.slane %v519_v0, 4  ;;  %v543_v4 = vrot.slane %v541_v1, 4  ;;  %v546_v7 = vrot.slane %v544_v17, 5  ;;  %v745_v0 = vld [vmem:[%s825_s12 + $0x88] sm:$0xf] }
  0x4e   : > { %v555_v35 = vshrl.u32 %v1060_v28, 16  ;;  %v533_v38 = vor.u32 %v532_v63, %v529_v24  ;;  %v552_v40 = vrot.slane %v550_v3, 5  ;;  %v558_v27 = vshll.u32 %v1060_v28, 16 }
  0x4f   : > { %v511_v37 = vsel %vm906_vm2, %v506_v18, %v510_v13  ;;  %v525_v29 = vsel %vm906_vm2, %v520_v6, %v1113_v61  ;;  %v547_v8 = vor.u32 %v546_v7, %v543_v4  ;;  %v564_v9 = vshll.u32 %v750_v2, 16 }
  0x50   : > { %v557_v26 = vrot.slane %v555_v35, 4  ;;  %v534_v41 = vrot.slane %v533_v38, 4  ;;  %v560_v10 = vrot.slane %v558_v27, 5  ;;  %v569_v12 = vshrl.u32 %v1067_v21, 16 }
  0x51   : > { %v572_v22 = vshll.u32 %v1067_v21, 16  ;;  %v548_v11 = vrot.slane %v547_v8, 4  ;;  %v566_v15 = vrot.slane %v564_v9, 5  ;;  %v578_v28 = vshll.u32 %v751_v19, 16 }
  0x52   : > { %v583_v39 = vshrl.u32 %v1080_v30, 16  ;;  %v539_v47 = vsel %vm906_vm2, %v534_v41, %v538_v36  ;;  %v561_v46 = vor.u32 %v560_v10, %v557_v26  ;;  %v571_v48 = vrot.slane %v569_v12, 4 }
  0x53   : > { %v574_v50 = vrot.slane %v572_v22, 5  ;;  %v553_v51 = vsel %vm906_vm2, %v548_v11, %v552_v40  ;;  %v580_v20 = vrot.slane %v578_v28, 5  ;;  %v586_v52 = vshll.u32 %v1080_v30, 16 }
  0x54   : > { %v585_v21 = vrot.slane %v583_v39, 4  ;;  %v562_v53 = vrot.slane %v561_v46, 4  ;;  %v592_v58 = vshll.u32 %v752_v23, 16  ;;  %v597_v59 = vshrl.u32 %v1101_v45, 16 }
  0x55   : > { %v575_v54 = vor.u32 %v574_v50, %v571_v48  ;;  %v588_v13 = vrot.slane %v586_v52, 5  ;;  %v600_v16 = vshll.u32 %v1101_v45, 16  ;;  %v606_v25 = vshll.u32 %v753_v42, 16 }
  0x56   : > { %v618_v33 = vmax.bf16 %v511_v37, %v1082_v31  ;;  %v567_v60 = vsel %vm906_vm2, %v562_v53, %v566_v15  ;;  %v594_v62 = vrot.slane %v592_v58, 5  ;;  %v599_v14 = vrot.slane %v597_v59, 4 }
  0x57   : > { %v576_v61 = vrot.slane %v575_v54, 4  ;;  %v589_v30 = vor.u32 %v588_v13, %v585_v21  ;;  %v602_v24 = vrot.slane %v600_v16, 5  ;;  %v608_v1 = vrot.slane %v606_v25, 5 }
  0x58   : > { %v619_v17 = vmax.bf16 %v525_v29, %v1084_v32  ;;  %v620_v31 = vmax.bf16 %v539_v47, %v1086_v34  ;;  %v621_v18 = vmax.bf16 %v553_v51, %v1093_v5  ;;  %v622_v63 = vmax.bf16 %v567_v60, %v1095_v43 }
  0x59   : > { %v581_v2 = vsel %vm906_vm2, %v576_v61, %v580_v20  ;;  %v590_v36 = vrot.slane %v589_v30, 4  ;;  %v603_v3 = vor.u32 %v602_v24, %v599_v14  ;;  %v489_v32 = vmax.bf16 %v745_v0, %v472_v55 }
  0x5a   : > { %v623_v6 = vmax.bf16 %v581_v2, %v1107_v56  ;;  %v777_v4 = vcombine.low %v618_v33, %v619_v17  ;;  %v778_v7 = vcombine.low %v620_v31, %v621_v18 }
  0x5b   : > { %v595_v35 = vsel %vm906_vm2, %v590_v36, %v594_v62  ;;  %v604_v19 = vrot.slane %v603_v3, 4 }
  0x5c   : > { %761 = vst [vmem:[%s121_s16] sm:$0xff] %v777_v4   ;;  %v780_v34 = vcombine.low %v622_v63, %v623_v6  ;;  %v624_v5 = vmax.bf16 %v595_v35, %v1109_v57  ;;  %779 = vst [vmem:[%s121_s16 + $0x8] sm:$0xff] %v778_v7  }
  0x5d   : > { %v609_v43 = vsel %vm906_vm2, %v604_v19, %v608_v1 }
  0x5e   : > { %781 = vst [vmem:[%s121_s16 + $0x10] sm:$0xff] %v780_v34   ;;  %v625_v56 = vmax.bf16 %v609_v43, %v489_v32 }
  0x60   : > { %v782_v37 = vcombine.low %v624_v5, %v625_v56 }
  0x62   : > { %783 = vst [vmem:[%s121_s16 + $0x18] sm:$0xff] %v782_v37  }
  0x63 PF: > { %s11_s6 = sadd.s32 1, %s799_s6  }
  0x64   : > { %p8_p5 = scmp.ge.s32.totalorder %s11_s6, 4  }
  0x66   :  { %10 = sbr.rel (!%p8_p5) target bundleno = 1 (0x1), region = 59 }

// kernel: encode_uv.10
= control target key start
LH: loop header
LB: loop body
LE: loop exit
PB: predicated region body
PF: predicated region fallthrough
CT: control target
= control target key end

     0   :  { %s4250_s12 = smov 0   ;;  %s4636_s0 = inlined_call_operand.vmem [shape: bf16[4,304,21], index: 0, kind: input, shape index: {}]   ;;  %s4637_s1 = inlined_call_operand.vmem [shape: bf16[7,21,128], index: 1, kind: input, shape index: {}]   ;;  %s4638_s2 = inlined_call_operand.vmem [shape: f32[1,128], index: 2, kind: input, shape index: {}]   ;;  %s4639_s3 = inlined_call_operand.vmem [shape: bf16[2,256,128], index: 3, kind: output, shape index: {}]  }
   0x1 LB: > { %s4256_s13 = sadd.s32 4294967295, %s4227_s12   ;;  %p2991_p0 = scmp.ge.s32.totalorder %s4227_s12, 1  ;;  %s4227_s12 = sphi %s4250_s12, %s13_s12  }
   0x2   : > { %p139_p1 = scmp.lt.s32.totalorder %s4227_s12, 3 }
   0x4   : > { %p140_p2 = pnand %p2991_p0, %p139_p1 }
   0x5   : > { %v4095_v0 = vld [vmem:[%s4637_s1 + $0xc] sm:$0xff] (!%p140_p2)   ;;  %vm387_vm0 = vcmask (!%p140_p2), 1041408   ;;  %v4266_v1 = vld [vmem:[%s4637_s1 + $0x24] sm:$0xff] (!%p140_p2)   ;;  %vm388_vm1 = vcmask (!%p140_p2), 1042432   ;;  %v4229_v3 = vmov (!%p140_p2), 65535   ;;  %s2992_s22 = sshll.u32 (!%p140_p2), %s4256_s13, 1 }
   0x6   : > { %143 = sbr.rel (%p140_p2) target bundleno = 459 (0x1cb), region = 32  ;;  %3637 = vmatprep.subr.bf16.mxu1 (!%p140_p2), %v4095_v0  ;;  %v4097_v2 = vld [vmem:[%s4637_s1 + $0x14] ss:$0 sps:$4 sm:$0x77] (!%p140_p2)   ;;  %3745 = vmatprep.subr.bf16.mxu0 (!%p140_p2), %v4266_v1  ;;  %v389_v4 = vsel (!%p140_p2), %vm387_vm0, 4294967295, %v4229_v3  ;;  %v4100_v7 = vld [vmem:[%s4637_s1] sm:$0xff] (!%p140_p2)  }
   0x7   : > { %3638 = vmatpush3.bf16.msra.mxu1 (!%p140_p2), %v4095_v0  ;;  %v4098_v5 = vld [vmem:[%s4637_s1 + $0x2c] ss:$0 sps:$4 sm:$0x77] (!%p140_p2)   ;;  %3746 = vmatpush3.bf16.msra.mxu0 (!%p140_p2), %v4266_v1  ;;  %v4276_v6 = vsel (!%p140_p2), %vm388_vm1, %v389_v4, 0  ;;  %p165_p3 = scmp.lt.s32.totalorder (!%p140_p2), %s2992_s22, 3  ;;  %v4102_v10 = vld [vmem:[%s4637_s1 + $0x30] sm:$0xff] (!%p140_p2)  }
   0x8   : > { %v392_v8 = vand.u32 (!%p140_p2), %v4097_v2, %v4276_v6  ;;  %v4284_v9 = vand.u32 (!%p140_p2), %v4098_v5, %v4276_v6  ;;  %v4111_v11 = vld [vmem:[%s4637_s1 + $0x38] ss:$0 sps:$4 sm:$0x77] (!%p140_p2)   ;;  %vm338_vm2 = vcmask (!%p140_p2), 171008   ;;  %v4121_v21 = vld [vmem:[%s4637_s1 + $0x3c] sm:$0xff] (!%p140_p2)   ;;  %v4364_v41 = vld [vmem:[%s4637_s1 + $0x48] sm:$0xff] (!%p140_p2)  }
   0x9   : > { %v4119_v12 = vld [vmem:[%s4637_s1 + $0x8] ss:$0 sps:$4 sm:$0x77] (!%p140_p2)   ;;  %v1768_v17 = vand.u32 (!%p140_p2), %v4111_v11, %v4276_v6  ;;  %v4321_v22 = vld [vmem:[%s4637_s1 + $0x18] sm:$0xff] (!%p140_p2)   ;;  %p171_p4 = scmp.lt.s32.totalorder (!%p140_p2), %s4256_s13, 1 }
   0xa   : > { %3639 = vmatprep.subr.bf16.mxu1 (!%p140_p2), %v392_v8  ;;  %3747 = vmatprep.subr.bf16.mxu0 (!%p140_p2), %v4284_v9  ;;  %v693_v19 = vand.u32 (!%p140_p2), %v4119_v12, %v4276_v6  ;;  %v4139_v35 = vld [vmem:[%s4637_s1 + $0x44] ss:$0 sps:$4 sm:$0x77] (!%p140_p2)   ;;  %v4155_v54 = vld [vmem:[%s4637_s1 + $0x20] ss:$0 sps:$4 sm:$0x77] (!%p140_p2)  }
   0xb   : > { %3640 = vmatpush3.bf16.msra.mxu1 (!%p140_p2), %v392_v8  ;;  %3748 = vmatpush3.bf16.msra.mxu0 (!%p140_p2), %v4284_v9  ;;  %v2137_v40 = vand.u32 (!%p140_p2), %v4139_v35, %v4276_v6  ;;  %v1030_v59 = vand.u32 (!%p140_p2), %v4155_v54, %v4276_v6  ;;  %v4174_v11 = vld [vmem:[%s4637_s1 + $0x50] ss:$0 sps:$4 sm:$0x77] (!%p140_p2)  }
   0xc   : > { %3673 = vmatprep.subr.bf16.mxu1 (!%p140_p2), %v4100_v7  ;;  %3781 = vmatprep.subr.bf16.mxu0 (!%p140_p2), %v4102_v10 }
   0xd   : > { %s4641_s22 = smov (!%p165_p3, %s2992_s22), 3  ;;  %s4643_s13 = smov (!%p171_p4, %s4256_s13), 1 }
   0xe   : > { %s4085_s27 = smul.u32 152, %s4641_s22  ;;  %s3383_s24 = sshll.u32 %s4643_s13, 7 }
  0x10   : > { %s4297_s5 = scalar_lea.vmem %s4636_s0, %s4085_s27  ;;  %s4583_s27 = scalar_lea.vmem %s4639_s3, %s3383_s24 }
  0x11   : > { %v4099_v13 = vld [vmem:[%s4297_s5 + $0x98] sm:$0xff]   ;;  %v4101_v14 = vld [vmem:[%s4297_s5 + $0xa0] sm:$0xff]   ;;  %v4104_v16 = vld [vmem:[%s4297_s5 + $0xa8] sm:$0xff]  }
  0x12   : > { %3641 = vmatprep.mubr.msk.bf16.mxu1 %vm338_vm2, %v4099_v13  ;;  %v4103_v15 = vld [vmem:[%s4297_s5 + $0xa0] sm:$0xff]   ;;  %3749 = vmatprep.mubr.msk.bf16.mxu0 %vm338_vm2, %v4101_v14  ;;  %v4105_v18 = vld [vmem:[%s4297_s5 + $0xa8] sm:$0xff]   ;;  %v4106_v20 = vld [vmem:[%s4297_s5 + $0xb0] sm:$0xff]  }
  0x13   : > { %3642 = vmatmul.mubr.msk.bf16.vlgmr.msra.gmra.mrb[0].mxu1 %vm338_vm2, %v4103_v15  ;;  %3750 = vmatmul.mubr.msk.bf16.vlgmr.msra.gmra.mrb[0].mxu0 %vm338_vm2, %v4104_v16  ;;  %v4107_v23 = vld [vmem:[%s4297_s5 + $0xb0] sm:$0xff]   ;;  %v4108_v24 = vld [vmem:[%s4297_s5 + $0xb8] sm:$0xff]   ;;  %v4110_v26 = vld [vmem:[%s4297_s5 + $0xc0] sm:$0xff]   ;;  %v2506_v16 = vand.u32 %v4174_v11, %v4276_v6 }
  0x14   : > { %3674 = vmatpush3.bf16.msra.mxu1 %v4100_v7  ;;  %3782 = vmatpush3.bf16.msra.mxu0 %v4102_v10  ;;  %v4109_v25 = vld [vmem:[%s4297_s5 + $0xb8] sm:$0xff]   ;;  %v4112_v27 = vld [vmem:[%s4297_s5 + $0xc0] sm:$0xff]   ;;  %v4113_v28 = vld [vmem:[%s4297_s5 + $0xc8] sm:$0xff]  }
  0x15   : > { %3645 = vmatprep.mubr.msk.bf16.mxu1 %vm338_vm2, %v4105_v18  ;;  %3753 = vmatprep.mubr.msk.bf16.mxu0 %vm338_vm2, %v4106_v20  ;;  %v4114_v29 = vld [vmem:[%s4297_s5 + $0xc8] sm:$0xff]   ;;  %v4115_v30 = vld [vmem:[%s4297_s5 + $0xd0] sm:$0xff]   ;;  %v4117_v32 = vld [vmem:[%s4297_s5 + $0xd8] sm:$0xff]  }
  0x16   : > { %3783 = vmatprep.subr.bf16.mxu0 %v1768_v17  ;;  %3675 = vmatprep.subr.bf16.mxu1 %v693_v19  ;;  %v4116_v31 = vld [vmem:[%s4297_s5 + $0xd0] sm:$0xff]   ;;  %v4118_v33 = vld [vmem:[%s4297_s5 + $0xd8] sm:$0xff]   ;;  %v4122_v36 = vld [vmem:[%s4297_s5 + $0xe0] sm:$0xff]  }
  0x17   : > { %v4120_v34 = vld [vmem:[%s4297_s5 + $0x10] sm:$0xff]   ;;  %v4123_v37 = vld [vmem:[%s4297_s5 + $0x18] sm:$0xff]   ;;  %v4124_v38 = vld [vmem:[%s4297_s5 + $0xe8] sm:$0xff]  }
  0x18   : > { %3676 = vmatpush3.bf16.msra.mxu1 %v693_v19  ;;  %3784 = vmatpush3.bf16.msra.mxu0 %v1768_v17  ;;  %v4125_v39 = vld [vmem:[%s4297_s5 + $0x20] sm:$0xff]   ;;  %v4126_v42 = vld [vmem:[%s4297_s5 + $0xf0] sm:$0xff]   ;;  %v4127_v43 = vld [vmem:[%s4297_s5 + $0x28] sm:$0xff]  }
  0x19   : > { %3709 = vmatprep.subr.bf16.mxu1 %v4321_v22  ;;  %3817 = vmatprep.subr.bf16.mxu0 %v4121_v21  ;;  %v4128_v44 = vld [vmem:[%s4297_s5 + $0xf8] sm:$0xff]   ;;  %v4129_v45 = vld [vmem:[%s4297_s5 + $0x30] sm:$0xff]   ;;  %v4130_v46 = vld [vmem:[%s4297_s5 + $0x100] sm:$0xff]  }
  0x1a   : > { %v4131_v47 = vld [vmem:[%s4297_s5 + $0x38] sm:$0xff]   ;;  %v4132_v48 = vld [vmem:[%s4297_s5 + $0x108] sm:$0xff]   ;;  %v4133_v49 = vld [vmem:[%s4297_s5 + $0x40] sm:$0xff]  }
  0x1b   : > { %3646 = vmatmul.mubr.msk.bf16.gmra.mrb[4].mxu1 %vm338_vm2, %v4107_v23  ;;  %3754 = vmatmul.mubr.msk.bf16.gmra.mrb[4].mxu0 %vm338_vm2, %v4108_v24  ;;  %v4134_v50 = vld [vmem:[%s4297_s5 + $0x110] sm:$0xff]   ;;  %v4135_v51 = vld [vmem:[%s4297_s5 + $0x48] sm:$0xff]   ;;  %v4136_v52 = vld [vmem:[%s4297_s5] sm:$0xff]  }
  0x1c   : > { %3649 = vmatprep.mubr.msk.bf16.mxu1 %vm338_vm2, %v4109_v25  ;;  %3757 = vmatprep.mubr.msk.bf16.mxu0 %vm338_vm2, %v4110_v26  ;;  %v4138_v53 = vld [vmem:[%s4297_s5 + $0x50] sm:$0xff]   ;;  %v4140_v55 = vld [vmem:[%s4297_s5 + $0x8] sm:$0xff]   ;;  %v4141_v56 = vld [vmem:[%s4297_s5 + $0x58] sm:$0xff]  }
  0x1d   : > { %v4142_v57 = vld [vmem:[%s4297_s5 + $0x10] sm:$0xff]   ;;  %v4143_v58 = vld [vmem:[%s4297_s5 + $0x60] sm:$0xff]   ;;  %v4144_v60 = vld [vmem:[%s4297_s5 + $0x18] sm:$0xff]  }
  0x1e   : > { %v4145_v61 = vld [vmem:[%s4297_s5 + $0x68] sm:$0xff]   ;;  %v4146_v62 = vld [vmem:[%s4297_s5 + $0x20] sm:$0xff]   ;;  %v4147_v63 = vld [vmem:[%s4297_s5 + $0x70] sm:$0xff]  }
  0x1f   : > { %v4148_v0 = vld [vmem:[%s4297_s5 + $0x28] sm:$0xff]   ;;  %v4149_v2 = vld [vmem:[%s4297_s5 + $0x78] sm:$0xff]   ;;  %v4150_v3 = vld [vmem:[%s4297_s5 + $0x30] sm:$0xff]  }
  0x20   : > { %v4151_v4 = vld [vmem:[%s4297_s5 + $0x80] sm:$0xff]   ;;  %v4152_v5 = vld [vmem:[%s4297_s5 + $0x38] sm:$0xff]   ;;  %v4153_v7 = vld [vmem:[%s4297_s5 + $0x88] sm:$0xff]  }
  0x21   : > { %v4154_v8 = vld [vmem:[%s4297_s5 + $0x40] sm:$0xff]   ;;  %v4156_v10 = vld [vmem:[%s4297_s5 + $0xa8] sm:$0xff]   ;;  %v4159_v13 = vld [vmem:[%s4297_s5 + $0xb0] sm:$0xff]  }
  0x22   : > { %v4158_v12 = vld [vmem:[%s4297_s5 + $0x48] sm:$0xff]   ;;  %v4160_v14 = vld [vmem:[%s4297_s5 + $0x50] sm:$0xff]   ;;  %v4161_v15 = vld [vmem:[%s4297_s5 + $0xb8] sm:$0xff]  }
  0x23   : > { %3650 = vmatmul.mubr.msk.bf16.gmra.mrb[8].mxu1 %vm338_vm2, %v4112_v27  ;;  %3758 = vmatmul.mubr.msk.bf16.gmra.mrb[8].mxu0 %vm338_vm2, %v4113_v28  ;;  %v4162_v17 = vld [vmem:[%s4297_s5 + $0x58] sm:$0xff]   ;;  %v4163_v18 = vld [vmem:[%s4297_s5 + $0xc0] sm:$0xff]   ;;  %v4165_v6 = vld [vmem:[%s4297_s5 + $0xc8] sm:$0xff]  }
  0x24   : > { %3653 = vmatprep.mubr.msk.bf16.mxu1 %vm338_vm2, %v4114_v29  ;;  %3761 = vmatprep.mubr.msk.bf16.mxu0 %vm338_vm2, %v4115_v30  ;;  %v4164_v19 = vld [vmem:[%s4297_s5 + $0x60] sm:$0xff]   ;;  %v4166_v20 = vld [vmem:[%s4297_s5 + $0x68] sm:$0xff]   ;;  %v4169_v23 = vld [vmem:[%s4297_s5 + $0xd8] sm:$0xff]  }
  0x25   : > { %v4170_v24 = vld [vmem:[%s4297_s5 + $0x78] sm:$0xff]   ;;  %v4171_v25 = vld [vmem:[%s4297_s5 + $0xe0] sm:$0xff]   ;;  %v4172_v26 = vld [vmem:[%s4297_s5 + $0x8] sm:$0xff]  }
  0x26   : > { %v4173_v27 = vld [vmem:[%s4297_s5 + $0xe8] sm:$0xff]   ;;  %v4175_v28 = vld [vmem:[%s4297_s5 + $0x10] sm:$0xff]   ;;  %v4177_v30 = vld [vmem:[%s4297_s5 + $0x18] sm:$0xff]  }
  0x27   : > { %v4176_v29 = vld [vmem:[%s4297_s5 + $0xf0] sm:$0xff]   ;;  %v4182_v35 = vld [vmem:[%s4297_s5 + $0x108] sm:$0xff]   ;;  %v4203_v54 = vld [vmem:[%s4297_s5 + $0x80] sm:$0xff]  }
  0x2b   : > { %3654 = vmatmul.mubr.msk.bf16.gmra.mrb[12].mxu1 %vm338_vm2, %v4116_v31  ;;  %3762 = vmatmul.mubr.msk.bf16.gmra.mrb[12].mxu0 %vm338_vm2, %v4117_v32  ;;  %v4178_v31 = vld [vmem:[%s4297_s5 + $0xf8] sm:$0xff]   ;;  %v4179_v32 = vld [vmem:[%s4297_s5 + $0x20] sm:$0xff]  }
  0x2c   : > { %3657 = vmatprep.mubr.msk.bf16.mxu1 %vm338_vm2, %v4118_v33  ;;  %3785 = vmatprep.mubr.msk.bf16.mxu0 %vm338_vm2, %v4120_v34  ;;  %v4180_v33 = vld [vmem:[%s4297_s5 + $0x100] sm:$0xff]   ;;  %v4181_v34 = vld [vmem:[%s4297_s5 + $0x28] sm:$0xff]  }
  0x33   : > { %3658 = vmatmul.mubr.msk.bf16.gmra.mrb[16].mxu1 %vm338_vm2, %v4122_v36  ;;  %3786 = vmatmul.mubr.msk.bf16.vlgmr.msra.gmra.mrb[0].mxu0 %vm338_vm2, %v4123_v37  ;;  %v4184_v36 = vld [vmem:[%s4297_s5 + $0x110] sm:$0xff]   ;;  %v4185_v37 = vld [vmem:[%s4297_s5 + $0x38] sm:$0xff]  }
  0x34   : > { %3661 = vmatprep.mubr.msk.bf16.mxu1 %vm338_vm2, %v4124_v38  ;;  %3818 = vmatpush3.bf16.msra.mxu0 %v4121_v21  ;;  %v4167_v21 = vld [vmem:[%s4297_s5 + $0xd0] sm:$0xff]   ;;  %v4186_v38 = vld [vmem:[%s4297_s5 + $0x118] sm:$0xff]  }
  0x35   : > { %3789 = vmatprep.mubr.msk.bf16.mxu0 %vm338_vm2, %v4125_v39  ;;  %3819 = vmatprep.subr.bf16.mxu0 %v2137_v40  ;;  %v4188_v39 = vld [vmem:[%s4297_s5 + $0x120] sm:$0xff]  }
  0x38   : > { %3820 = vmatpush3.bf16.msra.mxu0 %v2137_v40  ;;  %v4189_v40 = vld [vmem:[%s4297_s5 + $0x48] sm:$0xff]  }
  0x39   : > { %3853 = vmatprep.subr.bf16.mxu0 %v4364_v41 }
  0x3b   : > { %3662 = vmatmul.mubr.msk.bf16.gmra.mrb[20].mxu1 %vm338_vm2, %v4126_v42  ;;  %3790 = vmatmul.mubr.msk.bf16.gmra.mrb[4].mxu0 %vm338_vm2, %v4127_v43  ;;  %v4191_v42 = vld [vmem:[%s4297_s5 + $0x50] sm:$0xff]   ;;  %v4192_v43 = vld [vmem:[%s4297_s5 + $0x20] sm:$0xff]  }
  0x3c   : > { %3665 = vmatprep.mubr.msk.bf16.mxu1 %vm338_vm2, %v4128_v44  ;;  %3793 = vmatprep.mubr.msk.bf16.mxu0 %vm338_vm2, %v4129_v45  ;;  %v4193_v44 = vld [vmem:[%s4297_s5 + $0x58] sm:$0xff]   ;;  %v4194_v45 = vld [vmem:[%s4297_s5 + $0x28] sm:$0xff]  }
  0x43   : > { %3666 = vmatmul.mubr.msk.bf16.gmra.mrb[24].mxu1 %vm338_vm2, %v4130_v46  ;;  %3794 = vmatmul.mubr.msk.bf16.gmra.mrb[8].mxu0 %vm338_vm2, %v4131_v47  ;;  %v4195_v46 = vld [vmem:[%s4297_s5 + $0x60] sm:$0xff]   ;;  %v4196_v47 = vld [vmem:[%s4297_s5 + $0x30] sm:$0xff]  }
  0x44   : > { %3669 = vmatprep.mubr.msk.bf16.mxu1 %vm338_vm2, %v4132_v48  ;;  %3797 = vmatprep.mubr.msk.bf16.mxu0 %vm338_vm2, %v4133_v49  ;;  %v4197_v48 = vld [vmem:[%s4297_s5 + $0x68] sm:$0xff]   ;;  %v4198_v49 = vld [vmem:[%s4297_s5 + $0x38] sm:$0xff]  }
  0x4b   : > { %3670 = vmatmul.mubr.msk.bf16.gmra.mrb[28].mxu1 %vm338_vm2, %v4134_v50  ;;  %3798 = vmatmul.mubr.msk.bf16.gmra.mrb[12].mxu0 %vm338_vm2, %v4135_v51  ;;  %v4199_v50 = vld [vmem:[%s4297_s5 + $0x70] sm:$0xff]   ;;  %v4200_v51 = vld [vmem:[%s4297_s5 + $0x40] sm:$0xff]  }
  0x4c   : > { %3677 = vmatprep.mubr.msk.bf16.mxu1 %vm338_vm2, %v4136_v52  ;;  %3801 = vmatprep.mubr.msk.bf16.mxu0 %vm338_vm2, %v4138_v53  ;;  %v4201_v52 = vld [vmem:[%s4297_s5 + $0x78] sm:$0xff]   ;;  %v4202_v53 = vld [vmem:[%s4297_s5 + $0x48] sm:$0xff]  }
  0x53   : > { %3678 = vmatmul.mubr.msk.bf16.vlgmr.msra.gmra.mrb[0].mxu1 %vm338_vm2, %v4140_v55  ;;  %3802 = vmatmul.mubr.msk.bf16.gmra.mrb[16].mxu0 %vm338_vm2, %v4141_v56  ;;  %v4204_v55 = vld [vmem:[%s4297_s5 + $0x50] sm:$0xff]   ;;  %v4205_v56 = vld [vmem:[%s4297_s5 + $0xe0] sm:$0xff]  }
  0x54   : > { %3710 = vmatpush3.bf16.msra.mxu1 %v4321_v22  ;;  %3681 = vmatprep.mubr.msk.bf16.mxu1 %vm338_vm2, %v4142_v57  ;;  %v4168_v22 = vld [vmem:[%s4297_s5 + $0x70] sm:$0xff]   ;;  %v4206_v57 = vld [vmem:[%s4297_s5 + $0x58] sm:$0xff]  }
  0x55   : > { %3805 = vmatprep.mubr.msk.bf16.mxu0 %vm338_vm2, %v4143_v58  ;;  %3711 = vmatprep.subr.bf16.mxu1 %v1030_v59  ;;  %v4207_v58 = vld [vmem:[%s4297_s5 + $0xe8] sm:$0xff]  }
  0x58   : > { %3712 = vmatpush3.bf16.msra.mxu1 %v1030_v59  ;;  %v4208_v59 = vld [vmem:[%s4297_s5 + $0x60] sm:$0xff]  }
  0x59   : > { %3889 = vmatprep.subr.bf16.mxu1 %v4266_v1 }
  0x5b   : > { %3682 = vmatmul.mubr.msk.bf16.gmra.mrb[4].mxu1 %vm338_vm2, %v4144_v60  ;;  %3806 = vmatmul.mubr.msk.bf16.gmra.mrb[20].mxu0 %vm338_vm2, %v4145_v61  ;;  %v4209_v60 = vld [vmem:[%s4297_s5 + $0xf0] sm:$0xff]   ;;  %v4210_v61 = vld [vmem:[%s4297_s5 + $0x68] sm:$0xff]  }
  0x5c   : > { %3685 = vmatprep.mubr.msk.bf16.mxu1 %vm338_vm2, %v4146_v62  ;;  %3809 = vmatprep.mubr.msk.bf16.mxu0 %vm338_vm2, %v4147_v63  ;;  %v4211_v62 = vld [vmem:[%s4297_s5 + $0xf8] sm:$0xff]   ;;  %v4212_v63 = vld [vmem:[%s4297_s5 + $0x70] sm:$0xff]  }
  0x63   : > { %3686 = vmatmul.mubr.msk.bf16.gmra.mrb[8].mxu1 %vm338_vm2, %v4148_v0  ;;  %3810 = vmatmul.mubr.msk.bf16.gmra.mrb[24].mxu0 %vm338_vm2, %v4149_v2  ;;  %v4213_v0 = vld [vmem:[%s4297_s5 + $0x100] sm:$0xff]   ;;  %v4214_v2 = vld [vmem:[%s4297_s5 + $0x78] sm:$0xff]  }
  0x64   : > { %3689 = vmatprep.mubr.msk.bf16.mxu1 %vm338_vm2, %v4150_v3  ;;  %3813 = vmatprep.mubr.msk.bf16.mxu0 %vm338_vm2, %v4151_v4  ;;  %v4215_v3 = vld [vmem:[%s4297_s5 + $0x108] sm:$0xff]   ;;  %v4216_v4 = vld [vmem:[%s4297_s5 + $0x80] sm:$0xff]  }
  0x6b   : > { %3690 = vmatmul.mubr.msk.bf16.gmra.mrb[12].mxu1 %vm338_vm2, %v4152_v5  ;;  %3814 = vmatmul.mubr.msk.bf16.gmra.mrb[28].mxu0 %vm338_vm2, %v4153_v7  ;;  %v4217_v5 = vld [vmem:[%s4297_s5 + $0x110] sm:$0xff]   ;;  %v4218_v7 = vld [vmem:[%s4297_s5 + $0x88] sm:$0xff]  }
  0x6c   : > { %3693 = vmatprep.mubr.msk.bf16.mxu1 %vm338_vm2, %v4154_v8  ;;  %3821 = vmatprep.mubr.msk.bf16.mxu0 %vm338_vm2, %v4156_v10  ;;  %v4219_v8 = vld [vmem:[%s4297_s5 + $0x118] sm:$0xff]   ;;  %v4220_v10 = vld [vmem:[%s4297_s5 + $0x90] sm:$0xff]  }
  0x73   : > { %3694 = vmatmul.mubr.msk.bf16.gmra.mrb[16].mxu1 %vm338_vm2, %v4158_v12  ;;  %3822 = vmatmul.mubr.msk.bf16.vlgmr.msra.gmra.mrb[0].mxu0 %vm338_vm2, %v4159_v13 }
  0x74   : > { %3697 = vmatprep.mubr.msk.bf16.mxu1 %vm338_vm2, %v4160_v14  ;;  %3854 = vmatpush3.bf16.msra.mxu0 %v4364_v41  ;;  %v4190_v41 = vld [vmem:[%s4297_s5 + $0x18] sm:$0xff]  }
  0x75   : > { %3825 = vmatprep.mubr.msk.bf16.mxu0 %vm338_vm2, %v4161_v15  ;;  %3855 = vmatprep.subr.bf16.mxu0 %v2506_v16 }
  0x78   : > { %3856 = vmatpush3.bf16.msra.mxu0 %v2506_v16 }
  0x7b   : > { %3698 = vmatmul.mubr.msk.bf16.gmra.mrb[20].mxu1 %vm338_vm2, %v4162_v17  ;;  %3826 = vmatmul.mubr.msk.bf16.gmra.mrb[4].mxu0 %vm338_vm2, %v4163_v18 }
  0x7c   : > { %3701 = vmatprep.mubr.msk.bf16.mxu1 %vm338_vm2, %v4164_v19  ;;  %3829 = vmatprep.mubr.msk.bf16.mxu0 %vm338_vm2, %v4165_v6 }
  0x83   : > { %3702 = vmatmul.mubr.msk.bf16.gmra.mrb[24].mxu1 %vm338_vm2, %v4166_v20  ;;  %3830 = vmatmul.mubr.msk.bf16.gmra.mrb[8].mxu0 %vm338_vm2, %v4167_v21 }
  0x84   : > { %3705 = vmatprep.mubr.msk.bf16.mxu1 %vm338_vm2, %v4168_v22  ;;  %3833 = vmatprep.mubr.msk.bf16.mxu0 %vm338_vm2, %v4169_v23 }
  0x8b   : > { %3706 = vmatmul.mubr.msk.bf16.gmra.mrb[28].mxu1 %vm338_vm2, %v4170_v24  ;;  %3834 = vmatmul.mubr.msk.bf16.gmra.mrb[12].mxu0 %vm338_vm2, %v4171_v25 }
  0x8c   : > { %3713 = vmatprep.mubr.msk.bf16.mxu1 %vm338_vm2, %v4172_v26  ;;  %3837 = vmatprep.mubr.msk.bf16.mxu0 %vm338_vm2, %v4173_v27  ;;  %v4573_v27 = vld [vmem:[%s4638_s2] ss:$0 sm:$0xff] }
  0x93   : > { %3714 = vmatmul.mubr.msk.bf16.vlgmr.msra.gmra.mrb[0].mxu1 %vm338_vm2, %v4175_v28  ;;  %3838 = vmatmul.mubr.msk.bf16.gmra.mrb[16].mxu0 %vm338_vm2, %v4176_v29 }
  0x94   : > { %3891 = vmatpush3.bf16.msra.mxu1 %v4266_v1  ;;  %3717 = vmatprep.mubr.msk.bf16.mxu1 %vm338_vm2, %v4177_v30  ;;  %v4183_v1 = vld [vmem:[%s4297_s5 + $0x30] sm:$0xff]  }
  0x95   : > { %3841 = vmatprep.mubr.msk.bf16.mxu0 %vm338_vm2, %v4178_v31  ;;  %3890 = vmatprep.subr.bf16.mxu1 %v4284_v9 }
  0x98   : > { %3892 = vmatpush3.bf16.msra.mxu1 %v4284_v9  ;;  %v4187_v9 = vld [vmem:[%s4297_s5 + $0x40] sm:$0xff]  }
  0x9b   : > { %3718 = vmatmul.mubr.msk.bf16.gmra.mrb[4].mxu1 %vm338_vm2, %v4179_v32  ;;  %3842 = vmatmul.mubr.msk.bf16.gmra.mrb[20].mxu0 %vm338_vm2, %v4180_v33 }
  0x9c   : > { %3721 = vmatprep.mubr.msk.bf16.mxu1 %vm338_vm2, %v4181_v34  ;;  %3845 = vmatprep.mubr.msk.bf16.mxu0 %vm338_vm2, %v4182_v35 }
  0xa3   : > { %3722 = vmatmul.mubr.msk.bf16.gmra.mrb[8].mxu1 %vm338_vm2, %v4183_v1  ;;  %3846 = vmatmul.mubr.msk.bf16.gmra.mrb[24].mxu0 %vm338_vm2, %v4184_v36 }
  0xa4   : > { %3725 = vmatprep.mubr.msk.bf16.mxu1 %vm338_vm2, %v4185_v37  ;;  %3849 = vmatprep.mubr.msk.bf16.mxu0 %vm338_vm2, %v4186_v38 }
  0xab   : > { %3726 = vmatmul.mubr.msk.bf16.gmra.mrb[12].mxu1 %vm338_vm2, %v4187_v9  ;;  %3850 = vmatmul.mubr.msk.bf16.gmra.mrb[28].mxu0 %vm338_vm2, %v4188_v39 }
  0xac   : > { %3729 = vmatprep.mubr.msk.bf16.mxu1 %vm338_vm2, %v4189_v40  ;;  %3857 = vmatprep.mubr.msk.bf16.mxu0 %vm338_vm2, %v4190_v41 }
  0xb3   : > { %3730 = vmatmul.mubr.msk.bf16.gmra.mrb[16].mxu1 %vm338_vm2, %v4191_v42  ;;  %3858 = vmatmul.mubr.msk.bf16.vlgmr.msra.gmra.mrb[0].mxu0 %vm338_vm2, %v4192_v43 }
  0xb4   : > { %3733 = vmatprep.mubr.msk.bf16.mxu1 %vm338_vm2, %v4193_v44  ;;  %3861 = vmatprep.mubr.msk.bf16.mxu0 %vm338_vm2, %v4194_v45 }
  0xbb   : > { %3734 = vmatmul.mubr.msk.bf16.gmra.mrb[20].mxu1 %vm338_vm2, %v4195_v46  ;;  %3862 = vmatmul.mubr.msk.bf16.gmra.mrb[4].mxu0 %vm338_vm2, %v4196_v47 }
  0xbc   : > { %3737 = vmatprep.mubr.msk.bf16.mxu1 %vm338_vm2, %v4197_v48  ;;  %3865 = vmatprep.mubr.msk.bf16.mxu0 %vm338_vm2, %v4198_v49 }
  0xc3   : > { %3738 = vmatmul.mubr.msk.bf16.gmra.mrb[24].mxu1 %vm338_vm2, %v4199_v50  ;;  %3866 = vmatmul.mubr.msk.bf16.gmra.mrb[8].mxu0 %vm338_vm2, %v4200_v51 }
  0xc4   : > { %3741 = vmatprep.mubr.msk.bf16.mxu1 %vm338_vm2, %v4201_v52  ;;  %3869 = vmatprep.mubr.msk.bf16.mxu0 %vm338_vm2, %v4202_v53 }
  0xcb   : > { %3742 = vmatmul.mubr.msk.bf16.gmra.mrb[28].mxu1 %vm338_vm2, %v4203_v54  ;;  %3870 = vmatmul.mubr.msk.bf16.gmra.mrb[12].mxu0 %vm338_vm2, %v4204_v55 }
  0xcc   : > { %3765 = vmatprep.mubr.msk.bf16.mxu1 %vm338_vm2, %v4205_v56  ;;  %3873 = vmatprep.mubr.msk.bf16.mxu0 %vm338_vm2, %v4206_v57 }
  0xd3   : > { %3766 = vmatmul.mubr.msk.bf16.vlgmr.msra.gmra.mrb[16].mxu1 %vm338_vm2, %v4207_v58  ;;  %3874 = vmatmul.mubr.msk.bf16.gmra.mrb[16].mxu0 %vm338_vm2, %v4208_v59 }
  0xd4   : > { %3769 = vmatprep.mubr.msk.bf16.mxu1 %vm338_vm2, %v4209_v60  ;;  %3877 = vmatprep.mubr.msk.bf16.mxu0 %vm338_vm2, %v4210_v61 }
  0xdb   : > { %3770 = vmatmul.mubr.msk.bf16.gmra.mrb[20].mxu1 %vm338_vm2, %v4211_v62  ;;  %3878 = vmatmul.mubr.msk.bf16.gmra.mrb[20].mxu0 %vm338_vm2, %v4212_v63 }
  0xdc   : > { %3773 = vmatprep.mubr.msk.bf16.mxu1 %vm338_vm2, %v4213_v0  ;;  %3881 = vmatprep.mubr.msk.bf16.mxu0 %vm338_vm2, %v4214_v2 }
  0xe3   : > { %3774 = vmatmul.mubr.msk.bf16.gmra.mrb[24].mxu1 %vm338_vm2, %v4215_v3  ;;  %3882 = vmatmul.mubr.msk.bf16.gmra.mrb[24].mxu0 %vm338_vm2, %v4216_v4 }
  0xe4   : > { %3777 = vmatprep.mubr.msk.bf16.mxu1 %vm338_vm2, %v4217_v5  ;;  %3885 = vmatprep.mubr.msk.bf16.mxu0 %vm338_vm2, %v4218_v7 }
  0xeb   : > { %3778 = vmatmul.mubr.msk.bf16.gmra.mrb[28].mxu1 %vm338_vm2, %v4219_v8  ;;  %3886 = vmatmul.mubr.msk.bf16.gmra.mrb[28].mxu0 %vm338_vm2, %v4220_v10 }
 0x166   : > { %v3715_v11 = vpop.f32.mrb[0].mxu1 }
 0x167   : > { %v1066_v12 = vpop.f32.mrb[1].mxu1 }
 0x168   : > { %v3716_v13 = vpop.f32.mrb[2].mxu1 }
 0x169   : > { %v1069_v14 = vpop.f32.mrb[3].mxu1 }
 0x16e   : > { %v3719_v15 = vpop.f32.mrb[4].mxu1 }
 0x16f   : > { %v1082_v16 = vpop.f32.mrb[5].mxu1 }
 0x170   : > { %v3720_v17 = vpop.f32.mrb[6].mxu1 }
 0x171   : > { %v1085_v18 = vpop.f32.mrb[7].mxu1 }
 0x176   : > { %v3723_v19 = vpop.f32.mrb[8].mxu1 }
 0x177   : > { %v1098_v6 = vpop.f32.mrb[9].mxu1 }
 0x178   : > { %v3724_v20 = vpop.f32.mrb[10].mxu1 }
 0x179   : > { %v1101_v21 = vpop.f32.mrb[11].mxu1 }
 0x17e   : > { %v4561_v22 = vpop.f32.mrb[12].mxu1 }
 0x17f   : > { %v4563_v23 = vpop.f32.mrb[13].mxu1 }
 0x180   : > { %v4565_v24 = vpop.f32.mrb[14].mxu1 }
 0x181   : > { %v4567_v25 = vpop.f32.mrb[15].mxu1 }
 0x186   : > { %v3859_v26 = vpop.f32.mrb[0].mxu0 }
 0x187   : > { %v3893_v28 = vadd.f32 %v3859_v26, %v3715_v11  ;;  %v2542_v29 = vpop.f32.mrb[1].mxu0 }
 0x188   : > { %v3894_v30 = vadd.f32 %v2542_v29, %v1066_v12  ;;  %v3860_v31 = vpop.f32.mrb[2].mxu0 }
 0x189   : > { %v2710_v32 = vadd.f32 %v3893_v28, %v4573_v27  ;;  %v3895_v33 = vadd.f32 %v3860_v31, %v3716_v13  ;;  %v2545_v34 = vpop.f32.mrb[3].mxu0 }
 0x18a   : > { %v2708_v35 = vadd.f32 %v3894_v30, %v4573_v27  ;;  %v3896_v1 = vadd.f32 %v2545_v34, %v1069_v14 }
 0x18b   : > { %v2711_v36 = vadd.f32 %v3895_v33, %v4573_v27  ;;  %v2742_v38 = vmax.f32 %v2710_v32, 0.0 }
 0x18c   : > { %v2709_v37 = vadd.f32 %v3896_v1, %v4573_v27  ;;  %v2740_v39 = vmax.f32 %v2708_v35, 0.0 }
 0x18d   : > { %v2743_v9 = vmax.f32 %v2711_v36, 0.0 }
 0x18e   : > { %v2741_v40 = vmax.f32 %v2709_v37, 0.0  ;;  %v3863_v41 = vpop.f32.mrb[4].mxu0 }
 0x18f   : > { %v3424_v42 = vpack.c.bf16 %v2743_v9, %v2742_v38  ;;  %v3897_v43 = vadd.f32 %v3863_v41, %v3719_v15  ;;  %v2558_v44 = vpop.f32.mrb[5].mxu0 }
 0x190   : > { %v3419_v45 = vpack.c.bf16 %v2741_v40, %v2740_v39  ;;  %v3898_v46 = vadd.f32 %v2558_v44, %v1082_v16  ;;  %v3864_v47 = vpop.f32.mrb[6].mxu0 }
 0x191   : > { %3496 = vst [vmem:[%s4583_s27 + $0x8] sm:$0xff] %v3424_v42   ;;  %v2714_v48 = vadd.f32 %v3897_v43, %v4573_v27  ;;  %v3899_v49 = vadd.f32 %v3864_v47, %v3720_v17  ;;  %v2561_v50 = vpop.f32.mrb[7].mxu0 }
 0x192   : > { %3420 = vst [vmem:[%s4583_s27] sm:$0xff] %v3419_v45   ;;  %v2712_v51 = vadd.f32 %v3898_v46, %v4573_v27  ;;  %v3900_v52 = vadd.f32 %v2561_v50, %v1085_v18 }
 0x193   : > { %v2715_v53 = vadd.f32 %v3899_v49, %v4573_v27  ;;  %v2746_v55 = vmax.f32 %v2714_v48, 0.0 }
 0x194   : > { %v2713_v54 = vadd.f32 %v3900_v52, %v4573_v27  ;;  %v2744_v57 = vmax.f32 %v2712_v51, 0.0 }
 0x195   : > { %v2747_v56 = vmax.f32 %v2715_v53, 0.0 }
 0x196   : > { %v2745_v58 = vmax.f32 %v2713_v54, 0.0  ;;  %v3867_v59 = vpop.f32.mrb[8].mxu0 }
 0x197   : > { %v3434_v60 = vpack.c.bf16 %v2747_v56, %v2746_v55  ;;  %v3901_v61 = vadd.f32 %v3867_v59, %v3723_v19  ;;  %v2574_v62 = vpop.f32.mrb[9].mxu0 }
 0x198   : > { %v3429_v63 = vpack.c.bf16 %v2745_v58, %v2744_v57  ;;  %v3902_v0 = vadd.f32 %v2574_v62, %v1098_v6  ;;  %v3868_v2 = vpop.f32.mrb[10].mxu0 }
 0x199   : > { %3498 = vst [vmem:[%s4583_s27 + $0x18] sm:$0xff] %v3434_v60   ;;  %v2718_v3 = vadd.f32 %v3901_v61, %v4573_v27  ;;  %v3903_v4 = vadd.f32 %v3868_v2, %v3724_v20  ;;  %v2577_v5 = vpop.f32.mrb[11].mxu0 }
 0x19a   : > { %3497 = vst [vmem:[%s4583_s27 + $0x10] sm:$0xff] %v3429_v63   ;;  %v2716_v7 = vadd.f32 %v3902_v0, %v4573_v27  ;;  %v3904_v8 = vadd.f32 %v2577_v5, %v1101_v21 }
 0x19b   : > { %v2719_v10 = vadd.f32 %v3903_v4, %v4573_v27  ;;  %v2750_v12 = vmax.f32 %v2718_v3, 0.0 }
 0x19c   : > { %v2717_v11 = vadd.f32 %v3904_v8, %v4573_v27  ;;  %v2748_v14 = vmax.f32 %v2716_v7, 0.0 }
 0x19d   : > { %v2751_v13 = vmax.f32 %v2719_v10, 0.0 }
 0x19e   : > { %v2749_v15 = vmax.f32 %v2717_v11, 0.0  ;;  %v3871_v16 = vpop.f32.mrb[12].mxu0 }
 0x19f   : > { %v3444_v17 = vpack.c.bf16 %v2751_v13, %v2750_v12  ;;  %v3905_v18 = vadd.f32 %v3871_v16, %v4561_v22  ;;  %v2590_v19 = vpop.f32.mrb[13].mxu0 }
 0x1a0   : > { %v3439_v6 = vpack.c.bf16 %v2749_v15, %v2748_v14  ;;  %v3906_v20 = vadd.f32 %v2590_v19, %v4563_v23  ;;  %v3872_v26 = vpop.f32.mrb[14].mxu0 }
 0x1a1   : > { %3500 = vst [vmem:[%s4583_s27 + $0x28] sm:$0xff] %v3444_v17   ;;  %v2722_v21 = vadd.f32 %v3905_v18, %v4573_v27  ;;  %v3907_v28 = vadd.f32 %v3872_v26, %v4565_v24  ;;  %v2593_v29 = vpop.f32.mrb[15].mxu0 }
 0x1a2   : > { %3499 = vst [vmem:[%s4583_s27 + $0x20] sm:$0xff] %v3439_v6   ;;  %v2720_v30 = vadd.f32 %v3906_v20, %v4573_v27  ;;  %v3908_v31 = vadd.f32 %v2593_v29, %v4567_v25 }
 0x1a3   : > { %v2723_v32 = vadd.f32 %v3907_v28, %v4573_v27  ;;  %v2754_v33 = vmax.f32 %v2722_v21, 0.0 }
 0x1a4   : > { %v2721_v22 = vadd.f32 %v3908_v31, %v4573_v27  ;;  %v2752_v35 = vmax.f32 %v2720_v30, 0.0 }
 0x1a5   : > { %v2755_v34 = vmax.f32 %v2723_v32, 0.0 }
 0x1a6   : > { %v3767_v23 = vpop.f32.mrb[16].mxu1  ;;  %v2753_v1 = vmax.f32 %v2721_v22, 0.0  ;;  %v3875_v36 = vpop.f32.mrb[16].mxu0 }
 0x1a7   : > { %v1499_v37 = vpop.f32.mrb[17].mxu1  ;;  %v3454_v24 = vpack.c.bf16 %v2755_v34, %v2754_v33  ;;  %v3909_v38 = vadd.f32 %v3875_v36, %v3767_v23  ;;  %v2606_v9 = vpop.f32.mrb[17].mxu0 }
 0x1a8   : > { %v3768_v39 = vpop.f32.mrb[18].mxu1  ;;  %v3449_v40 = vpack.c.bf16 %v2753_v1, %v2752_v35  ;;  %v3910_v41 = vadd.f32 %v2606_v9, %v1499_v37  ;;  %v3876_v25 = vpop.f32.mrb[18].mxu0 }
 0x1a9   : > { %v1502_v42 = vpop.f32.mrb[19].mxu1  ;;  %3502 = vst [vmem:[%s4583_s27 + $0x38] sm:$0xff] %v3454_v24   ;;  %v2726_v43 = vadd.f32 %v3909_v38, %v4573_v27  ;;  %v3911_v44 = vadd.f32 %v3876_v25, %v3768_v39  ;;  %v2609_v45 = vpop.f32.mrb[19].mxu0 }
 0x1aa   : > { %3501 = vst [vmem:[%s4583_s27 + $0x30] sm:$0xff] %v3449_v40   ;;  %v2724_v46 = vadd.f32 %v3910_v41, %v4573_v27  ;;  %v3912_v47 = vadd.f32 %v2609_v45, %v1502_v42 }
 0x1ab   : > { %v2727_v48 = vadd.f32 %v3911_v44, %v4573_v27  ;;  %v2758_v50 = vmax.f32 %v2726_v43, 0.0 }
 0x1ac   : > { %v2725_v49 = vadd.f32 %v3912_v47, %v4573_v27  ;;  %v2756_v53 = vmax.f32 %v2724_v46, 0.0 }
 0x1ad   : > { %v2759_v51 = vmax.f32 %v2727_v48, 0.0 }
 0x1ae   : > { %v3771_v52 = vpop.f32.mrb[20].mxu1  ;;  %v2757_v54 = vmax.f32 %v2725_v49, 0.0  ;;  %v3879_v55 = vpop.f32.mrb[20].mxu0 }
 0x1af   : > { %v1515_v56 = vpop.f32.mrb[21].mxu1  ;;  %v3464_v57 = vpack.c.bf16 %v2759_v51, %v2758_v50  ;;  %v3913_v58 = vadd.f32 %v3879_v55, %v3771_v52  ;;  %v2622_v59 = vpop.f32.mrb[21].mxu0 }
 0x1b0   : > { %v3772_v60 = vpop.f32.mrb[22].mxu1  ;;  %v3459_v61 = vpack.c.bf16 %v2757_v54, %v2756_v53  ;;  %v3914_v62 = vadd.f32 %v2622_v59, %v1515_v56  ;;  %v3880_v63 = vpop.f32.mrb[22].mxu0 }
 0x1b1   : > { %v1518_v0 = vpop.f32.mrb[23].mxu1  ;;  %3504 = vst [vmem:[%s4583_s27 + $0x48] sm:$0xff] %v3464_v57   ;;  %v2730_v2 = vadd.f32 %v3913_v58, %v4573_v27  ;;  %v3915_v3 = vadd.f32 %v3880_v63, %v3772_v60  ;;  %v2625_v4 = vpop.f32.mrb[23].mxu0 }
 0x1b2   : > { %3503 = vst [vmem:[%s4583_s27 + $0x40] sm:$0xff] %v3459_v61   ;;  %v2728_v5 = vadd.f32 %v3914_v62, %v4573_v27  ;;  %v3916_v7 = vadd.f32 %v2625_v4, %v1518_v0 }
 0x1b3   : > { %v2731_v8 = vadd.f32 %v3915_v3, %v4573_v27  ;;  %v2762_v11 = vmax.f32 %v2730_v2, 0.0 }
 0x1b4   : > { %v2729_v10 = vadd.f32 %v3916_v7, %v4573_v27  ;;  %v2760_v14 = vmax.f32 %v2728_v5, 0.0 }
 0x1b5   : > { %v2763_v12 = vmax.f32 %v2731_v8, 0.0 }
 0x1b6   : > { %v3775_v13 = vpop.f32.mrb[24].mxu1  ;;  %v2761_v15 = vmax.f32 %v2729_v10, 0.0  ;;  %v3883_v16 = vpop.f32.mrb[24].mxu0 }
 0x1b7   : > { %v1531_v17 = vpop.f32.mrb[25].mxu1  ;;  %v3474_v18 = vpack.c.bf16 %v2763_v12, %v2762_v11  ;;  %v3917_v19 = vadd.f32 %v3883_v16, %v3775_v13  ;;  %v2638_v6 = vpop.f32.mrb[25].mxu0 }
 0x1b8   : > { %v3776_v20 = vpop.f32.mrb[26].mxu1  ;;  %v3469_v26 = vpack.c.bf16 %v2761_v15, %v2760_v14  ;;  %v3918_v21 = vadd.f32 %v2638_v6, %v1531_v17  ;;  %v3884_v28 = vpop.f32.mrb[26].mxu0 }
 0x1b9   : > { %v1534_v29 = vpop.f32.mrb[27].mxu1  ;;  %3506 = vst [vmem:[%s4583_s27 + $0x58] sm:$0xff] %v3474_v18   ;;  %v2734_v30 = vadd.f32 %v3917_v19, %v4573_v27  ;;  %v3919_v31 = vadd.f32 %v3884_v28, %v3776_v20  ;;  %v2641_v32 = vpop.f32.mrb[27].mxu0 }
 0x1ba   : > { %3505 = vst [vmem:[%s4583_s27 + $0x50] sm:$0xff] %v3469_v26   ;;  %v2732_v22 = vadd.f32 %v3918_v21, %v4573_v27  ;;  %v3920_v33 = vadd.f32 %v2641_v32, %v1534_v29 }
 0x1bb   : > { %v2735_v34 = vadd.f32 %v3919_v31, %v4573_v27  ;;  %v2766_v35 = vmax.f32 %v2734_v30, 0.0 }
 0x1bc   : > { %v2733_v23 = vadd.f32 %v3920_v33, %v4573_v27  ;;  %v2764_v37 = vmax.f32 %v2732_v22, 0.0 }
 0x1bd   : > { %v2767_v1 = vmax.f32 %v2735_v34, 0.0 }
 0x1be   : > { %v3779_v36 = vpop.f32.mrb[28].mxu1  ;;  %v2765_v24 = vmax.f32 %v2733_v23, 0.0  ;;  %v3887_v38 = vpop.f32.mrb[28].mxu0 }
 0x1bf   : > { %v1547_v9 = vpop.f32.mrb[29].mxu1  ;;  %v3484_v39 = vpack.c.bf16 %v2767_v1, %v2766_v35  ;;  %v3921_v40 = vadd.f32 %v3887_v38, %v3779_v36  ;;  %v2654_v41 = vpop.f32.mrb[29].mxu0 }
 0x1c0   : > { %v3780_v25 = vpop.f32.mrb[30].mxu1  ;;  %v3479_v42 = vpack.c.bf16 %v2765_v24, %v2764_v37  ;;  %v3922_v43 = vadd.f32 %v2654_v41, %v1547_v9  ;;  %v3888_v44 = vpop.f32.mrb[30].mxu0 }
 0x1c1   : > { %v1550_v45 = vpop.f32.mrb[31].mxu1  ;;  %3508 = vst [vmem:[%s4583_s27 + $0x68] sm:$0xff] %v3484_v39   ;;  %v2738_v46 = vadd.f32 %v3921_v40, %v4573_v27  ;;  %v3923_v47 = vadd.f32 %v3888_v44, %v3780_v25  ;;  %v2657_v48 = vpop.f32.mrb[31].mxu0 }
 0x1c2   : > { %3507 = vst [vmem:[%s4583_s27 + $0x60] sm:$0xff] %v3479_v42   ;;  %v2736_v49 = vadd.f32 %v3922_v43, %v4573_v27  ;;  %v3924_v50 = vadd.f32 %v2657_v48, %v1550_v45 }
 0x1c3   : > { %v2739_v51 = vadd.f32 %v3923_v47, %v4573_v27  ;;  %v2770_v53 = vmax.f32 %v2738_v46, 0.0 }
 0x1c4   : > { %v2737_v52 = vadd.f32 %v3924_v50, %v4573_v27  ;;  %v2768_v55 = vmax.f32 %v2736_v49, 0.0 }
 0x1c5   : > { %v2771_v54 = vmax.f32 %v2739_v51, 0.0 }
 0x1c6   : > { %v2769_v56 = vmax.f32 %v2737_v52, 0.0 }
 0x1c7   : > { %v3494_v57 = vpack.c.bf16 %v2771_v54, %v2770_v53 }
 0x1c8   : > { %v3489_v58 = vpack.c.bf16 %v2769_v56, %v2768_v55 }
 0x1c9   : > { %3510 = vst [vmem:[%s4583_s27 + $0x78] sm:$0xff] %v3494_v57  }
 0x1ca   : > { %3509 = vst [vmem:[%s4583_s27 + $0x70] sm:$0xff] %v3489_v58  }
 0x1cb PF: > { %s13_s12 = sadd.s32 1, %s4227_s12  }
 0x1cc   : > { %p10_p5 = scmp.ge.s32.totalorder %s13_s12, 4  }
 0x1ce   :  { %12 = sbr.rel (!%p10_p5) target bundleno = 1 (0x1), region = 69 }

// kernel: encode_uv.12
= control target key start
LH: loop header
LB: loop body
LE: loop exit
PB: predicated region body
PF: predicated region fallthrough
CT: control target
= control target key end

     0   :  { %s3053_s21 = smov 0   ;;  %s3717_s0 = inlined_call_operand.vmem [shape: bf16[2,80,48], index: 0, kind: input, shape index: {}]   ;;  %s3718_s1 = inlined_call_operand.vmem [shape: bf16[3,48,128], index: 1, kind: input, shape index: {}]   ;;  %s3719_s2 = inlined_call_operand.vmem [shape: f32[1,128], index: 2, kind: input, shape index: {}]   ;;  %s3720_s3 = inlined_call_operand.vmem [shape: bf16[3,384,128], index: 3, kind: input, shape index: {}]   ;;  %s3721_s4 = inlined_call_operand.vmem [shape: f32[1,128], index: 4, kind: input, shape index: {}]   ;;  %s3722_s5 = inlined_call_operand.vmem [shape: bf16[2,64,128], index: 5, kind: input, shape index: {}]   ;;  %s3723_s6 = inlined_call_operand.vmem [shape: bf16[2,64,128], index: 6, kind: output, shape index: {}]  }
   0x1 LB: > { %s2264_s22 = sadd.s32 4294967295, %s3015_s21   ;;  %p2268_p0 = scmp.ge.s32.totalorder %s3015_s21, 1  ;;  %s3015_s21 = sphi %s3053_s21, %s16_s21  }
   0x2   : > { %p222_p1 = scmp.lt.s32.totalorder %s3015_s21, 3 }
   0x4   : > { %p223_p2 = pnand %p2268_p0, %p222_p1 }
   0x5   : > { %v2916_v0 = vld [vmem:[%s3718_s1 + $0x18] sm:$0xff] (!%p223_p2)   ;;  %p257_p3 = scmp.lt.s32.totalorder (!%p223_p2), %s2264_s22, 1  ;;  %v2917_v1 = vld [vmem:[%s3718_s1 + $0x20] sm:$0xff] (!%p223_p2)   ;;  %v2918_v2 = vld [vmem:[%s3718_s1 + $0x28] sm:$0xff] (!%p223_p2)   ;;  %vm335_vm0 = vcmask (!%p223_p2), 392192   ;;  %v3017_v40 = vmov (!%p223_p2), 0  }
   0x6   : > { %226 = sbr.rel (%p223_p2) target bundleno = 626 (0x272), region = 44  ;;  %2736 = vmatprep.subr.bf16.mxu0 (!%p223_p2), %v2916_v0  ;;  %v2923_v5 = vld [vmem:[%s3718_s1] sm:$0xff] (!%p223_p2)   ;;  %v2924_v13 = vld [vmem:[%s3718_s1 + $0x8] sm:$0xff] (!%p223_p2)   ;;  %v2927_v15 = vld [vmem:[%s3718_s1 + $0x10] sm:$0xff] (!%p223_p2)   ;;  %695 = vst [vmem:[#allocation2] sm:$0xff] (!%p223_p2), %v3017_v40 }
   0x7   : > { %2737 = vmatpush3.bf16.msra.mxu0 (!%p223_p2), %v2916_v0  ;;  %v2939_v19 = vld [vmem:[%s3720_s3 + $0x100] sm:$0xff] (!%p223_p2)   ;;  %v2928_v22 = vld [vmem:[%s3718_s1 + $0x30] sm:$0xff] (!%p223_p2)   ;;  %v2929_v24 = vld [vmem:[%s3718_s1 + $0x38] sm:$0xff] (!%p223_p2)   ;;  %696 = vst [vmem:[#allocation2 + $0x8] sm:$0xff] (!%p223_p2), %v3017_v40 }
   0x8   : > { %2738 = vmatprep.subr.bf16.mxu0 (!%p223_p2), %v2917_v1  ;;  %v2940_v21 = vld [vmem:[%s3720_s3 + $0xc0] sm:$0xff] (!%p223_p2)   ;;  %2580 = vmatprep.subr.bf16.mxu1 (!%p223_p2), %v2939_v19  ;;  %v2941_v33 = vld [vmem:[%s3720_s3 + $0x48] sm:$0xff] (!%p223_p2)   ;;  %v2945_v38 = vld [vmem:[%s3720_s3 + $0x50] sm:$0xff] (!%p223_p2)   ;;  %697 = vst [vmem:[#allocation2 + $0x10] sm:$0xff] (!%p223_p2), %v3017_v40 }
   0x9   : > { %2581 = vmatpush3.bf16.msra.mxu1 (!%p223_p2), %v2940_v21  ;;  %v2932_v26 = vld [vmem:[%s3718_s1 + $0x40] sm:$0xff] (!%p223_p2)   ;;  %v2942_v34 = vld [vmem:[%s3720_s3 + $0x8] sm:$0xff] (!%p223_p2)   ;;  %v2946_v39 = vld [vmem:[%s3720_s3 + $0x10] sm:$0xff] (!%p223_p2)   ;;  %707 = vst [vmem:[#allocation2 + $0x60] sm:$0xff] (!%p223_p2), %v3017_v40 }
   0xa   : > { %v2937_v29 = vld [vmem:[%s3720_s3 + $0x40] sm:$0xff] (!%p223_p2)   ;;  %v2943_v36 = vld [vmem:[%s3720_s3 + $0x108] sm:$0xff] (!%p223_p2)   ;;  %708 = vst [vmem:[#allocation2 + $0x68] sm:$0xff] (!%p223_p2), %v3017_v40  ;;  %709 = vst [vmem:[#allocation2 + $0x70] sm:$0xff] (!%p223_p2), %v3017_v40 }
   0xb   : > { %2739 = vmatpush3.bf16.msra.mxu0 (!%p223_p2), %v2917_v1  ;;  %v2938_v32 = vld [vmem:[%s3720_s3] sm:$0xff] (!%p223_p2)   ;;  %v2944_v37 = vld [vmem:[%s3720_s3 + $0xc8] sm:$0xff] (!%p223_p2)   ;;  %2582 = vmatprep.subr.bf16.mxu1 (!%p223_p2), %v2943_v36  ;;  %v2947_v41 = vld [vmem:[%s3720_s3 + $0x110] sm:$0xff] (!%p223_p2)   ;;  %v732_v1 = vlaneseq (!%p223_p2) }
   0xc   : > { %2740 = vmatprep.subr.bf16.mxu0 (!%p223_p2), %v2918_v2  ;;  %v2948_v42 = vld [vmem:[%s3720_s3 + $0xd0] sm:$0xff] (!%p223_p2)   ;;  %v2949_v43 = vld [vmem:[%s3720_s3 + $0x58] sm:$0xff] (!%p223_p2)   ;;  %v2953_v47 = vld [vmem:[%s3720_s3 + $0x60] sm:$0xff] (!%p223_p2)  }
   0xd   : > { %s3798_s22 = smov (!%p257_p3, %s2264_s22), 1  ;;  %2583 = vmatpush3.bf16.msra.mxu1 %v2944_v37  ;;  %v2950_v44 = vld [vmem:[%s3720_s3 + $0x18] sm:$0xff]   ;;  %v2954_v48 = vld [vmem:[%s3720_s3 + $0x20] sm:$0xff]   ;;  %v2957_v51 = vld [vmem:[%s3720_s3 + $0x68] sm:$0xff]  }
   0xe   : > { %s2906_s29 = smul.u32 40, %s3798_s22  ;;  %2584 = vmatprep.subr.bf16.mxu1 %v2947_v41  ;;  %v2951_v45 = vld [vmem:[%s3720_s3 + $0x118] sm:$0xff]   ;;  %v2955_v49 = vld [vmem:[%s3720_s3 + $0x120] sm:$0xff]   ;;  %v2958_v52 = vld [vmem:[%s3720_s3 + $0x28] sm:$0xff]   ;;  %s2507_s14 = sshll.u32 %s3798_s22, 5 }
   0xf   : > { %2741 = vmatpush3.bf16.msra.mxu0 %v2918_v2  ;;  %v2952_v46 = vld [vmem:[%s3720_s3 + $0xd8] sm:$0xff]   ;;  %v2956_v50 = vld [vmem:[%s3720_s3 + $0xe0] sm:$0xff]   ;;  %v2959_v53 = vld [vmem:[%s3720_s3 + $0x128] sm:$0xff]   ;;  %v733_v2 = vshrl.u32 %v732_v1, 7  ;;  %s266_s17 = scalar_lea.vmem %s3722_s5, %s2507_s14  ;;  %s271_s23 = scalar_lea.vmem %s3723_s6, %s2507_s14 }
  0x10   : > { %s3076_s8 = scalar_lea.vmem %s3717_s0, %s2906_s29  ;;  %2750 = vmatprep.subr.bf16.mxu0 %v2923_v5  ;;  %v2960_v54 = vld [vmem:[%s3720_s3 + $0xe8] sm:$0xff]   ;;  %v2961_v55 = vld [vmem:[%s3720_s3 + $0x70] sm:$0xff]   ;;  %v2965_v59 = vld [vmem:[%s3720_s3 + $0x78] sm:$0xff]  }
  0x11   : > { %v276_v3 = vld [vmem:[%s3076_s8 + $0x4] sm:$0xf]  ;;  %v277_v4 = vld [vmem:[%s3076_s8 + $0x8] sm:$0xf]  ;;  %v278_v6 = vld [vmem:[%s3076_s8 + $0xc] sm:$0xf]  ;;  %2585 = vmatpush3.bf16.msra.mxu1 %v2948_v42 }
  0x12   : > { %v279_v7 = vld [vmem:[%s3076_s8 + $0x10] sm:$0xf]  ;;  %v2280_v8 = vcombine.low %v276_v3, %v277_v4  ;;  %v280_v9 = vld [vmem:[%s3076_s8 + $0x14] sm:$0xf]  ;;  %v281_v10 = vld [vmem:[%s3076_s8 + $0x18] sm:$0xf]  ;;  %v2292_v23 = vcombine.low %v277_v4, %v278_v6  ;;  %2586 = vmatprep.subr.bf16.mxu1 %v2951_v45 }
  0x13   : > { %v2281_v11 = vcombine.low %v278_v6, %v279_v7  ;;  %v2282_v12 = vcombine.low %v280_v9, %v281_v10  ;;  %v282_v14 = vld [vmem:[%s3076_s8 + $0x1c] sm:$0xf]  ;;  %v289_v16 = vld [vmem:[%s3076_s8 + $0x20] sm:$0xf]  ;;  %v2293_v25 = vcombine.low %v279_v7, %v280_v9  ;;  %v2933_v27 = vld [vmem:[%s3076_s8 + $0x8] sm:$0xff]   ;;  %v736_v4 = vadd.s32 24, %v733_v2 }
  0x14   : > { %2742 = vmatprep.mubr.msk.bf16.mxu0 %vm335_vm0, %v2280_v8  ;;  %v275_v17 = vld [vmem:[%s3076_s8] sm:$0xf]  ;;  %v2283_v18 = vcombine.low %v282_v14, %v289_v16  ;;  %v2294_v28 = vcombine.low %v281_v10, %v282_v14  ;;  %v2934_v30 = vld [vmem:[%s3076_s8 + $0x10] sm:$0xff]   ;;  %v2935_v31 = vld [vmem:[%s3076_s8 + $0x18] sm:$0xff]   ;;  %v734_v7 = vadd.s32 8, %v733_v2  ;;  %v745_v9 = vand.u32 7, %v733_v2 }
  0x15   : > { %2743 = vmatmul.mubr.msk.bf16.vlgmr.msra.gmra.mrb[0].mxu0 %vm335_vm0, %v2281_v11  ;;  %v2291_v20 = vcombine.low %v275_v17, %v276_v3  ;;  %v2936_v35 = vld [vmem:[%s3076_s8 + $0x20] sm:$0xff]   ;;  %2587 = vmatpush3.bf16.msra.mxu1 %v2952_v46  ;;  %v2962_v56 = vld [vmem:[%s3720_s3 + $0x30] sm:$0xff]   ;;  %v2966_v60 = vld [vmem:[%s3720_s3 + $0x38] sm:$0xff]   ;;  %v735_v3 = vadd.s32 16, %v733_v2  ;;  %v766_v6 = vand.u32 7, %v736_v4 }
  0x16   : > { %2751 = vmatpush3.bf16.msra.mxu0 %v2923_v5  ;;  %2746 = vmatprep.mubr.msk.bf16.mxu0 %vm335_vm0, %v2282_v12  ;;  %v2963_v57 = vld [vmem:[%s3720_s3 + $0x130] sm:$0xff]   ;;  %v2967_v61 = vld [vmem:[%s3720_s3 + $0x138] sm:$0xff]   ;;  %v2969_v63 = vld [vmem:[%s3720_s3 + $0x1c0] sm:$0xff]   ;;  %v752_v11 = vand.u32 7, %v734_v7  ;;  %vm3254_vm7 = vcmp.ne.s32.totalorder %v745_v9, 7  ;;  %vm3268_vm11 = vcmp.ne.s32.totalorder %v745_v9, 0 }
  0x17   : > { %2752 = vmatprep.subr.bf16.mxu0 %v2924_v13  ;;  %2588 = vmatprep.subr.bf16.mxu1 %v2955_v49  ;;  %v2964_v58 = vld [vmem:[%s3720_s3 + $0xf0] sm:$0xff]   ;;  %v2968_v62 = vld [vmem:[%s3720_s3 + $0xf8] sm:$0xff]   ;;  %v3229_v0 = vld [vmem:[%s3720_s3 + $0x140] sm:$0xff]   ;;  %v759_v5 = vand.u32 7, %v735_v3  ;;  %vm3236_vm2 = vcmp.ne.s32.totalorder %v766_v6, 7  ;;  %vm3247_vm5 = vcmp.ne.s32.totalorder %v766_v6, 0 }
  0x18   : > { %vm864_vm6 = vmpackc.low %vm3236_vm2, %vm3236_vm2  ;;  %vm3261_vm9 = vcmp.ne.s32.totalorder %v752_v11, 7  ;;  %vm3275_vm13 = vcmp.ne.s32.totalorder %v752_v11, 0  ;;  %v3323_v41 = vld [vmem:[%s3719_s2] ss:$0 sm:$0xff]  ;;  %v941_v49 = vld [vmem:[#allocation2] sm:$0xf0] }
  0x19   : > { %2589 = vmatpush3.bf16.msra.mxu1 %v2956_v50  ;;  %vm3232_vm1 = vcmp.ne.s32.totalorder %v759_v5, 7  ;;  %vm3240_vm3 = vcmp.ne.s32.totalorder %v759_v5, 0  ;;  %vm979_vm10 = vmpackc.low %vm3247_vm5, %vm3247_vm5 }
  0x1a   : > { %2753 = vmatpush3.bf16.msra.mxu0 %v2924_v13  ;;  %2590 = vmatprep.subr.bf16.mxu1 %v2959_v53  ;;  %v739_v13 = vadd.s32 48, %v733_v2  ;;  %vm863_vm4 = vmpackc.low %vm3232_vm1, %vm3232_vm1 }
  0x1b   : > { %2754 = vmatprep.subr.bf16.mxu0 %v2927_v15  ;;  %vm978_vm8 = vmpackc.low %vm3240_vm3, %vm3240_vm3 }
  0x1c   : > { %v787_v19 = vand.u32 7, %v739_v13  ;;  %vm861_vm12 = vmpackc.low %vm3254_vm7, %vm3254_vm7 }
  0x1d   : > { %2747 = vmatmul.mubr.msk.bf16.gmra.mrb[4].mxu0 %vm335_vm0, %v2283_v18  ;;  %2591 = vmatpush3.bf16.msra.mxu1 %v2960_v54  ;;  %vm862_vm14 = vmpackc.low %vm3261_vm9, %vm3261_vm9  ;;  %v2973_v54 = vld [vmem:[%s3720_s3 + $0x188] sm:$0xff]  }
  0x1e   : > { %2755 = vmatpush3.bf16.msra.mxu0 %v2927_v15  ;;  %2756 = vmatprep.mubr.msk.bf16.mxu0 %vm335_vm0, %v2291_v20  ;;  %v740_v15 = vadd.s32 56, %v733_v2  ;;  %v737_v20 = vadd.s32 32, %v733_v2  ;;  %vm976_vm15 = vmpackc.low %vm3268_vm11, %vm3268_vm11  ;;  %vm3297_vm2 = vcmp.ne.s32.totalorder %v787_v19, 7  ;;  %vm3307_vm3 = vcmp.ne.s32.totalorder %v787_v19, 0 }
  0x1f   : > { %2764 = vmatprep.subr.bf16.mxu0 %v2928_v22  ;;  %2592 = vmatprep.subr.bf16.mxu1 %v2963_v57  ;;  %v984_v37 = vsel %vm976_vm15, 65537, %v3017_v40 }
  0x21   : > { %2593 = vmatpush3.bf16.msra.mxu1 %v2964_v58 }
  0x22   : > { %2594 = vmatprep.subr.bf16.mxu1 %v2967_v61 }
  0x25   : > { %2757 = vmatmul.mubr.msk.bf16.vlgmr.msra.gmra.mrb[0].mxu0 %vm335_vm0, %v2292_v23  ;;  %2595 = vmatpush3.bf16.msra.mxu1 %v2968_v62  ;;  %v738_v23 = vadd.s32 40, %v733_v2 }
  0x26   : > { %2765 = vmatpush3.bf16.msra.mxu0 %v2928_v22  ;;  %2760 = vmatprep.mubr.msk.bf16.mxu0 %vm335_vm0, %v2293_v25  ;;  %v794_v22 = vand.u32 7, %v740_v15  ;;  %v872_v25 = vsel %vm864_vm6, 65537, %v3017_v40 }
  0x27   : > { %2766 = vmatprep.subr.bf16.mxu0 %v2929_v24  ;;  %2778 = vmatprep.subr.bf16.mxu1 %v3229_v0 }
  0x28   : > { %vm3303_vm1 = vcmp.ne.s32.totalorder %v794_v22, 7  ;;  %vm3316_vm5 = vcmp.ne.s32.totalorder %v794_v22, 0 }
  0x29   : > { %vm868_vm6 = vmpackc.low %vm3303_vm1, %vm3303_vm1 }
  0x2a   : > { %2767 = vmatpush3.bf16.msra.mxu0 %v2929_v24  ;;  %v871_v24 = vsel %vm863_vm4, 65537, %v3017_v40  ;;  %vm867_vm4 = vmpackc.low %vm3297_vm2, %vm3297_vm2  ;;  %v876_v58 = vsel %vm868_vm6, 65537, %v3017_v40  ;;  %vm1053_vm6 = vcmask 1047555  }
  0x2b   : > { %2768 = vmatprep.subr.bf16.mxu0 %v2932_v26  ;;  %v875_v57 = vsel %vm867_vm4, 65537, %v3017_v40  ;;  %vm3764_vm2 = vmpackc.low %vm3316_vm5, %vm3316_vm5  ;;  %vm939_vm5 = vsmask.f32 7954 }
  0x2c   : > { %v2323_v7 = vcombine.low %v875_v57, %v876_v58  ;;  %v2974_v58 = vld [vmem:[%s3720_s3 + $0x148] sm:$0xff]  }
  0x2d   : > { %2761 = vmatmul.mubr.msk.bf16.gmra.mrb[4].mxu0 %vm335_vm0, %v2294_v28 }
  0x2e   : > { %2769 = vmatpush3.bf16.msra.mxu0 %v2932_v26  ;;  %2770 = vmatprep.mubr.msk.bf16.mxu0 %vm335_vm0, %v2933_v27  ;;  %v986_v26 = vsel %vm978_vm8, 65537, %v3017_v40  ;;  %v987_v27 = vsel %vm979_vm10, 65537, %v3017_v40  ;;  %vm982_vm8 = vmpackc.low %vm3307_vm3, %vm3307_vm3  ;;  %vm938_vm3 = vcmask 1047556  }
  0x2f   : > { %2632 = vmatprep.subr.bf16.mxu0 %v2937_v29  ;;  %v773_v29 = vand.u32 7, %v737_v20  ;;  %v2325_v36 = vcombine.low %v986_v26, %v987_v27  ;;  %v990_v62 = vsel %vm982_vm8, 65537, %v3017_v40  ;;  %vm897_vm8 = vsmask.f32 4352 }
  0x31   : > { %vm3328_vm7 = vcmp.ne.s32.totalorder %v773_v29, 7  ;;  %vm3362_vm10 = vcmp.ne.s32.totalorder %v773_v29, 0 }
  0x32   : > { %vm980_vm1 = vmpackc.low %vm3362_vm10, %vm3362_vm10  ;;  %vm1012_vm10 = vsmask.f32 3328 }
  0x33   : > { %v988_v13 = vsel %vm980_vm1, 65537, %v3017_v40 }
  0x35   : > { %2771 = vmatmul.mubr.msk.bf16.vlgmr.msra.gmra.mrb[0].mxu0 %vm335_vm0, %v2934_v30  ;;  %v869_v30 = vsel %vm861_vm12, 65537, %v3017_v40  ;;  %vm3347_vm12 = vcmp.ne.s16.totalorder %v2325_v36, 0 }
  0x36   : > { %2774 = vmatprep.mubr.msk.bf16.mxu0 %vm335_vm0, %v2935_v31  ;;  %2633 = vmatpush3.bf16.msra.mxu0 %v2938_v32  ;;  %v870_v31 = vsel %vm862_vm14, 65537, %v3017_v40 }
  0x37   : > { %2634 = vmatprep.subr.bf16.mxu0 %v2941_v33  ;;  %v780_v33 = vand.u32 7, %v738_v23  ;;  %v2320_v42 = vcombine.low %v869_v30, %v870_v31 }
  0x39   : > { %vm3335_vm9 = vcmp.ne.s32.totalorder %v780_v33, 7  ;;  %vm3355_vm15 = vcmp.ne.s16.totalorder %v2320_v42, 0 }
  0x3a   : > { %2635 = vmatpush3.bf16.msra.mxu0 %v2942_v34  ;;  %v2321_v34 = vcombine.low %v871_v24, %v872_v25 }
  0x3b   : > { %2636 = vmatprep.subr.bf16.mxu0 %v2945_v38 }
  0x3c   : > { %vm3343_vm11 = vcmp.ne.s16.totalorder %v2321_v34, 0 }
  0x3d   : > { %2775 = vmatmul.mubr.msk.bf16.gmra.mrb[4].mxu0 %vm335_vm0, %v2936_v35  ;;  %vm977_vm0 = vmpackc.low %vm3275_vm13, %vm3275_vm13 }
  0x3e   : > { %2637 = vmatpush3.bf16.msra.mxu0 %v2946_v39  ;;  %v985_v38 = vsel %vm977_vm0, 65537, %v3017_v40  ;;  %vm865_vm13 = vmpackc.low %vm3328_vm7, %vm3328_vm7  ;;  %vm1054_vm7 = vsmask.f32 7950 }
  0x3f   : > { %2638 = vmatprep.subr.bf16.mxu0 %v2949_v43  ;;  %v2324_v46 = vcombine.low %v984_v37, %v985_v38  ;;  %vm866_vm0 = vmpackc.low %vm3335_vm9, %vm3335_vm9  ;;  %vm3379_vm9 = vcmp.ne.s32.totalorder %v780_v33, 0  ;;  %v3406_v3 = vsel %vm865_vm13, 65537, %v3017_v40  ;;  %vm3435_vm13 = vcmp.ne.s16.totalorder %v2323_v7, 0 }
  0x40   : > { %v3409_v4 = vsel %vm866_vm0, 65537, %v3017_v40  ;;  %vm981_vm4 = vmpackc.low %vm3379_vm9, %vm3379_vm9 }
  0x41   : > { %vm3384_vm14 = vcmp.ne.s16.totalorder %v2324_v46, 0  ;;  %v2322_v12 = vcombine.low %v3406_v3, %v3409_v4  ;;  %v989_v18 = vsel %vm981_vm4, 65537, %v3017_v40  ;;  %vm3468_vm0 = vmand %vm1053_vm6, %vm1054_vm7 }
  0x42   : > { %2639 = vmatpush3.bf16.msra.mxu0 %v2950_v44  ;;  %v2326_v42 = vcombine.low %v988_v13, %v989_v18 }
  0x43   : > { %2640 = vmatprep.subr.bf16.mxu0 %v2953_v47  ;;  %vm3472_vm9 = vcmp.ne.s16.totalorder %v2322_v12, 0 }
  0x46   : > { %2641 = vmatpush3.bf16.msra.mxu0 %v2954_v48 }
  0x47   : > { %2642 = vmatprep.subr.bf16.mxu0 %v2957_v51 }
  0x4a   : > { %2643 = vmatpush3.bf16.msra.mxu0 %v2958_v52 }
  0x4b   : > { %2644 = vmatprep.subr.bf16.mxu0 %v2961_v55 }
  0x4e   : > { %2645 = vmatpush3.bf16.msra.mxu0 %v2962_v56 }
  0x4f   : > { %2646 = vmatprep.subr.bf16.mxu0 %v2965_v59 }
  0x52   : > { %2647 = vmatpush3.bf16.msra.mxu0 %v2966_v60 }
  0x53   : > { %2684 = vmatprep.subr.bf16.mxu0 %v2969_v63  ;;  %v991_v63 = vsel %vm3764_vm2, 65537, %v3017_v40  ;;  %vm3476_vm2 = vcmp.ne.s16.totalorder %v2326_v42, 0 }
  0x54   : > { %v2327_v11 = vcombine.low %v990_v62, %v991_v63  ;;  %v2975_v62 = vld [vmem:[%s3720_s3 + $0x1d0] sm:$0xff]  }
 0x108   : > { %v2772_v45 = vpop.f32.mrb[0].mxu0 }
 0x109   : > { %v661_v47 = vadd.f32 %v2772_v45, %v3323_v41  ;;  %v613_v48 = vpop.f32.mrb[1].mxu0 }
 0x10a   : > { %v659_v51 = vadd.f32 %v3323_v41, %v613_v48  ;;  %v2773_v52 = vpop.f32.mrb[2].mxu0 }
 0x10b   : > { %v662_v55 = vadd.f32 %v2773_v52, %v3323_v41  ;;  %v616_v56 = vpop.f32.mrb[3].mxu0  ;;  %v669_v1 = vmax.f32 %v661_v47, 0.0 }
 0x10c   : > { %v660_v60 = vadd.f32 %v3323_v41, %v616_v56  ;;  %v667_v5 = vmax.f32 %v659_v51, 0.0 }
 0x10d   : > { %v670_v2 = vmax.f32 %v662_v55, 0.0  ;;  %v1056_v55 = vld [vmem:[#allocation2 + $0x10] sm:$0xf8] }
 0x10e   : > { %v668_v6 = vmax.f32 %v660_v60, 0.0 }
 0x10f   : > { %v3417_v8 = vpack.c.bf16 %v670_v2, %v669_v1 }
 0x110   : > { %v675_v9 = vpack.c.bf16 %v668_v6, %v667_v5  ;;  %v2776_v10 = vpop.f32.mrb[4].mxu0 }
 0x111   : > { %v716_v14 = vrot.slane %v3417_v8, 4  ;;  %v894_v15 = vsel %vm3343_vm11, %v3417_v8, 0  ;;  %v1009_v16 = vsel %vm3347_vm12, %v3417_v8, 0  ;;  %v629_v17 = vpop.f32.mrb[5].mxu0  ;;  %v665_v28 = vadd.f32 %v2776_v10, %v3323_v41  ;;  %v2972_v8 = vld [vmem:[%s3720_s3 + $0x1c8] sm:$0xff]  }
 0x112   : > { %v907_v19 = vshrl.u32 %v894_v15, 16  ;;  %v910_v20 = vshll.u32 %v894_v15, 16  ;;  %v1022_v21 = vshrl.u32 %v1009_v16, 16  ;;  %v1025_v22 = vshll.u32 %v1009_v16, 16  ;;  %v2777_v23 = vpop.f32.mrb[6].mxu0 }
 0x113   : > { %v715_v25 = vrot.slane %v675_v9, 4  ;;  %v893_v26 = vsel %vm3355_vm15, %v675_v9, 0  ;;  %v1008_v27 = vsel %vm3384_vm14, %v675_v9, 0  ;;  %v632_v29 = vpop.f32.mrb[7].mxu0  ;;  %vm3767_vm11 = vcmask 1043456   ;;  %vm3457_vm14 = vmand %vm938_vm3, %vm939_vm5 }
 0x114   : > { %v909_v40 = vrot.slane %v907_v19, 3  ;;  %v912_v30 = vrot.slane %v910_v20, 4  ;;  %v1024_v31 = vrot.slane %v1022_v21, 4  ;;  %v1027_v32 = vrot.slane %v1025_v22, 5  ;;  %vm3778_vm1 = vmmov %vm3767_vm11 }
 0x115   : > { %v3447_v33 = vsel %vm3767_vm11, %v715_v25, %v716_v14  ;;  %727 = vst [vmem:[#allocation2 + $0x8] sm:$0xf0] %v715_v25  ;;  %v899_v34 = vshrl.u32 %v893_v26, 16  ;;  %v902_v35 = vshll.u32 %v893_v26, 16  ;;  %v1014_v36 = vshrl.u32 %v1008_v27, 16  ;;  %vm3781_vm4 = vmmov %vm3778_vm1  ;;  %v2989_v25 = vld [vmem:[%s3720_s3 + $0x170] sm:$0xff]  }
 0x116   : > { %vm947_vm12 = vcmask 1044480   ;;  %v3449_v37 = vor.u32 %v912_v30, %v909_v40  ;;  %v1017_v38 = vshll.u32 %v1008_v27, 16  ;;  %v663_v39 = vadd.f32 %v3323_v41, %v629_v17  ;;  %v949_v26 = vld [vmem:[#allocation2 + $0x60] sm:$0x1f]  ;;  %vm3511_vm5 = vmand %vm3781_vm4, %vm1012_vm10  ;;  %v1063_v40 = vld [vmem:[#allocation2 + $0x70] sm:$0xf] }
 0x117   : > { %v901_v43 = vrot.slane %v899_v34, 3  ;;  %v904_v44 = vrot.slane %v902_v35, 4  ;;  %v1016_v45 = vrot.slane %v1014_v36, 4  ;;  %v666_v46 = vadd.f32 %v2777_v23, %v3323_v41  ;;  %vm3505_vm3 = vmand %vm947_vm12, %vm897_vm8  ;;  %v2970_v35 = vld [vmem:[%s3720_s3 + $0x180] sm:$0xff]  }
 0x118   : > { %v3453_v47 = vor.u32 %v1027_v32, %v1024_v31  ;;  %v1019_v50 = vrot.slane %v1017_v38, 5  ;;  %vm3461_vm15 = vcmp.ne.s16.totalorder %v2327_v11, 0  ;;  %v664_v52 = vadd.f32 %v3323_v41, %v632_v29  ;;  %vm3784_vm6 = vmmov %vm3778_vm1 }
 0x119   : > { %v905_v53 = vor.u32 %v904_v44, %v901_v43  ;;  %v673_v56 = vmax.f32 %v665_v28, 0.0  ;;  %v674_v57 = vmax.f32 %v666_v46, 0.0  ;;  %v671_v60 = vmax.f32 %v663_v39, 0.0  ;;  %vm3785_vm7 = vmmov %vm3778_vm1 }
 0x11a   : > { %v1020_v59 = vor.u32 %v1019_v50, %v1016_v45  ;;  %v672_v61 = vmax.f32 %v664_v52, 0.0  ;;  %v1209_v2 = vrot.slane %v3447_v33, 4  ;;  %vm3787_vm11 = vmmov %vm3778_vm1 }
 0x11b   : > { %v3482_v41 = vsel %vm897_vm8, %v905_v53, %v3449_v37  ;;  %v942_v63 = vsel %vm3457_vm14, %v905_v53, %v941_v49  ;;  %v678_v1 = vpack.c.bf16 %v674_v57, %v673_v56  ;;  %vm3788_vm12 = vmmov %vm3778_vm1 }
 0x11c   : > { %943 = vst [vmem:[#allocation2] sm:$0xf0] %v942_v63  ;;  %v3489_v3 = vsel %vm1012_vm10, %v1020_v59, %v3453_v47  ;;  %v1057_v4 = vsel %vm3468_vm0, %v1020_v59, %v1056_v55  ;;  %v677_v5 = vpack.c.bf16 %v672_v61, %v671_v60  ;;  %v1067_v6 = vld [vmem:[#allocation2 + $0x8] sm:$0xff]  ;;  %v1206_v9 = vrot.slane %v3482_v41, 4  ;;  %vm3791_vm14 = vmmov %vm3778_vm1 }
 0x11d   : > { %v1127_v7 = vld [vmem:[#allocation2 + $0x8] sm:$0xf0]  ;;  %1058 = vst [vmem:[#allocation2 + $0x10] sm:$0xf8] %v1057_v4  ;;  %v720_v10 = vrot.slane %v678_v1, 4  ;;  %v896_v11 = vsel %vm3435_vm13, %v678_v1, 0  ;;  %1694 = vmatprep.mubr.bf16.mxu0 %v1067_v6  ;;  %vm3786_vm13 = vmmov %vm3778_vm1 }
 0x11e   : > { %v1011_v12 = vsel %vm3461_vm15, %v678_v1, 0  ;;  %v1208_v13 = vrot.slane %v1127_v7, 4  ;;  %v925_v15 = vshrl.u32 %v896_v11, 16  ;;  %v928_v16 = vshll.u32 %v896_v11, 16  ;;  %v2981_v11 = vld [vmem:[%s3720_s3 + $0x1e0] sm:$0xff]   ;;  %vm3792_vm15 = vmmov %vm3778_vm1 }
 0x11f   : > { %v1040_v17 = vshrl.u32 %v1011_v12, 16  ;;  %v1043_v18 = vshll.u32 %v1011_v12, 16  ;;  %731 = vst [vmem:[#allocation2 + $0x68] sm:$0xf] %v720_v10  ;;  %v718_v19 = vrot.slane %v677_v5, 4  ;;  %v895_v20 = vsel %vm3472_vm9, %v677_v5, 0  ;;  %vm3793_vm0 = vmmov %vm3778_vm1 }
 0x120   : > { %v1010_v21 = vsel %vm3476_vm2, %v677_v5, 0  ;;  %v1210_v22 = vsel %vm3778_vm1, %v1208_v13, %v1209_v2  ;;  %v927_v23 = vrot.slane %v925_v15, 3  ;;  %v930_v24 = vrot.slane %v928_v16, 4  ;;  %v2976_v5 = vld [vmem:[%s3720_s3 + $0x190] sm:$0xff]   ;;  %v2982_v13 = vld [vmem:[%s3720_s3 + $0x1a0] sm:$0xff]   ;;  %v2984_v16 = vld [vmem:[%s3720_s3 + $0x1e8] sm:$0xff]  }
 0x121   : > { %v1042_v27 = vrot.slane %v1040_v17, 4  ;;  %v1045_v28 = vrot.slane %v1043_v18, 5  ;;  %1420 = vmatprep.mubr.bf16.mxu1 %v1210_v22  ;;  %v3518_v30 = vsel %vm3784_vm6, %v716_v14, %v718_v19  ;;  %v3521_v31 = vsel %vm3785_vm7, %v718_v19, %v720_v10  ;;  %v2980_v10 = vld [vmem:[%s3720_s3 + $0x158] sm:$0xff]   ;;  %v2983_v15 = vld [vmem:[%s3720_s3 + $0x160] sm:$0xff]   ;;  %v2985_v18 = vld [vmem:[%s3720_s3 + $0x1a8] sm:$0xff]  }
 0x122   : > { %v916_v32 = vshrl.u32 %v895_v20, 16  ;;  %v919_v34 = vshll.u32 %v895_v20, 16  ;;  %v931_v36 = vor.u32 %v930_v24, %v927_v23  ;;  %v1031_v39 = vshrl.u32 %v1010_v21, 16  ;;  %v2986_v19 = vld [vmem:[%s3720_s3 + $0x168] sm:$0xff]   ;;  %v2987_v20 = vld [vmem:[%s3720_s3 + $0x1f0] sm:$0xff]   ;;  %vm3794_vm9 = vmmov %vm3793_vm0 }
 0x123   : > { %v1046_v38 = vor.u32 %v1045_v28, %v1042_v27  ;;  %v1034_v42 = vshll.u32 %v1010_v21, 16  ;;  %v1066_v44 = vld [vmem:[#allocation2] sm:$0xff]  ;;  %v1216_v46 = vrot.slane %v3518_v30, 4  ;;  %v1222_v56 = vrot.slane %v3521_v31, 4  ;;  %v2988_v24 = vld [vmem:[%s3720_s3 + $0x1b0] sm:$0xff]   ;;  %v2990_v27 = vld [vmem:[%s3720_s3 + $0x1f8] sm:$0xff]  }
 0x124   : > { %v918_v43 = vrot.slane %v916_v32, 3  ;;  %v921_v14 = vrot.slane %v919_v34, 4  ;;  %v1126_v45 = vld [vmem:[#allocation2] sm:$0xf0]  ;;  %v950_v48 = vsel %vm3505_vm3, %v931_v36, %v949_v26  ;;  %v1033_v50 = vrot.slane %v1031_v39, 4  ;;  %1695 = vmatmul.mubr.bf16.vlgmr.msra.gmra.mrb[8].mxu0 %v1066_v44  ;;  %v2992_v32 = vld [vmem:[%s3720_s3 + $0x178] sm:$0xff]   ;;  %vm3795_vm2 = vmmov %vm3793_vm0 }
 0x125   : > { %v1064_v49 = vsel %vm3511_vm5, %v1046_v38, %v1063_v40  ;;  %v1036_v51 = vrot.slane %v1034_v42, 5  ;;  %951 = vst [vmem:[#allocation2 + $0x60] sm:$0x1f] %v950_v48  ;;  %1702 = vmatprep.mubr.bf16.mxu0 %v3447_v33  ;;  %2685 = vmatpush3.bf16.msra.mxu0 %v2970_v35  ;;  %v1205_v53 = vrot.slane %v1126_v45, 4  ;;  %v1217_v55 = vsel %vm3786_vm13, %v1209_v2, %v1216_v46  ;;  %v1128_v23 = vld [vmem:[#allocation2 + $0x10] sm:$0xf0] }
 0x126   : > { %1065 = vst [vmem:[#allocation2 + $0x70] sm:$0xf] %v1064_v49  ;;  %v922_v52 = vor.u32 %v921_v14, %v918_v43  ;;  %2686 = vmatprep.subr.bf16.mxu0 %v2972_v8  ;;  %v1223_v63 = vsel %vm3788_vm12, %v1216_v46, %v1222_v56  ;;  %v1139_v12 = vld [vmem:[#allocation2 + $0x68] sm:$0xf]  ;;  %v1211_v28 = vrot.slane %v1128_v23, 4  ;;  %v1212_v29 = vrot.slane %v3489_v3, 4 }
 0x127   : > { %v1037_v57 = vor.u32 %v1036_v51, %v1033_v50  ;;  %v1207_v61 = vsel %vm3787_vm11, %v1205_v53, %v1206_v9  ;;  %v1228_v17 = vrot.slane %v1139_v12, 4  ;;  %v2991_v40 = vld [vmem:[%s3720_s3 + $0x1b8] sm:$0xff]   ;;  %v2993_v35 = vld [vmem:[%s3720_s3 + $0x80] sm:$0xff]   ;;  %v2994_v39 = vld [vmem:[%s3720_s3 + $0x88] sm:$0xff]  }
 0x128   : > { %v3545_v59 = vsel %vm897_vm8, %v3449_v37, %v922_v52  ;;  %v3548_v60 = vsel %vm897_vm8, %v922_v52, %v931_v36  ;;  %1421 = vmatmul.mubr.bf16.vlgmr.msra.gmra.mrb[0].mxu1 %v1207_v61  ;;  %vm3789_vm8 = vmmov %vm3778_vm1  ;;  %v1068_v45 = vld [vmem:[#allocation2 + $0x10] sm:$0xff]  ;;  %v2997_v46 = vld [vmem:[%s3720_s3 + $0xa0] sm:$0xff]  }
 0x129   : > { %v3559_v1 = vsel %vm1012_vm10, %v3453_v47, %v1037_v57  ;;  %v3562_v37 = vsel %vm1012_vm10, %v1037_v57, %v1046_v38  ;;  %v1214_v2 = vrot.slane %v3545_v59, 4  ;;  %v1220_v4 = vrot.slane %v3548_v60, 4  ;;  %2779 = vmatpush3.bf16.msra.mxu1 %v3229_v0  ;;  %2687 = vmatpush3.bf16.msra.mxu0 %v2973_v54  ;;  %v2977_v47 = vld [vmem:[%s3720_s3 + $0x150] sm:$0xff]   ;;  %vm3790_vm10 = vmmov %vm3778_vm1  ;;  %v2978_v0 = vld [vmem:[%s3720_s3 + $0x1d8] sm:$0xff]  }
 0x12a   : > { %1428 = vmatprep.mubr.bf16.mxu1 %v1217_v55  ;;  %2780 = vmatprep.subr.bf16.mxu1 %v2974_v58  ;;  %v1229_v21 = vsel %vm3791_vm14, %v1222_v56, %v1228_v17  ;;  %v1218_v36 = vrot.slane %v3559_v1, 4  ;;  %v1224_v38 = vrot.slane %v3562_v37, 4  ;;  %vm3796_vm1 = vmmov %vm3793_vm0  ;;  %v2998_v48 = vld [vmem:[%s3720_s3 + $0xa8] sm:$0xff]   ;;  %v2999_v49 = vld [vmem:[%s3720_s3 + $0xb0] sm:$0xff]  }
 0x12b   : > { %v1215_v6 = vsel %vm3789_vm8, %v1206_v9, %v1214_v2  ;;  %v1221_v7 = vsel %vm3790_vm10, %v1214_v2, %v1220_v4  ;;  %2688 = vmatprep.subr.bf16.mxu0 %v2975_v62  ;;  %v2979_v9 = vld [vmem:[%s3720_s3 + $0x198] sm:$0xff]   ;;  %v3001_v52 = vld [vmem:[%s3720_s3 + $0x200] sm:$0xff]   ;;  %v3002_v53 = vld [vmem:[%s3720_s3 + $0x208] sm:$0xff]  }
 0x12c   : > { %1703 = vmatmul.mubr.bf16.gmra.mrb[12].mxu0 %v3482_v41  ;;  %v1138_v22 = vld [vmem:[#allocation2 + $0x60] sm:$0xf]  ;;  %v1219_v42 = vsel %vm3794_vm9, %v1212_v29, %v1218_v36  ;;  %v1225_v8 = vsel %vm3795_vm2, %v1218_v36, %v1224_v38  ;;  %v3000_v51 = vld [vmem:[%s3720_s3 + $0xb8] sm:$0xff]   ;;  %v3003_v54 = vld [vmem:[%s3720_s3 + $0x210] sm:$0xff]  }
 0x12d   : > { %2781 = vmatpush3.bf16.msra.mxu1 %v2974_v58  ;;  %1710 = vmatprep.mubr.bf16.mxu0 %v3518_v30  ;;  %v1226_v26 = vrot.slane %v1138_v22, 4  ;;  %v1140_v43 = vld [vmem:[#allocation2 + $0x70] sm:$0xf]  ;;  %v1792_v50 = vld [vmem:[#allocation2 + $0x60] sm:$0xff]  ;;  %v3004_v55 = vld [vmem:[%s3720_s3 + $0x218] sm:$0xff]  }
 0x12e   : > { %2689 = vmatpush3.bf16.msra.mxu0 %v2976_v5  ;;  %2782 = vmatprep.subr.bf16.mxu1 %v2977_v47  ;;  %v1230_v14 = vrot.slane %v1140_v43, 4  ;;  %v3005_v56 = vld [vmem:[%s3720_s3 + $0x220] sm:$0xff]   ;;  %v3006_v57 = vld [vmem:[%s3720_s3 + $0x228] sm:$0xff]   ;;  %v3007_v58 = vld [vmem:[%s3720_s3 + $0x230] sm:$0xff]  }
 0x12f   : > { %2690 = vmatprep.subr.bf16.mxu0 %v2978_v0  ;;  %v1227_v34 = vsel %vm3792_vm15, %v1220_v4, %v1226_v26 }
 0x130   : > { %1429 = vmatmul.mubr.bf16.gmra.mrb[4].mxu1 %v1215_v6  ;;  %v1231_v44 = vsel %vm3796_vm1, %v1224_v38, %v1230_v14 }
 0x131   : > { %2783 = vmatpush3.bf16.msra.mxu1 %v2977_v47  ;;  %1436 = vmatprep.mubr.bf16.mxu1 %v1223_v63 }
 0x132   : > { %2691 = vmatpush3.bf16.msra.mxu0 %v2979_v9  ;;  %2784 = vmatprep.subr.bf16.mxu1 %v2980_v10 }
 0x133   : > { %2692 = vmatprep.subr.bf16.mxu0 %v2981_v11 }
 0x134   : > { %1711 = vmatmul.mubr.bf16.gmra.mrb[16].mxu0 %v3545_v59 }
 0x135   : > { %2785 = vmatpush3.bf16.msra.mxu1 %v2980_v10  ;;  %1718 = vmatprep.mubr.bf16.mxu0 %v3521_v31 }
 0x136   : > { %2693 = vmatpush3.bf16.msra.mxu0 %v2982_v13  ;;  %2786 = vmatprep.subr.bf16.mxu1 %v2983_v15 }
 0x137   : > { %2694 = vmatprep.subr.bf16.mxu0 %v2984_v16 }
 0x138   : > { %1437 = vmatmul.mubr.bf16.gmra.mrb[8].mxu1 %v1221_v7 }
 0x139   : > { %2787 = vmatpush3.bf16.msra.mxu1 %v2983_v15  ;;  %1444 = vmatprep.mubr.bf16.mxu1 %v1229_v21 }
 0x13a   : > { %2695 = vmatpush3.bf16.msra.mxu0 %v2985_v18  ;;  %2788 = vmatprep.subr.bf16.mxu1 %v2986_v19 }
 0x13b   : > { %2696 = vmatprep.subr.bf16.mxu0 %v2987_v20 }
 0x13c   : > { %1719 = vmatmul.mubr.bf16.gmra.mrb[20].mxu0 %v3548_v60 }
 0x13d   : > { %2789 = vmatpush3.bf16.msra.mxu1 %v2986_v19  ;;  %2020 = vmatprep.mubr.bf16.mxu0 %v3447_v33  ;;  %v1213_v33 = vsel %vm3793_vm0, %v1211_v28, %v1212_v29 }
 0x13e   : > { %2697 = vmatpush3.bf16.msra.mxu0 %v2988_v24  ;;  %2790 = vmatprep.subr.bf16.mxu1 %v2989_v25 }
 0x13f   : > { %2698 = vmatprep.subr.bf16.mxu0 %v2990_v27 }
 0x140   : > { %1445 = vmatmul.mubr.bf16.gmra.mrb[12].mxu1 %v1227_v34 }
 0x141   : > { %2791 = vmatpush3.bf16.msra.mxu1 %v2989_v25  ;;  %2794 = vmatprep.mubr.bf16.mxu1 %v1213_v33 }
 0x142   : > { %2699 = vmatpush3.bf16.msra.mxu0 %v2991_v40  ;;  %2792 = vmatprep.subr.bf16.mxu1 %v2992_v32 }
 0x145   : > { %2793 = vmatpush3.bf16.msra.mxu1 %v2992_v32  ;;  %2021 = vmatmul.mubr.bf16.vlgmr.msra.gmra.mrb[24].mxu0 %v3482_v41  ;;  %v2995_v41 = vld [vmem:[%s3720_s3 + $0x90] sm:$0xff]  }
 0x146   : > { %2028 = vmatprep.mubr.bf16.mxu0 %v3518_v30  ;;  %2802 = vmatprep.subr.bf16.mxu1 %v2993_v35  ;;  %v2996_v30 = vld [vmem:[%s3720_s3 + $0x98] sm:$0xff]  }
 0x148   : > { %2795 = vmatmul.mubr.bf16.vlgmr.msra.gmra.mrb[16].mxu1 %v1219_v42 }
 0x149   : > { %2803 = vmatpush3.bf16.msra.mxu1 %v2993_v35  ;;  %2798 = vmatprep.mubr.bf16.mxu1 %v1225_v8 }
 0x14a   : > { %2804 = vmatprep.subr.bf16.mxu1 %v2994_v39 }
 0x14d   : > { %2805 = vmatpush3.bf16.msra.mxu1 %v2994_v39  ;;  %2029 = vmatmul.mubr.bf16.gmra.mrb[28].mxu0 %v3545_v59  ;;  %v1794_v59 = vld [vmem:[#allocation2 + $0x70] sm:$0xff] }
 0x14e   : > { %2036 = vmatprep.mubr.bf16.mxu0 %v3521_v31  ;;  %2806 = vmatprep.subr.bf16.mxu1 %v2995_v41  ;;  %v1793_v31 = vld [vmem:[#allocation2 + $0x68] sm:$0xff] }
 0x150   : > { %2799 = vmatmul.mubr.bf16.gmra.mrb[20].mxu1 %v1231_v44 }
 0x151   : > { %2807 = vmatpush3.bf16.msra.mxu1 %v2995_v41  ;;  %2818 = vmatprep.mubr.bf16.mxu1 %v1068_v45 }
 0x152   : > { %2808 = vmatprep.subr.bf16.mxu1 %v2996_v30 }
 0x155   : > { %2809 = vmatpush3.bf16.msra.mxu1 %v2996_v30  ;;  %2037 = vmatmul.mubr.bf16.gmra.mrb[32].mxu0 %v3548_v60 }
 0x156   : > { %2044 = vmatprep.mubr.bf16.mxu0 %v1793_v31  ;;  %2810 = vmatprep.subr.bf16.mxu1 %v2997_v46 }
 0x159   : > { %2811 = vmatpush3.bf16.msra.mxu1 %v2997_v46 }
 0x15a   : > { %2812 = vmatprep.subr.bf16.mxu1 %v2998_v48 }
 0x15d   : > { %2813 = vmatpush3.bf16.msra.mxu1 %v2998_v48  ;;  %2045 = vmatmul.mubr.bf16.gmra.mrb[36].mxu0 %v1792_v50 }
 0x15e   : > { %2814 = vmatprep.subr.bf16.mxu1 %v2999_v49 }
 0x161   : > { %2815 = vmatpush3.bf16.msra.mxu1 %v2999_v49 }
 0x162   : > { %2816 = vmatprep.subr.bf16.mxu1 %v3000_v51 }
 0x165   : > { %2817 = vmatpush3.bf16.msra.mxu1 %v3000_v51 }
 0x166   : > { %2826 = vmatprep.subr.bf16.mxu1 %v3001_v52 }
 0x168   : > { %2819 = vmatmul.mubr.bf16.vlgmr.msra.gmra.mrb[16].mxu1 %v3489_v3 }
 0x169   : > { %2822 = vmatprep.mubr.bf16.mxu1 %v3559_v1  ;;  %2827 = vmatpush3.bf16.msra.mxu1 %v3001_v52 }
 0x16a   : > { %2828 = vmatprep.subr.bf16.mxu1 %v3002_v53 }
 0x16d   : > { %2829 = vmatpush3.bf16.msra.mxu1 %v3002_v53 }
 0x16e   : > { %2830 = vmatprep.subr.bf16.mxu1 %v3003_v54 }
 0x170   : > { %2823 = vmatmul.mubr.bf16.gmra.mrb[20].mxu1 %v3562_v37 }
 0x171   : > { %2831 = vmatpush3.bf16.msra.mxu1 %v3003_v54  ;;  %2842 = vmatprep.mubr.bf16.mxu1 %v3489_v3  ;;  %v3008_v3 = vld [vmem:[%s3720_s3 + $0x238] sm:$0xff]  }
 0x172   : > { %2832 = vmatprep.subr.bf16.mxu1 %v3004_v55 }
 0x175   : > { %2833 = vmatpush3.bf16.msra.mxu1 %v3004_v55 }
 0x176   : > { %2834 = vmatprep.subr.bf16.mxu1 %v3005_v56 }
 0x179   : > { %2835 = vmatpush3.bf16.msra.mxu1 %v3005_v56 }
 0x17a   : > { %2836 = vmatprep.subr.bf16.mxu1 %v3006_v57 }
 0x17d   : > { %2837 = vmatpush3.bf16.msra.mxu1 %v3006_v57 }
 0x17e   : > { %2838 = vmatprep.subr.bf16.mxu1 %v3007_v58 }
 0x181   : > { %2839 = vmatpush3.bf16.msra.mxu1 %v3007_v58 }
 0x182   : > { %2840 = vmatprep.subr.bf16.mxu1 %v3008_v3 }
 0x185   : > { %2841 = vmatpush3.bf16.msra.mxu1 %v3008_v3 }
 0x188   : > { %2843 = vmatmul.mubr.bf16.vlgmr.msra.gmra.mrb[16].mxu1 %v3559_v1 }
 0x189   : > { %2846 = vmatprep.mubr.bf16.mxu1 %v3562_v37 }
 0x190   : > { %2847 = vmatmul.mubr.bf16.gmra.mrb[20].mxu1 %v1794_v59 }
 0x1f7   : > { %v2648_v60 = vpop.f32.mrb[8].mxu0 }
 0x1f8   : > { %v2649_v61 = vpop.f32.mrb[9].mxu0 }
 0x1f9   : > { %v2650_v62 = vadd.f32 %v2649_v61, %v2648_v60  ;;  %v2651_v63 = vpop.f32.mrb[10].mxu0 }
 0x1fa   : > { %v2652_v2 = vpop.f32.mrb[11].mxu0 }
 0x1fb   : > { %v2596_v4 = vpop.f32.mrb[0].mxu1  ;;  %v2653_v5 = vadd.f32 %v2652_v2, %v2651_v63 }
 0x1fc   : > { %v2597_v47 = vpop.f32.mrb[1].mxu1 }
 0x1fd   : > { %v2598_v6 = vadd.f32 %v2597_v47, %v2596_v4  ;;  %v2599_v7 = vpop.f32.mrb[2].mxu1 }
 0x1fe   : > { %v2600_v0 = vpop.f32.mrb[3].mxu1 }
 0x1ff   : > { %v2853_v9 = vadd.f32 %v2650_v62, %v2598_v6  ;;  %v2601_v10 = vadd.f32 %v2600_v0, %v2599_v7  ;;  %v2654_v11 = vpop.f32.mrb[12].mxu0 }
 0x200   : > { %v2655_v12 = vpop.f32.mrb[13].mxu0 }
 0x201   : > { %v2859_v1 = vadd.f32 %v2653_v5, %v2601_v10  ;;  %v2656_v13 = vadd.f32 %v2655_v12, %v2654_v11  ;;  %v2657_v37 = vpop.f32.mrb[14].mxu0 }
 0x202   : > { %v2658_v15 = vpop.f32.mrb[15].mxu0 }
 0x203   : > { %v2602_v16 = vpop.f32.mrb[4].mxu1  ;;  %v2659_v17 = vadd.f32 %v2658_v15, %v2657_v37 }
 0x204   : > { %v2603_v18 = vpop.f32.mrb[5].mxu1 }
 0x205   : > { %v2604_v19 = vadd.f32 %v2603_v18, %v2602_v16  ;;  %v2605_v20 = vpop.f32.mrb[6].mxu1 }
 0x206   : > { %v2606_v21 = vpop.f32.mrb[7].mxu1 }
 0x207   : > { %v2850_v22 = vadd.f32 %v2656_v13, %v2604_v19  ;;  %v2607_v23 = vadd.f32 %v2606_v21, %v2605_v20  ;;  %v2660_v24 = vpop.f32.mrb[16].mxu0  ;;  %v2553_v21 = vld [vmem:[%s266_s17 + $0x8] sm:$0xff]  }
 0x208   : > { %v2661_v25 = vpop.f32.mrb[17].mxu0 }
 0x209   : > { %v2856_v26 = vadd.f32 %v2659_v17, %v2607_v23  ;;  %v2662_v27 = vadd.f32 %v2661_v25, %v2660_v24  ;;  %v2663_v28 = vpop.f32.mrb[18].mxu0  ;;  %v2496_v24 = vld [vmem:[%s3721_s4] ss:$0 sm:$0xff]  ;;  %v2523_v25 = vunpack.c.l.bf16 %v2553_v21 }
 0x20a   : > { %v2664_v29 = vpop.f32.mrb[19].mxu0 }
 0x20b   : > { %v2608_v40 = vpop.f32.mrb[8].mxu1  ;;  %v2665_v32 = vadd.f32 %v2664_v29, %v2663_v28 }
 0x20c   : > { %v2609_v34 = vpop.f32.mrb[9].mxu1 }
 0x20d   : > { %v2610_v33 = vadd.f32 %v2609_v34, %v2608_v40  ;;  %v2611_v35 = vpop.f32.mrb[10].mxu1  ;;  %v2524_v34 = vunpack.c.h.bf16 %v2553_v21 }
 0x20e   : > { %v2612_v36 = vpop.f32.mrb[11].mxu1 }
 0x20f   : > { %v2865_v38 = vadd.f32 %v2662_v27, %v2610_v33  ;;  %v2613_v39 = vadd.f32 %v2612_v36, %v2611_v35  ;;  %v2666_v42 = vpop.f32.mrb[20].mxu0 }
 0x210   : > { %v2667_v8 = vpop.f32.mrb[21].mxu0 }
 0x211   : > { %v2871_v43 = vadd.f32 %v2665_v32, %v2613_v39  ;;  %v2668_v41 = vadd.f32 %v2667_v8, %v2666_v42  ;;  %v2669_v14 = vpop.f32.mrb[22].mxu0 }
 0x212   : > { %v2670_v30 = vpop.f32.mrb[23].mxu0 }
 0x213   : > { %v2614_v44 = vpop.f32.mrb[12].mxu1  ;;  %v2671_v45 = vadd.f32 %v2670_v30, %v2669_v14  ;;  %v2555_v14 = vld [vmem:[%s266_s17 + $0x18] sm:$0xff]  }
 0x214   : > { %v2615_v46 = vpop.f32.mrb[13].mxu1 }
 0x215   : > { %v2616_v31 = vadd.f32 %v2615_v46, %v2614_v44  ;;  %v2617_v48 = vpop.f32.mrb[14].mxu1  ;;  %v2554_v44 = vld [vmem:[%s266_s17 + $0x10] sm:$0xff]  }
 0x216   : > { %v2618_v49 = vpop.f32.mrb[15].mxu1 }
 0x217   : > { %v2862_v50 = vadd.f32 %v2668_v41, %v2616_v31  ;;  %v2619_v51 = vadd.f32 %v2618_v49, %v2617_v48  ;;  %v2531_v49 = vunpack.c.l.bf16 %v2555_v14 }
 0x218   : > { %v2700_v52 = vpop.f32.mrb[24].mxu0 }
 0x219   : > { %v2868_v53 = vadd.f32 %v2671_v45, %v2619_v51  ;;  %v2701_v54 = vpop.f32.mrb[25].mxu0 }
 0x21a   : > { %v2702_v55 = vadd.f32 %v2701_v54, %v2700_v52  ;;  %v2703_v56 = vpop.f32.mrb[26].mxu0  ;;  %v2527_v54 = vunpack.c.l.bf16 %v2554_v44 }
 0x21b   : > { %v2704_v57 = vpop.f32.mrb[27].mxu0 }
 0x21c   : > { %v2705_v58 = vadd.f32 %v2704_v57, %v2703_v56  ;;  %v2854_v3 = vadd.f32 %v2853_v9, %v2702_v55 }
 0x21e   : > { %v2860_v59 = vadd.f32 %v2859_v1, %v2705_v58 }
 0x220   : > { %v2706_v60 = vpop.f32.mrb[28].mxu0 }
 0x221   : > { %v2707_v61 = vpop.f32.mrb[29].mxu0 }
 0x222   : > { %v2708_v62 = vadd.f32 %v2707_v61, %v2706_v60  ;;  %v2709_v63 = vpop.f32.mrb[30].mxu0 }
 0x223   : > { %v2710_v2 = vpop.f32.mrb[31].mxu0 }
 0x224   : > { %v2711_v4 = vadd.f32 %v2710_v2, %v2709_v63  ;;  %v2851_v5 = vadd.f32 %v2850_v22, %v2708_v62  ;;  %v2518_v22 = vld [vmem:[%s266_s17] sm:$0xff]   ;;  %v2528_v63 = vunpack.c.h.bf16 %v2554_v44 }
 0x225   : > { %v2519_v28 = vunpack.c.l.bf16 %v2518_v22 }
 0x226   : > { %v2857_v47 = vadd.f32 %v2856_v26, %v2711_v4 }
 0x228   : > { %v2712_v6 = vpop.f32.mrb[32].mxu0 }
 0x229   : > { %v2713_v7 = vpop.f32.mrb[33].mxu0 }
 0x22a   : > { %v2714_v0 = vadd.f32 %v2713_v7, %v2712_v6  ;;  %v2715_v10 = vpop.f32.mrb[34].mxu0 }
 0x22b   : > { %v2716_v11 = vpop.f32.mrb[35].mxu0 }
 0x22c   : > { %v2717_v12 = vadd.f32 %v2716_v11, %v2715_v10  ;;  %v2866_v13 = vadd.f32 %v2865_v38, %v2714_v0  ;;  %v2520_v38 = vunpack.c.h.bf16 %v2518_v22 }
 0x22e   : > { %v2872_v37 = vadd.f32 %v2871_v43, %v2717_v12 }
 0x230   : > { %v2718_v9 = vpop.f32.mrb[36].mxu0 }
 0x231   : > { %v2719_v1 = vpop.f32.mrb[37].mxu0 }
 0x232   : > { %v2720_v15 = vadd.f32 %v2719_v1, %v2718_v9  ;;  %v2721_v16 = vpop.f32.mrb[38].mxu0 }
 0x233   : > { %v2722_v17 = vpop.f32.mrb[39].mxu0 }
 0x234   : > { %v2723_v18 = vadd.f32 %v2722_v17, %v2721_v16  ;;  %v2863_v19 = vadd.f32 %v2862_v50, %v2720_v15 }
 0x236   : > { %v2869_v20 = vadd.f32 %v2868_v53, %v2723_v18 }
 0x25b   : > { %v2844_v23 = vpop.f32.mrb[16].mxu1 }
 0x25c   : > { %v2852_v26 = vadd.f32 %v2851_v5, %v2844_v23  ;;  %v2087_v27 = vpop.f32.mrb[17].mxu1 }
 0x25d   : > { %v2855_v29 = vadd.f32 %v2854_v3, %v2087_v27  ;;  %v2845_v40 = vpop.f32.mrb[18].mxu1  ;;  %v2532_v3 = vunpack.c.h.bf16 %v2555_v14 }
 0x25e   : > { %v2135_v32 = vadd.f32 %v2852_v26, %v2496_v24  ;;  %v2858_v33 = vadd.f32 %v2857_v47, %v2845_v40  ;;  %v2090_v35 = vpop.f32.mrb[19].mxu1 }
 0x25f   : > { %v2133_v36 = vadd.f32 %v2855_v29, %v2496_v24  ;;  %v2861_v39 = vadd.f32 %v2860_v59, %v2090_v35 }
 0x260   : > { %v2143_v42 = vadd.f32 %v2523_v25, %v2135_v32  ;;  %v2136_v8 = vadd.f32 %v2858_v33, %v2496_v24 }
 0x261   : > { %v2141_v43 = vadd.f32 %v2519_v28, %v2133_v36  ;;  %v2134_v41 = vadd.f32 %v2861_v39, %v2496_v24 }
 0x262   : > { %v2144_v30 = vadd.f32 %v2524_v34, %v2136_v8  ;;  %v2151_v31 = vmax.f32 %v2143_v42, 0.0 }
 0x263   : > { %v2142_v45 = vadd.f32 %v2520_v38, %v2134_v41  ;;  %v2848_v46 = vpop.f32.mrb[20].mxu1  ;;  %v2149_v52 = vmax.f32 %v2141_v43, 0.0 }
 0x264   : > { %v2152_v48 = vmax.f32 %v2144_v30, 0.0  ;;  %v2864_v50 = vadd.f32 %v2863_v19, %v2848_v46  ;;  %v2103_v51 = vpop.f32.mrb[21].mxu1 }
 0x265   : > { %v2150_v53 = vmax.f32 %v2142_v45, 0.0  ;;  %v2867_v55 = vadd.f32 %v2866_v13, %v2103_v51  ;;  %v2849_v56 = vpop.f32.mrb[22].mxu1 }
 0x266   : > { %v2541_v57 = vpack.c.bf16 %v2152_v48, %v2151_v31  ;;  %v2139_v58 = vadd.f32 %v2864_v50, %v2496_v24  ;;  %v2870_v59 = vadd.f32 %v2869_v20, %v2849_v56  ;;  %v2106_v60 = vpop.f32.mrb[23].mxu1 }
 0x267   : > { %v2536_v61 = vpack.c.bf16 %v2150_v53, %v2149_v52  ;;  %v2137_v62 = vadd.f32 %v2867_v55, %v2496_v24  ;;  %v2873_v2 = vadd.f32 %v2872_v37, %v2106_v60 }
 0x268   : > { %2556 = vst [vmem:[%s271_s23 + $0x8] sm:$0xff] %v2541_v57   ;;  %v2147_v4 = vadd.f32 %v2531_v49, %v2139_v58  ;;  %v2140_v5 = vadd.f32 %v2870_v59, %v2496_v24 }
 0x269   : > { %2537 = vst [vmem:[%s271_s23] sm:$0xff] %v2536_v61   ;;  %v2145_v47 = vadd.f32 %v2527_v54, %v2137_v62  ;;  %v2138_v6 = vadd.f32 %v2873_v2, %v2496_v24 }
 0x26a   : > { %v2148_v7 = vadd.f32 %v2532_v3, %v2140_v5  ;;  %v2155_v10 = vmax.f32 %v2147_v4, 0.0 }
 0x26b   : > { %v2146_v0 = vadd.f32 %v2528_v63, %v2138_v6  ;;  %v2153_v12 = vmax.f32 %v2145_v47, 0.0 }
 0x26c   : > { %v2156_v11 = vmax.f32 %v2148_v7, 0.0 }
 0x26d   : > { %v2154_v13 = vmax.f32 %v2146_v0, 0.0 }
 0x26e   : > { %v2551_v9 = vpack.c.bf16 %v2156_v11, %v2155_v10 }
 0x26f   : > { %v2546_v1 = vpack.c.bf16 %v2154_v13, %v2153_v12 }
 0x270   : > { %2558 = vst [vmem:[%s271_s23 + $0x18] sm:$0xff] %v2551_v9  }
 0x271   : > { %2557 = vst [vmem:[%s271_s23 + $0x10] sm:$0xff] %v2546_v1  }
 0x272 PF: > { %s16_s21 = sadd.s32 1, %s3015_s21  }
 0x273   : > { %p13_p4 = scmp.ge.s32.totalorder %s16_s21, 4  }
 0x275   :  { %15 = sbr.rel (!%p13_p4) target bundleno = 1 (0x1), region = 81 }

// kernel: encode_uv.14
= control target key start
LH: loop header
LB: loop body
LE: loop exit
PB: predicated region body
PF: predicated region fallthrough
CT: control target
= control target key end

     0   :  { %s2292_s21 = smov 0   ;;  %s2714_s0 = inlined_call_operand.vmem [shape: bf16[4,20,48], index: 0, kind: input, shape index: {}]   ;;  %s2715_s1 = inlined_call_operand.vmem [shape: bf16[3,48,256], index: 1, kind: input, shape index: {}]   ;;  %s2716_s2 = inlined_call_operand.vmem [shape: f32[1,128], index: 2, kind: input, shape index: {}]   ;;  %s2717_s3 = inlined_call_operand.vmem [shape: bf16[3,384,128], index: 3, kind: input, shape index: {}]   ;;  %s2718_s4 = inlined_call_operand.vmem [shape: f32[1,128], index: 4, kind: input, shape index: {}]   ;;  %s2719_s5 = inlined_call_operand.vmem [shape: f32[1,128], index: 5, kind: input, shape index: {}]   ;;  %s2720_s6 = inlined_call_operand.vmem [shape: bf16[2,16,128], index: 6, kind: output, shape index: {}]  }
   0x1 LB: > { %s2298_s22 = sadd.s32 4294967295, %s2252_s21   ;;  %p1709_p0 = scmp.ge.s32.totalorder %s2252_s21, 1  ;;  %s2252_s21 = sphi %s2292_s21, %s16_s21  }
   0x2   : > { %p214_p1 = scmp.lt.s32.totalorder %s2252_s21, 3 }
   0x4   : > { %p215_p2 = pnand %p1709_p0, %p214_p1 }
   0x5   : > { %v2131_v0 = vld [vmem:[%s2715_s1 + $0x34] ss:$8 sps:$4 sm:$0xff] (!%p215_p2)   ;;  %s1710_s25 = sshll.u32 (!%p215_p2), %s2298_s22, 1  ;;  %v2133_v1 = vld [vmem:[%s2715_s1 + $0x30] ss:$8 sps:$4 sm:$0xff] (!%p215_p2)   ;;  %v2254_v2 = vmov (!%p215_p2), 0   ;;  %v589_v60 = vlaneseq (!%p215_p2) }
   0x6   : > { %218 = sbr.rel (%p215_p2) target bundleno = 612 (0x264), region = 44  ;;  %349 = vmatprep.mubr.bf16.mxu0 (!%p215_p2), %v2254_v2  ;;  %564 = vst [vmem:[#allocation2] sm:$0xff] (!%p215_p2), %v2254_v2  ;;  %565 = vst [vmem:[#allocation2 + $0x8] sm:$0xf] (!%p215_p2), %v2254_v2  ;;  %p246_p3 = scmp.lt.s32.totalorder (!%p215_p2), %s1710_s25, 3  ;;  %317 = vmatprep.subr.bf16.mxu0 (!%p215_p2), %v2131_v0  ;;  %vm313_vm0 = vcmask (!%p215_p2), 392192  }
   0x7   : > { %566 = vst [vmem:[#allocation2 + $0xc] sm:$0xff] (!%p215_p2), %v2254_v2  ;;  %567 = vst [vmem:[#allocation2 + $0x14] sm:$0xf] (!%p215_p2), %v2254_v2  ;;  %v2134_v3 = vld [vmem:[%s2715_s1 + $0x44] ss:$8 sps:$4 sm:$0xff] (!%p215_p2)   ;;  %318 = vmatpush1.bf16.msra.mxu0 (!%p215_p2), %v2133_v1  ;;  %vm459_vm1 = vcmask (!%p215_p2), 1045504  }
   0x8   : > { %568 = vst [vmem:[#allocation2 + $0x18] sm:$0xff] (!%p215_p2), %v2254_v2  ;;  %569 = vst [vmem:[#allocation2 + $0x20] sm:$0xf] (!%p215_p2), %v2254_v2  ;;  %v2136_v4 = vld [vmem:[%s2715_s1 + $0x40] ss:$8 sps:$4 sm:$0xff] (!%p215_p2)   ;;  %319 = vmatprep.subr.bf16.mxu0 (!%p215_p2), %v2134_v3  ;;  %v2170_v34 = vld [vmem:[%s2717_s3 + $0x50] sm:$0xff] (!%p215_p2)  }
   0x9   : > { %v2137_v5 = vld [vmem:[%s2715_s1 + $0x54] ss:$8 sps:$4 sm:$0xff] (!%p215_p2)   ;;  %v2139_v6 = vld [vmem:[%s2715_s1 + $0x50] ss:$8 sps:$4 sm:$0xff] (!%p215_p2)   ;;  %v2143_v7 = vld [vmem:[%s2715_s1 + $0x4] ss:$8 sps:$4 sm:$0xff] (!%p215_p2)  }
   0xa   : > { %v2141_v9 = vld [vmem:[%s2715_s1] ss:$8 sps:$4 sm:$0xff] (!%p215_p2)   ;;  %v2146_v10 = vld [vmem:[%s2715_s1 + $0x14] ss:$8 sps:$4 sm:$0xff] (!%p215_p2)   ;;  %v2144_v11 = vld [vmem:[%s2715_s1 + $0x10] ss:$8 sps:$4 sm:$0xff] (!%p215_p2)  }
   0xb   : > { %320 = vmatpush1.bf16.msra.mxu0 (!%p215_p2), %v2136_v4  ;;  %v2149_v12 = vld [vmem:[%s2715_s1 + $0x24] ss:$8 sps:$4 sm:$0xff] (!%p215_p2)   ;;  %v2147_v15 = vld [vmem:[%s2715_s1 + $0x20] ss:$8 sps:$4 sm:$0xff] (!%p215_p2)   ;;  %v2156_v21 = vld [vmem:[%s2715_s1 + $0x74] ss:$8 sps:$4 sm:$0xff] (!%p215_p2)  }
   0xc   : > { %321 = vmatprep.subr.bf16.mxu0 (!%p215_p2), %v2137_v5  ;;  %v2153_v18 = vld [vmem:[%s2715_s1 + $0x64] ss:$8 sps:$4 sm:$0xff] (!%p215_p2)   ;;  %v2151_v20 = vld [vmem:[%s2715_s1 + $0x60] ss:$8 sps:$4 sm:$0xff] (!%p215_p2)   ;;  %v2154_v22 = vld [vmem:[%s2715_s1 + $0x70] ss:$8 sps:$4 sm:$0xff] (!%p215_p2)  }
   0xd   : > { %s2734_s25 = smov (!%p246_p3, %s1710_s25), 3  ;;  %v2159_v23 = vld [vmem:[%s2715_s1 + $0x84] ss:$8 sps:$4 sm:$0xff]   ;;  %v2157_v24 = vld [vmem:[%s2715_s1 + $0x80] ss:$8 sps:$4 sm:$0xff]   ;;  %v2171_v35 = vld [vmem:[%s2717_s3 + $0x10] sm:$0xff]  }
   0xe   : > { %s2119_s10 = smul.u32 12, %s2734_s25  ;;  %v2162_v25 = vld [vmem:[%s2717_s3 + $0x40] sm:$0xff]   ;;  %v2166_v30 = vld [vmem:[%s2717_s3 + $0x48] sm:$0xff]   ;;  %v2172_v36 = vld [vmem:[%s2717_s3 + $0x110] sm:$0xff]   ;;  %v2255_v59 = vmov 0.0   ;;  %v590_v61 = vshrl.u32 %v589_v60, 7 }
   0xf   : > { %322 = vmatpush1.bf16.msra.mxu0 %v2139_v6  ;;  %v2163_v27 = vld [vmem:[%s2717_s3] sm:$0xff]   ;;  %v2167_v31 = vld [vmem:[%s2717_s3 + $0x8] sm:$0xff]   ;;  %v2173_v37 = vld [vmem:[%s2717_s3 + $0xd0] sm:$0xff]   ;;  %vm575_vm10 = vcmask 1041408   ;;  %vm576_vm11 = vcmask 1045508   ;;  %p252_p4 = scmp.lt.s32.totalorder %s2298_s22, 1 }
  0x10   : > { %s250_s15 = scalar_lea.vmem %s2714_s0, %s2119_s10  ;;  %398 = vmatprep.subr.bf16.mxu0 %v2143_v7  ;;  %v2164_v28 = vld [vmem:[%s2717_s3 + $0x100] sm:$0xff]   ;;  %v2168_v32 = vld [vmem:[%s2717_s3 + $0x108] sm:$0xff]   ;;  %v2174_v38 = vld [vmem:[%s2717_s3 + $0x58] sm:$0xff]   ;;  %v591_v62 = vadd.s32 8, %v590_v61  ;;  %v596_v63 = vand.u32 3, %v590_v61 }
  0x11   : > { %v2140_v8 = vld [vmem:[%s250_s15 + $0xc] sm:$0xff]   ;;  %v2160_v13 = vld [vmem:[%s250_s15] sm:$0xfc]   ;;  %v2161_v14 = vld [vmem:[%s250_s15 + $0x8] ss:$0 sps:$4 sm:$0x33]   ;;  %1958 = vmatprep.subr.bf16.mxu1 %v2164_v28 }
  0x12   : > { %1729 = vmatmul.mubr.msk.bf16.vlgmr.msra.gmra.mrb[0].mxu0 %vm313_vm0, %v2140_v8  ;;  %v460_v16 = vrot.slane %v2160_v13, 2  ;;  %v461_v17 = vrot.slane %v2161_v14, 2  ;;  %v2150_v19 = vld [vmem:[%s250_s15] sm:$0xff]   ;;  %v2169_v33 = vld [vmem:[%s2717_s3 + $0xc8] sm:$0xff]   ;;  %v2175_v39 = vld [vmem:[%s2717_s3 + $0x18] sm:$0xff]   ;;  %v603_v0 = vand.u32 3, %v591_v62 }
  0x13   : > { %399 = vmatpush1.bf16.msra.mxu0 %v2141_v9  ;;  %430 = vmatprep.mubr.bf16.mxu0 %v2254_v2  ;;  %v2165_v29 = vld [vmem:[%s2717_s3 + $0xc0] sm:$0xff]   ;;  %v2176_v40 = vld [vmem:[%s2717_s3 + $0x118] sm:$0xff]   ;;  %v2182_v46 = vld [vmem:[%s2717_s3 + $0x68] sm:$0xff]   ;;  %vm616_vm2 = vcmp.ne.s32.totalorder %v596_v63, 3  ;;  %vm673_vm4 = vcmp.ne.s32.totalorder %v596_v63, 0  ;;  %s2736_s22 = smov (!%p252_p4, %s2298_s22), 1 }
  0x14   : > { %400 = vmatprep.subr.bf16.mxu0 %v2146_v10  ;;  %v462_v26 = vsel %vm459_vm1, %v460_v16, %v461_v17  ;;  %1959 = vmatpush3.bf16.msra.mxu1 %v2165_v29  ;;  %v2177_v41 = vld [vmem:[%s2717_s3 + $0xd8] sm:$0xff]   ;;  %v2178_v42 = vld [vmem:[%s2717_s3 + $0x60] sm:$0xff]   ;;  %v2183_v47 = vld [vmem:[%s2717_s3 + $0x28] sm:$0xff]   ;;  %vm617_vm3 = vcmp.ne.s32.totalorder %v603_v0, 3  ;;  %vm674_vm6 = vcmp.ne.s32.totalorder %v603_v0, 0  ;;  %s1948_s14 = sshll.u32 %s2736_s22, 3 }
  0x15   : > { %1960 = vmatprep.subr.bf16.mxu1 %v2168_v32  ;;  %v2179_v43 = vld [vmem:[%s2717_s3 + $0x20] sm:$0xff]   ;;  %v2184_v48 = vld [vmem:[%s2717_s3 + $0x128] sm:$0xff]   ;;  %v2186_v50 = vld [vmem:[%s2717_s3 + $0x70] sm:$0xff]   ;;  %vm636_vm13 = vsmask.f32 2304  ;;  %s256_s17 = scalar_lea.vmem %s2720_s6, %s1948_s14 }
  0x16   : > { %v2180_v44 = vld [vmem:[%s2717_s3 + $0x120] sm:$0xff]   ;;  %v2185_v49 = vld [vmem:[%s2717_s3 + $0xe8] sm:$0xff]   ;;  %v2187_v51 = vld [vmem:[%s2717_s3 + $0x30] sm:$0xff]   ;;  %vm637_vm14 = vsmask.f32 6416 }
  0x17   : > { %401 = vmatpush1.bf16.msra.mxu0 %v2144_v11  ;;  %v2181_v45 = vld [vmem:[%s2717_s3 + $0xe0] sm:$0xff]   ;;  %v2188_v52 = vld [vmem:[%s2717_s3 + $0x130] sm:$0xff]   ;;  %v2190_v54 = vld [vmem:[%s2717_s3 + $0x78] sm:$0xff]  }
  0x18   : > { %402 = vmatprep.subr.bf16.mxu0 %v2149_v12  ;;  %1961 = vmatpush3.bf16.msra.mxu1 %v2169_v33  ;;  %v2189_v53 = vld [vmem:[%s2717_s3 + $0xf0] sm:$0xff]   ;;  %v2192_v55 = vld [vmem:[%s2717_s3 + $0x138] sm:$0xff]   ;;  %v2196_v58 = vld [vmem:[%s2717_s3 + $0x1c0] sm:$0xff]  }
  0x19   : > { %1962 = vmatprep.subr.bf16.mxu1 %v2172_v36  ;;  %v2191_v56 = vld [vmem:[%s2717_s3 + $0x38] sm:$0xff]   ;;  %vm622_vm5 = vmpackc.low %vm616_vm2, %vm616_vm2  ;;  %v1753_v1 = vld [vmem:[%s2716_s2] ss:$0 sm:$0xff] }
  0x1a   : > { %v2193_v57 = vld [vmem:[%s2717_s3 + $0xf8] sm:$0xff]   ;;  %vm623_vm7 = vmpackc.low %vm617_vm3, %vm617_vm3  ;;  %v624_v3 = vsel %vm622_vm5, 65537, %v2254_v2  ;;  %vm662_vm3 = vsmask.f32 7946  ;;  %vm718_vm5 = vcmask 1043457  }
  0x1b   : > { %403 = vmatpush1.bf16.msra.mxu0 %v2147_v15  ;;  %vm679_vm8 = vmpackc.low %vm673_vm4, %vm673_vm4  ;;  %v625_v4 = vsel %vm623_vm7, 65537, %v2254_v2  ;;  %vm668_vm4 = vcmask 1042432   ;;  %vm693_vm7 = vsmask.f32 1280  ;;  %v726_v63 = vld [vmem:[#allocation2 + $0x20] sm:$0x3] }
  0x1c   : > { %496 = vmatprep.subr.bf16.mxu0 %v2153_v18  ;;  %1963 = vmatpush3.bf16.msra.mxu1 %v2173_v37  ;;  %vm680_vm9 = vmpackc.low %vm674_vm6, %vm674_vm6  ;;  %v681_v5 = vsel %vm679_vm8, 65537, %v2254_v2  ;;  %v1757_v11 = vcombine.low %v624_v3, %v625_v4  ;;  %vm719_vm6 = vsmask.f32 7942  ;;  %vm694_vm8 = vsmask.f32 5392 }
  0x1d   : > { %1964 = vmatprep.subr.bf16.mxu1 %v2176_v40  ;;  %v682_v6 = vsel %vm680_vm9, 65537, %v2254_v2  ;;  %vm577_vm2 = vmor %vm575_vm10, %vm576_vm11 }
  0x1e   : > { %1737 = vmatmul.mubr.msk.bf16.vlgmr.msra.gmra.mrb[0].mxu0 %vm313_vm0, %v2150_v19  ;;  %v1760_v12 = vcombine.low %v681_v5, %v682_v6  ;;  %vm2484_vm12 = vcmp.ne.s16.totalorder %v1757_v11, 0  ;;  %vm2493_vm9 = vmor %vm636_vm13, %vm637_vm14 }
  0x1f   : > { %497 = vmatpush1.bf16.msra.mxu0 %v2151_v20  ;;  %528 = vmatprep.mubr.bf16.mxu0 %v2254_v2  ;;  %vm2511_vm14 = vmand %vm668_vm4, %vm636_vm13 }
  0x20   : > { %498 = vmatprep.subr.bf16.mxu0 %v2156_v21  ;;  %1965 = vmatpush3.bf16.msra.mxu1 %v2177_v41  ;;  %vm686_vm15 = vcmp.ne.s16.totalorder %v1760_v12, 0  ;;  %vm725_vm13 = vmand %vm575_vm10, %vm693_vm7  ;;  %vm2256_vm10 = vmmov 0  }
  0x21   : > { %1966 = vmatprep.subr.bf16.mxu1 %v2180_v44  ;;  %v2219_v44 = vld [vmem:[%s2717_s3 + $0x168] sm:$0xff]  }
  0x23   : > { %499 = vmatpush1.bf16.msra.mxu0 %v2154_v22 }
  0x24   : > { %500 = vmatprep.subr.bf16.mxu0 %v2159_v23  ;;  %1967 = vmatpush3.bf16.msra.mxu1 %v2181_v45  ;;  %v664_v45 = vld [vmem:[#allocation2] sm:$0xc] }
  0x25   : > { %1968 = vmatprep.subr.bf16.mxu1 %v2184_v48 }
  0x27   : > { %501 = vmatpush1.bf16.msra.mxu0 %v2157_v24 }
  0x28   : > { %1989 = vmatprep.subr.bf16.mxu0 %v2162_v25  ;;  %1969 = vmatpush3.bf16.msra.mxu1 %v2185_v49 }
  0x29   : > { %1970 = vmatprep.subr.bf16.mxu1 %v2188_v52 }
  0x2a   : > { %1752 = vmatmul.mubr.msk.bf16.vlgmr.msra.gmra.mrb[0].mxu0 %vm313_vm0, %v462_v26  ;;  %vm661_vm0 = vcmask 1043458  }
  0x2b   : > { %1990 = vmatpush3.bf16.msra.mxu0 %v2163_v27  ;;  %vm2499_vm11 = vmand %vm661_vm0, %vm662_vm3 }
  0x2c   : > { %1991 = vmatprep.subr.bf16.mxu0 %v2166_v30  ;;  %1971 = vmatpush3.bf16.msra.mxu1 %v2189_v53  ;;  %v2225_v53 = vld [vmem:[%s2717_s3 + $0x178] sm:$0xff]  }
  0x2d   : > { %1972 = vmatprep.subr.bf16.mxu1 %v2192_v55  ;;  %v670_v55 = vld [vmem:[#allocation2 + $0x18] sm:$0x7] }
  0x2f   : > { %1992 = vmatpush3.bf16.msra.mxu0 %v2167_v31 }
  0x30   : > { %1993 = vmatprep.subr.bf16.mxu0 %v2170_v34  ;;  %1973 = vmatpush3.bf16.msra.mxu1 %v2193_v57 }
  0x31   : > { %2051 = vmatprep.subr.bf16.mxu1 %v2255_v59 }
  0x33   : > { %1994 = vmatpush3.bf16.msra.mxu0 %v2171_v35  ;;  %v2210_v35 = vld [vmem:[%s2717_s3 + $0x150] sm:$0xff]  }
  0x34   : > { %1995 = vmatprep.subr.bf16.mxu0 %v2174_v38 }
  0x37   : > { %1996 = vmatpush3.bf16.msra.mxu0 %v2175_v39 }
  0x38   : > { %1997 = vmatprep.subr.bf16.mxu0 %v2178_v42 }
  0x3b   : > { %1998 = vmatpush3.bf16.msra.mxu0 %v2179_v43 }
  0x3c   : > { %1999 = vmatprep.subr.bf16.mxu0 %v2182_v46 }
  0x3f   : > { %2000 = vmatpush3.bf16.msra.mxu0 %v2183_v47 }
  0x40   : > { %2001 = vmatprep.subr.bf16.mxu0 %v2186_v50 }
  0x43   : > { %2002 = vmatpush3.bf16.msra.mxu0 %v2187_v51 }
  0x44   : > { %2003 = vmatprep.subr.bf16.mxu0 %v2190_v54  ;;  %v721_v54 = vld [vmem:[#allocation2 + $0x8] sm:$0xe] }
  0x47   : > { %2004 = vmatpush3.bf16.msra.mxu0 %v2191_v56 }
  0x48   : > { %2020 = vmatprep.subr.bf16.mxu0 %v2196_v58 }
  0xfd   : > { %v530_v7 = vpop.f32.mrb[0].mxu0 }
  0xfe   : > { %v550_v8 = vadd.f32 %v1753_v1, %v530_v7  ;;  %v2480_v9 = vpop.f32.mrb[1].mxu0 }
  0xff   : > { %v534_v10 = vpop.f32.mrb[2].mxu0 }
 0x100   : > { %v552_v13 = vmax.f32 %v550_v8, 0.0  ;;  %v551_v14 = vadd.f32 %v1753_v1, %v534_v10  ;;  %v2482_v15 = vpop.f32.mrb[3].mxu0  ;;  %v2197_v10 = vld [vmem:[%s2717_s3 + $0x180] sm:$0xff]  }
 0x102   : > { %v1949_v16 = vpack.c.bf16 %v552_v13, %v552_v13  ;;  %v553_v17 = vmax.f32 %v551_v14, 0.0 }
 0x104   : > { %v578_v2 = vrot.slane %v1949_v16, 6  ;;  %v554_v19 = vpack.c.bf16 %v553_v17, %v552_v13  ;;  %v1950_v20 = vpack.c.bf16 %v553_v17, %v553_v17 }
 0x106   : > { %v579_v21 = vrot.slane %v578_v2, 4  ;;  %586 = vst [vmem:[#allocation2 + $0x4] sm:$0xc] %v578_v2  ;;  %v580_v22 = vrot.slane %v1950_v20, 6  ;;  %v630_v23 = vsel %vm2484_vm12, %v554_v19, 0  ;;  %v687_v24 = vsel %vm686_vm15, %v554_v19, 0  ;;  %vm2505_vm12 = vmand %vm718_vm5, %vm719_vm6 }
 0x107   : > { %v1758_v25 = vcombine.low %v630_v23, %v630_v23  ;;  %v1759_v26 = vcombine.high %v630_v23, %v630_v23  ;;  %v1761_v27 = vcombine.low %v687_v24, %v687_v24  ;;  %v1762_v28 = vcombine.high %v687_v24, %v687_v24  ;;  %vm2517_vm15 = vmor %vm693_vm7, %vm694_vm8 }
 0x108   : > { %v581_v29 = vsel %vm577_vm2, %v579_v21, %v580_v22  ;;  %v582_v30 = vrot.slane %v580_v22, 4  ;;  %v2205_v21 = vld [vmem:[%s2717_s3 + $0x1c8] sm:$0xff]  }
 0x109   : > { %587 = vst [vmem:[#allocation2 + $0x10] sm:$0xf] %v581_v29  ;;  %v640_v31 = vshrl.u32 %v1758_v25, 16  ;;  %v643_v32 = vshll.u32 %v1758_v25, 16  ;;  %v649_v33 = vshrl.u32 %v1759_v26, 16  ;;  %v652_v34 = vshll.u32 %v1759_v26, 16 }
 0x10a   : > { %588 = vst [vmem:[#allocation2 + $0x1c] sm:$0x3] %v582_v30  ;;  %v697_v36 = vshrl.u32 %v1761_v27, 16  ;;  %v700_v37 = vshll.u32 %v1761_v27, 16  ;;  %v706_v38 = vshrl.u32 %v1762_v28, 16  ;;  %v709_v39 = vshll.u32 %v1762_v28, 16 }
 0x10b   : > { %v642_v40 = vrot.slane %v640_v31, 5  ;;  %v645_v41 = vrot.slane %v643_v32, 6  ;;  %v651_v42 = vrot.slane %v649_v33, 5  ;;  %v654_v43 = vrot.slane %v652_v34, 6  ;;  %v2204_v27 = vld [vmem:[%s2717_s3 + $0x140] sm:$0xff]   ;;  %v2206_v28 = vld [vmem:[%s2717_s3 + $0x188] sm:$0xff]  }
 0x10c   : > { %v699_v46 = vrot.slane %v697_v36, 6  ;;  %v702_v47 = vrot.slane %v700_v37, 7  ;;  %v708_v48 = vrot.slane %v706_v38, 6  ;;  %v711_v49 = vrot.slane %v709_v39, 7  ;;  %v2208_v31 = vld [vmem:[%s2717_s3 + $0x1d0] sm:$0xff]   ;;  %v2207_v32 = vld [vmem:[%s2717_s3 + $0x148] sm:$0xff]  }
 0x10d   : > { %v646_v51 = vor.u32 %v645_v41, %v642_v40  ;;  %v655_v52 = vor.u32 %v654_v43, %v651_v42  ;;  %v2209_v33 = vld [vmem:[%s2717_s3 + $0x190] sm:$0xff]   ;;  %v2211_v34 = vld [vmem:[%s2717_s3 + $0x1d8] sm:$0xff]   ;;  %v2214_v37 = vld [vmem:[%s2717_s3 + $0x1e0] sm:$0xff]  }
 0x10e   : > { %v703_v57 = vor.u32 %v702_v47, %v699_v46  ;;  %v712_v58 = vor.u32 %v711_v49, %v708_v48  ;;  %v2212_v36 = vld [vmem:[%s2717_s3 + $0x198] sm:$0xff]   ;;  %v2215_v39 = vld [vmem:[%s2717_s3 + $0x1a0] sm:$0xff]   ;;  %v2217_v40 = vld [vmem:[%s2717_s3 + $0x1e8] sm:$0xff]  }
 0x10f   : > { %v647_v60 = vrot.slane %v646_v51, 4  ;;  %v657_v61 = vrot.slane %v655_v52, 4  ;;  %v665_v62 = vsel %vm2499_vm11, %v646_v51, %v664_v45  ;;  %v2213_v38 = vld [vmem:[%s2717_s3 + $0x158] sm:$0xff]   ;;  %v2216_v41 = vld [vmem:[%s2717_s3 + $0x160] sm:$0xff]   ;;  %v2218_v42 = vld [vmem:[%s2717_s3 + $0x1a8] sm:$0xff]  }
 0x110   : > { %666 = vst [vmem:[#allocation2] sm:$0xc] %v665_v62  ;;  %v704_v0 = vrot.slane %v703_v57, 4  ;;  %v714_v1 = vrot.slane %v712_v58, 4  ;;  %v722_v3 = vsel %vm2505_vm12, %v703_v57, %v721_v54  ;;  %v2220_v43 = vld [vmem:[%s2717_s3 + $0x1f0] sm:$0xff]   ;;  %v2223_v46 = vld [vmem:[%s2717_s3 + $0x1f8] sm:$0xff]  }
 0x111   : > { %v656_v4 = vsel %vm2493_vm9, %v647_v60, %v655_v52  ;;  %v671_v5 = vsel %vm2511_vm14, %v657_v61, %v670_v55  ;;  %723 = vst [vmem:[#allocation2 + $0x8] sm:$0xe] %v722_v3  ;;  %v2221_v45 = vld [vmem:[%s2717_s3 + $0x1b0] sm:$0xff]   ;;  %v2224_v49 = vld [vmem:[%s2717_s3 + $0x1b8] sm:$0xff]   ;;  %v2228_v57 = vld [vmem:[%s2717_s3 + $0x80] sm:$0xff]  }
 0x112   : > { %667 = vst [vmem:[#allocation2 + $0xc] sm:$0xf] %v656_v4  ;;  %672 = vst [vmem:[#allocation2 + $0x18] sm:$0x7] %v671_v5  ;;  %v713_v6 = vsel %vm2517_vm15, %v704_v0, %v712_v58  ;;  %v727_v7 = vsel %vm725_vm13, %v714_v1, %v726_v63  ;;  %v2222_v48 = vld [vmem:[%s2717_s3 + $0x170] sm:$0xff]   ;;  %v2229_v60 = vld [vmem:[%s2717_s3 + $0x88] sm:$0xff]  }
 0x113   : > { %724 = vst [vmem:[#allocation2 + $0x14] sm:$0xf] %v713_v6  ;;  %728 = vst [vmem:[#allocation2 + $0x20] sm:$0x3] %v727_v7  ;;  %v2230_v61 = vld [vmem:[%s2717_s3 + $0x90] sm:$0xff]   ;;  %v2231_v62 = vld [vmem:[%s2717_s3 + $0x98] sm:$0xff]  }
 0x114   : > { %v2232_v63 = vld [vmem:[%s2717_s3 + $0xa0] sm:$0xff]   ;;  %v2233_v0 = vld [vmem:[%s2717_s3 + $0xa8] sm:$0xff]   ;;  %v2234_v1 = vld [vmem:[%s2717_s3 + $0xb0] sm:$0xff]  }
 0x115   : > { %v2235_v3 = vld [vmem:[%s2717_s3 + $0xb8] sm:$0xff]   ;;  %v2237_v4 = vld [vmem:[%s2717_s3 + $0x200] sm:$0xff]   ;;  %v2238_v6 = vld [vmem:[%s2717_s3 + $0x208] sm:$0xff]  }
 0x116   : > { %v2239_v7 = vld [vmem:[%s2717_s3 + $0x210] sm:$0xff]  }
 0x117   : > { %v729_v8 = vld [vmem:[#allocation2] sm:$0xff] }
 0x118   : > { %v781_v17 = vld [vmem:[#allocation2] sm:$0xcc]  ;;  %v782_v50 = vld [vmem:[#allocation2 + $0x8] sm:$0xc] }
 0x119   : > { %v2536_v11 = vld [vmem:[#allocation2 + $0xc] sm:$0xff]  ;;  %v2538_v12 = vld [vmem:[#allocation2 + $0x18] sm:$0xff] }
 0x11a   : > { %v785_v13 = vld [vmem:[#allocation2 + $0x18] sm:$0x33]  ;;  %v1841_v14 = vcombine.low %v729_v8, %v2536_v11  ;;  %v1842_v16 = vcombine.high %v729_v8, %v2536_v11  ;;  %v1812_v18 = vcombine.high %v781_v17, %v2536_v11  ;;  %v1811_v19 = vcombine.low %v781_v17, %v2536_v11  ;;  %v2612_v47 = vld [vmem:[#allocation2 + $0x14] sm:$0xf] }
 0x11b   : > { %v1815_v2 = vcombine.high %v785_v13, %v785_v13  ;;  %v1814_v20 = vcombine.low %v785_v13, %v785_v13  ;;  %v1917_v22 = vcombine.high %v2536_v11, %v2538_v12  ;;  %v1813_v51 = vcombine.low %v782_v50, %v2612_v47  ;;  %v2227_v52 = vld [vmem:[#allocation2 + $0x20] ss:$0 sps:$4 sm:$0x33]   ;;  %v2236_v5 = vld [vmem:[#allocation2 + $0x8] ss:$12 sps:$4 sm:$0xff]   ;;  %v2240_v8 = vld [vmem:[%s2717_s3 + $0x218] sm:$0xff]  }
 0x11c   : > { %1287 = vmatprep.mubr.bf16.mxu0 %v1842_v16  ;;  %v860_v23 = vrot.slane %v1812_v18, 2  ;;  %v857_v25 = vrot.slane %v1811_v19, 2  ;;  %v1916_v54 = vcombine.low %v2536_v11, %v2538_v12  ;;  %v864_v56 = vrot.slane %v2227_v52, 2  ;;  %v2242_v11 = vld [vmem:[%s2717_s3 + $0x228] sm:$0xff]   ;;  %v2243_v12 = vld [vmem:[%s2717_s3 + $0x230] sm:$0xff]   ;;  %v2244_v13 = vld [vmem:[%s2717_s3 + $0x238] sm:$0xff]  }
 0x11d   : > { %1288 = vmatmul.mubr.bf16.vlgmr.msra.gmra.mrb[4].mxu0 %v1841_v14  ;;  %v861_v24 = vrot.slane %v1815_v2, 2  ;;  %v858_v26 = vrot.slane %v1814_v20, 2  ;;  %v863_v55 = vrot.slane %v1813_v51, 2  ;;  %v1338_v14 = vld [vmem:[#allocation2 + $0x20] sm:$0xf] }
 0x11e   : > { %2021 = vmatpush3.bf16.msra.mxu0 %v2197_v10  ;;  %1575 = vmatprep.mubr.bf16.mxu0 %v1917_v22  ;;  %v2241_v10 = vld [vmem:[%s2717_s3 + $0x220] sm:$0xff]   ;;  %v1918_v16 = vcombine.low %v2612_v47, %v1338_v14 }
 0x11f   : > { %v862_v29 = vsel %vm459_vm1, %v860_v23, %v861_v24  ;;  %v859_v30 = vsel %vm459_vm1, %v857_v25, %v858_v26  ;;  %2022 = vmatprep.subr.bf16.mxu0 %v2205_v21  ;;  %v865_v58 = vsel %vm459_vm1, %v863_v55, %v864_v56  ;;  %v1754_v50 = vld [vmem:[%s2719_s5] ss:$0 sm:$0xff] }
 0x120   : > { %1045 = vmatprep.mubr.bf16.mxu1 %v862_v29  ;;  %v1943_v51 = vld [vmem:[%s2718_s4] ss:$0 sm:$0xff]  ;;  %v562_v56 = vadd.f32 %v1754_v50, %v2480_v9 }
 0x121   : > { %1046 = vmatmul.mubr.bf16.vlgmr.msra.gmra.mrb[0].mxu1 %v859_v30 }
 0x122   : > { %2052 = vmatpush3.bf16.msra.mxu1 %v2204_v27  ;;  %2023 = vmatpush3.bf16.msra.mxu0 %v2206_v28 }
 0x123   : > { %2053 = vmatprep.subr.bf16.mxu1 %v2255_v59  ;;  %2024 = vmatprep.subr.bf16.mxu0 %v2208_v31 }
 0x124   : > { %2067 = vmatprep.mubr.msk.bf16.mxu1 %vm2256_vm10, %v2255_v59 }
 0x126   : > { %2054 = vmatpush3.bf16.msra.mxu1 %v2207_v32  ;;  %2025 = vmatpush3.bf16.msra.mxu0 %v2209_v33 }
 0x127   : > { %2055 = vmatprep.subr.bf16.mxu1 %v2255_v59  ;;  %2026 = vmatprep.subr.bf16.mxu0 %v2211_v34 }
 0x12a   : > { %2056 = vmatpush3.bf16.msra.mxu1 %v2210_v35  ;;  %2027 = vmatpush3.bf16.msra.mxu0 %v2212_v36 }
 0x12b   : > { %2057 = vmatprep.subr.bf16.mxu1 %v2255_v59  ;;  %2028 = vmatprep.subr.bf16.mxu0 %v2214_v37 }
 0x12e   : > { %2058 = vmatpush3.bf16.msra.mxu1 %v2213_v38  ;;  %2029 = vmatpush3.bf16.msra.mxu0 %v2215_v39 }
 0x12f   : > { %2059 = vmatprep.subr.bf16.mxu1 %v2255_v59  ;;  %2030 = vmatprep.subr.bf16.mxu0 %v2217_v40 }
 0x132   : > { %2060 = vmatpush3.bf16.msra.mxu1 %v2216_v41  ;;  %2031 = vmatpush3.bf16.msra.mxu0 %v2218_v42 }
 0x133   : > { %2061 = vmatprep.subr.bf16.mxu1 %v2255_v59  ;;  %2032 = vmatprep.subr.bf16.mxu0 %v2220_v43 }
 0x136   : > { %2062 = vmatpush3.bf16.msra.mxu1 %v2219_v44  ;;  %2033 = vmatpush3.bf16.msra.mxu0 %v2221_v45 }
 0x137   : > { %2063 = vmatprep.subr.bf16.mxu1 %v2255_v59  ;;  %2034 = vmatprep.subr.bf16.mxu0 %v2223_v46 }
 0x13a   : > { %2064 = vmatpush3.bf16.msra.mxu1 %v2222_v48  ;;  %2035 = vmatpush3.bf16.msra.mxu0 %v2224_v49 }
 0x13b   : > { %2065 = vmatprep.subr.bf16.mxu1 %v2255_v59 }
 0x13d   : > { %1576 = vmatmul.mubr.bf16.vlgmr.msra.gmra.mrb[8].mxu0 %v1916_v54 }
 0x13e   : > { %2066 = vmatpush3.bf16.msra.mxu1 %v2225_v53 }
 0x13f   : > { %2071 = vmatprep.subr.bf16.mxu1 %v2255_v59 }
 0x141   : > { %2068 = vmatmul.mubr.bf16.vlgmr.msra.gmra.mrb[4].mxu1 %v865_v58 }
 0x142   : > { %2072 = vmatpush3.bf16.msra.mxu1 %v2228_v57  ;;  %2087 = vmatprep.mubr.msk.bf16.mxu1 %vm2256_vm10, %v2255_v59 }
 0x143   : > { %2073 = vmatprep.subr.bf16.mxu1 %v2255_v59 }
 0x146   : > { %2074 = vmatpush3.bf16.msra.mxu1 %v2229_v60  ;;  %v563_v60 = vadd.f32 %v1754_v50, %v2482_v15 }
 0x147   : > { %2075 = vmatprep.subr.bf16.mxu1 %v2255_v59 }
 0x14a   : > { %2076 = vmatpush3.bf16.msra.mxu1 %v2230_v61 }
 0x14b   : > { %2077 = vmatprep.subr.bf16.mxu1 %v2255_v59 }
 0x14e   : > { %2078 = vmatpush3.bf16.msra.mxu1 %v2231_v62 }
 0x14f   : > { %2079 = vmatprep.subr.bf16.mxu1 %v2255_v59 }
 0x152   : > { %2080 = vmatpush3.bf16.msra.mxu1 %v2232_v63 }
 0x153   : > { %2081 = vmatprep.subr.bf16.mxu1 %v2255_v59 }
 0x156   : > { %2082 = vmatpush3.bf16.msra.mxu1 %v2233_v0 }
 0x157   : > { %2083 = vmatprep.subr.bf16.mxu1 %v2255_v59 }
 0x15a   : > { %2084 = vmatpush3.bf16.msra.mxu1 %v2234_v1 }
 0x15b   : > { %2085 = vmatprep.subr.bf16.mxu1 %v2255_v59 }
 0x15e   : > { %2086 = vmatpush3.bf16.msra.mxu1 %v2235_v3 }
 0x15f   : > { %2091 = vmatprep.subr.bf16.mxu1 %v2255_v59 }
 0x161   : > { %2088 = vmatmul.mubr.bf16.vlgmr.msra.gmra.mrb[8].mxu1 %v2236_v5 }
 0x162   : > { %2092 = vmatpush3.bf16.msra.mxu1 %v2237_v4  ;;  %2107 = vmatprep.mubr.msk.bf16.mxu1 %vm2256_vm10, %v2255_v59 }
 0x163   : > { %2093 = vmatprep.subr.bf16.mxu1 %v2255_v59 }
 0x166   : > { %2094 = vmatpush3.bf16.msra.mxu1 %v2238_v6 }
 0x167   : > { %2095 = vmatprep.subr.bf16.mxu1 %v2255_v59 }
 0x16a   : > { %2096 = vmatpush3.bf16.msra.mxu1 %v2239_v7 }
 0x16b   : > { %2097 = vmatprep.subr.bf16.mxu1 %v2255_v59 }
 0x16e   : > { %2098 = vmatpush3.bf16.msra.mxu1 %v2240_v8 }
 0x16f   : > { %2099 = vmatprep.subr.bf16.mxu1 %v2255_v59 }
 0x172   : > { %2100 = vmatpush3.bf16.msra.mxu1 %v2241_v10 }
 0x173   : > { %2101 = vmatprep.subr.bf16.mxu1 %v2255_v59 }
 0x176   : > { %2102 = vmatpush3.bf16.msra.mxu1 %v2242_v11 }
 0x177   : > { %2103 = vmatprep.subr.bf16.mxu1 %v2255_v59 }
 0x17a   : > { %2104 = vmatpush3.bf16.msra.mxu1 %v2243_v12 }
 0x17b   : > { %2105 = vmatprep.subr.bf16.mxu1 %v2255_v59 }
 0x17e   : > { %2106 = vmatpush3.bf16.msra.mxu1 %v2244_v13 }
 0x181   : > { %2108 = vmatmul.mubr.bf16.vlgmr.msra.gmra.mrb[12].mxu1 %v1918_v16 }
 0x1f0   : > { %v2005_v17 = vpop.f32.mrb[4].mxu0 }
 0x1f1   : > { %v2006_v18 = vpop.f32.mrb[5].mxu0 }
 0x1f2   : > { %v2007_v2 = vadd.f32 %v2006_v18, %v2005_v17  ;;  %v2008_v19 = vpop.f32.mrb[6].mxu0 }
 0x1f3   : > { %v2009_v20 = vpop.f32.mrb[7].mxu0 }
 0x1f4   : > { %v1974_v21 = vpop.f32.mrb[0].mxu1  ;;  %v2010_v22 = vadd.f32 %v2009_v20, %v2008_v19 }
 0x1f5   : > { %v1975_v23 = vpop.f32.mrb[1].mxu1 }
 0x1f6   : > { %v1976_v24 = vadd.f32 %v1975_v23, %v1974_v21  ;;  %v1977_v25 = vpop.f32.mrb[2].mxu1 }
 0x1f7   : > { %v1978_v26 = vpop.f32.mrb[3].mxu1 }
 0x1f8   : > { %v1979_v27 = vadd.f32 %v1978_v26, %v1977_v25 }
 0x210   : > { %v2036_v28 = vpop.f32.mrb[8].mxu0 }
 0x211   : > { %v2037_v29 = vpop.f32.mrb[9].mxu0 }
 0x212   : > { %v2038_v59 = vadd.f32 %v2037_v29, %v2036_v28  ;;  %v2039_v30 = vpop.f32.mrb[10].mxu0 }
 0x213   : > { %v2040_v31 = vpop.f32.mrb[11].mxu0 }
 0x214   : > { %v1088_v32 = vpop.f32.mrb[4].mxu1  ;;  %v2041_v33 = vadd.f32 %v2040_v31, %v2039_v30 }
 0x215   : > { %v1089_v34 = vadd.f32 %v1976_v24, %v1088_v32  ;;  %v2069_v35 = vpop.f32.mrb[5].mxu1 }
 0x216   : > { %v1091_v36 = vpop.f32.mrb[6].mxu1 }
 0x217   : > { %v1092_v37 = vadd.f32 %v1979_v27, %v1091_v36  ;;  %v2070_v38 = vpop.f32.mrb[7].mxu1  ;;  %v1290_v39 = vadd.f32 %v2007_v2, %v1089_v34 }
 0x219   : > { %v1293_v40 = vadd.f32 %v2010_v22, %v1092_v37 }
 0x234   : > { %v1330_v41 = vpop.f32.mrb[8].mxu1 }
 0x235   : > { %v1331_v42 = vadd.f32 %v1330_v41, %v1290_v39  ;;  %v2089_v43 = vpop.f32.mrb[9].mxu1 }
 0x236   : > { %v1333_v44 = vpop.f32.mrb[10].mxu1 }
 0x237   : > { %v1334_v45 = vadd.f32 %v1333_v44, %v1293_v40  ;;  %v2090_v46 = vpop.f32.mrb[11].mxu1 }
 0x254   : > { %v1618_v47 = vpop.f32.mrb[12].mxu1 }
 0x255   : > { %v1619_v48 = vadd.f32 %v2038_v59, %v1618_v47  ;;  %v2109_v49 = vpop.f32.mrb[13].mxu1 }
 0x256   : > { %v1621_v52 = vpop.f32.mrb[14].mxu1 }
 0x257   : > { %v1625_v53 = vadd.f32 %v1619_v48, %v1331_v42  ;;  %v1622_v54 = vadd.f32 %v2041_v33, %v1621_v52  ;;  %v2110_v55 = vpop.f32.mrb[15].mxu1 }
 0x259   : > { %v1634_v57 = vadd.f32 %v1943_v51, %v1625_v53  ;;  %v1626_v58 = vadd.f32 %v1622_v54, %v1334_v45 }
 0x25b   : > { %v1636_v61 = vadd.f32 %v1634_v57, %v562_v56  ;;  %v1635_v62 = vadd.f32 %v1943_v51, %v1626_v58 }
 0x25d   : > { %v1637_v63 = vadd.f32 %v1635_v62, %v563_v60  ;;  %v1638_v0 = vmax.f32 %v1636_v61, 0.0 }
 0x25f   : > { %v1639_v1 = vmax.f32 %v1637_v63, 0.0 }
 0x261   : > { %v1956_v3 = vpack.c.bf16 %v1639_v1, %v1638_v0 }
 0x263   : > { %1957 = vst [vmem:[%s256_s17] sm:$0xff] %v1956_v3  }
 0x264 PF: > { %s16_s21 = sadd.s32 1, %s2252_s21  }
 0x265   : > { %p13_p5 = scmp.ge.s32.totalorder %s16_s21, 4  }
 0x267   :  { %15 = sbr.rel (!%p13_p5) target bundleno = 1 (0x1), region = 79 }

// kernel: encode_uv.15
= control target key start
LH: loop header
LB: loop body
LE: loop exit
PB: predicated region body
PF: predicated region fallthrough
CT: control target
= control target key end

     0   :  { %s2402_s21 = smov 0   ;;  %s2849_s0 = inlined_call_operand.vmem [shape: bf16[2,24,96], index: 0, kind: input, shape index: {}]   ;;  %s2850_s1 = inlined_call_operand.vmem [shape: bf16[3,96,128], index: 1, kind: input, shape index: {}]   ;;  %s2851_s2 = inlined_call_operand.vmem [shape: f32[1,128], index: 2, kind: input, shape index: {}]   ;;  %s2852_s3 = inlined_call_operand.vmem [shape: bf16[3,384,128], index: 3, kind: input, shape index: {}]   ;;  %s2853_s4 = inlined_call_operand.vmem [shape: f32[1,128], index: 4, kind: input, shape index: {}]   ;;  %s2854_s5 = inlined_call_operand.vmem [shape: bf16[2,16,128], index: 5, kind: input, shape index: {}]   ;;  %s2855_s6 = inlined_call_operand.vmem [shape: bf16[2,16,128], index: 6, kind: output, shape index: {}]  }
   0x1 LB: > { %s1748_s22 = sadd.s32 4294967295, %s2362_s21   ;;  %p1752_p0 = scmp.ge.s32.totalorder %s2362_s21, 1  ;;  %s2362_s21 = sphi %s2402_s21, %s16_s21  }
   0x2   : > { %p222_p1 = scmp.lt.s32.totalorder %s2362_s21, 3 }
   0x4   : > { %p223_p2 = pnand %p1752_p0, %p222_p1 }
   0x5   : > { %v2250_v0 = vld [vmem:[%s2850_s1 + $0x30] sm:$0xff] (!%p223_p2)   ;;  %v2364_v1 = vmov (!%p223_p2), 0.0   ;;  %v2251_v2 = vld [vmem:[%s2850_s1] sm:$0xff] (!%p223_p2)   ;;  %v2252_v3 = vld [vmem:[%s2850_s1 + $0x38] sm:$0xff] (!%p223_p2)   ;;  %vm2365_vm0 = vmmov (!%p223_p2), 0   ;;  %p257_p3 = scmp.lt.s32.totalorder (!%p223_p2), %s1748_s22, 1  ;;  %v620_v59 = vlaneseq (!%p223_p2) }
   0x6   : > { %226 = sbr.rel (%p223_p2) target bundleno = 596 (0x254), region = 44  ;;  %2130 = vmatprep.subr.bf16.mxu0 (!%p223_p2), %v2364_v1  ;;  %2146 = vmatprep.subr.bf16.mxu1 (!%p223_p2), %v2364_v1  ;;  %v2253_v4 = vld [vmem:[%s2850_s1 + $0x8] sm:$0xff] (!%p223_p2)   ;;  %v2254_v5 = vld [vmem:[%s2850_s1 + $0x40] sm:$0xff] (!%p223_p2)   ;;  %v2255_v6 = vld [vmem:[%s2850_s1 + $0x10] sm:$0xff] (!%p223_p2)   ;;  %vm312_vm1 = vcmask (!%p223_p2), 1045504   ;;  %vm352_vm2 = vcmask (!%p223_p2), 785408  }
   0x7   : > { %2131 = vmatpush3.bf16.msra.mxu0 (!%p223_p2), %v2250_v0  ;;  %2142 = vmatprep.mubr.msk.bf16.mxu0 (!%p223_p2), %vm2365_vm0, %v2364_v1  ;;  %v2256_v7 = vld [vmem:[%s2850_s1 + $0x48] sm:$0xff] (!%p223_p2)   ;;  %v2257_v8 = vld [vmem:[%s2850_s1 + $0x18] sm:$0xff] (!%p223_p2)   ;;  %v2258_v11 = vld [vmem:[%s2850_s1 + $0x50] sm:$0xff] (!%p223_p2)   ;;  %v2366_v33 = vmov (!%p223_p2), 0   ;;  %vm606_vm11 = vcmask (!%p223_p2), 1041408   ;;  %vm607_vm12 = vcmask (!%p223_p2), 1045508  }
   0x8   : > { %2147 = vmatpush3.bf16.msra.mxu1 (!%p223_p2), %v2251_v2  ;;  %2132 = vmatprep.subr.bf16.mxu0 (!%p223_p2), %v2364_v1  ;;  %v2259_v14 = vld [vmem:[%s2850_s1 + $0x20] sm:$0xff] (!%p223_p2)   ;;  %v2260_v15 = vld [vmem:[%s2850_s1 + $0x58] sm:$0xff] (!%p223_p2)   ;;  %v2261_v18 = vld [vmem:[%s2850_s1 + $0x28] sm:$0xff] (!%p223_p2)   ;;  %595 = vst [vmem:[#allocation2] sm:$0xff] (!%p223_p2), %v2366_v33  ;;  %vm667_vm14 = vsmask.f32 (!%p223_p2), 2304 }
   0x9   : > { %2148 = vmatprep.subr.bf16.mxu1 (!%p223_p2), %v2364_v1  ;;  %2158 = vmatprep.mubr.msk.bf16.mxu1 (!%p223_p2), %vm2365_vm0, %v2364_v1  ;;  %v2265_v20 = vld [vmem:[%s2850_s1 + $0x60] sm:$0xff] (!%p223_p2)   ;;  %v2266_v23 = vld [vmem:[%s2850_s1 + $0x68] sm:$0xff] (!%p223_p2)   ;;  %v2267_v24 = vld [vmem:[%s2850_s1 + $0x70] sm:$0xff] (!%p223_p2)   ;;  %596 = vst [vmem:[#allocation2 + $0x8] sm:$0xf] (!%p223_p2), %v2366_v33 }
   0xa   : > { %v2268_v25 = vld [vmem:[%s2850_s1 + $0x78] sm:$0xff] (!%p223_p2)   ;;  %v2269_v26 = vld [vmem:[%s2850_s1 + $0x80] sm:$0xff] (!%p223_p2)   ;;  %v2270_v27 = vld [vmem:[%s2850_s1 + $0x88] sm:$0xff] (!%p223_p2)   ;;  %597 = vst [vmem:[#allocation2 + $0xc] sm:$0xff] (!%p223_p2), %v2366_v33  ;;  %vm668_vm15 = vsmask.f32 (!%p223_p2), 6416 }
   0xb   : > { %2133 = vmatpush3.bf16.msra.mxu0 (!%p223_p2), %v2252_v3  ;;  %v2272_v30 = vld [vmem:[%s2852_s3 + $0x100] sm:$0xff] (!%p223_p2)   ;;  %598 = vst [vmem:[#allocation2 + $0x14] sm:$0xf] (!%p223_p2), %v2366_v33  ;;  %599 = vst [vmem:[#allocation2 + $0x18] sm:$0xff] (!%p223_p2), %v2366_v33  ;;  %v2275_v34 = vld [vmem:[%s2852_s3 + $0x108] sm:$0xff] (!%p223_p2)  }
   0xc   : > { %2149 = vmatpush3.bf16.msra.mxu1 (!%p223_p2), %v2253_v4  ;;  %2134 = vmatprep.subr.bf16.mxu0 (!%p223_p2), %v2364_v1  ;;  %v2273_v31 = vld [vmem:[%s2852_s3 + $0x140] sm:$0xff] (!%p223_p2)   ;;  %600 = vst [vmem:[#allocation2 + $0x20] sm:$0xf] (!%p223_p2), %v2366_v33  ;;  %v2276_v35 = vld [vmem:[%s2852_s3 + $0x148] sm:$0xff] (!%p223_p2)   ;;  %v2278_v37 = vld [vmem:[%s2852_s3 + $0x110] sm:$0xff] (!%p223_p2)   ;;  %v621_v4 = vshrl.u32 (!%p223_p2), %v620_v59, 7 }
   0xd   : > { %s2869_s22 = smov (!%p257_p3, %s1748_s22), 1  ;;  %2150 = vmatprep.subr.bf16.mxu1 %v2364_v1  ;;  %v2274_v32 = vld [vmem:[%s2852_s3 + $0xc0] sm:$0xff]   ;;  %v2277_v36 = vld [vmem:[%s2852_s3 + $0xc8] sm:$0xff]   ;;  %v2279_v38 = vld [vmem:[%s2852_s3 + $0x150] sm:$0xff]  }
   0xe   : > { %s2238_s9 = smul.u32 12, %s2869_s22  ;;  %v2280_v39 = vld [vmem:[%s2852_s3 + $0xd0] sm:$0xff]   ;;  %v2281_v40 = vld [vmem:[%s2852_s3 + $0x118] sm:$0xff]   ;;  %v2284_v43 = vld [vmem:[%s2852_s3 + $0x120] sm:$0xff]  }
   0xf   : > { %2135 = vmatpush3.bf16.msra.mxu0 %v2254_v5  ;;  %v2282_v41 = vld [vmem:[%s2852_s3 + $0x158] sm:$0xff]   ;;  %v2285_v44 = vld [vmem:[%s2852_s3 + $0x160] sm:$0xff]   ;;  %v2287_v46 = vld [vmem:[%s2852_s3 + $0x128] sm:$0xff]   ;;  %v622_v5 = vadd.s32 8, %v621_v4 }
  0x10   : > { %s2444_s14 = scalar_lea.vmem %s2849_s0, %s2238_s9  ;;  %2151 = vmatpush3.bf16.msra.mxu1 %v2255_v6  ;;  %2136 = vmatprep.subr.bf16.mxu0 %v2364_v1  ;;  %v2283_v42 = vld [vmem:[%s2852_s3 + $0xd8] sm:$0xff]   ;;  %v2286_v45 = vld [vmem:[%s2852_s3 + $0xe0] sm:$0xff]   ;;  %v2288_v47 = vld [vmem:[%s2852_s3 + $0x168] sm:$0xff]   ;;  %v627_v6 = vand.u32 3, %v621_v4  ;;  %s2001_s9 = sshll.u32 %s2869_s22, 3 }
  0x11   : > { %2152 = vmatprep.subr.bf16.mxu1 %v2364_v1  ;;  %v276_v9 = vld [vmem:[%s2444_s14 + $0x4] sm:$0xf]  ;;  %v289_v10 = vld [vmem:[%s2444_s14] sm:$0xc]  ;;  %v480_v28 = vld [vmem:[%s2444_s14 + $0x8] sm:$0xf]  ;;  %s266_s12 = scalar_lea.vmem %s2854_s5, %s2001_s9  ;;  %s271_s17 = scalar_lea.vmem %s2855_s6, %s2001_s9 }
  0x12   : > { %v2263_v12 = vld [vmem:[%s2444_s14 + $0x8] ss:$0 sps:$4 sm:$0x33]   ;;  %v1770_v13 = vcombine.low %v289_v10, %v276_v9  ;;  %v275_v19 = vld [vmem:[%s2444_s14] sm:$0xf]  ;;  %v1799_v29 = vcombine.low %v276_v9, %v480_v28  ;;  %v2290_v49 = vld [vmem:[%s2852_s3 + $0x130] sm:$0xff]  }
  0x13   : > { %2137 = vmatpush3.bf16.msra.mxu0 %v2256_v7  ;;  %v314_v17 = vrot.slane %v2263_v12, 2  ;;  %v1779_v22 = vcombine.low %v275_v19, %v276_v9  ;;  %v2289_v48 = vld [vmem:[%s2852_s3 + $0xe8] sm:$0xff]   ;;  %v2291_v50 = vld [vmem:[%s2852_s3 + $0x170] sm:$0xff]   ;;  %v2293_v52 = vld [vmem:[%s2852_s3 + $0x138] sm:$0xff]   ;;  %v634_v7 = vand.u32 3, %v622_v5  ;;  %vm647_vm3 = vcmp.ne.s32.totalorder %v627_v6, 3 }
  0x14   : > { %2153 = vmatpush3.bf16.msra.mxu1 %v2257_v8  ;;  %2138 = vmatprep.subr.bf16.mxu0 %v2364_v1  ;;  %v313_v16 = vrot.slane %v1770_v13, 2  ;;  %v2292_v51 = vld [vmem:[%s2852_s3 + $0xf0] sm:$0xff]   ;;  %v2294_v53 = vld [vmem:[%s2852_s3 + $0x178] sm:$0xff]   ;;  %v2300_v55 = vld [vmem:[%s2852_s3 + $0x40] sm:$0xff]   ;;  %vm704_vm5 = vcmp.ne.s32.totalorder %v627_v6, 0 }
  0x15   : > { %2154 = vmatprep.subr.bf16.mxu1 %v2364_v1  ;;  %v2295_v54 = vld [vmem:[%s2852_s3 + $0xf8] sm:$0xff]   ;;  %vm648_vm4 = vcmp.ne.s32.totalorder %v634_v7, 3  ;;  %vm653_vm6 = vmpackc.low %vm647_vm3, %vm647_vm3  ;;  %vm705_vm7 = vcmp.ne.s32.totalorder %v634_v7, 0  ;;  %v1807_v9 = vld [vmem:[%s2851_s2] ss:$0 sm:$0xff]  ;;  %vm692_vm3 = vcmask 1043458  }
  0x16   : > { %v315_v21 = vsel %vm312_vm1, %v313_v16, %v314_v17  ;;  %vm654_vm8 = vmpackc.low %vm648_vm4, %vm648_vm4  ;;  %v655_v10 = vsel %vm653_vm6, 65537, %v2366_v33  ;;  %vm699_vm6 = vcmask 1042432   ;;  %v2326_v59 = vld [vmem:[%s2852_s3 + $0xb8] sm:$0xff]  }
  0x17   : > { %2139 = vmatpush3.bf16.msra.mxu0 %v2258_v11  ;;  %vm710_vm9 = vmpackc.low %vm704_vm5, %vm704_vm5  ;;  %v656_v13 = vsel %vm654_vm8, 65537, %v2366_v33  ;;  %vm693_vm5 = vsmask.f32 7946  ;;  %vm750_vm8 = vsmask.f32 7942 }
  0x18   : > { %2155 = vmatpush3.bf16.msra.mxu1 %v2259_v14  ;;  %2140 = vmatprep.subr.bf16.mxu0 %v2364_v1  ;;  %vm711_vm10 = vmpackc.low %vm705_vm7, %vm705_vm7  ;;  %v712_v14 = vsel %vm710_vm9, 65537, %v2366_v33  ;;  %vm749_vm7 = vcmask 1043457   ;;  %vm724_vm9 = vsmask.f32 1280 }
  0x19   : > { %2156 = vmatprep.subr.bf16.mxu1 %v2364_v1  ;;  %vm608_vm4 = vmor %vm606_vm11, %vm607_vm12 }
  0x1a   : > { %vm2613_vm12 = vmor %vm667_vm14, %vm668_vm15 }
  0x1b   : > { %2141 = vmatpush3.bf16.msra.mxu0 %v2260_v15  ;;  %v713_v15 = vsel %vm711_vm10, 65537, %v2366_v33  ;;  %vm725_vm10 = vsmask.f32 5392  ;;  %vm2625_vm15 = vmand %vm749_vm7, %vm750_vm8 }
  0x1c   : > { %2157 = vmatpush3.bf16.msra.mxu1 %v2261_v18  ;;  %2162 = vmatprep.subr.bf16.mxu0 %v2364_v1 }
  0x1d   : > { %2037 = vmatprep.subr.bf16.mxu1 %v2272_v30 }
  0x1e   : > { %2143 = vmatmul.mubr.msk.bf16.vlgmr.msra.gmra.mrb[0].mxu0 %vm352_vm2, %v315_v21  ;;  %v1813_v21 = vcombine.low %v712_v14, %v713_v15 }
  0x1f   : > { %2159 = vmatmul.mubr.msk.bf16.vlgmr.msra.gmra.mrb[0].mxu1 %vm352_vm2, %v1779_v22  ;;  %2163 = vmatpush3.bf16.msra.mxu0 %v2265_v20  ;;  %v1810_v20 = vcombine.low %v655_v10, %v656_v13 }
  0x20   : > { %2164 = vmatprep.subr.bf16.mxu0 %v2364_v1  ;;  %2174 = vmatprep.mubr.msk.bf16.mxu0 %vm2365_vm0, %v2364_v1 }
  0x21   : > { %2038 = vmatpush3.bf16.msra.mxu1 %v2274_v32  ;;  %vm2604_vm13 = vcmp.ne.s16.totalorder %v1810_v20, 0 }
  0x22   : > { %2039 = vmatprep.subr.bf16.mxu1 %v2275_v34 }
  0x23   : > { %2165 = vmatpush3.bf16.msra.mxu0 %v2266_v23 }
  0x24   : > { %2166 = vmatprep.subr.bf16.mxu0 %v2364_v1 }
  0x25   : > { %2040 = vmatpush3.bf16.msra.mxu1 %v2277_v36 }
  0x26   : > { %2041 = vmatprep.subr.bf16.mxu1 %v2278_v37 }
  0x27   : > { %2167 = vmatpush3.bf16.msra.mxu0 %v2267_v24 }
  0x28   : > { %2168 = vmatprep.subr.bf16.mxu0 %v2364_v1 }
  0x29   : > { %2042 = vmatpush3.bf16.msra.mxu1 %v2280_v39 }
  0x2a   : > { %2043 = vmatprep.subr.bf16.mxu1 %v2281_v40 }
  0x2b   : > { %2169 = vmatpush3.bf16.msra.mxu0 %v2268_v25 }
  0x2c   : > { %2170 = vmatprep.subr.bf16.mxu0 %v2364_v1 }
  0x2d   : > { %2044 = vmatpush3.bf16.msra.mxu1 %v2283_v42 }
  0x2e   : > { %2045 = vmatprep.subr.bf16.mxu1 %v2284_v43 }
  0x2f   : > { %2171 = vmatpush3.bf16.msra.mxu0 %v2269_v26 }
  0x30   : > { %2172 = vmatprep.subr.bf16.mxu0 %v2364_v1 }
  0x31   : > { %2046 = vmatpush3.bf16.msra.mxu1 %v2286_v45 }
  0x32   : > { %2047 = vmatprep.subr.bf16.mxu1 %v2287_v46 }
  0x33   : > { %2173 = vmatpush3.bf16.msra.mxu0 %v2270_v27 }
  0x34   : > { %2178 = vmatprep.subr.bf16.mxu0 %v2364_v1 }
  0x35   : > { %2048 = vmatpush3.bf16.msra.mxu1 %v2289_v48 }
  0x36   : > { %2175 = vmatmul.mubr.msk.bf16.vlgmr.msra.gmra.mrb[4].mxu0 %vm352_vm2, %v1799_v29  ;;  %2049 = vmatprep.subr.bf16.mxu1 %v2290_v49  ;;  %vm717_vm2 = vcmp.ne.s16.totalorder %v1813_v21, 0 }
  0x37   : > { %2194 = vmatprep.mubr.msk.bf16.mxu0 %vm2365_vm0, %v2364_v1  ;;  %2179 = vmatpush3.bf16.msra.mxu0 %v2273_v31 }
  0x38   : > { %2180 = vmatprep.subr.bf16.mxu0 %v2364_v1 }
  0x39   : > { %2050 = vmatpush3.bf16.msra.mxu1 %v2292_v51 }
  0x3a   : > { %2051 = vmatprep.subr.bf16.mxu1 %v2293_v52 }
  0x3b   : > { %2181 = vmatpush3.bf16.msra.mxu0 %v2276_v35 }
  0x3c   : > { %2182 = vmatprep.subr.bf16.mxu0 %v2364_v1 }
  0x3d   : > { %2052 = vmatpush3.bf16.msra.mxu1 %v2295_v54  ;;  %v695_v54 = vld [vmem:[#allocation2] sm:$0xc] }
  0x3e   : > { %2068 = vmatprep.subr.bf16.mxu1 %v2300_v55 }
  0x3f   : > { %2183 = vmatpush3.bf16.msra.mxu0 %v2279_v38 }
  0x40   : > { %2184 = vmatprep.subr.bf16.mxu0 %v2364_v1 }
  0x43   : > { %2185 = vmatpush3.bf16.msra.mxu0 %v2282_v41 }
  0x44   : > { %2186 = vmatprep.subr.bf16.mxu0 %v2364_v1 }
  0x47   : > { %2187 = vmatpush3.bf16.msra.mxu0 %v2285_v44  ;;  %v2311_v44 = vld [vmem:[%s2852_s3 + $0x90] sm:$0xff]  }
  0x48   : > { %2188 = vmatprep.subr.bf16.mxu0 %v2364_v1 }
  0x4b   : > { %2189 = vmatpush3.bf16.msra.mxu0 %v2288_v47 }
  0x4c   : > { %2190 = vmatprep.subr.bf16.mxu0 %v2364_v1 }
  0x4f   : > { %2191 = vmatpush3.bf16.msra.mxu0 %v2291_v50 }
  0x50   : > { %2192 = vmatprep.subr.bf16.mxu0 %v2364_v1 }
  0x53   : > { %2193 = vmatpush3.bf16.msra.mxu0 %v2294_v53  ;;  %v2320_v53 = vld [vmem:[%s2852_s3 + $0xa8] sm:$0xff]  }
  0x54   : > { %2198 = vmatprep.subr.bf16.mxu0 %v2364_v1 }
  0xf1   : > { %v390_v56 = vpop.f32.mrb[0].mxu0 }
  0xf2   : > { %v473_v57 = vpop.f32.mrb[0].mxu1  ;;  %v2144_v58 = vpop.f32.mrb[1].mxu0 }
  0xf3   : > { %v474_v60 = vadd.f32 %v473_v57, %v390_v56  ;;  %v2160_v61 = vpop.f32.mrb[1].mxu1  ;;  %v393_v62 = vpop.f32.mrb[2].mxu0 }
  0xf4   : > { %v476_v63 = vpop.f32.mrb[2].mxu1  ;;  %v2145_v0 = vpop.f32.mrb[3].mxu0 }
  0xf5   : > { %v477_v2 = vadd.f32 %v476_v63, %v393_v62  ;;  %v2161_v3 = vpop.f32.mrb[3].mxu1  ;;  %v752_v63 = vld [vmem:[#allocation2 + $0x8] sm:$0xe]  ;;  %v701_v0 = vld [vmem:[#allocation2 + $0x18] sm:$0x7]  ;;  %v2330_v62 = vld [vmem:[%s2852_s3 + $0x200] sm:$0xff]  }
 0x109   : > { %v570_v8 = vpop.f32.mrb[4].mxu0 }
 0x10a   : > { %v577_v11 = vadd.f32 %v570_v8, %v474_v60  ;;  %v2176_v12 = vpop.f32.mrb[5].mxu0  ;;  %v757_v8 = vld [vmem:[#allocation2 + $0x20] sm:$0x3] }
 0x10b   : > { %v573_v16 = vpop.f32.mrb[6].mxu0 }
 0x10c   : > { %v586_v17 = vadd.f32 %v1807_v9, %v577_v11  ;;  %v578_v18 = vadd.f32 %v573_v16, %v477_v2  ;;  %v2177_v19 = vpop.f32.mrb[7].mxu0 }
 0x10e   : > { %v588_v22 = vmax.f32 %v586_v17, 0.0  ;;  %v587_v23 = vadd.f32 %v1807_v9, %v578_v18 }
 0x110   : > { %v2003_v24 = vpack.c.bf16 %v588_v22, %v588_v22  ;;  %v589_v25 = vmax.f32 %v587_v23, 0.0 }
 0x112   : > { %v609_v27 = vrot.slane %v2003_v24, 6  ;;  %v590_v28 = vpack.c.bf16 %v589_v25, %v588_v22  ;;  %v2004_v29 = vpack.c.bf16 %v589_v25, %v589_v25 }
 0x114   : > { %v610_v30 = vrot.slane %v609_v27, 4  ;;  %617 = vst [vmem:[#allocation2 + $0x4] sm:$0xc] %v609_v27  ;;  %v611_v31 = vrot.slane %v2004_v29, 6  ;;  %v661_v32 = vsel %vm2604_vm13, %v590_v28, 0  ;;  %v718_v33 = vsel %vm717_vm2, %v590_v28, 0  ;;  %vm2619_vm13 = vmand %vm692_vm3, %vm693_vm5 }
 0x115   : > { %v1811_v34 = vcombine.low %v661_v32, %v661_v32  ;;  %v1812_v35 = vcombine.high %v661_v32, %v661_v32  ;;  %v1814_v36 = vcombine.low %v718_v33, %v718_v33  ;;  %v1815_v37 = vcombine.high %v718_v33, %v718_v33  ;;  %vm2631_vm2 = vmand %vm699_vm6, %vm667_vm14  ;;  %v2301_v33 = vld [vmem:[%s2852_s3 + $0x80] sm:$0xff]  }
 0x116   : > { %v612_v38 = vsel %vm608_vm4, %v610_v30, %v611_v31  ;;  %v613_v39 = vrot.slane %v611_v31, 4  ;;  %vm2637_vm3 = vmor %vm724_vm9, %vm725_vm10 }
 0x117   : > { %618 = vst [vmem:[#allocation2 + $0x10] sm:$0xf] %v612_v38  ;;  %v671_v40 = vshrl.u32 %v1811_v34, 16  ;;  %v674_v41 = vshll.u32 %v1811_v34, 16  ;;  %v680_v42 = vshrl.u32 %v1812_v35, 16  ;;  %v683_v43 = vshll.u32 %v1812_v35, 16  ;;  %vm756_vm14 = vmand %vm606_vm11, %vm724_vm9 }
 0x118   : > { %619 = vst [vmem:[#allocation2 + $0x1c] sm:$0x3] %v613_v39  ;;  %v728_v45 = vshrl.u32 %v1814_v36, 16  ;;  %v731_v46 = vshll.u32 %v1814_v36, 16  ;;  %v737_v47 = vshrl.u32 %v1815_v37, 16  ;;  %v740_v48 = vshll.u32 %v1815_v37, 16 }
 0x119   : > { %v673_v49 = vrot.slane %v671_v40, 5  ;;  %v676_v50 = vrot.slane %v674_v41, 6  ;;  %v682_v51 = vrot.slane %v680_v42, 5  ;;  %v685_v52 = vrot.slane %v683_v43, 6  ;;  %v2304_v34 = vld [vmem:[%s2852_s3] sm:$0xff]   ;;  %v2307_v39 = vld [vmem:[%s2852_s3 + $0x48] sm:$0xff]  }
 0x11a   : > { %v730_v55 = vrot.slane %v728_v45, 6  ;;  %v733_v56 = vrot.slane %v731_v46, 7  ;;  %v739_v57 = vrot.slane %v737_v47, 6  ;;  %v742_v58 = vrot.slane %v740_v48, 7  ;;  %v2308_v41 = vld [vmem:[%s2852_s3 + $0x88] sm:$0xff]   ;;  %v2310_v43 = vld [vmem:[%s2852_s3 + $0x50] sm:$0xff]  }
 0x11b   : > { %v677_v60 = vor.u32 %v676_v50, %v673_v49  ;;  %v686_v61 = vor.u32 %v685_v52, %v682_v51  ;;  %v2309_v42 = vld [vmem:[%s2852_s3 + $0x8] sm:$0xff]   ;;  %v2312_v45 = vld [vmem:[%s2852_s3 + $0x10] sm:$0xff]   ;;  %v2313_v46 = vld [vmem:[%s2852_s3 + $0x58] sm:$0xff]  }
 0x11c   : > { %v734_v3 = vor.u32 %v733_v56, %v730_v55  ;;  %v743_v4 = vor.u32 %v742_v58, %v739_v57  ;;  %v2314_v47 = vld [vmem:[%s2852_s3 + $0x98] sm:$0xff]   ;;  %v2316_v49 = vld [vmem:[%s2852_s3 + $0x60] sm:$0xff]   ;;  %v2319_v52 = vld [vmem:[%s2852_s3 + $0x68] sm:$0xff]  }
 0x11d   : > { %v678_v5 = vrot.slane %v677_v60, 4  ;;  %v688_v6 = vrot.slane %v686_v61, 4  ;;  %v696_v7 = vsel %vm2619_vm13, %v677_v60, %v695_v54  ;;  %v2315_v48 = vld [vmem:[%s2852_s3 + $0x18] sm:$0xff]   ;;  %v2317_v50 = vld [vmem:[%s2852_s3 + $0xa0] sm:$0xff]   ;;  %v2321_v54 = vld [vmem:[%s2852_s3 + $0x28] sm:$0xff]  }
 0x11e   : > { %697 = vst [vmem:[#allocation2] sm:$0xc] %v696_v7  ;;  %v735_v9 = vrot.slane %v734_v3, 4  ;;  %v745_v10 = vrot.slane %v743_v4, 4  ;;  %v753_v11 = vsel %vm2625_vm15, %v734_v3, %v752_v63  ;;  %v2318_v51 = vld [vmem:[%s2852_s3 + $0x20] sm:$0xff]   ;;  %v2322_v55 = vld [vmem:[%s2852_s3 + $0x70] sm:$0xff]  }
 0x11f   : > { %v687_v12 = vsel %vm2613_vm12, %v678_v5, %v686_v61  ;;  %v702_v13 = vsel %vm2631_vm2, %v688_v6, %v701_v0  ;;  %754 = vst [vmem:[#allocation2 + $0x8] sm:$0xe] %v753_v11  ;;  %v2323_v56 = vld [vmem:[%s2852_s3 + $0xb0] sm:$0xff]   ;;  %v2325_v58 = vld [vmem:[%s2852_s3 + $0x78] sm:$0xff]   ;;  %v2329_v61 = vld [vmem:[%s2852_s3 + $0x1c0] sm:$0xff]  }
 0x120   : > { %698 = vst [vmem:[#allocation2 + $0xc] sm:$0xf] %v687_v12  ;;  %703 = vst [vmem:[#allocation2 + $0x18] sm:$0x7] %v702_v13  ;;  %v744_v14 = vsel %vm2637_vm3, %v735_v9, %v743_v4  ;;  %v758_v15 = vsel %vm756_vm14, %v745_v10, %v757_v8  ;;  %v2324_v57 = vld [vmem:[%s2852_s3 + $0x30] sm:$0xff]   ;;  %v2327_v60 = vld [vmem:[%s2852_s3 + $0x38] sm:$0xff]  }
 0x121   : > { %755 = vst [vmem:[#allocation2 + $0x14] sm:$0xf] %v744_v14  ;;  %759 = vst [vmem:[#allocation2 + $0x20] sm:$0x3] %v758_v15  ;;  %v2331_v63 = vld [vmem:[%s2852_s3 + $0x180] sm:$0xff]   ;;  %v2334_v4 = vld [vmem:[%s2852_s3 + $0x1c8] sm:$0xff]  }
 0x122   : > { %v2335_v6 = vld [vmem:[%s2852_s3 + $0x208] sm:$0xff]   ;;  %v2337_v8 = vld [vmem:[%s2852_s3 + $0x1d0] sm:$0xff]   ;;  %v2340_v11 = vld [vmem:[%s2852_s3 + $0x1d8] sm:$0xff]  }
 0x123   : > { %v2336_v7 = vld [vmem:[%s2852_s3 + $0x188] sm:$0xff]   ;;  %v2338_v9 = vld [vmem:[%s2852_s3 + $0x210] sm:$0xff]   ;;  %v2341_v12 = vld [vmem:[%s2852_s3 + $0x218] sm:$0xff]  }
 0x124   : > { %v2339_v10 = vld [vmem:[%s2852_s3 + $0x190] sm:$0xff]   ;;  %v2342_v13 = vld [vmem:[%s2852_s3 + $0x198] sm:$0xff]   ;;  %v2343_v14 = vld [vmem:[%s2852_s3 + $0x1e0] sm:$0xff]  }
 0x125   : > { %v812_v16 = vld [vmem:[#allocation2] sm:$0xcc] }
 0x126   : > { %v813_v19 = vld [vmem:[#allocation2 + $0x8] sm:$0xc]  ;;  %v2669_v38 = vld [vmem:[#allocation2] sm:$0xff] }
 0x127   : > { %v2653_v17 = vld [vmem:[#allocation2 + $0xc] sm:$0xff]  ;;  %v816_v18 = vld [vmem:[#allocation2 + $0x18] sm:$0x33]  ;;  %v2344_v15 = vld [vmem:[%s2852_s3 + $0x220] sm:$0xff]  }
 0x128   : > { %v1865_v20 = vcombine.high %v812_v16, %v2653_v17  ;;  %v1868_v21 = vcombine.high %v816_v18, %v816_v18  ;;  %v2656_v22 = vld [vmem:[#allocation2 + $0x14] sm:$0xf]  ;;  %v1864_v23 = vcombine.low %v812_v16, %v2653_v17  ;;  %v1867_v24 = vcombine.low %v816_v18, %v816_v18  ;;  %v2299_v26 = vld [vmem:[#allocation2 + $0x20] ss:$0 sps:$4 sm:$0x33]   ;;  %v2754_v0 = vld [vmem:[#allocation2 + $0x18] sm:$0xff] }
 0x129   : > { %v1866_v25 = vcombine.low %v813_v19, %v2656_v22  ;;  %v895_v32 = vrot.slane %v2299_v26, 2  ;;  %v1895_v40 = vcombine.high %v2669_v38, %v2653_v17  ;;  %v1894_v2 = vcombine.low %v2669_v38, %v2653_v17  ;;  %v2328_v3 = vld [vmem:[#allocation2 + $0x8] ss:$12 sps:$4 sm:$0xff]   ;;  %v2345_v16 = vld [vmem:[%s2852_s3 + $0x1a0] sm:$0xff]   ;;  %v2353_v26 = vld [vmem:[%s2852_s3 + $0x238] sm:$0xff]  }
 0x12a   : > { %v891_v27 = vrot.slane %v1865_v20, 2  ;;  %v892_v28 = vrot.slane %v1868_v21, 2  ;;  %v888_v29 = vrot.slane %v1864_v23, 2  ;;  %v889_v30 = vrot.slane %v1867_v24, 2  ;;  %v2346_v18 = vld [vmem:[%s2852_s3 + $0x1e8] sm:$0xff]   ;;  %v2349_v21 = vld [vmem:[%s2852_s3 + $0x1f0] sm:$0xff]  }
 0x12b   : > { %v894_v31 = vrot.slane %v1866_v25, 2  ;;  %v1970_v5 = vcombine.high %v2653_v17, %v2754_v0  ;;  %v2347_v19 = vld [vmem:[%s2852_s3 + $0x228] sm:$0xff]   ;;  %v2350_v23 = vld [vmem:[%s2852_s3 + $0x230] sm:$0xff]   ;;  %v2352_v25 = vld [vmem:[%s2852_s3 + $0x1f8] sm:$0xff]  }
 0x12c   : > { %v893_v35 = vsel %vm312_vm1, %v891_v27, %v892_v28  ;;  %v890_v36 = vsel %vm312_vm1, %v888_v29, %v889_v30  ;;  %v2348_v20 = vld [vmem:[%s2852_s3 + $0x1a8] sm:$0xff]   ;;  %v2351_v24 = vld [vmem:[%s2852_s3 + $0x1b0] sm:$0xff]   ;;  %v2354_v27 = vld [vmem:[%s2852_s3 + $0x1b8] sm:$0xff]   ;;  %v1969_v29 = vcombine.low %v2653_v17, %v2754_v0 }
 0x12d   : > { %1076 = vmatprep.mubr.bf16.mxu1 %v893_v35  ;;  %v896_v37 = vsel %vm312_vm1, %v894_v31, %v895_v32  ;;  %v1369_v28 = vld [vmem:[#allocation2 + $0x20] sm:$0xf] }
 0x12e   : > { %2195 = vmatmul.mubr.bf16.vlgmr.msra.gmra.mrb[8].mxu0 %v896_v37  ;;  %1077 = vmatmul.mubr.bf16.vlgmr.msra.gmra.mrb[4].mxu1 %v890_v36  ;;  %v1971_v30 = vcombine.low %v2656_v22, %v1369_v28 }
 0x12f   : > { %2199 = vmatpush3.bf16.msra.mxu0 %v2301_v33  ;;  %2069 = vmatpush3.bf16.msra.mxu1 %v2304_v34 }
 0x130   : > { %1318 = vmatprep.mubr.bf16.mxu1 %v1895_v40  ;;  %2200 = vmatprep.subr.bf16.mxu0 %v2364_v1 }
 0x131   : > { %2070 = vmatprep.subr.bf16.mxu1 %v2307_v39  ;;  %2214 = vmatprep.mubr.msk.bf16.mxu0 %vm2365_vm0, %v2364_v1 }
 0x133   : > { %2201 = vmatpush3.bf16.msra.mxu0 %v2308_v41  ;;  %2071 = vmatpush3.bf16.msra.mxu1 %v2309_v42 }
 0x134   : > { %2202 = vmatprep.subr.bf16.mxu0 %v2364_v1  ;;  %2072 = vmatprep.subr.bf16.mxu1 %v2310_v43 }
 0x137   : > { %2203 = vmatpush3.bf16.msra.mxu0 %v2311_v44  ;;  %2073 = vmatpush3.bf16.msra.mxu1 %v2312_v45 }
 0x138   : > { %2204 = vmatprep.subr.bf16.mxu0 %v2364_v1  ;;  %2074 = vmatprep.subr.bf16.mxu1 %v2313_v46 }
 0x13b   : > { %2205 = vmatpush3.bf16.msra.mxu0 %v2314_v47  ;;  %2075 = vmatpush3.bf16.msra.mxu1 %v2315_v48 }
 0x13c   : > { %2206 = vmatprep.subr.bf16.mxu0 %v2364_v1  ;;  %2076 = vmatprep.subr.bf16.mxu1 %v2316_v49 }
 0x13f   : > { %2207 = vmatpush3.bf16.msra.mxu0 %v2317_v50  ;;  %2077 = vmatpush3.bf16.msra.mxu1 %v2318_v51 }
 0x140   : > { %2208 = vmatprep.subr.bf16.mxu0 %v2364_v1  ;;  %2078 = vmatprep.subr.bf16.mxu1 %v2319_v52 }
 0x143   : > { %2209 = vmatpush3.bf16.msra.mxu0 %v2320_v53  ;;  %2079 = vmatpush3.bf16.msra.mxu1 %v2321_v54 }
 0x144   : > { %2210 = vmatprep.subr.bf16.mxu0 %v2364_v1  ;;  %2080 = vmatprep.subr.bf16.mxu1 %v2322_v55 }
 0x147   : > { %2211 = vmatpush3.bf16.msra.mxu0 %v2323_v56  ;;  %2081 = vmatpush3.bf16.msra.mxu1 %v2324_v57 }
 0x148   : > { %2212 = vmatprep.subr.bf16.mxu0 %v2364_v1  ;;  %2082 = vmatprep.subr.bf16.mxu1 %v2325_v58 }
 0x14b   : > { %2213 = vmatpush3.bf16.msra.mxu0 %v2326_v59  ;;  %2083 = vmatpush3.bf16.msra.mxu1 %v2327_v60 }
 0x14c   : > { %2218 = vmatprep.subr.bf16.mxu0 %v2364_v1  ;;  %2099 = vmatprep.subr.bf16.mxu1 %v2329_v61  ;;  %v2008_v61 = vld [vmem:[%s266_s12] sm:$0xff]  }
 0x14e   : > { %2215 = vmatmul.mubr.bf16.vlgmr.msra.gmra.mrb[12].mxu0 %v2328_v3  ;;  %1319 = vmatmul.mubr.bf16.vlgmr.msra.gmra.mrb[8].mxu1 %v1894_v2  ;;  %v1996_v3 = vld [vmem:[%s2853_s4] ss:$0 sm:$0xff] }
 0x14f   : > { %2219 = vmatpush3.bf16.msra.mxu0 %v2330_v62  ;;  %2100 = vmatpush3.bf16.msra.mxu1 %v2331_v63 }
 0x150   : > { %1606 = vmatprep.mubr.bf16.mxu1 %v1970_v5  ;;  %2220 = vmatprep.subr.bf16.mxu0 %v2364_v1 }
 0x151   : > { %2101 = vmatprep.subr.bf16.mxu1 %v2334_v4  ;;  %2234 = vmatprep.mubr.msk.bf16.mxu0 %vm2365_vm0, %v2364_v1  ;;  %v2009_v4 = vunpack.c.l.bf16 %v2008_v61 }
 0x153   : > { %2221 = vmatpush3.bf16.msra.mxu0 %v2335_v6  ;;  %2102 = vmatpush3.bf16.msra.mxu1 %v2336_v7 }
 0x154   : > { %2222 = vmatprep.subr.bf16.mxu0 %v2364_v1  ;;  %2103 = vmatprep.subr.bf16.mxu1 %v2337_v8  ;;  %v2010_v8 = vunpack.c.h.bf16 %v2008_v61 }
 0x157   : > { %2223 = vmatpush3.bf16.msra.mxu0 %v2338_v9  ;;  %2104 = vmatpush3.bf16.msra.mxu1 %v2339_v10 }
 0x158   : > { %2224 = vmatprep.subr.bf16.mxu0 %v2364_v1  ;;  %2105 = vmatprep.subr.bf16.mxu1 %v2340_v11 }
 0x15b   : > { %2225 = vmatpush3.bf16.msra.mxu0 %v2341_v12  ;;  %2106 = vmatpush3.bf16.msra.mxu1 %v2342_v13 }
 0x15c   : > { %2226 = vmatprep.subr.bf16.mxu0 %v2364_v1  ;;  %2107 = vmatprep.subr.bf16.mxu1 %v2343_v14 }
 0x15f   : > { %2227 = vmatpush3.bf16.msra.mxu0 %v2344_v15  ;;  %2108 = vmatpush3.bf16.msra.mxu1 %v2345_v16 }
 0x160   : > { %2228 = vmatprep.subr.bf16.mxu0 %v2364_v1  ;;  %2109 = vmatprep.subr.bf16.mxu1 %v2346_v18 }
 0x163   : > { %2229 = vmatpush3.bf16.msra.mxu0 %v2347_v19  ;;  %2110 = vmatpush3.bf16.msra.mxu1 %v2348_v20 }
 0x164   : > { %2230 = vmatprep.subr.bf16.mxu0 %v2364_v1  ;;  %2111 = vmatprep.subr.bf16.mxu1 %v2349_v21 }
 0x167   : > { %2231 = vmatpush3.bf16.msra.mxu0 %v2350_v23  ;;  %2112 = vmatpush3.bf16.msra.mxu1 %v2351_v24 }
 0x168   : > { %2232 = vmatprep.subr.bf16.mxu0 %v2364_v1  ;;  %2113 = vmatprep.subr.bf16.mxu1 %v2352_v25 }
 0x16b   : > { %2233 = vmatpush3.bf16.msra.mxu0 %v2353_v26  ;;  %2114 = vmatpush3.bf16.msra.mxu1 %v2354_v27 }
 0x16e   : > { %2235 = vmatmul.mubr.bf16.vlgmr.msra.gmra.mrb[16].mxu0 %v1971_v30  ;;  %1607 = vmatmul.mubr.bf16.vlgmr.msra.gmra.mrb[12].mxu1 %v1969_v29 }
 0x201   : > { %v1119_v31 = vpop.f32.mrb[8].mxu0  ;;  %v2053_v32 = vpop.f32.mrb[4].mxu1 }
 0x202   : > { %v2196_v33 = vpop.f32.mrb[9].mxu0  ;;  %v2054_v34 = vpop.f32.mrb[5].mxu1 }
 0x203   : > { %v2055_v35 = vadd.f32 %v2054_v34, %v2053_v32  ;;  %v1122_v36 = vpop.f32.mrb[10].mxu0  ;;  %v2056_v37 = vpop.f32.mrb[6].mxu1 }
 0x204   : > { %v2197_v38 = vpop.f32.mrb[11].mxu0  ;;  %v2057_v1 = vpop.f32.mrb[7].mxu1 }
 0x205   : > { %v1120_v39 = vadd.f32 %v2055_v35, %v1119_v31  ;;  %v2058_v40 = vadd.f32 %v2057_v1, %v2056_v37 }
 0x207   : > { %v1123_v41 = vadd.f32 %v2058_v40, %v1122_v36 }
 0x221   : > { %v1361_v42 = vpop.f32.mrb[12].mxu0  ;;  %v2084_v43 = vpop.f32.mrb[8].mxu1 }
 0x222   : > { %v2216_v17 = vpop.f32.mrb[13].mxu0  ;;  %v2085_v44 = vpop.f32.mrb[9].mxu1 }
 0x223   : > { %v2086_v22 = vadd.f32 %v2085_v44, %v2084_v43  ;;  %v1364_v45 = vpop.f32.mrb[14].mxu0  ;;  %v2087_v46 = vpop.f32.mrb[10].mxu1 }
 0x224   : > { %v2217_v47 = vpop.f32.mrb[15].mxu0  ;;  %v2088_v48 = vpop.f32.mrb[11].mxu1 }
 0x225   : > { %v1321_v49 = vadd.f32 %v2086_v22, %v1120_v39  ;;  %v2089_v50 = vadd.f32 %v2088_v48, %v2087_v46 }
 0x227   : > { %v1362_v51 = vadd.f32 %v1361_v42, %v1321_v49  ;;  %v1324_v52 = vadd.f32 %v2089_v50, %v1123_v41 }
 0x229   : > { %v1365_v53 = vadd.f32 %v1364_v45, %v1324_v52 }
 0x241   : > { %v1649_v54 = vpop.f32.mrb[16].mxu0  ;;  %v2115_v55 = vpop.f32.mrb[12].mxu1 }
 0x242   : > { %v2236_v56 = vpop.f32.mrb[17].mxu0  ;;  %v2116_v57 = vpop.f32.mrb[13].mxu1 }
 0x243   : > { %v2117_v58 = vadd.f32 %v2116_v57, %v2115_v55  ;;  %v1652_v59 = vpop.f32.mrb[18].mxu0  ;;  %v2118_v60 = vpop.f32.mrb[14].mxu1 }
 0x244   : > { %v2237_v62 = vpop.f32.mrb[19].mxu0  ;;  %v2119_v63 = vpop.f32.mrb[15].mxu1 }
 0x245   : > { %v1650_v0 = vadd.f32 %v2117_v58, %v1649_v54  ;;  %v2120_v2 = vadd.f32 %v2119_v63, %v2118_v60 }
 0x247   : > { %v1656_v5 = vadd.f32 %v1650_v0, %v1362_v51  ;;  %v1653_v6 = vadd.f32 %v2120_v2, %v1652_v59 }
 0x249   : > { %v1665_v7 = vadd.f32 %v1996_v3, %v1656_v5  ;;  %v1657_v9 = vadd.f32 %v1653_v6, %v1365_v53 }
 0x24b   : > { %v1667_v10 = vadd.f32 %v2009_v4, %v1665_v7  ;;  %v1666_v11 = vadd.f32 %v1996_v3, %v1657_v9 }
 0x24d   : > { %v1668_v12 = vadd.f32 %v2010_v8, %v1666_v11  ;;  %v1669_v13 = vmax.f32 %v1667_v10, 0.0 }
 0x24f   : > { %v1670_v14 = vmax.f32 %v1668_v12, 0.0 }
 0x251   : > { %v2014_v15 = vpack.c.bf16 %v1670_v14, %v1669_v13 }
 0x253   : > { %2015 = vst [vmem:[%s271_s17] sm:$0xff] %v2014_v15  }
 0x254 PF: > { %s16_s21 = sadd.s32 1, %s2362_s21  }
 0x255   : > { %p13_p4 = scmp.ge.s32.totalorder %s16_s21, 4  }
 0x257   :  { %15 = sbr.rel (!%p13_p4) target bundleno = 1 (0x1), region = 81 }

// kernel: encode_uv.16
= control target key start
LH: loop header
LB: loop body
LE: loop exit
PB: predicated region body
PF: predicated region fallthrough
CT: control target
= control target key end

     0   :  { %s2233_s21 = smov 0   ;;  %s2641_s0 = inlined_call_operand.vmem [shape: bf16[4,6,96], index: 0, kind: input, shape index: {}]   ;;  %s2642_s1 = inlined_call_operand.vmem [shape: bf16[3,96,256], index: 1, kind: input, shape index: {}]   ;;  %s2643_s2 = inlined_call_operand.vmem [shape: f32[1,128], index: 2, kind: input, shape index: {}]   ;;  %s2644_s3 = inlined_call_operand.vmem [shape: bf16[3,384,128], index: 3, kind: input, shape index: {}]   ;;  %s2645_s4 = inlined_call_operand.vmem [shape: f32[1,128], index: 4, kind: input, shape index: {}]   ;;  %s2646_s5 = inlined_call_operand.vmem [shape: f32[1,128], index: 5, kind: input, shape index: {}]   ;;  %s2647_s6 = inlined_call_operand.vmem [shape: bf16[2,4,128], index: 6, kind: output, shape index: {}]  }
   0x1 LB: > { %s2239_s22 = sadd.s32 4294967295, %s2193_s21   ;;  %p1632_p0 = scmp.ge.s32.totalorder %s2193_s21, 1  ;;  %s2193_s21 = sphi %s2233_s21, %s16_s21  }
   0x2   : > { %p213_p1 = scmp.lt.s32.totalorder %s2193_s21, 3 }
   0x4   : > { %p214_p2 = pnand %p1632_p0, %p213_p1 }
   0x5   : > { %v2051_v0 = vld [vmem:[%s2642_s1 + $0x64] ss:$8 sps:$4 sm:$0xff] (!%p214_p2)   ;;  %v2195_v2 = vmov (!%p214_p2), 0   ;;  %s1633_s27 = sshll.u32 (!%p214_p2), %s2239_s22, 1  ;;  %v2055_v3 = vld [vmem:[%s2642_s1 + $0x60] ss:$8 sps:$4 sm:$0xff] (!%p214_p2)  }
   0x6   : > { %217 = sbr.rel (%p214_p2) target bundleno = 590 (0x24e), region = 44  ;;  %v2053_v1 = vld [vmem:[%s2642_s1 + $0x4] ss:$8 sps:$4 sm:$0xff] (!%p214_p2)   ;;  %377 = vmatprep.mubr.bf16.mxu0 (!%p214_p2), %v2195_v2  ;;  %632 = vst [vmem:[#allocation2] sm:$0xff] (!%p214_p2), %v2195_v2  ;;  %633 = vst [vmem:[#allocation2 + $0x8] sm:$0xf] (!%p214_p2), %v2195_v2  ;;  %481 = vmatprep.mubr.bf16.mxu1 (!%p214_p2), %v2195_v2 }
   0x7   : > { %345 = vmatprep.subr.bf16.mxu0 (!%p214_p2), %v2051_v0  ;;  %v2056_v4 = vld [vmem:[%s2642_s1] ss:$8 sps:$4 sm:$0xff] (!%p214_p2)   ;;  %449 = vmatprep.subr.bf16.mxu1 (!%p214_p2), %v2053_v1  ;;  %v2057_v5 = vld [vmem:[%s2642_s1 + $0x74] ss:$8 sps:$4 sm:$0xff] (!%p214_p2)   ;;  %v2061_v7 = vld [vmem:[%s2642_s1 + $0x70] ss:$8 sps:$4 sm:$0xff] (!%p214_p2)  }
   0x8   : > { %346 = vmatpush1.bf16.msra.mxu0 (!%p214_p2), %v2055_v3  ;;  %450 = vmatpush1.bf16.msra.mxu1 (!%p214_p2), %v2056_v4  ;;  %v2059_v6 = vld [vmem:[%s2642_s1 + $0x14] ss:$8 sps:$4 sm:$0xff] (!%p214_p2)   ;;  %p243_p3 = scmp.lt.s32.totalorder (!%p214_p2), %s1633_s27, 3  ;;  %v2062_v8 = vld [vmem:[%s2642_s1 + $0x10] ss:$8 sps:$4 sm:$0xff] (!%p214_p2)   ;;  %vm341_vm0 = vcmask (!%p214_p2), 785408  }
   0x9   : > { %347 = vmatprep.subr.bf16.mxu0 (!%p214_p2), %v2057_v5  ;;  %451 = vmatprep.subr.bf16.mxu1 (!%p214_p2), %v2059_v6  ;;  %v2063_v9 = vld [vmem:[%s2642_s1 + $0x84] ss:$8 sps:$4 sm:$0xff] (!%p214_p2)   ;;  %v2067_v11 = vld [vmem:[%s2642_s1 + $0x80] ss:$8 sps:$4 sm:$0xff] (!%p214_p2)   ;;  %v2069_v13 = vld [vmem:[%s2642_s1 + $0x94] ss:$8 sps:$4 sm:$0xff] (!%p214_p2)  }
   0xa   : > { %v2065_v10 = vld [vmem:[%s2642_s1 + $0x24] ss:$8 sps:$4 sm:$0xff] (!%p214_p2)   ;;  %v2068_v12 = vld [vmem:[%s2642_s1 + $0x20] ss:$8 sps:$4 sm:$0xff] (!%p214_p2)   ;;  %v2071_v14 = vld [vmem:[%s2642_s1 + $0x34] ss:$8 sps:$4 sm:$0xff] (!%p214_p2)  }
   0xb   : > { %v2073_v15 = vld [vmem:[%s2642_s1 + $0x90] ss:$8 sps:$4 sm:$0xff] (!%p214_p2)   ;;  %v2075_v17 = vld [vmem:[%s2642_s1 + $0xa4] ss:$8 sps:$4 sm:$0xff] (!%p214_p2)   ;;  %v2079_v19 = vld [vmem:[%s2642_s1 + $0xa0] ss:$8 sps:$4 sm:$0xff] (!%p214_p2)  }
   0xc   : > { %348 = vmatpush1.bf16.msra.mxu0 (!%p214_p2), %v2061_v7  ;;  %452 = vmatpush1.bf16.msra.mxu1 (!%p214_p2), %v2062_v8  ;;  %v2074_v16 = vld [vmem:[%s2642_s1 + $0x30] ss:$8 sps:$4 sm:$0xff] (!%p214_p2)   ;;  %v2077_v18 = vld [vmem:[%s2642_s1 + $0x44] ss:$8 sps:$4 sm:$0xff] (!%p214_p2)   ;;  %v2080_v20 = vld [vmem:[%s2642_s1 + $0x40] ss:$8 sps:$4 sm:$0xff] (!%p214_p2)  }
   0xd   : > { %s2649_s27 = smov (!%p243_p3, %s1633_s27), 3  ;;  %349 = vmatprep.subr.bf16.mxu0 %v2063_v9  ;;  %453 = vmatprep.subr.bf16.mxu1 %v2065_v10  ;;  %v2081_v21 = vld [vmem:[%s2642_s1 + $0xb4] ss:$8 sps:$4 sm:$0xff]   ;;  %v2085_v23 = vld [vmem:[%s2642_s1 + $0xb0] ss:$8 sps:$4 sm:$0xff]   ;;  %v2106_v41 = vld [vmem:[%s2644_s3 + $0x100] sm:$0xff]  }
   0xe   : > { %s1634_s13 = sshll.u32 %s2649_s27, 2  ;;  %v2083_v22 = vld [vmem:[%s2642_s1 + $0x54] ss:$8 sps:$4 sm:$0xff]   ;;  %v2086_v24 = vld [vmem:[%s2642_s1 + $0x50] ss:$8 sps:$4 sm:$0xff]   ;;  %v2107_v42 = vld [vmem:[%s2644_s3 + $0x140] sm:$0xff]  }
   0xf   : > { %s246_s20 = scalar_lea.vmem %s2641_s0, %s1634_s13  ;;  %v2090_v26 = vld [vmem:[%s2642_s1 + $0xc4] ss:$8 sps:$4 sm:$0xff]   ;;  %v2088_v30 = vld [vmem:[%s2642_s1 + $0xc0] ss:$8 sps:$4 sm:$0xff]   ;;  %v2093_v31 = vld [vmem:[%s2642_s1 + $0xd4] ss:$8 sps:$4 sm:$0xff]  }
  0x10   : > { %350 = vmatpush1.bf16.msra.mxu0 %v2067_v11  ;;  %454 = vmatpush1.bf16.msra.mxu1 %v2068_v12  ;;  %v2087_v25 = vld [vmem:[%s246_s20] ss:$0 sps:$4 sm:$0x66]   ;;  %v1636_v27 = vld [vmem:[%s246_s20 + $0x4] sm:$0x3]  ;;  %v2196_v43 = vmov 0.0  }
  0x11   : > { %351 = vmatprep.subr.bf16.mxu0 %v2069_v13  ;;  %455 = vmatprep.subr.bf16.mxu1 %v2071_v14  ;;  %v253_v28 = vld [vmem:[%s246_s20] sm:$0x3]  ;;  %v507_v29 = vrot.slane %v2087_v25, 1  ;;  %v2091_v32 = vld [vmem:[%s2642_s1 + $0xd0] ss:$8 sps:$4 sm:$0xff]   ;;  %v2110_v45 = vld [vmem:[%s2644_s3 + $0x148] sm:$0xff]   ;;  %v640_v13 = vlaneseq }
  0x12   : > { %v2096_v33 = vld [vmem:[%s2642_s1 + $0xe4] ss:$8 sps:$4 sm:$0xff]   ;;  %v2094_v34 = vld [vmem:[%s2642_s1 + $0xe0] ss:$8 sps:$4 sm:$0xff]   ;;  %v2099_v35 = vld [vmem:[%s2642_s1 + $0xf4] ss:$8 sps:$4 sm:$0xff]  }
  0x13   : > { %v2097_v36 = vld [vmem:[%s2642_s1 + $0xf0] ss:$8 sps:$4 sm:$0xff]   ;;  %v2102_v37 = vld [vmem:[%s2642_s1 + $0x104] ss:$8 sps:$4 sm:$0xff]   ;;  %v2100_v38 = vld [vmem:[%s2642_s1 + $0x100] ss:$8 sps:$4 sm:$0xff]  }
  0x14   : > { %352 = vmatpush1.bf16.msra.mxu0 %v2073_v15  ;;  %456 = vmatpush1.bf16.msra.mxu1 %v2074_v16  ;;  %v2105_v39 = vld [vmem:[%s2642_s1 + $0x114] ss:$8 sps:$4 sm:$0xff]   ;;  %v2103_v40 = vld [vmem:[%s2642_s1 + $0x110] ss:$8 sps:$4 sm:$0xff]   ;;  %v2108_v44 = vld [vmem:[%s2644_s3 + $0xc0] sm:$0xff]   ;;  %vm2197_vm1 = vmmov 0  }
  0x15   : > { %353 = vmatprep.subr.bf16.mxu0 %v2075_v17  ;;  %457 = vmatprep.subr.bf16.mxu1 %v2077_v18  ;;  %v2109_v46 = vld [vmem:[%s2644_s3 + $0x108] sm:$0xff]   ;;  %v2113_v48 = vld [vmem:[%s2644_s3 + $0x150] sm:$0xff]   ;;  %v2116_v51 = vld [vmem:[%s2644_s3 + $0x158] sm:$0xff]   ;;  %v641_v14 = vshrl.u32 %v640_v13, 7  ;;  %vm671_vm6 = vcmask 1043457   ;;  %vm693_vm8 = vcmask 1042432  }
  0x16   : > { %v2111_v47 = vld [vmem:[%s2644_s3 + $0xc8] sm:$0xff]   ;;  %v2112_v49 = vld [vmem:[%s2644_s3 + $0x110] sm:$0xff]   ;;  %v2115_v52 = vld [vmem:[%s2644_s3 + $0x118] sm:$0xff]   ;;  %vm672_vm7 = vsmask.f32 3334  ;;  %p248_p4 = scmp.lt.s32.totalorder %s2239_s22, 1 }
  0x17   : > { %v2114_v50 = vld [vmem:[%s2644_s3 + $0xd0] sm:$0xff]   ;;  %v2117_v53 = vld [vmem:[%s2644_s3 + $0xd8] sm:$0xff]   ;;  %v2119_v54 = vld [vmem:[%s2644_s3 + $0x160] sm:$0xff]   ;;  %v646_v15 = vand.u32 1, %v641_v14  ;;  %vm694_vm9 = vsmask.f32 2306 }
  0x18   : > { %354 = vmatpush1.bf16.msra.mxu0 %v2079_v19  ;;  %458 = vmatpush1.bf16.msra.mxu1 %v2080_v20  ;;  %v2118_v55 = vld [vmem:[%s2644_s3 + $0x120] sm:$0xff]   ;;  %v2121_v57 = vld [vmem:[%s2644_s3 + $0x128] sm:$0xff]   ;;  %v2124_v60 = vld [vmem:[%s2644_s3 + $0x130] sm:$0xff]   ;;  %s2651_s22 = smov (!%p248_p4, %s2239_s22), 1 }
  0x19   : > { %355 = vmatprep.subr.bf16.mxu0 %v2081_v21  ;;  %459 = vmatprep.subr.bf16.mxu1 %v2083_v22  ;;  %v2120_v56 = vld [vmem:[%s2644_s3 + $0xe0] sm:$0xff]   ;;  %v2122_v58 = vld [vmem:[%s2644_s3 + $0x168] sm:$0xff]   ;;  %v2125_v61 = vld [vmem:[%s2644_s3 + $0x170] sm:$0xff]   ;;  %vm654_vm2 = vcmp.ne.s32.totalorder %v646_v15, 1  ;;  %vm677_vm3 = vcmp.ne.s32.totalorder %v646_v15, 0  ;;  %s1635_s7 = sshll.u32 %s2651_s22, 1 }
  0x1a   : > { %v2123_v59 = vld [vmem:[%s2644_s3 + $0xe8] sm:$0xff]   ;;  %v2126_v62 = vld [vmem:[%s2644_s3 + $0xf0] sm:$0xff]   ;;  %v2127_v63 = vld [vmem:[%s2644_s3 + $0x138] sm:$0xff]   ;;  %s251_s10 = scalar_lea.vmem %s2647_s6, %s1635_s7 }
  0x1b   : > { %v2128_v0 = vld [vmem:[%s2644_s3 + $0x178] sm:$0xff]   ;;  %v1701_v17 = vld [vmem:[%s2643_s2] ss:$0 sm:$0xff]  ;;  %vm657_vm4 = vmpackc.low %vm654_vm2, %vm654_vm2 }
  0x1c   : > { %356 = vmatpush1.bf16.msra.mxu0 %v2085_v23  ;;  %460 = vmatpush1.bf16.msra.mxu1 %v2086_v24  ;;  %v2129_v1 = vld [vmem:[%s2644_s3 + $0xf8] sm:$0xff]   ;;  %vm680_vm5 = vmpackc.low %vm677_vm3, %vm677_vm3  ;;  %v2160_v14 = vld [vmem:[%s2644_s3 + $0x1c0] sm:$0xff]  }
  0x1d   : > { %571 = vmatprep.subr.bf16.mxu0 %v2090_v26  ;;  %1887 = vmatprep.subr.bf16.mxu1 %v2106_v41  ;;  %vm673_vm10 = vmand %vm671_vm6, %vm672_vm7  ;;  %v2158_v13 = vld [vmem:[%s2644_s3 + $0x38] sm:$0xff]  }
  0x1e   : > { %vm695_vm11 = vmand %vm693_vm8, %vm694_vm9 }
  0x1f   : > { %1661 = vmatmul.mubr.msk.bf16.vlgmr.msra.gmra.mrb[0].mxu0 %vm341_vm0, %v1636_v27  ;;  %1674 = vmatmul.mubr.msk.bf16.vlgmr.msra.gmra.mrb[0].mxu1 %vm341_vm0, %v253_v28 }
  0x20   : > { %572 = vmatpush1.bf16.msra.mxu0 %v2088_v30  ;;  %603 = vmatprep.mubr.bf16.mxu0 %v2195_v2  ;;  %v2133_v2 = vld [vmem:[%s2644_s3 + $0x40] sm:$0xff]  }
  0x21   : > { %573 = vmatprep.subr.bf16.mxu0 %v2093_v31  ;;  %1888 = vmatpush3.bf16.msra.mxu1 %v2108_v44 }
  0x22   : > { %1889 = vmatprep.subr.bf16.mxu1 %v2109_v46 }
  0x24   : > { %574 = vmatpush1.bf16.msra.mxu0 %v2091_v32 }
  0x25   : > { %575 = vmatprep.subr.bf16.mxu0 %v2096_v33  ;;  %1890 = vmatpush3.bf16.msra.mxu1 %v2111_v47 }
  0x26   : > { %1891 = vmatprep.subr.bf16.mxu1 %v2112_v49  ;;  %v2134_v49 = vld [vmem:[%s2644_s3 + $0x80] sm:$0xff]  }
  0x28   : > { %576 = vmatpush1.bf16.msra.mxu0 %v2094_v34 }
  0x29   : > { %577 = vmatprep.subr.bf16.mxu0 %v2099_v35  ;;  %1892 = vmatpush3.bf16.msra.mxu1 %v2114_v50 }
  0x2a   : > { %1893 = vmatprep.subr.bf16.mxu1 %v2115_v52 }
  0x2c   : > { %578 = vmatpush1.bf16.msra.mxu0 %v2097_v36 }
  0x2d   : > { %579 = vmatprep.subr.bf16.mxu0 %v2102_v37  ;;  %1894 = vmatpush3.bf16.msra.mxu1 %v2117_v53 }
  0x2e   : > { %1895 = vmatprep.subr.bf16.mxu1 %v2118_v55  ;;  %v2138_v55 = vld [vmem:[%s2644_s3 + $0x48] sm:$0xff]  }
  0x30   : > { %580 = vmatpush1.bf16.msra.mxu0 %v2100_v38  ;;  %v674_v38 = vld [vmem:[#allocation2] sm:$0xe] }
  0x31   : > { %581 = vmatprep.subr.bf16.mxu0 %v2105_v39  ;;  %1896 = vmatpush3.bf16.msra.mxu1 %v2120_v56  ;;  %v696_v39 = vld [vmem:[#allocation2 + $0x8] sm:$0x7] }
  0x32   : > { %1897 = vmatprep.subr.bf16.mxu1 %v2121_v57  ;;  %v2139_v57 = vld [vmem:[%s2644_s3 + $0x88] sm:$0xff]  }
  0x34   : > { %582 = vmatpush1.bf16.msra.mxu0 %v2103_v40 }
  0x35   : > { %1980 = vmatprep.subr.bf16.mxu0 %v2196_v43  ;;  %1898 = vmatpush3.bf16.msra.mxu1 %v2123_v59  ;;  %v2141_v59 = vld [vmem:[%s2644_s3 + $0x50] sm:$0xff]  }
  0x36   : > { %1899 = vmatprep.subr.bf16.mxu1 %v2124_v60  ;;  %v2142_v60 = vld [vmem:[%s2644_s3 + $0x90] sm:$0xff]  }
  0x37   : > { %1700 = vmatmul.mubr.msk.bf16.vlgmr.msra.gmra.mrb[4].mxu0 %vm341_vm0, %v507_v29 }
  0x38   : > { %1981 = vmatpush3.bf16.msra.mxu0 %v2107_v42  ;;  %1996 = vmatprep.mubr.msk.bf16.mxu0 %vm2197_vm1, %v2196_v43 }
  0x39   : > { %1982 = vmatprep.subr.bf16.mxu0 %v2196_v43  ;;  %1900 = vmatpush3.bf16.msra.mxu1 %v2126_v62  ;;  %v2144_v62 = vld [vmem:[%s2644_s3 + $0x58] sm:$0xff]  }
  0x3a   : > { %1901 = vmatprep.subr.bf16.mxu1 %v2127_v63  ;;  %v2145_v63 = vld [vmem:[%s2644_s3 + $0x98] sm:$0xff]  }
  0x3c   : > { %1983 = vmatpush3.bf16.msra.mxu0 %v2110_v45 }
  0x3d   : > { %1984 = vmatprep.subr.bf16.mxu0 %v2196_v43  ;;  %1902 = vmatpush3.bf16.msra.mxu1 %v2129_v1  ;;  %v2147_v1 = vld [vmem:[%s2644_s3 + $0x60] sm:$0xff]  }
  0x3e   : > { %1918 = vmatprep.subr.bf16.mxu1 %v2133_v2  ;;  %v2148_v2 = vld [vmem:[%s2644_s3 + $0xa0] sm:$0xff]  }
  0x40   : > { %1985 = vmatpush3.bf16.msra.mxu0 %v2113_v48 }
  0x41   : > { %1986 = vmatprep.subr.bf16.mxu0 %v2196_v43 }
  0x44   : > { %1987 = vmatpush3.bf16.msra.mxu0 %v2116_v51 }
  0x45   : > { %1988 = vmatprep.subr.bf16.mxu0 %v2196_v43 }
  0x48   : > { %1989 = vmatpush3.bf16.msra.mxu0 %v2119_v54  ;;  %v2135_v54 = vld [vmem:[%s2644_s3] sm:$0xff]  }
  0x49   : > { %1990 = vmatprep.subr.bf16.mxu0 %v2196_v43 }
  0x4c   : > { %1991 = vmatpush3.bf16.msra.mxu0 %v2122_v58  ;;  %v2140_v58 = vld [vmem:[%s2644_s3 + $0x8] sm:$0xff]  }
  0x4d   : > { %1992 = vmatprep.subr.bf16.mxu0 %v2196_v43 }
  0x50   : > { %1993 = vmatpush3.bf16.msra.mxu0 %v2125_v61  ;;  %v2143_v61 = vld [vmem:[%s2644_s3 + $0x10] sm:$0xff]  }
  0x51   : > { %1994 = vmatprep.subr.bf16.mxu0 %v2196_v43 }
  0x54   : > { %1995 = vmatpush3.bf16.msra.mxu0 %v2128_v0  ;;  %v2146_v0 = vld [vmem:[%s2644_s3 + $0x18] sm:$0xff]  }
  0x55   : > { %2000 = vmatprep.subr.bf16.mxu0 %v2196_v43 }
  0xf2   : > { %v379_v3 = vpop.f32.mrb[0].mxu0  ;;  %v483_v4 = vpop.f32.mrb[0].mxu1 }
  0xf3   : > { %v484_v5 = vadd.f32 %v483_v4, %v379_v3  ;;  %v381_v6 = vpop.f32.mrb[1].mxu0  ;;  %v485_v7 = vpop.f32.mrb[1].mxu1  ;;  %v2149_v3 = vld [vmem:[%s2644_s3 + $0x20] sm:$0xff]   ;;  %v2150_v4 = vld [vmem:[%s2644_s3 + $0x68] sm:$0xff]  }
  0xf4   : > { %v486_v8 = vadd.f32 %v485_v7, %v381_v6  ;;  %v383_v9 = vpop.f32.mrb[2].mxu0  ;;  %v487_v10 = vpop.f32.mrb[2].mxu1  ;;  %v2152_v6 = vld [vmem:[%s2644_s3 + $0x28] sm:$0xff]   ;;  %v2153_v7 = vld [vmem:[%s2644_s3 + $0x70] sm:$0xff]  }
  0xf5   : > { %v384_v11 = vpop.f32.mrb[3].mxu0  ;;  %v488_v12 = vpop.f32.mrb[3].mxu1  ;;  %v2155_v9 = vld [vmem:[%s2644_s3 + $0x30] sm:$0xff]   ;;  %v2156_v10 = vld [vmem:[%s2644_s3 + $0x78] sm:$0xff]  }
  0xf6   : > { %v2157_v11 = vld [vmem:[%s2644_s3 + $0xb8] sm:$0xff]  }
 0x10a   : > { %v605_v16 = vpop.f32.mrb[4].mxu0 }
 0x10b   : > { %v612_v18 = vadd.f32 %v605_v16, %v484_v5  ;;  %v607_v19 = vpop.f32.mrb[5].mxu0  ;;  %v2151_v5 = vld [vmem:[%s2644_s3 + $0xa8] sm:$0xff]   ;;  %v2161_v16 = vld [vmem:[%s2644_s3 + $0x200] sm:$0xff]  }
 0x10c   : > { %v2452_v20 = vadd.f32 %v607_v19, %v486_v8  ;;  %v609_v21 = vpop.f32.mrb[6].mxu0  ;;  %v2154_v8 = vld [vmem:[%s2644_s3 + $0xb0] sm:$0xff]  }
 0x10d   : > { %v621_v22 = vadd.f32 %v1701_v17, %v612_v18  ;;  %v610_v23 = vpop.f32.mrb[7].mxu0  ;;  %v2162_v18 = vld [vmem:[%s2644_s3 + $0x180] sm:$0xff]   ;;  %v2165_v21 = vld [vmem:[%s2644_s3 + $0x1c8] sm:$0xff]  }
 0x10e   : > { %v2166_v23 = vld [vmem:[%s2644_s3 + $0x208] sm:$0xff]  }
 0x10f   : > { %v622_v24 = vmax.f32 %v621_v22, 0.0 }
 0x111   : > { %v623_v25 = vpack.c.bf16 %v622_v24, %v622_v24  ;;  %v2167_v24 = vld [vmem:[%s2644_s3 + $0x188] sm:$0xff]  }
 0x113   : > { %v637_v26 = vrot.slane %v623_v25, 7  ;;  %v658_v27 = vsel %vm657_vm4, %v623_v25, 0  ;;  %v681_v28 = vsel %vm680_vm5, %v623_v25, 0  ;;  %v2168_v25 = vld [vmem:[%s2644_s3 + $0x1d0] sm:$0xff]  }
 0x114   : > { %v1704_v29 = vcombine.low %v658_v27, %v658_v27  ;;  %v1705_v30 = vcombine.low %v681_v28, %v681_v28  ;;  %v2170_v27 = vld [vmem:[%s2644_s3 + $0x190] sm:$0xff]   ;;  %v2171_v28 = vld [vmem:[%s2644_s3 + $0x1d8] sm:$0xff]  }
 0x115   : > { %639 = vst [vmem:[#allocation2 + $0x4] sm:$0x6] %v637_v26  ;;  %v2169_v26 = vld [vmem:[%s2644_s3 + $0x210] sm:$0xff]  }
 0x116   : > { %v663_v31 = vshrl.u32 %v1704_v29, 16  ;;  %v666_v32 = vshll.u32 %v1704_v29, 16  ;;  %v686_v33 = vshrl.u32 %v1705_v30, 16  ;;  %v689_v37 = vshll.u32 %v1705_v30, 16  ;;  %v2172_v29 = vld [vmem:[%s2644_s3 + $0x218] sm:$0xff]  }
 0x117   : > { %v2173_v30 = vld [vmem:[%s2644_s3 + $0x198] sm:$0xff]  }
 0x118   : > { %v665_v34 = vrot.slane %v663_v31, 6  ;;  %v668_v35 = vrot.slane %v666_v32, 7  ;;  %v688_v36 = vrot.slane %v686_v33, 7  ;;  %v2174_v31 = vld [vmem:[%s2644_s3 + $0x1e0] sm:$0xff]  }
 0x119   : > { %v2175_v32 = vld [vmem:[%s2644_s3 + $0x220] sm:$0xff]  }
 0x11a   : > { %v669_v40 = vor.u32 %v668_v35, %v665_v34  ;;  %v691_v41 = vor.u32 %v689_v37, %v688_v36  ;;  %v2176_v33 = vld [vmem:[%s2644_s3 + $0x1a0] sm:$0xff]   ;;  %v2177_v34 = vld [vmem:[%s2644_s3 + $0x1e8] sm:$0xff]   ;;  %v2180_v37 = vld [vmem:[%s2644_s3 + $0x1f0] sm:$0xff]  }
 0x11b   : > { %v2178_v35 = vld [vmem:[%s2644_s3 + $0x228] sm:$0xff]  }
 0x11c   : > { %v675_v42 = vsel %vm673_vm10, %v669_v40, %v674_v38  ;;  %v697_v44 = vsel %vm695_vm11, %v691_v41, %v696_v39  ;;  %v2179_v36 = vld [vmem:[%s2644_s3 + $0x1a8] sm:$0xff]   ;;  %v2181_v38 = vld [vmem:[%s2644_s3 + $0x230] sm:$0xff]   ;;  %v2183_v40 = vld [vmem:[%s2644_s3 + $0x1f8] sm:$0xff]  }
 0x11d   : > { %676 = vst [vmem:[#allocation2] sm:$0xe] %v675_v42  ;;  %698 = vst [vmem:[#allocation2 + $0x8] sm:$0x7] %v697_v44  ;;  %v2182_v39 = vld [vmem:[%s2644_s3 + $0x1b0] sm:$0xff]   ;;  %v2184_v41 = vld [vmem:[%s2644_s3 + $0x238] sm:$0xff]  }
 0x11e   : > { %v2185_v42 = vld [vmem:[%s2644_s3 + $0x1b8] sm:$0xff]  }
 0x124   : > { %v749_v45 = vld [vmem:[#allocation2] sm:$0x66]  ;;  %v2132_v48 = vld [vmem:[#allocation2 + $0x8] ss:$0 sps:$4 sm:$0x66]  }
 0x125   : > { %v1754_v46 = vcombine.low %v749_v45, %v749_v45  ;;  %v1755_v47 = vcombine.high %v749_v45, %v749_v45  ;;  %v2457_v50 = vld [vmem:[#allocation2] sm:$0x33]  ;;  %v810_v53 = vrot.slane %v2132_v48, 1  ;;  %v2532_v12 = vld [vmem:[#allocation2] sm:$0xcc] }
 0x126   : > { %v1782_v56 = vcombine.high %v2457_v50, %v2457_v50  ;;  %v1857_v15 = vcombine.high %v2532_v12, %v2532_v12  ;;  %v2159_v17 = vld [vmem:[#allocation2 + $0x8] ss:$0 sps:$4 sm:$0x33]   ;;  %v1781_v19 = vcombine.low %v2457_v50, %v2457_v50  ;;  %v1856_v45 = vcombine.low %v2532_v12, %v2532_v12 }
 0x127   : > { %v808_v51 = vrot.slane %v1754_v46, 1  ;;  %v809_v52 = vrot.slane %v1755_v47, 1  ;;  %1997 = vmatmul.mubr.bf16.vlgmr.msra.gmra.mrb[8].mxu0 %v810_v53  ;;  %v2186_v44 = vld [vmem:[#allocation2 + $0x8] ss:$0 sps:$4 sm:$0xcc]  }
 0x128   : > { %2001 = vmatpush3.bf16.msra.mxu0 %v2134_v49  ;;  %2016 = vmatprep.mubr.msk.bf16.mxu0 %vm2197_vm1, %v2196_v43  ;;  %v1333_v22 = vrot.slane %v1857_v15, 2  ;;  %v1334_v46 = vrot.slane %v2186_v44, 2  ;;  %v1332_v47 = vrot.slane %v1856_v45, 2  ;;  %v1883_v15 = vld [vmem:[%s2645_s4] ss:$0 sm:$0xff] }
 0x129   : > { %990 = vmatprep.mubr.bf16.mxu1 %v809_v52  ;;  %2002 = vmatprep.subr.bf16.mxu0 %v2196_v43 }
 0x12a   : > { %991 = vmatmul.mubr.bf16.vlgmr.msra.gmra.mrb[4].mxu1 %v808_v51 }
 0x12b   : > { %1919 = vmatpush3.bf16.msra.mxu1 %v2135_v54  ;;  %1225 = vmatprep.mubr.bf16.mxu1 %v1782_v56 }
 0x12c   : > { %1920 = vmatprep.subr.bf16.mxu1 %v2138_v55  ;;  %2003 = vmatpush3.bf16.msra.mxu0 %v2139_v57 }
 0x12d   : > { %2004 = vmatprep.subr.bf16.mxu0 %v2196_v43 }
 0x12f   : > { %1921 = vmatpush3.bf16.msra.mxu1 %v2140_v58 }
 0x130   : > { %1922 = vmatprep.subr.bf16.mxu1 %v2141_v59  ;;  %2005 = vmatpush3.bf16.msra.mxu0 %v2142_v60 }
 0x131   : > { %2006 = vmatprep.subr.bf16.mxu0 %v2196_v43 }
 0x133   : > { %1923 = vmatpush3.bf16.msra.mxu1 %v2143_v61 }
 0x134   : > { %1924 = vmatprep.subr.bf16.mxu1 %v2144_v62  ;;  %2007 = vmatpush3.bf16.msra.mxu0 %v2145_v63 }
 0x135   : > { %2008 = vmatprep.subr.bf16.mxu0 %v2196_v43 }
 0x137   : > { %1925 = vmatpush3.bf16.msra.mxu1 %v2146_v0 }
 0x138   : > { %1926 = vmatprep.subr.bf16.mxu1 %v2147_v1  ;;  %2009 = vmatpush3.bf16.msra.mxu0 %v2148_v2 }
 0x139   : > { %2010 = vmatprep.subr.bf16.mxu0 %v2196_v43 }
 0x13b   : > { %1927 = vmatpush3.bf16.msra.mxu1 %v2149_v3 }
 0x13c   : > { %1928 = vmatprep.subr.bf16.mxu1 %v2150_v4  ;;  %2011 = vmatpush3.bf16.msra.mxu0 %v2151_v5 }
 0x13d   : > { %2012 = vmatprep.subr.bf16.mxu0 %v2196_v43 }
 0x13f   : > { %1929 = vmatpush3.bf16.msra.mxu1 %v2152_v6 }
 0x140   : > { %1930 = vmatprep.subr.bf16.mxu1 %v2153_v7  ;;  %2013 = vmatpush3.bf16.msra.mxu0 %v2154_v8 }
 0x141   : > { %2014 = vmatprep.subr.bf16.mxu0 %v2196_v43 }
 0x143   : > { %1931 = vmatpush3.bf16.msra.mxu1 %v2155_v9 }
 0x144   : > { %1932 = vmatprep.subr.bf16.mxu1 %v2156_v10  ;;  %2015 = vmatpush3.bf16.msra.mxu0 %v2157_v11 }
 0x145   : > { %2020 = vmatprep.subr.bf16.mxu0 %v2196_v43 }
 0x147   : > { %1933 = vmatpush3.bf16.msra.mxu1 %v2158_v13  ;;  %2017 = vmatmul.mubr.bf16.vlgmr.msra.gmra.mrb[12].mxu0 %v2159_v17 }
 0x148   : > { %1949 = vmatprep.subr.bf16.mxu1 %v2160_v14  ;;  %2021 = vmatpush3.bf16.msra.mxu0 %v2161_v16  ;;  %v1702_v14 = vld [vmem:[%s2646_s5] ss:$0 sm:$0xff] }
 0x149   : > { %2022 = vmatprep.subr.bf16.mxu0 %v2196_v43  ;;  %2036 = vmatprep.mubr.msk.bf16.mxu0 %vm2197_vm1, %v2196_v43  ;;  %v631_v17 = vadd.f32 %v1702_v14, %v2452_v20 }
 0x14a   : > { %1226 = vmatmul.mubr.bf16.vlgmr.msra.gmra.mrb[8].mxu1 %v1781_v19 }
 0x14b   : > { %1950 = vmatpush3.bf16.msra.mxu1 %v2162_v18  ;;  %1514 = vmatprep.mubr.bf16.mxu1 %v1333_v22 }
 0x14c   : > { %1951 = vmatprep.subr.bf16.mxu1 %v2165_v21  ;;  %2023 = vmatpush3.bf16.msra.mxu0 %v2166_v23 }
 0x14d   : > { %2024 = vmatprep.subr.bf16.mxu0 %v2196_v43 }
 0x14f   : > { %1952 = vmatpush3.bf16.msra.mxu1 %v2167_v24 }
 0x150   : > { %1953 = vmatprep.subr.bf16.mxu1 %v2168_v25  ;;  %2025 = vmatpush3.bf16.msra.mxu0 %v2169_v26 }
 0x151   : > { %2026 = vmatprep.subr.bf16.mxu0 %v2196_v43 }
 0x153   : > { %1954 = vmatpush3.bf16.msra.mxu1 %v2170_v27 }
 0x154   : > { %1955 = vmatprep.subr.bf16.mxu1 %v2171_v28  ;;  %2027 = vmatpush3.bf16.msra.mxu0 %v2172_v29 }
 0x155   : > { %2028 = vmatprep.subr.bf16.mxu0 %v2196_v43 }
 0x157   : > { %1956 = vmatpush3.bf16.msra.mxu1 %v2173_v30 }
 0x158   : > { %1957 = vmatprep.subr.bf16.mxu1 %v2174_v31  ;;  %2029 = vmatpush3.bf16.msra.mxu0 %v2175_v32 }
 0x159   : > { %2030 = vmatprep.subr.bf16.mxu0 %v2196_v43 }
 0x15b   : > { %1958 = vmatpush3.bf16.msra.mxu1 %v2176_v33 }
 0x15c   : > { %1959 = vmatprep.subr.bf16.mxu1 %v2177_v34  ;;  %2031 = vmatpush3.bf16.msra.mxu0 %v2178_v35 }
 0x15d   : > { %2032 = vmatprep.subr.bf16.mxu0 %v2196_v43 }
 0x15f   : > { %1960 = vmatpush3.bf16.msra.mxu1 %v2179_v36 }
 0x160   : > { %1961 = vmatprep.subr.bf16.mxu1 %v2180_v37  ;;  %2033 = vmatpush3.bf16.msra.mxu0 %v2181_v38 }
 0x161   : > { %2034 = vmatprep.subr.bf16.mxu0 %v2196_v43 }
 0x163   : > { %1962 = vmatpush3.bf16.msra.mxu1 %v2182_v39 }
 0x164   : > { %1963 = vmatprep.subr.bf16.mxu1 %v2183_v40  ;;  %2035 = vmatpush3.bf16.msra.mxu0 %v2184_v41 }
 0x167   : > { %1964 = vmatpush3.bf16.msra.mxu1 %v2185_v42  ;;  %2037 = vmatmul.mubr.bf16.vlgmr.msra.gmra.mrb[16].mxu0 %v1334_v46 }
 0x16a   : > { %1515 = vmatmul.mubr.bf16.vlgmr.msra.gmra.mrb[12].mxu1 %v1332_v47 }
 0x1fa   : > { %v1032_v48 = vpop.f32.mrb[8].mxu0 }
 0x1fb   : > { %v1998_v50 = vpop.f32.mrb[9].mxu0 }
 0x1fc   : > { %v1035_v43 = vpop.f32.mrb[10].mxu0 }
 0x1fd   : > { %v1903_v49 = vpop.f32.mrb[4].mxu1  ;;  %v1999_v54 = vpop.f32.mrb[11].mxu0 }
 0x1fe   : > { %v1904_v51 = vpop.f32.mrb[5].mxu1 }
 0x1ff   : > { %v1905_v52 = vadd.f32 %v1904_v51, %v1903_v49  ;;  %v1906_v53 = vpop.f32.mrb[6].mxu1 }
 0x200   : > { %v1907_v55 = vpop.f32.mrb[7].mxu1 }
 0x201   : > { %v1033_v56 = vadd.f32 %v1905_v52, %v1032_v48 }
 0x21a   : > { %v1267_v57 = vpop.f32.mrb[12].mxu0 }
 0x21b   : > { %v2018_v59 = vpop.f32.mrb[13].mxu0 }
 0x21c   : > { %v1270_v61 = vpop.f32.mrb[14].mxu0 }
 0x21d   : > { %v1934_v58 = vpop.f32.mrb[8].mxu1  ;;  %v2019_v0 = vpop.f32.mrb[15].mxu0 }
 0x21e   : > { %v1935_v60 = vpop.f32.mrb[9].mxu1 }
 0x21f   : > { %v1936_v62 = vadd.f32 %v1935_v60, %v1934_v58  ;;  %v1937_v63 = vpop.f32.mrb[10].mxu1 }
 0x220   : > { %v1938_v1 = vpop.f32.mrb[11].mxu1 }
 0x221   : > { %v1228_v2 = vadd.f32 %v1936_v62, %v1033_v56 }
 0x223   : > { %v1268_v3 = vadd.f32 %v1267_v57, %v1228_v2 }
 0x23a   : > { %v1556_v4 = vpop.f32.mrb[16].mxu0 }
 0x23b   : > { %v2038_v6 = vpop.f32.mrb[17].mxu0 }
 0x23c   : > { %v1559_v8 = vpop.f32.mrb[18].mxu0 }
 0x23d   : > { %v1965_v5 = vpop.f32.mrb[12].mxu1  ;;  %v2039_v11 = vpop.f32.mrb[19].mxu0 }
 0x23e   : > { %v1966_v7 = vpop.f32.mrb[13].mxu1 }
 0x23f   : > { %v1967_v9 = vadd.f32 %v1966_v7, %v1965_v5  ;;  %v1968_v10 = vpop.f32.mrb[14].mxu1 }
 0x240   : > { %v1969_v12 = vpop.f32.mrb[15].mxu1 }
 0x241   : > { %v1557_v13 = vadd.f32 %v1967_v9, %v1556_v4 }
 0x243   : > { %v1562_v16 = vadd.f32 %v1557_v13, %v1268_v3 }
 0x245   : > { %v1570_v18 = vadd.f32 %v1883_v15, %v1562_v16 }
 0x247   : > { %v1571_v19 = vadd.f32 %v1570_v18, %v631_v17 }
 0x249   : > { %v1572_v21 = vmax.f32 %v1571_v19, 0.0 }
 0x24b   : > { %v1573_v22 = vpack.c.bf16 %v1572_v21, %v1572_v21 }
 0x24d   : > { %1574 = vst [vmem:[%s251_s10] sm:$0x3] %v1573_v22 }
 0x24e PF: > { %s16_s21 = sadd.s32 1, %s2193_s21  }
 0x24f   : > { %p13_p5 = scmp.ge.s32.totalorder %s16_s21, 4  }
 0x251   :  { %15 = sbr.rel (!%p13_p5) target bundleno = 1 (0x1), region = 79 }

// kernel: encode_uv.17
= control target key start
LH: loop header
LB: loop body
LE: loop exit
PB: predicated region body
PF: predicated region fallthrough
CT: control target
= control target key end

     0   :  { %s2355_s21 = smov 0   ;;  %s2796_s0 = inlined_call_operand.vmem [shape: bf16[2,8,192], index: 0, kind: input, shape index: {}]   ;;  %s2797_s1 = inlined_call_operand.vmem [shape: bf16[3,192,128], index: 1, kind: input, shape index: {}]   ;;  %s2798_s2 = inlined_call_operand.vmem [shape: f32[1,128], index: 2, kind: input, shape index: {}]   ;;  %s2799_s3 = inlined_call_operand.vmem [shape: bf16[3,384,128], index: 3, kind: input, shape index: {}]   ;;  %s2800_s4 = inlined_call_operand.vmem [shape: f32[1,128], index: 4, kind: input, shape index: {}]   ;;  %s2801_s5 = inlined_call_operand.vmem [shape: bf16[2,4,128], index: 5, kind: input, shape index: {}]   ;;  %s2802_s6 = inlined_call_operand.vmem [shape: bf16[2,4,128], index: 6, kind: output, shape index: {}]  }
   0x1 LB: > { %s1734_s22 = sadd.s32 4294967295, %s2315_s21   ;;  %p1738_p0 = scmp.ge.s32.totalorder %s2315_s21, 1  ;;  %s2315_s21 = sphi %s2355_s21, %s16_s21  }
   0x2   : > { %p221_p1 = scmp.lt.s32.totalorder %s2315_s21, 3 }
   0x4   : > { %p222_p2 = pnand %p1738_p0, %p221_p1 }
   0x5   : > { %v2186_v0 = vld [vmem:[%s2797_s1 + $0x60] sm:$0xff] (!%p222_p2)   ;;  %v2317_v1 = vmov (!%p222_p2), 0   ;;  %v2188_v3 = vld [vmem:[%s2797_s1 + $0x68] sm:$0xff] (!%p222_p2)   ;;  %v2190_v5 = vld [vmem:[%s2797_s1 + $0x70] sm:$0xff] (!%p222_p2)   ;;  %p254_p3 = scmp.lt.s32.totalorder (!%p222_p2), %s1734_s22, 1  ;;  %vm399_vm0 = vcmask (!%p222_p2), 523264  }
   0x6   : > { %225 = sbr.rel (%p222_p2) target bundleno = 667 (0x29b), region = 44  ;;  %403 = vmatprep.subr.bf16.mxu0 (!%p222_p2), %v2317_v1  ;;  %726 = vst [vmem:[#allocation2] sm:$0xff] (!%p222_p2), %v2317_v1  ;;  %727 = vst [vmem:[#allocation2 + $0x8] sm:$0xf] (!%p222_p2), %v2317_v1  ;;  %524 = vmatprep.subr.bf16.mxu1 (!%p222_p2), %v2317_v1  ;;  %v2187_v2 = vld [vmem:[%s2797_s1] sm:$0xff] (!%p222_p2)   ;;  %v2189_v4 = vld [vmem:[%s2797_s1 + $0x8] sm:$0xff] (!%p222_p2)  }
   0x7   : > { %404 = vmatpush1.bf16.msra.mxu0 (!%p222_p2), %v2186_v0  ;;  %525 = vmatpush1.bf16.msra.mxu1 (!%p222_p2), %v2187_v2  ;;  %v2191_v6 = vld [vmem:[%s2797_s1 + $0x10] sm:$0xff] (!%p222_p2)   ;;  %v2192_v7 = vld [vmem:[%s2797_s1 + $0x78] sm:$0xff] (!%p222_p2)   ;;  %v2194_v9 = vld [vmem:[%s2797_s1 + $0x80] sm:$0xff] (!%p222_p2)   ;;  %vm765_vm5 = vcmask (!%p222_p2), 1043457   ;;  %vm766_vm6 = vsmask.f32 (!%p222_p2), 3334 }
   0x8   : > { %405 = vmatprep.subr.bf16.mxu0 (!%p222_p2), %v2317_v1  ;;  %526 = vmatprep.subr.bf16.mxu1 (!%p222_p2), %v2317_v1  ;;  %v2193_v8 = vld [vmem:[%s2797_s1 + $0x18] sm:$0xff] (!%p222_p2)   ;;  %v2195_v10 = vld [vmem:[%s2797_s1 + $0x20] sm:$0xff] (!%p222_p2)   ;;  %v2196_v11 = vld [vmem:[%s2797_s1 + $0x88] sm:$0xff] (!%p222_p2)   ;;  %vm787_vm7 = vcmask (!%p222_p2), 1042432   ;;  %vm788_vm8 = vsmask.f32 (!%p222_p2), 2306 }
   0x9   : > { %v2197_v12 = vld [vmem:[%s2797_s1 + $0x28] sm:$0xff] (!%p222_p2)   ;;  %v2198_v13 = vld [vmem:[%s2797_s1 + $0x90] sm:$0xff] (!%p222_p2)   ;;  %v2200_v19 = vld [vmem:[%s2797_s1 + $0x98] sm:$0xff] (!%p222_p2)   ;;  %vm2319_vm11 = vmmov (!%p222_p2), 0  }
   0xa   : > { %v2199_v14 = vld [vmem:[%s2797_s1 + $0x30] sm:$0xff] (!%p222_p2)   ;;  %v2201_v20 = vld [vmem:[%s2797_s1 + $0x38] sm:$0xff] (!%p222_p2)   ;;  %v2202_v22 = vld [vmem:[%s2797_s1 + $0xa0] sm:$0xff] (!%p222_p2)  }
   0xb   : > { %406 = vmatpush1.bf16.msra.mxu0 (!%p222_p2), %v2188_v3  ;;  %527 = vmatpush1.bf16.msra.mxu1 (!%p222_p2), %v2189_v4  ;;  %v2203_v24 = vld [vmem:[%s2797_s1 + $0x40] sm:$0xff] (!%p222_p2)   ;;  %v2204_v27 = vld [vmem:[%s2797_s1 + $0xa8] sm:$0xff] (!%p222_p2)   ;;  %v2206_v29 = vld [vmem:[%s2797_s1 + $0xb0] sm:$0xff] (!%p222_p2)  }
   0xc   : > { %407 = vmatprep.subr.bf16.mxu0 (!%p222_p2), %v2317_v1  ;;  %528 = vmatprep.subr.bf16.mxu1 (!%p222_p2), %v2317_v1  ;;  %v2205_v28 = vld [vmem:[%s2797_s1 + $0x48] sm:$0xff] (!%p222_p2)   ;;  %v2207_v30 = vld [vmem:[%s2797_s1 + $0x50] sm:$0xff] (!%p222_p2)   ;;  %v2208_v33 = vld [vmem:[%s2797_s1 + $0xb8] sm:$0xff] (!%p222_p2)  }
   0xd   : > { %s2804_s22 = smov (!%p254_p3, %s1734_s22), 1  ;;  %v2209_v34 = vld [vmem:[%s2797_s1 + $0x58] sm:$0xff]   ;;  %v2214_v35 = vld [vmem:[%s2797_s1 + $0xc0] sm:$0xff]   ;;  %v2215_v37 = vld [vmem:[%s2797_s1 + $0xc8] sm:$0xff]  }
   0xe   : > { %s2020_s23 = sshll.u32 %s2804_s22, 3  ;;  %v2216_v38 = vld [vmem:[%s2797_s1 + $0xd0] sm:$0xff]   ;;  %v2217_v39 = vld [vmem:[%s2797_s1 + $0xd8] sm:$0xff]   ;;  %v2218_v40 = vld [vmem:[%s2797_s1 + $0xe0] sm:$0xff]   ;;  %s1741_s25 = sshll.u32 %s2804_s22, 1 }
   0xf   : > { %408 = vmatpush1.bf16.msra.mxu0 %v2190_v5  ;;  %529 = vmatpush1.bf16.msra.mxu1 %v2191_v6  ;;  %s258_s28 = scalar_lea.vmem %s2796_s0, %s2020_s23  ;;  %v2219_v41 = vld [vmem:[%s2797_s1 + $0xe8] sm:$0xff]   ;;  %v2220_v42 = vld [vmem:[%s2797_s1 + $0xf0] sm:$0xff]   ;;  %v2221_v43 = vld [vmem:[%s2797_s1 + $0xf8] sm:$0xff]   ;;  %s266_s8 = scalar_lea.vmem %s2802_s6, %s1741_s25 }
  0x10   : > { %409 = vmatprep.subr.bf16.mxu0 %v2317_v1  ;;  %530 = vmatprep.subr.bf16.mxu1 %v2317_v1  ;;  %v293_v15 = vld [vmem:[%s258_s28] sm:$0x66]  ;;  %v2223_v45 = vld [vmem:[%s2797_s1 + $0x108] sm:$0xff]   ;;  %v2224_v46 = vld [vmem:[%s2797_s1 + $0x110] sm:$0xff]  }
  0x11   : > { %v268_v16 = vld [vmem:[%s258_s28] sm:$0x33]  ;;  %v1768_v17 = vcombine.high %v293_v15, %v293_v15  ;;  %v2444_v23 = vld [vmem:[%s258_s28] sm:$0xcc]  ;;  %v1767_v25 = vcombine.low %v293_v15, %v293_v15  ;;  %v2225_v48 = vld [vmem:[%s2797_s1 + $0x118] sm:$0xff]   ;;  %s262_s28 = scalar_lea.vmem %s2801_s5, %s1741_s25 }
  0x12   : > { %v1783_v18 = vcombine.high %v268_v16, %v268_v16  ;;  %v1822_v26 = vcombine.high %v2444_v23, %v2444_v23  ;;  %v1782_v36 = vcombine.low %v268_v16, %v268_v16  ;;  %v2222_v44 = vld [vmem:[%s2797_s1 + $0x100] sm:$0xff]   ;;  %v1821_v47 = vcombine.low %v2444_v23, %v2444_v23  ;;  %v2232_v54 = vld [vmem:[%s2799_s3 + $0x48] sm:$0xff]   ;;  %v2236_v58 = vld [vmem:[%s2799_s3 + $0x50] sm:$0xff]  }
  0x13   : > { %410 = vmatpush1.bf16.msra.mxu0 %v2192_v7  ;;  %531 = vmatpush1.bf16.msra.mxu1 %v2193_v8  ;;  %v325_v21 = vrot.slane %v1768_v17, 1  ;;  %v324_v31 = vrot.slane %v1767_v25, 1  ;;  %v2228_v50 = vld [vmem:[%s2799_s3 + $0x40] sm:$0xff]   ;;  %v2233_v55 = vld [vmem:[%s2799_s3 + $0x8] sm:$0xff]   ;;  %v2237_v59 = vld [vmem:[%s2799_s3 + $0x10] sm:$0xff]  }
  0x14   : > { %411 = vmatprep.subr.bf16.mxu0 %v2317_v1  ;;  %532 = vmatprep.subr.bf16.mxu1 %v2317_v1  ;;  %v596_v32 = vrot.slane %v1822_v26, 2  ;;  %v595_v49 = vrot.slane %v1821_v47, 2  ;;  %v2229_v51 = vld [vmem:[%s2799_s3] sm:$0xff]   ;;  %v2234_v56 = vld [vmem:[%s2799_s3 + $0x108] sm:$0xff]   ;;  %v2238_v60 = vld [vmem:[%s2799_s3 + $0x110] sm:$0xff]  }
  0x15   : > { %1796 = vmatprep.mubr.msk.bf16.mxu1 %vm399_vm0, %v1783_v18  ;;  %1781 = vmatprep.mubr.msk.bf16.mxu0 %vm399_vm0, %v325_v21  ;;  %v2230_v52 = vld [vmem:[%s2799_s3 + $0x100] sm:$0xff]   ;;  %v2235_v57 = vld [vmem:[%s2799_s3 + $0xc8] sm:$0xff]   ;;  %v2239_v61 = vld [vmem:[%s2799_s3 + $0xd0] sm:$0xff]  }
  0x16   : > { %v2231_v53 = vld [vmem:[%s2799_s3 + $0xc0] sm:$0xff]   ;;  %v2240_v62 = vld [vmem:[%s2799_s3 + $0x58] sm:$0xff]   ;;  %v2248_v6 = vld [vmem:[%s2799_s3 + $0x68] sm:$0xff]  }
  0x17   : > { %412 = vmatpush1.bf16.msra.mxu0 %v2194_v9  ;;  %533 = vmatpush1.bf16.msra.mxu1 %v2195_v10  ;;  %v2241_v63 = vld [vmem:[%s2799_s3 + $0x18] sm:$0xff]   ;;  %v2244_v2 = vld [vmem:[%s2799_s3 + $0x60] sm:$0xff]   ;;  %v2249_v7 = vld [vmem:[%s2799_s3 + $0x28] sm:$0xff]  }
  0x18   : > { %413 = vmatprep.subr.bf16.mxu0 %v2317_v1  ;;  %534 = vmatprep.subr.bf16.mxu1 %v2317_v1  ;;  %v2242_v0 = vld [vmem:[%s2799_s3 + $0x118] sm:$0xff]   ;;  %v2245_v3 = vld [vmem:[%s2799_s3 + $0x20] sm:$0xff]   ;;  %v2250_v8 = vld [vmem:[%s2799_s3 + $0x128] sm:$0xff]  }
  0x19   : > { %v2246_v4 = vld [vmem:[%s2799_s3 + $0x120] sm:$0xff]   ;;  %v2251_v9 = vld [vmem:[%s2799_s3 + $0xe8] sm:$0xff]   ;;  %v2252_v10 = vld [vmem:[%s2799_s3 + $0x70] sm:$0xff]  }
  0x1a   : > { %v2247_v5 = vld [vmem:[%s2799_s3 + $0xe0] sm:$0xff]   ;;  %v2258_v15 = vld [vmem:[%s2799_s3 + $0x138] sm:$0xff]   ;;  %vm767_vm9 = vmand %vm765_vm5, %vm766_vm6 }
  0x1b   : > { %414 = vmatpush1.bf16.msra.mxu0 %v2196_v11  ;;  %535 = vmatpush1.bf16.msra.mxu1 %v2197_v12  ;;  %v2253_v11 = vld [vmem:[%s2799_s3 + $0x30] sm:$0xff]   ;;  %v2257_v16 = vld [vmem:[%s2799_s3 + $0x38] sm:$0xff]   ;;  %v2262_v18 = vld [vmem:[%s2799_s3 + $0x1c0] sm:$0xff]  }
  0x1c   : > { %415 = vmatprep.subr.bf16.mxu0 %v2317_v1  ;;  %536 = vmatprep.subr.bf16.mxu1 %v2317_v1  ;;  %v2254_v12 = vld [vmem:[%s2799_s3 + $0x130] sm:$0xff]   ;;  %v2259_v17 = vld [vmem:[%s2799_s3 + $0xf8] sm:$0xff]   ;;  %vm789_vm10 = vmand %vm787_vm7, %vm788_vm8 }
  0x1f   : > { %416 = vmatpush1.bf16.msra.mxu0 %v2198_v13  ;;  %537 = vmatpush1.bf16.msra.mxu1 %v2199_v14  ;;  %v2256_v13 = vld [vmem:[%s2799_s3 + $0x78] sm:$0xff]   ;;  %v2255_v14 = vld [vmem:[%s2799_s3 + $0xf0] sm:$0xff]  }
  0x20   : > { %417 = vmatprep.subr.bf16.mxu0 %v2317_v1  ;;  %538 = vmatprep.subr.bf16.mxu1 %v2317_v1 }
  0x23   : > { %418 = vmatpush1.bf16.msra.mxu0 %v2200_v19  ;;  %539 = vmatpush1.bf16.msra.mxu1 %v2201_v20  ;;  %v2318_v19 = vmov 0.0  }
  0x24   : > { %419 = vmatprep.subr.bf16.mxu0 %v2317_v1  ;;  %540 = vmatprep.subr.bf16.mxu1 %v2317_v1 }
  0x27   : > { %420 = vmatpush1.bf16.msra.mxu0 %v2202_v22  ;;  %541 = vmatpush1.bf16.msra.mxu1 %v2203_v24 }
  0x28   : > { %421 = vmatprep.subr.bf16.mxu0 %v2317_v1  ;;  %542 = vmatprep.subr.bf16.mxu1 %v2317_v1 }
  0x2b   : > { %422 = vmatpush1.bf16.msra.mxu0 %v2204_v27  ;;  %543 = vmatpush1.bf16.msra.mxu1 %v2205_v28 }
  0x2c   : > { %423 = vmatprep.subr.bf16.mxu0 %v2317_v1  ;;  %544 = vmatprep.subr.bf16.mxu1 %v2317_v1 }
  0x2f   : > { %424 = vmatpush1.bf16.msra.mxu0 %v2206_v29  ;;  %545 = vmatpush1.bf16.msra.mxu1 %v2207_v30  ;;  %v734_v29 = vlaneseq }
  0x30   : > { %425 = vmatprep.subr.bf16.mxu0 %v2317_v1  ;;  %546 = vmatprep.subr.bf16.mxu1 %v2317_v1 }
  0x31   : > { %v735_v30 = vshrl.u32 %v734_v29, 7 }
  0x33   : > { %426 = vmatpush1.bf16.msra.mxu0 %v2208_v33  ;;  %547 = vmatpush1.bf16.msra.mxu1 %v2209_v34  ;;  %v1836_v33 = vld [vmem:[%s2798_s2] ss:$0 sm:$0xff] }
  0x34   : > { %673 = vmatprep.subr.bf16.mxu0 %v2317_v1  ;;  %2022 = vmatprep.subr.bf16.mxu1 %v2230_v52 }
  0x36   : > { %436 = vmatmul.mubr.bf16.vlgmr.msra.gmra.mrb[0].mxu0 %v324_v31  ;;  %557 = vmatmul.mubr.bf16.vlgmr.msra.gmra.mrb[0].mxu1 %v1782_v36  ;;  %v740_v31 = vand.u32 1, %v735_v30  ;;  %v2289_v30 = vld [vmem:[%s2799_s3 + $0x178] sm:$0xff]  }
  0x37   : > { %674 = vmatpush1.bf16.msra.mxu0 %v2214_v35  ;;  %1835 = vmatprep.mubr.msk.bf16.mxu0 %vm399_vm0, %v596_v32 }
  0x38   : > { %675 = vmatprep.subr.bf16.mxu0 %v2317_v1  ;;  %2023 = vmatpush3.bf16.msra.mxu1 %v2231_v53  ;;  %vm748_vm1 = vcmp.ne.s32.totalorder %v740_v31, 1  ;;  %vm771_vm2 = vcmp.ne.s32.totalorder %v740_v31, 0  ;;  %v768_v53 = vld [vmem:[#allocation2] sm:$0xe] }
  0x39   : > { %2024 = vmatprep.subr.bf16.mxu1 %v2234_v56  ;;  %vm751_vm3 = vmpackc.low %vm748_vm1, %vm748_vm1 }
  0x3a   : > { %vm774_vm4 = vmpackc.low %vm771_vm2, %vm771_vm2 }
  0x3b   : > { %676 = vmatpush1.bf16.msra.mxu0 %v2215_v37 }
  0x3c   : > { %677 = vmatprep.subr.bf16.mxu0 %v2317_v1  ;;  %2025 = vmatpush3.bf16.msra.mxu1 %v2235_v57 }
  0x3d   : > { %2026 = vmatprep.subr.bf16.mxu1 %v2238_v60 }
  0x3f   : > { %678 = vmatpush1.bf16.msra.mxu0 %v2216_v38 }
  0x40   : > { %679 = vmatprep.subr.bf16.mxu0 %v2317_v1  ;;  %2027 = vmatpush3.bf16.msra.mxu1 %v2239_v61 }
  0x41   : > { %2028 = vmatprep.subr.bf16.mxu1 %v2242_v0  ;;  %v2263_v0 = vld [vmem:[%s2799_s3 + $0x180] sm:$0xff]  }
  0x43   : > { %680 = vmatpush1.bf16.msra.mxu0 %v2217_v39 }
  0x44   : > { %681 = vmatprep.subr.bf16.mxu0 %v2317_v1 }
  0x47   : > { %682 = vmatpush1.bf16.msra.mxu0 %v2218_v40 }
  0x48   : > { %683 = vmatprep.subr.bf16.mxu0 %v2317_v1 }
  0x4b   : > { %684 = vmatpush1.bf16.msra.mxu0 %v2219_v41 }
  0x4c   : > { %685 = vmatprep.subr.bf16.mxu0 %v2317_v1 }
  0x4f   : > { %686 = vmatpush1.bf16.msra.mxu0 %v2220_v42 }
  0x50   : > { %687 = vmatprep.subr.bf16.mxu0 %v2317_v1 }
  0x53   : > { %688 = vmatpush1.bf16.msra.mxu0 %v2221_v43 }
  0x54   : > { %689 = vmatprep.subr.bf16.mxu0 %v2317_v1 }
  0x57   : > { %690 = vmatpush1.bf16.msra.mxu0 %v2222_v44 }
  0x58   : > { %691 = vmatprep.subr.bf16.mxu0 %v2317_v1 }
  0x5b   : > { %692 = vmatpush1.bf16.msra.mxu0 %v2223_v45 }
  0x5c   : > { %693 = vmatprep.subr.bf16.mxu0 %v2317_v1 }
  0x5f   : > { %694 = vmatpush1.bf16.msra.mxu0 %v2224_v46 }
  0x60   : > { %695 = vmatprep.subr.bf16.mxu0 %v2317_v1  ;;  %v2243_v1 = vld [vmem:[%s2799_s3 + $0xd8] sm:$0xff]  }
  0x61   : > { %2029 = vmatpush3.bf16.msra.mxu1 %v2243_v1 }
  0x62   : > { %2030 = vmatprep.subr.bf16.mxu1 %v2246_v4 }
  0x63   : > { %696 = vmatpush1.bf16.msra.mxu0 %v2225_v48 }
  0x64   : > { %2053 = vmatprep.subr.bf16.mxu0 %v2228_v50 }
  0x65   : > { %2031 = vmatpush3.bf16.msra.mxu1 %v2247_v5 }
  0x66   : > { %706 = vmatmul.mubr.bf16.vlgmr.msra.gmra.mrb[4].mxu0 %v595_v49  ;;  %2032 = vmatprep.subr.bf16.mxu1 %v2250_v8 }
  0x67   : > { %2054 = vmatpush3.bf16.msra.mxu0 %v2229_v51 }
  0x68   : > { %2055 = vmatprep.subr.bf16.mxu0 %v2232_v54  ;;  %v790_v54 = vld [vmem:[#allocation2 + $0x8] sm:$0x7] }
  0x69   : > { %2033 = vmatpush3.bf16.msra.mxu1 %v2251_v9  ;;  %v2270_v9 = vld [vmem:[%s2799_s3 + $0x188] sm:$0xff]  }
  0x6a   : > { %2034 = vmatprep.subr.bf16.mxu1 %v2254_v12  ;;  %v2273_v12 = vld [vmem:[%s2799_s3 + $0x190] sm:$0xff]  }
  0x6b   : > { %2056 = vmatpush3.bf16.msra.mxu0 %v2233_v55 }
  0x6c   : > { %2057 = vmatprep.subr.bf16.mxu0 %v2236_v58 }
  0x6d   : > { %2035 = vmatpush3.bf16.msra.mxu1 %v2255_v14  ;;  %v2274_v14 = vld [vmem:[%s2799_s3 + $0x150] sm:$0xff]  }
  0x6e   : > { %2036 = vmatprep.subr.bf16.mxu1 %v2258_v15  ;;  %v2276_v15 = vld [vmem:[%s2799_s3 + $0x198] sm:$0xff]  }
  0x6f   : > { %2058 = vmatpush3.bf16.msra.mxu0 %v2237_v59 }
  0x70   : > { %2059 = vmatprep.subr.bf16.mxu0 %v2240_v62 }
  0x71   : > { %2037 = vmatpush3.bf16.msra.mxu1 %v2259_v17  ;;  %v2277_v17 = vld [vmem:[%s2799_s3 + $0x158] sm:$0xff]  }
  0x72   : > { %2115 = vmatprep.subr.bf16.mxu1 %v2318_v19 }
  0x73   : > { %2060 = vmatpush3.bf16.msra.mxu0 %v2241_v63 }
  0x74   : > { %2061 = vmatprep.subr.bf16.mxu0 %v2244_v2 }
  0x77   : > { %2062 = vmatpush3.bf16.msra.mxu0 %v2245_v3 }
  0x78   : > { %2063 = vmatprep.subr.bf16.mxu0 %v2248_v6  ;;  %v2268_v6 = vld [vmem:[%s2799_s3 + $0x140] sm:$0xff]  }
  0x7b   : > { %2064 = vmatpush3.bf16.msra.mxu0 %v2249_v7  ;;  %v2269_v7 = vld [vmem:[%s2799_s3 + $0x1c8] sm:$0xff]  }
  0x7c   : > { %2065 = vmatprep.subr.bf16.mxu0 %v2252_v10  ;;  %v2272_v10 = vld [vmem:[%s2799_s3 + $0x1d0] sm:$0xff]  }
  0x7f   : > { %2066 = vmatpush3.bf16.msra.mxu0 %v2253_v11  ;;  %v2271_v11 = vld [vmem:[%s2799_s3 + $0x148] sm:$0xff]  }
  0x80   : > { %2067 = vmatprep.subr.bf16.mxu0 %v2256_v13  ;;  %v2275_v13 = vld [vmem:[%s2799_s3 + $0x1d8] sm:$0xff]  }
  0x83   : > { %2068 = vmatpush3.bf16.msra.mxu0 %v2257_v16  ;;  %v2278_v16 = vld [vmem:[%s2799_s3 + $0x1e0] sm:$0xff]  }
  0x84   : > { %2084 = vmatprep.subr.bf16.mxu0 %v2262_v18  ;;  %v2279_v18 = vld [vmem:[%s2799_s3 + $0x1a0] sm:$0xff]  }
 0x109   : > { %v437_v20 = vpop.f32.mrb[0].mxu0  ;;  %v558_v22 = vpop.f32.mrb[0].mxu1 }
 0x10a   : > { %v439_v21 = vpop.f32.mrb[1].mxu0  ;;  %v559_v23 = vadd.f32 %v558_v22, %v437_v20  ;;  %v560_v25 = vpop.f32.mrb[1].mxu1  ;;  %v2281_v20 = vld [vmem:[%s2799_s3 + $0x1e8] sm:$0xff]  }
 0x10b   : > { %v440_v24 = vpop.f32.mrb[2].mxu0  ;;  %v561_v27 = vpop.f32.mrb[2].mxu1  ;;  %v2280_v21 = vld [vmem:[%s2799_s3 + $0x160] sm:$0xff]   ;;  %v2282_v22 = vld [vmem:[%s2799_s3 + $0x1a8] sm:$0xff]   ;;  %v2285_v25 = vld [vmem:[%s2799_s3 + $0x1b0] sm:$0xff]  }
 0x10c   : > { %v441_v26 = vpop.f32.mrb[3].mxu0  ;;  %v562_v28 = vpop.f32.mrb[3].mxu1  ;;  %v2283_v24 = vld [vmem:[%s2799_s3 + $0x168] sm:$0xff]   ;;  %v2286_v27 = vld [vmem:[%s2799_s3 + $0x170] sm:$0xff]  }
 0x10d   : > { %v2287_v26 = vld [vmem:[%s2799_s3 + $0x1f8] sm:$0xff]  }
 0x10e   : > { %v2288_v28 = vld [vmem:[%s2799_s3 + $0x1b8] sm:$0xff]  }
 0x139   : > { %v707_v32 = vpop.f32.mrb[4].mxu0 }
 0x13a   : > { %v713_v34 = vadd.f32 %v707_v32, %v559_v23  ;;  %v709_v35 = vpop.f32.mrb[5].mxu0  ;;  %v2284_v23 = vld [vmem:[%s2799_s3 + $0x1f0] sm:$0xff]  }
 0x13b   : > { %v710_v36 = vpop.f32.mrb[6].mxu0  ;;  %v2292_v35 = vld [vmem:[%s2799_s3 + $0x88] sm:$0xff]  }
 0x13c   : > { %v721_v37 = vadd.f32 %v1836_v33, %v713_v34  ;;  %v711_v38 = vpop.f32.mrb[7].mxu0  ;;  %v2291_v33 = vld [vmem:[%s2799_s3 + $0x80] sm:$0xff]   ;;  %v2293_v36 = vld [vmem:[%s2799_s3 + $0x90] sm:$0xff]  }
 0x13d   : > { %v2295_v38 = vld [vmem:[%s2799_s3 + $0xa0] sm:$0xff]  }
 0x13e   : > { %v722_v39 = vmax.f32 %v721_v37, 0.0  ;;  %v2294_v37 = vld [vmem:[%s2799_s3 + $0x98] sm:$0xff]  }
 0x140   : > { %v723_v40 = vpack.c.bf16 %v722_v39, %v722_v39  ;;  %v2296_v39 = vld [vmem:[%s2799_s3 + $0xa8] sm:$0xff]  }
 0x142   : > { %v731_v41 = vrot.slane %v723_v40, 7  ;;  %v752_v42 = vsel %vm751_vm3, %v723_v40, 0  ;;  %v775_v43 = vsel %vm774_vm4, %v723_v40, 0  ;;  %v2297_v40 = vld [vmem:[%s2799_s3 + $0xb0] sm:$0xff]  }
 0x143   : > { %v1838_v44 = vcombine.low %v752_v42, %v752_v42  ;;  %v1839_v45 = vcombine.low %v775_v43, %v775_v43  ;;  %v2300_v42 = vld [vmem:[%s2799_s3 + $0x200] sm:$0xff]  }
 0x144   : > { %733 = vst [vmem:[#allocation2 + $0x4] sm:$0x6] %v731_v41  ;;  %v2298_v41 = vld [vmem:[%s2799_s3 + $0xb8] sm:$0xff]  }
 0x145   : > { %v757_v46 = vshrl.u32 %v1838_v44, 16  ;;  %v760_v47 = vshll.u32 %v1838_v44, 16  ;;  %v780_v48 = vshrl.u32 %v1839_v45, 16  ;;  %v783_v52 = vshll.u32 %v1839_v45, 16  ;;  %v2301_v44 = vld [vmem:[%s2799_s3 + $0x208] sm:$0xff]   ;;  %v2302_v45 = vld [vmem:[%s2799_s3 + $0x210] sm:$0xff]  }
 0x147   : > { %v759_v49 = vrot.slane %v757_v46, 6  ;;  %v762_v50 = vrot.slane %v760_v47, 7  ;;  %v782_v51 = vrot.slane %v780_v48, 7  ;;  %v2303_v46 = vld [vmem:[%s2799_s3 + $0x218] sm:$0xff]   ;;  %v2304_v47 = vld [vmem:[%s2799_s3 + $0x220] sm:$0xff]   ;;  %v2305_v48 = vld [vmem:[%s2799_s3 + $0x228] sm:$0xff]  }
 0x149   : > { %v763_v55 = vor.u32 %v762_v50, %v759_v49  ;;  %v785_v56 = vor.u32 %v783_v52, %v782_v51  ;;  %v2306_v49 = vld [vmem:[%s2799_s3 + $0x230] sm:$0xff]   ;;  %v2307_v50 = vld [vmem:[%s2799_s3 + $0x238] sm:$0xff]  }
 0x14b   : > { %v769_v57 = vsel %vm767_vm9, %v763_v55, %v768_v53  ;;  %v791_v58 = vsel %vm789_vm10, %v785_v56, %v790_v54 }
 0x14c   : > { %770 = vst [vmem:[#allocation2] sm:$0xe] %v769_v57  ;;  %792 = vst [vmem:[#allocation2 + $0x8] sm:$0x7] %v791_v58 }
 0x153   : > { %v793_v59 = vld [vmem:[#allocation2] sm:$0x33]  ;;  %v2631_v61 = vld [vmem:[#allocation2] sm:$0xcc] }
 0x154   : > { %v843_v60 = vld [vmem:[#allocation2] sm:$0x66]  ;;  %v1915_v62 = vcombine.low %v793_v59, %v793_v59  ;;  %v1916_v63 = vcombine.high %v793_v59, %v793_v59  ;;  %v1991_v3 = vcombine.high %v2631_v61, %v2631_v61  ;;  %v1990_v29 = vcombine.low %v2631_v61, %v2631_v61  ;;  %v2290_v31 = vld [vmem:[#allocation2 + $0x8] ss:$0 sps:$4 sm:$0x66]  }
 0x155   : > { %v1888_v1 = vcombine.low %v843_v60, %v843_v60  ;;  %v1889_v2 = vcombine.high %v843_v60, %v843_v60  ;;  %v904_v34 = vrot.slane %v2290_v31, 1  ;;  %v2299_v43 = vld [vmem:[#allocation2 + $0x8] ss:$0 sps:$4 sm:$0x33]  }
 0x156   : > { %1319 = vmatprep.mubr.bf16.mxu0 %v1916_v63  ;;  %v1427_v8 = vrot.slane %v1991_v3, 2  ;;  %v1426_v32 = vrot.slane %v1990_v29, 2  ;;  %v2308_v51 = vld [vmem:[#allocation2 + $0x8] ss:$0 sps:$4 sm:$0xcc]  }
 0x157   : > { %v902_v4 = vrot.slane %v1888_v1, 1  ;;  %v903_v5 = vrot.slane %v1889_v2, 1  ;;  %1320 = vmatmul.mubr.bf16.vlgmr.msra.gmra.mrb[8].mxu0 %v1915_v62  ;;  %v1428_v52 = vrot.slane %v2308_v51, 2 }
 0x158   : > { %2085 = vmatpush3.bf16.msra.mxu0 %v2263_v0  ;;  %1608 = vmatprep.mubr.bf16.mxu0 %v1427_v8 }
 0x159   : > { %1084 = vmatprep.mubr.bf16.mxu1 %v903_v5  ;;  %2086 = vmatprep.subr.bf16.mxu0 %v2269_v7 }
 0x15a   : > { %1085 = vmatmul.mubr.bf16.vlgmr.msra.gmra.mrb[4].mxu1 %v902_v4 }
 0x15b   : > { %2116 = vmatpush3.bf16.msra.mxu1 %v2268_v6  ;;  %2131 = vmatprep.mubr.msk.bf16.mxu1 %vm2319_vm11, %v2318_v19 }
 0x15c   : > { %2117 = vmatprep.subr.bf16.mxu1 %v2318_v19  ;;  %2087 = vmatpush3.bf16.msra.mxu0 %v2270_v9 }
 0x15d   : > { %2088 = vmatprep.subr.bf16.mxu0 %v2272_v10 }
 0x15f   : > { %2118 = vmatpush3.bf16.msra.mxu1 %v2271_v11 }
 0x160   : > { %2119 = vmatprep.subr.bf16.mxu1 %v2318_v19  ;;  %2089 = vmatpush3.bf16.msra.mxu0 %v2273_v12 }
 0x161   : > { %2090 = vmatprep.subr.bf16.mxu0 %v2275_v13 }
 0x163   : > { %2120 = vmatpush3.bf16.msra.mxu1 %v2274_v14  ;;  %v724_v14 = vld [vmem:[%s262_s28] sm:$0x3] }
 0x164   : > { %2121 = vmatprep.subr.bf16.mxu1 %v2318_v19  ;;  %2091 = vmatpush3.bf16.msra.mxu0 %v2276_v15 }
 0x165   : > { %2092 = vmatprep.subr.bf16.mxu0 %v2278_v16 }
 0x167   : > { %2122 = vmatpush3.bf16.msra.mxu1 %v2277_v17 }
 0x168   : > { %2123 = vmatprep.subr.bf16.mxu1 %v2318_v19  ;;  %2093 = vmatpush3.bf16.msra.mxu0 %v2279_v18  ;;  %v2017_v18 = vld [vmem:[%s2800_s4] ss:$0 sm:$0xff] }
 0x169   : > { %2094 = vmatprep.subr.bf16.mxu0 %v2281_v20 }
 0x16b   : > { %2124 = vmatpush3.bf16.msra.mxu1 %v2280_v21  ;;  %v725_v21 = vunpack.c.l.bf16 %v724_v14 }
 0x16c   : > { %2125 = vmatprep.subr.bf16.mxu1 %v2318_v19  ;;  %2095 = vmatpush3.bf16.msra.mxu0 %v2282_v22 }
 0x16d   : > { %2096 = vmatprep.subr.bf16.mxu0 %v2284_v23 }
 0x16f   : > { %2126 = vmatpush3.bf16.msra.mxu1 %v2283_v24 }
 0x170   : > { %2127 = vmatprep.subr.bf16.mxu1 %v2318_v19  ;;  %2097 = vmatpush3.bf16.msra.mxu0 %v2285_v25 }
 0x171   : > { %2098 = vmatprep.subr.bf16.mxu0 %v2287_v26 }
 0x173   : > { %2128 = vmatpush3.bf16.msra.mxu1 %v2286_v27 }
 0x174   : > { %2129 = vmatprep.subr.bf16.mxu1 %v2318_v19  ;;  %2099 = vmatpush3.bf16.msra.mxu0 %v2288_v28 }
 0x177   : > { %2130 = vmatpush3.bf16.msra.mxu1 %v2289_v30  ;;  %1609 = vmatmul.mubr.bf16.vlgmr.msra.gmra.mrb[12].mxu0 %v1426_v32 }
 0x178   : > { %2135 = vmatprep.subr.bf16.mxu1 %v2318_v19 }
 0x17a   : > { %2132 = vmatmul.mubr.bf16.vlgmr.msra.gmra.mrb[8].mxu1 %v904_v34 }
 0x17b   : > { %2136 = vmatpush3.bf16.msra.mxu1 %v2291_v33  ;;  %2151 = vmatprep.mubr.msk.bf16.mxu1 %vm2319_vm11, %v2318_v19 }
 0x17c   : > { %2137 = vmatprep.subr.bf16.mxu1 %v2318_v19 }
 0x17f   : > { %2138 = vmatpush3.bf16.msra.mxu1 %v2292_v35 }
 0x180   : > { %2139 = vmatprep.subr.bf16.mxu1 %v2318_v19 }
 0x183   : > { %2140 = vmatpush3.bf16.msra.mxu1 %v2293_v36 }
 0x184   : > { %2141 = vmatprep.subr.bf16.mxu1 %v2318_v19 }
 0x187   : > { %2142 = vmatpush3.bf16.msra.mxu1 %v2294_v37 }
 0x188   : > { %2143 = vmatprep.subr.bf16.mxu1 %v2318_v19 }
 0x18b   : > { %2144 = vmatpush3.bf16.msra.mxu1 %v2295_v38 }
 0x18c   : > { %2145 = vmatprep.subr.bf16.mxu1 %v2318_v19 }
 0x18f   : > { %2146 = vmatpush3.bf16.msra.mxu1 %v2296_v39 }
 0x190   : > { %2147 = vmatprep.subr.bf16.mxu1 %v2318_v19 }
 0x193   : > { %2148 = vmatpush3.bf16.msra.mxu1 %v2297_v40 }
 0x194   : > { %2149 = vmatprep.subr.bf16.mxu1 %v2318_v19 }
 0x197   : > { %2150 = vmatpush3.bf16.msra.mxu1 %v2298_v41 }
 0x198   : > { %2155 = vmatprep.subr.bf16.mxu1 %v2318_v19 }
 0x19a   : > { %2152 = vmatmul.mubr.bf16.vlgmr.msra.gmra.mrb[12].mxu1 %v2299_v43 }
 0x19b   : > { %2156 = vmatpush3.bf16.msra.mxu1 %v2300_v42  ;;  %2171 = vmatprep.mubr.msk.bf16.mxu1 %vm2319_vm11, %v2318_v19 }
 0x19c   : > { %2157 = vmatprep.subr.bf16.mxu1 %v2318_v19 }
 0x19f   : > { %2158 = vmatpush3.bf16.msra.mxu1 %v2301_v44 }
 0x1a0   : > { %2159 = vmatprep.subr.bf16.mxu1 %v2318_v19 }
 0x1a3   : > { %2160 = vmatpush3.bf16.msra.mxu1 %v2302_v45 }
 0x1a4   : > { %2161 = vmatprep.subr.bf16.mxu1 %v2318_v19 }
 0x1a7   : > { %2162 = vmatpush3.bf16.msra.mxu1 %v2303_v46 }
 0x1a8   : > { %2163 = vmatprep.subr.bf16.mxu1 %v2318_v19 }
 0x1ab   : > { %2164 = vmatpush3.bf16.msra.mxu1 %v2304_v47 }
 0x1ac   : > { %2165 = vmatprep.subr.bf16.mxu1 %v2318_v19 }
 0x1af   : > { %2166 = vmatpush3.bf16.msra.mxu1 %v2305_v48 }
 0x1b0   : > { %2167 = vmatprep.subr.bf16.mxu1 %v2318_v19 }
 0x1b3   : > { %2168 = vmatpush3.bf16.msra.mxu1 %v2306_v49 }
 0x1b4   : > { %2169 = vmatprep.subr.bf16.mxu1 %v2318_v19 }
 0x1b7   : > { %2170 = vmatpush3.bf16.msra.mxu1 %v2307_v50 }
 0x1ba   : > { %2172 = vmatmul.mubr.bf16.vlgmr.msra.gmra.mrb[16].mxu1 %v1428_v52 }
 0x22a   : > { %v2069_v53 = vpop.f32.mrb[8].mxu0 }
 0x22b   : > { %v2070_v54 = vpop.f32.mrb[9].mxu0 }
 0x22c   : > { %v2071_v55 = vadd.f32 %v2070_v54, %v2069_v53  ;;  %v2072_v57 = vpop.f32.mrb[10].mxu0 }
 0x22d   : > { %v2038_v56 = vpop.f32.mrb[4].mxu1  ;;  %v2073_v59 = vpop.f32.mrb[11].mxu0 }
 0x22e   : > { %v2039_v58 = vpop.f32.mrb[5].mxu1 }
 0x22f   : > { %v2040_v60 = vadd.f32 %v2039_v58, %v2038_v56  ;;  %v2041_v61 = vpop.f32.mrb[6].mxu1 }
 0x230   : > { %v2042_v62 = vpop.f32.mrb[7].mxu1 }
 0x24a   : > { %v2100_v63 = vpop.f32.mrb[12].mxu0 }
 0x24b   : > { %v2101_v0 = vpop.f32.mrb[13].mxu0 }
 0x24c   : > { %v2102_v1 = vadd.f32 %v2101_v0, %v2100_v63  ;;  %v2103_v19 = vpop.f32.mrb[14].mxu0 }
 0x24d   : > { %v1126_v2 = vpop.f32.mrb[8].mxu1  ;;  %v2104_v5 = vpop.f32.mrb[15].mxu0 }
 0x24e   : > { %v1127_v3 = vadd.f32 %v2040_v60, %v1126_v2  ;;  %v2133_v4 = vpop.f32.mrb[9].mxu1 }
 0x24f   : > { %v1129_v6 = vpop.f32.mrb[10].mxu1 }
 0x250   : > { %v2134_v7 = vpop.f32.mrb[11].mxu1  ;;  %v1322_v8 = vadd.f32 %v2071_v55, %v1127_v3 }
 0x26d   : > { %v1361_v9 = vpop.f32.mrb[12].mxu1 }
 0x26e   : > { %v1362_v10 = vadd.f32 %v1361_v9, %v1322_v8  ;;  %v2153_v11 = vpop.f32.mrb[13].mxu1 }
 0x26f   : > { %v1364_v12 = vpop.f32.mrb[14].mxu1 }
 0x270   : > { %v2154_v13 = vpop.f32.mrb[15].mxu1 }
 0x28d   : > { %v1650_v15 = vpop.f32.mrb[16].mxu1 }
 0x28e   : > { %v1651_v16 = vadd.f32 %v2102_v1, %v1650_v15  ;;  %v2173_v17 = vpop.f32.mrb[17].mxu1 }
 0x28f   : > { %v1653_v20 = vpop.f32.mrb[18].mxu1 }
 0x290   : > { %v1656_v22 = vadd.f32 %v1651_v16, %v1362_v10  ;;  %v2174_v23 = vpop.f32.mrb[19].mxu1 }
 0x292   : > { %v1664_v24 = vadd.f32 %v2017_v18, %v1656_v22 }
 0x294   : > { %v1665_v25 = vadd.f32 %v1664_v24, %v725_v21 }
 0x296   : > { %v1666_v26 = vmax.f32 %v1665_v25, 0.0 }
 0x298   : > { %v1667_v27 = vpack.c.bf16 %v1666_v26, %v1666_v26 }
 0x29a   : > { %1668 = vst [vmem:[%s266_s8] sm:$0x3] %v1667_v27 }
 0x29b PF: > { %s16_s21 = sadd.s32 1, %s2315_s21  }
 0x29c   : > { %p13_p4 = scmp.ge.s32.totalorder %s16_s21, 4  }
 0x29e   :  { %15 = sbr.rel (!%p13_p4) target bundleno = 1 (0x1), region = 81 }

// kernel: encode_uv.18
= control target key start
LH: loop header
LB: loop body
LE: loop exit
PB: predicated region body
PF: predicated region fallthrough
CT: control target
= control target key end

     0   :  { %s2579_s21 = smov 0   ;;  %s3120_s0 = inlined_call_operand.vmem [shape: bf16[4,2,192], index: 0, kind: input, shape index: {}]   ;;  %s3121_s1 = inlined_call_operand.vmem [shape: bf16[3,192,256], index: 1, kind: input, shape index: {}]   ;;  %s3122_s2 = inlined_call_operand.vmem [shape: f32[1,128], index: 2, kind: input, shape index: {}]   ;;  %s3123_s3 = inlined_call_operand.vmem [shape: bf16[3,384,128], index: 3, kind: input, shape index: {}]   ;;  %s3124_s4 = inlined_call_operand.vmem [shape: f32[1,128], index: 4, kind: input, shape index: {}]   ;;  %s3125_s5 = inlined_call_operand.vmem [shape: f32[1,128], index: 5, kind: input, shape index: {}]   ;;  %s3126_s6 = inlined_call_operand.vmem [shape: bf16[2,1,128], index: 6, kind: output, shape index: {}]  }
   0x1 LB: > { %s2585_s22 = sadd.s32 4294967295, %s2538_s21   ;;  %p1885_p0 = scmp.ge.s32.totalorder %s2538_s21, 1  ;;  %s2538_s21 = sphi %s2579_s21, %s16_s21  }
   0x2   : > { %p213_p1 = scmp.lt.s32.totalorder %s2538_s21, 3 }
   0x4   : > { %p214_p2 = pnand %p1885_p0, %p213_p1 }
   0x5   : > { %v2350_v0 = vld [vmem:[%s3121_s1 + $0xc4] ss:$8 sps:$4 sm:$0xff] (!%p214_p2)   ;;  %v2354_v2 = vld [vmem:[%s3121_s1 + $0xc0] ss:$8 sps:$4 sm:$0xff] (!%p214_p2)   ;;  %v2356_v4 = vld [vmem:[%s3121_s1 + $0xd4] ss:$8 sps:$4 sm:$0xff] (!%p214_p2)   ;;  %v315_v30 = vlaneseq (!%p214_p2) }
   0x6   : > { %217 = sbr.rel (%p214_p2) target bundleno = 664 (0x298), region = 44  ;;  %v2352_v1 = vld [vmem:[%s3121_s1 + $0x4] ss:$8 sps:$4 sm:$0xff] (!%p214_p2)   ;;  %451 = vmatprep.subr.bf16.mxu0 (!%p214_p2), %v2350_v0  ;;  %v2355_v3 = vld [vmem:[%s3121_s1] ss:$8 sps:$4 sm:$0xff] (!%p214_p2)   ;;  %s1886_s17 = sshll.u32 (!%p214_p2), %s2585_s22, 1 }
   0x7   : > { %639 = vmatprep.subr.bf16.mxu1 (!%p214_p2), %v2352_v1  ;;  %452 = vmatpush1.bf16.msra.mxu0 (!%p214_p2), %v2354_v2  ;;  %v2358_v5 = vld [vmem:[%s3121_s1 + $0x14] ss:$8 sps:$4 sm:$0xff] (!%p214_p2)   ;;  %v2360_v6 = vld [vmem:[%s3121_s1 + $0xd0] ss:$8 sps:$4 sm:$0xff] (!%p214_p2)   ;;  %v2362_v8 = vld [vmem:[%s3121_s1 + $0xe4] ss:$8 sps:$4 sm:$0xff] (!%p214_p2)  }
   0x8   : > { %640 = vmatpush1.bf16.msra.mxu1 (!%p214_p2), %v2355_v3  ;;  %453 = vmatprep.subr.bf16.mxu0 (!%p214_p2), %v2356_v4  ;;  %v2361_v7 = vld [vmem:[%s3121_s1 + $0x10] ss:$8 sps:$4 sm:$0xff] (!%p214_p2)   ;;  %v2364_v9 = vld [vmem:[%s3121_s1 + $0x24] ss:$8 sps:$4 sm:$0xff] (!%p214_p2)   ;;  %v2366_v10 = vld [vmem:[%s3121_s1 + $0xe0] ss:$8 sps:$4 sm:$0xff] (!%p214_p2)  }
   0x9   : > { %641 = vmatprep.subr.bf16.mxu1 (!%p214_p2), %v2358_v5  ;;  %v2367_v11 = vld [vmem:[%s3121_s1 + $0x20] ss:$8 sps:$4 sm:$0xff] (!%p214_p2)   ;;  %v2368_v12 = vld [vmem:[%s3121_s1 + $0xf4] ss:$8 sps:$4 sm:$0xff] (!%p214_p2)   ;;  %v2372_v14 = vld [vmem:[%s3121_s1 + $0xf0] ss:$8 sps:$4 sm:$0xff] (!%p214_p2)  }
   0xa   : > { %v2370_v13 = vld [vmem:[%s3121_s1 + $0x34] ss:$8 sps:$4 sm:$0xff] (!%p214_p2)   ;;  %v2373_v15 = vld [vmem:[%s3121_s1 + $0x30] ss:$8 sps:$4 sm:$0xff] (!%p214_p2)   ;;  %v2374_v16 = vld [vmem:[%s3121_s1 + $0x104] ss:$8 sps:$4 sm:$0xff] (!%p214_p2)  }
   0xb   : > { %454 = vmatpush1.bf16.msra.mxu0 (!%p214_p2), %v2360_v6  ;;  %v2376_v17 = vld [vmem:[%s3121_s1 + $0x44] ss:$8 sps:$4 sm:$0xff] (!%p214_p2)   ;;  %v2378_v18 = vld [vmem:[%s3121_s1 + $0x100] ss:$8 sps:$4 sm:$0xff] (!%p214_p2)   ;;  %v2380_v20 = vld [vmem:[%s3121_s1 + $0x114] ss:$8 sps:$4 sm:$0xff] (!%p214_p2)  }
   0xc   : > { %642 = vmatpush1.bf16.msra.mxu1 (!%p214_p2), %v2361_v7  ;;  %455 = vmatprep.subr.bf16.mxu0 (!%p214_p2), %v2362_v8  ;;  %v2379_v19 = vld [vmem:[%s3121_s1 + $0x40] ss:$8 sps:$4 sm:$0xff] (!%p214_p2)   ;;  %v2382_v21 = vld [vmem:[%s3121_s1 + $0x54] ss:$8 sps:$4 sm:$0xff] (!%p214_p2)   ;;  %p242_p3 = scmp.lt.s32.totalorder (!%p214_p2), %s1886_s17, 3  ;;  %v2683_v35 = vshrl.u32 (!%p214_p2), %v315_v30, 7 }
   0xd   : > { %643 = vmatprep.subr.bf16.mxu1 %v2364_v9  ;;  %v2384_v22 = vld [vmem:[%s3121_s1 + $0x110] ss:$8 sps:$4 sm:$0xff]   ;;  %v2386_v24 = vld [vmem:[%s3121_s1 + $0x124] ss:$8 sps:$4 sm:$0xff]   ;;  %v2390_v26 = vld [vmem:[%s3121_s1 + $0x120] ss:$8 sps:$4 sm:$0xff]  }
   0xe   : > { %v2385_v23 = vld [vmem:[%s3121_s1 + $0x50] ss:$8 sps:$4 sm:$0xff]   ;;  %v2388_v25 = vld [vmem:[%s3121_s1 + $0x64] ss:$8 sps:$4 sm:$0xff]   ;;  %s3132_s17 = smov (!%p242_p3, %s1886_s17), 3  ;;  %vm447_vm0 = vcmask 523264  }
   0xf   : > { %456 = vmatpush1.bf16.msra.mxu0 %v2366_v10  ;;  %v2391_v27 = vld [vmem:[%s3121_s1 + $0x60] ss:$8 sps:$4 sm:$0xff]   ;;  %v2540_v28 = vmov 1966171168   ;;  %v2392_v31 = vld [vmem:[%s3121_s1 + $0x134] ss:$8 sps:$4 sm:$0xff]  }
  0x10   : > { %644 = vmatpush1.bf16.msra.mxu1 %v2367_v11  ;;  %457 = vmatprep.subr.bf16.mxu0 %v2368_v12  ;;  %v313_v29 = vunpack.c.l.s4 %v2540_v28  ;;  %v2394_v32 = vld [vmem:[%s3121_s1 + $0x74] ss:$8 sps:$4 sm:$0xff]   ;;  %s1887_s16 = sshll.u32 %s3132_s17, 1  ;;  %v2396_v33 = vld [vmem:[%s3121_s1 + $0x130] ss:$8 sps:$4 sm:$0xff]   ;;  %v2462_v28 = vld [vmem:[%s3123_s3 + $0x48] sm:$0xff]  }
  0x11   : > { %645 = vmatprep.subr.bf16.mxu1 %v2370_v13  ;;  %v2397_v36 = vld [vmem:[%s3121_s1 + $0x70] ss:$8 sps:$4 sm:$0xff]   ;;  %v2398_v37 = vld [vmem:[%s3121_s1 + $0x144] ss:$8 sps:$4 sm:$0xff]   ;;  %s245_s29 = scalar_lea.vmem %s3120_s0, %s1887_s16  ;;  %v2402_v39 = vld [vmem:[%s3121_s1 + $0x140] ss:$8 sps:$4 sm:$0xff]  }
  0x12   : > { %v314_v34 = vunpack.c.0.s8 %v313_v29  ;;  %v2400_v38 = vld [vmem:[%s3121_s1 + $0x84] ss:$8 sps:$4 sm:$0xff]   ;;  %v2403_v40 = vld [vmem:[%s3121_s1 + $0x80] ss:$8 sps:$4 sm:$0xff]   ;;  %v2404_v41 = vld [vmem:[%s3121_s1 + $0x154] ss:$8 sps:$4 sm:$0xff]  }
  0x13   : > { %458 = vmatpush1.bf16.msra.mxu0 %v2372_v14  ;;  %v1913_v43 = vld.sshfl [vmem:[%s245_s29 + $0x2] sm:$0x11 pattern:$0x75316420]  ;;  %v2406_v44 = vld [vmem:[%s3121_s1 + $0x94] ss:$8 sps:$4 sm:$0xff]  }
  0x14   : > { %646 = vmatpush1.bf16.msra.mxu1 %v2373_v15  ;;  %459 = vmatprep.subr.bf16.mxu0 %v2374_v16  ;;  %v317_v42 = vsub.s32 %v314_v34, %v2683_v35  ;;  %v311_v45 = vcombine.high %v1913_v43, %v1913_v43  ;;  %v1989_v46 = vld.sshfl [vmem:[%s245_s29] sm:$0x11 pattern:$0x75316420]  ;;  %v2408_v48 = vld [vmem:[%s3121_s1 + $0x150] ss:$8 sps:$4 sm:$0xff]  }
  0x15   : > { %647 = vmatprep.subr.bf16.mxu1 %v2376_v17  ;;  %v500_v47 = vcombine.high %v1989_v46, %v1989_v46  ;;  %v2409_v50 = vld [vmem:[%s3121_s1 + $0x90] ss:$8 sps:$4 sm:$0xff]   ;;  %v2410_v51 = vld [vmem:[%s3121_s1 + $0x164] ss:$8 sps:$4 sm:$0xff]   ;;  %v2414_v54 = vld [vmem:[%s3121_s1 + $0x160] ss:$8 sps:$4 sm:$0xff]  }
  0x16   : > { %v325_v49 = vrot.slane %v311_v45, %v317_v42  ;;  %v2412_v53 = vld [vmem:[%s3121_s1 + $0xa4] ss:$8 sps:$4 sm:$0xff]   ;;  %v2415_v55 = vld [vmem:[%s3121_s1 + $0xa0] ss:$8 sps:$4 sm:$0xff]   ;;  %v2416_v56 = vld [vmem:[%s3121_s1 + $0x174] ss:$8 sps:$4 sm:$0xff]   ;;  %v507_v61 = vrot.slane %v1989_v46, %v317_v42  ;;  %v318_v62 = vrot.slane %v1913_v43, %v317_v42 }
  0x17   : > { %460 = vmatpush1.bf16.msra.mxu0 %v2378_v18  ;;  %v514_v52 = vrot.slane %v500_v47, %v317_v42  ;;  %v2418_v57 = vld [vmem:[%s3121_s1 + $0xb4] ss:$8 sps:$4 sm:$0xff]   ;;  %v2420_v58 = vld [vmem:[%s3121_s1 + $0x170] ss:$8 sps:$4 sm:$0xff]   ;;  %v2424_v60 = vld [vmem:[%s3121_s1 + $0x184] ss:$8 sps:$4 sm:$0xff]  }
  0x18   : > { %648 = vmatpush1.bf16.msra.mxu1 %v2379_v19  ;;  %461 = vmatprep.subr.bf16.mxu0 %v2380_v20  ;;  %v2421_v59 = vld [vmem:[%s3121_s1 + $0xb0] ss:$8 sps:$4 sm:$0xff]   ;;  %v2422_v63 = vld [vmem:[%s3121_s1 + $0x180] ss:$8 sps:$4 sm:$0xff]   ;;  %v2427_v0 = vld [vmem:[%s3121_s1 + $0x194] ss:$8 sps:$4 sm:$0xff]  }
  0x19   : > { %649 = vmatprep.subr.bf16.mxu1 %v2382_v21  ;;  %1938 = vmatprep.mubr.msk.bf16.mxu0 %vm447_vm0, %v325_v49  ;;  %v733_v1 = vshrl.u32 %v514_v52, 16  ;;  %v730_v2 = vshrl.u32 %v507_v61, 16  ;;  %v2425_v3 = vld [vmem:[%s3121_s1 + $0x190] ss:$8 sps:$4 sm:$0xff]   ;;  %v2430_v4 = vld [vmem:[%s3121_s1 + $0x1a4] ss:$8 sps:$4 sm:$0xff]  }
  0x1a   : > { %1964 = vmatprep.mubr.msk.bf16.mxu1 %vm447_vm0, %v514_v52  ;;  %v2428_v5 = vld [vmem:[%s3121_s1 + $0x1a0] ss:$8 sps:$4 sm:$0xff]   ;;  %v2433_v6 = vld [vmem:[%s3121_s1 + $0x1b4] ss:$8 sps:$4 sm:$0xff]   ;;  %v2431_v7 = vld [vmem:[%s3121_s1 + $0x1b0] ss:$8 sps:$4 sm:$0xff]  }
  0x1b   : > { %462 = vmatpush1.bf16.msra.mxu0 %v2384_v22  ;;  %v2436_v8 = vld [vmem:[%s3121_s1 + $0x1c4] ss:$8 sps:$4 sm:$0xff]   ;;  %v2434_v9 = vld [vmem:[%s3121_s1 + $0x1c0] ss:$8 sps:$4 sm:$0xff]   ;;  %v2439_v10 = vld [vmem:[%s3121_s1 + $0x1d4] ss:$8 sps:$4 sm:$0xff]  }
  0x1c   : > { %650 = vmatpush1.bf16.msra.mxu1 %v2385_v23  ;;  %463 = vmatprep.subr.bf16.mxu0 %v2386_v24  ;;  %v2437_v11 = vld [vmem:[%s3121_s1 + $0x1d0] ss:$8 sps:$4 sm:$0xff]   ;;  %v2442_v12 = vld [vmem:[%s3121_s1 + $0x1e4] ss:$8 sps:$4 sm:$0xff]   ;;  %v2440_v13 = vld [vmem:[%s3121_s1 + $0x1e0] ss:$8 sps:$4 sm:$0xff]  }
  0x1d   : > { %651 = vmatprep.subr.bf16.mxu1 %v2388_v25  ;;  %v2445_v14 = vld [vmem:[%s3121_s1 + $0x1f4] ss:$8 sps:$4 sm:$0xff]   ;;  %v2443_v15 = vld [vmem:[%s3121_s1 + $0x1f0] ss:$8 sps:$4 sm:$0xff]   ;;  %v2448_v16 = vld [vmem:[%s3121_s1 + $0x204] ss:$8 sps:$4 sm:$0xff]  }
  0x1e   : > { %v2446_v17 = vld [vmem:[%s3121_s1 + $0x200] ss:$8 sps:$4 sm:$0xff]   ;;  %v2451_v18 = vld [vmem:[%s3121_s1 + $0x214] ss:$8 sps:$4 sm:$0xff]   ;;  %v2449_v19 = vld [vmem:[%s3121_s1 + $0x210] ss:$8 sps:$4 sm:$0xff]  }
  0x1f   : > { %464 = vmatpush1.bf16.msra.mxu0 %v2390_v26  ;;  %v2454_v20 = vld [vmem:[%s3121_s1 + $0x224] ss:$8 sps:$4 sm:$0xff]   ;;  %v2452_v21 = vld [vmem:[%s3121_s1 + $0x220] ss:$8 sps:$4 sm:$0xff]   ;;  %v2457_v22 = vld [vmem:[%s3121_s1 + $0x234] ss:$8 sps:$4 sm:$0xff]  }
  0x20   : > { %652 = vmatpush1.bf16.msra.mxu1 %v2391_v27  ;;  %465 = vmatprep.subr.bf16.mxu0 %v2392_v31  ;;  %v2455_v23 = vld [vmem:[%s3121_s1 + $0x230] ss:$8 sps:$4 sm:$0xff]   ;;  %v2458_v24 = vld [vmem:[%s3123_s3 + $0x40] sm:$0xff]   ;;  %v2463_v29 = vld [vmem:[%s3123_s3 + $0x108] sm:$0xff]   ;;  %vm908_vm1 = vcmask 1041408   ;;  %vm911_vm3 = vcmask 1043458  }
  0x21   : > { %653 = vmatprep.subr.bf16.mxu1 %v2394_v32  ;;  %v2459_v25 = vld [vmem:[%s3123_s3 + $0x100] sm:$0xff]   ;;  %v2464_v30 = vld [vmem:[%s3123_s3 + $0x8] sm:$0xff]   ;;  %vm909_vm2 = vsmask.f32 1280  ;;  %vm912_vm4 = vsmask.f32 3328 }
  0x22   : > { %v2460_v26 = vld [vmem:[%s3123_s3] sm:$0xff]   ;;  %v2465_v31 = vld [vmem:[%s3123_s3 + $0xc8] sm:$0xff]   ;;  %vm2840_vm5 = vmand %vm908_vm1, %vm909_vm2  ;;  %vm915_vm6 = vcmask 1045508   ;;  %vm916_vm7 = vsmask.f32 5376  ;;  %vm934_vm12 = vcmask 1040384  }
  0x23   : > { %466 = vmatpush1.bf16.msra.mxu0 %v2396_v33  ;;  %v2461_v27 = vld [vmem:[%s3123_s3 + $0xc0] sm:$0xff]   ;;  %v2466_v33 = vld [vmem:[%s3123_s3 + $0x50] sm:$0xff]   ;;  %vm913_vm8 = vmand %vm911_vm3, %vm912_vm4  ;;  %vm945_vm13 = vsmask.f32 256  ;;  %vm940_vm15 = vcmask 1041409   ;;  %vm2543_vm3 = vmmov 0  }
  0x24   : > { %654 = vmatpush1.bf16.msra.mxu1 %v2397_v36  ;;  %467 = vmatprep.subr.bf16.mxu0 %v2398_v37  ;;  %v2467_v34 = vld [vmem:[%s3123_s3 + $0x110] sm:$0xff]   ;;  %vm914_vm9 = vmor %vm913_vm8, %vm2840_vm5  ;;  %v919_v37 = vld [vmem:[#allocation2] sm:$0x3f]  ;;  %vm935_vm1 = vsmask.f32 7938  ;;  %p247_p4 = scmp.lt.s32.totalorder %s2585_s22, 1 }
  0x25   : > { %655 = vmatprep.subr.bf16.mxu1 %v2400_v38  ;;  %v2468_v36 = vld [vmem:[%s3123_s3 + $0x10] sm:$0xff]   ;;  %vm917_vm10 = vmand %vm915_vm6, %vm916_vm7  ;;  %v2472_v42 = vld [vmem:[%s3123_s3 + $0x18] sm:$0xff]  }
  0x26   : > { %v2469_v38 = vld [vmem:[%s3123_s3 + $0xd0] sm:$0xff]   ;;  %vm918_vm11 = vmor %vm917_vm10, %vm914_vm9  ;;  %v2473_v43 = vld [vmem:[%s3123_s3 + $0xd8] sm:$0xff]   ;;  %s3134_s22 = smov (!%p247_p4, %s2585_s22), 1 }
  0x27   : > { %468 = vmatpush1.bf16.msra.mxu0 %v2402_v39  ;;  %v2470_v39 = vld [vmem:[%s3123_s3 + $0x58] sm:$0xff]   ;;  %v2475_v45 = vld [vmem:[%s3123_s3 + $0x120] sm:$0xff]   ;;  %vm2883_vm14 = vmand %vm934_vm12, %vm945_vm13  ;;  %s249_s14 = scalar_lea.vmem %s3126_s6, %s3134_s22 }
  0x28   : > { %656 = vmatpush1.bf16.msra.mxu1 %v2403_v40  ;;  %469 = vmatprep.subr.bf16.mxu0 %v2404_v41  ;;  %v920_v40 = vsel %vm918_vm11, 0, %v919_v37  ;;  %v2471_v41 = vld [vmem:[%s3123_s3 + $0x118] sm:$0xff]   ;;  %v2476_v46 = vld [vmem:[%s3123_s3 + $0x20] sm:$0xff]   ;;  %v2478_v49 = vld [vmem:[%s3123_s3 + $0x68] sm:$0xff]  }
  0x29   : > { %657 = vmatprep.subr.bf16.mxu1 %v2406_v44  ;;  %921 = vst [vmem:[#allocation2] sm:$0x3f] %v920_v40  ;;  %v2474_v44 = vld [vmem:[%s3123_s3 + $0x60] sm:$0xff]   ;;  %v2509_v40 = vld [vmem:[%s3123_s3 + $0x1c8] sm:$0xff]  }
  0x2a   : > { %v2477_v47 = vld [vmem:[%s3123_s3 + $0xe0] sm:$0xff]  }
  0x2b   : > { %470 = vmatpush1.bf16.msra.mxu0 %v2408_v48 }
  0x2c   : > { %658 = vmatpush1.bf16.msra.mxu1 %v2409_v50  ;;  %471 = vmatprep.subr.bf16.mxu0 %v2410_v51  ;;  %v2479_v51 = vld [vmem:[%s3123_s3 + $0x128] sm:$0xff]  }
  0x2d   : > { %659 = vmatprep.subr.bf16.mxu1 %v2412_v53  ;;  %v2480_v53 = vld [vmem:[%s3123_s3 + $0x28] sm:$0xff]  }
  0x2f   : > { %472 = vmatpush1.bf16.msra.mxu0 %v2414_v54 }
  0x30   : > { %660 = vmatpush1.bf16.msra.mxu1 %v2415_v55  ;;  %473 = vmatprep.subr.bf16.mxu0 %v2416_v56  ;;  %v942_v50 = vld [vmem:[#allocation2] sm:$0x2]  ;;  %v947_v52 = vld [vmem:[#allocation2 + $0x4] sm:$0x1]  ;;  %v2481_v56 = vld [vmem:[%s3123_s3 + $0xe8] sm:$0xff]  }
  0x31   : > { %661 = vmatprep.subr.bf16.mxu1 %v2418_v57  ;;  %v948_v55 = vsel %vm2883_vm14, 0, %v947_v52  ;;  %v2482_v57 = vld [vmem:[%s3123_s3 + $0x70] sm:$0xff]   ;;  %v2516_v52 = vld [vmem:[%s3123_s3 + $0x198] sm:$0xff]  }
  0x32   : > { %949 = vst [vmem:[#allocation2 + $0x4] sm:$0x1] %v948_v55  ;;  %v2519_v55 = vld [vmem:[%s3123_s3 + $0x1a0] sm:$0xff]  }
  0x33   : > { %474 = vmatpush1.bf16.msra.mxu0 %v2420_v58  ;;  %v2483_v58 = vld [vmem:[%s3123_s3 + $0x130] sm:$0xff]  }
  0x34   : > { %662 = vmatpush1.bf16.msra.mxu1 %v2421_v59  ;;  %859 = vmatprep.subr.bf16.mxu0 %v2424_v60  ;;  %v2484_v59 = vld [vmem:[%s3123_s3 + $0x30] sm:$0xff]  }
  0x35   : > { %2185 = vmatprep.subr.bf16.mxu1 %v2459_v25  ;;  %v2485_v60 = vld [vmem:[%s3123_s3 + $0xf0] sm:$0xff]  }
  0x36   : > { %484 = vmatmul.mubr.bf16.vlgmr.msra.gmra.mrb[0].mxu0 %v318_v62  ;;  %v2487_v62 = vld [vmem:[%s3123_s3 + $0x138] sm:$0xff]  }
  0x37   : > { %672 = vmatmul.mubr.bf16.vlgmr.msra.gmra.mrb[0].mxu1 %v507_v61  ;;  %860 = vmatpush1.bf16.msra.mxu0 %v2422_v63  ;;  %v2486_v61 = vld [vmem:[%s3123_s3 + $0x78] sm:$0xff]  }
  0x38   : > { %2014 = vmatprep.mubr.msk.bf16.mxu0 %vm447_vm0, %v733_v1  ;;  %861 = vmatprep.subr.bf16.mxu0 %v2427_v0  ;;  %vm941_vm0 = vmand %vm940_vm15, %vm909_vm2  ;;  %v2488_v63 = vld [vmem:[%s3123_s3 + $0x38] sm:$0xff]   ;;  %v2541_v1 = vmov 0.0  }
  0x39   : > { %2186 = vmatpush3.bf16.msra.mxu1 %v2461_v27  ;;  %v943_v54 = vsel %vm941_vm0, 0, %v942_v50  ;;  %v2489_v0 = vld [vmem:[%s3123_s3 + $0xf8] sm:$0xff]   ;;  %vm936_vm2 = vmand %vm934_vm12, %vm935_vm1 }
  0x3a   : > { %2187 = vmatprep.subr.bf16.mxu1 %v2463_v29  ;;  %944 = vst [vmem:[#allocation2] sm:$0x2] %v943_v54  ;;  %v2515_v50 = vld [vmem:[%s3123_s3 + $0x1d8] sm:$0xff]  }
  0x3b   : > { %862 = vmatpush1.bf16.msra.mxu0 %v2425_v3  ;;  %v2494_v54 = vld [vmem:[%s3123_s3 + $0x158] sm:$0xff]  }
  0x3c   : > { %863 = vmatprep.subr.bf16.mxu0 %v2430_v4 }
  0x3d   : > { %2188 = vmatpush3.bf16.msra.mxu1 %v2465_v31 }
  0x3e   : > { %2189 = vmatprep.subr.bf16.mxu1 %v2467_v34 }
  0x3f   : > { %864 = vmatpush1.bf16.msra.mxu0 %v2428_v5 }
  0x40   : > { %865 = vmatprep.subr.bf16.mxu0 %v2433_v6 }
  0x41   : > { %2190 = vmatpush3.bf16.msra.mxu1 %v2469_v38 }
  0x42   : > { %2191 = vmatprep.subr.bf16.mxu1 %v2471_v41 }
  0x43   : > { %866 = vmatpush1.bf16.msra.mxu0 %v2431_v7 }
  0x44   : > { %867 = vmatprep.subr.bf16.mxu0 %v2436_v8 }
  0x45   : > { %2192 = vmatpush3.bf16.msra.mxu1 %v2473_v43 }
  0x46   : > { %2193 = vmatprep.subr.bf16.mxu1 %v2475_v45  ;;  %v2510_v45 = vld [vmem:[%s3123_s3 + $0x188] sm:$0xff]  }
  0x47   : > { %868 = vmatpush1.bf16.msra.mxu0 %v2434_v9 }
  0x48   : > { %869 = vmatprep.subr.bf16.mxu0 %v2439_v10 }
  0x49   : > { %2194 = vmatpush3.bf16.msra.mxu1 %v2477_v47  ;;  %v2492_v47 = vld [vmem:[%s3123_s3 + $0x148] sm:$0xff]  }
  0x4a   : > { %2195 = vmatprep.subr.bf16.mxu1 %v2479_v51  ;;  %v2493_v51 = vld [vmem:[%s3123_s3 + $0x150] sm:$0xff]  }
  0x4b   : > { %870 = vmatpush1.bf16.msra.mxu0 %v2437_v11 }
  0x4c   : > { %871 = vmatprep.subr.bf16.mxu0 %v2442_v12  ;;  %v2506_v12 = vld [vmem:[%s3123_s3 + $0x1c0] sm:$0xff]  }
  0x4d   : > { %2196 = vmatpush3.bf16.msra.mxu1 %v2481_v56  ;;  %v2521_v56 = vld [vmem:[%s3123_s3 + $0x1e8] sm:$0xff]  }
  0x4e   : > { %2197 = vmatprep.subr.bf16.mxu1 %v2483_v58  ;;  %v2522_v58 = vld [vmem:[%s3123_s3 + $0x1a8] sm:$0xff]  }
  0x4f   : > { %872 = vmatpush1.bf16.msra.mxu0 %v2440_v13  ;;  %v2542_v13 = vmov 1983009808  }
  0x50   : > { %873 = vmatprep.subr.bf16.mxu0 %v2445_v14  ;;  %v924_v14 = vunpack.c.l.s4 %v2542_v13  ;;  %v2505_v13 = vld [vmem:[%s3123_s3 + $0xb0] sm:$0xff]  }
  0x51   : > { %2198 = vmatpush3.bf16.msra.mxu1 %v2485_v60  ;;  %v2496_v60 = vld [vmem:[%s3123_s3 + $0x168] sm:$0xff]  }
  0x52   : > { %2199 = vmatprep.subr.bf16.mxu1 %v2487_v62  ;;  %v2527_v62 = vld [vmem:[%s3123_s3 + $0x1f8] sm:$0xff]  }
  0x53   : > { %874 = vmatpush1.bf16.msra.mxu0 %v2443_v15  ;;  %v925_v15 = vunpack.c.0.s8 %v924_v14  ;;  %v2508_v14 = vld [vmem:[%s3123_s3 + $0xb8] sm:$0xff]  }
  0x54   : > { %875 = vmatprep.subr.bf16.mxu0 %v2448_v16  ;;  %v1528_v16 = vld [vmem:[#allocation2] sm:$0x2a] }
  0x55   : > { %2200 = vmatpush3.bf16.msra.mxu1 %v2489_v0 }
  0x56   : > { %2278 = vmatprep.subr.bf16.mxu1 %v2541_v1 }
  0x57   : > { %876 = vmatpush1.bf16.msra.mxu0 %v2446_v17  ;;  %v1579_v17 = vcombine.high %v1528_v16, %v1528_v16 }
  0x58   : > { %877 = vmatprep.subr.bf16.mxu0 %v2451_v18  ;;  %v2931_v18 = vsub.s32 %v925_v15, %v2683_v35  ;;  %v2511_v15 = vld [vmem:[%s3123_s3 + $0x200] sm:$0xff]  }
  0x5b   : > { %878 = vmatpush1.bf16.msra.mxu0 %v2449_v19  ;;  %v2934_v19 = vrot.slane %v1579_v17, %v2931_v18  ;;  %v2517_v17 = vld [vmem:[%s3123_s3 + $0x210] sm:$0xff]  }
  0x5c   : > { %879 = vmatprep.subr.bf16.mxu0 %v2454_v20 }
  0x5f   : > { %880 = vmatpush1.bf16.msra.mxu0 %v2452_v21  ;;  %v902_v21 = vld [vmem:[%s3122_s2] sm:$0x1] }
  0x60   : > { %881 = vmatprep.subr.bf16.mxu0 %v2457_v22 }
  0x63   : > { %882 = vmatpush1.bf16.msra.mxu0 %v2455_v23 }
  0x64   : > { %2216 = vmatprep.subr.bf16.mxu0 %v2458_v24 }
  0x66   : > { %892 = vmatmul.mubr.bf16.vlgmr.msra.gmra.mrb[4].mxu0 %v730_v2 }
  0x67   : > { %2217 = vmatpush3.bf16.msra.mxu0 %v2460_v26 }
  0x68   : > { %2218 = vmatprep.subr.bf16.mxu0 %v2462_v28 }
  0x6b   : > { %2219 = vmatpush3.bf16.msra.mxu0 %v2464_v30  ;;  %v937_v30 = vld [vmem:[#allocation2 + $0x2] sm:$0x1] }
  0x6c   : > { %2220 = vmatprep.subr.bf16.mxu0 %v2466_v33  ;;  %v2944_v33 = vrot.slane %v1528_v16, %v2931_v18  ;;  %v2514_v16 = vld [vmem:[%s3123_s3 + $0x208] sm:$0xff]  }
  0x6e   : > { %v1594_v37 = vcombine.high %v2944_v33, %v2944_v33 }
  0x6f   : > { %2221 = vmatpush3.bf16.msra.mxu0 %v2468_v36 }
  0x70   : > { %2222 = vmatprep.subr.bf16.mxu0 %v2470_v39  ;;  %v2507_v39 = vld [vmem:[%s3123_s3 + $0x180] sm:$0xff]  }
  0x73   : > { %2223 = vmatpush3.bf16.msra.mxu0 %v2472_v42  ;;  %v2491_v42 = vld [vmem:[%s3123_s3 + $0x140] sm:$0xff]  }
  0x74   : > { %2224 = vmatprep.subr.bf16.mxu0 %v2474_v44  ;;  %v1596_v44 = vrot.slane %v1594_v37, 1 }
  0x77   : > { %2225 = vmatpush3.bf16.msra.mxu0 %v2476_v46  ;;  %v2512_v46 = vld [vmem:[%s3123_s3 + $0x1d0] sm:$0xff]  }
  0x78   : > { %2226 = vmatprep.subr.bf16.mxu0 %v2478_v49  ;;  %v2513_v49 = vld [vmem:[%s3123_s3 + $0x190] sm:$0xff]  }
  0x7b   : > { %2227 = vmatpush3.bf16.msra.mxu0 %v2480_v53  ;;  %v2518_v53 = vld [vmem:[%s3123_s3 + $0x1e0] sm:$0xff]  }
  0x7c   : > { %2228 = vmatprep.subr.bf16.mxu0 %v2482_v57  ;;  %v2495_v57 = vld [vmem:[%s3123_s3 + $0x160] sm:$0xff]  }
  0x7f   : > { %2229 = vmatpush3.bf16.msra.mxu0 %v2484_v59  ;;  %v2524_v59 = vld [vmem:[%s3123_s3 + $0x1f0] sm:$0xff]  }
  0x80   : > { %2230 = vmatprep.subr.bf16.mxu0 %v2486_v61  ;;  %v2525_v61 = vld [vmem:[%s3123_s3 + $0x1b0] sm:$0xff]  }
  0x83   : > { %2231 = vmatpush3.bf16.msra.mxu0 %v2488_v63  ;;  %v2497_v63 = vld [vmem:[%s3123_s3 + $0x170] sm:$0xff]  }
  0x84   : > { %2247 = vmatprep.subr.bf16.mxu0 %v2506_v12  ;;  %v2504_v12 = vld [vmem:[%s3123_s3 + $0xa8] sm:$0xff]  }
 0x109   : > { %v485_v2 = vpop.f32.mrb[0].mxu0 }
 0x10a   : > { %v673_v3 = vpop.f32.mrb[0].mxu1  ;;  %v487_v5 = vpop.f32.mrb[1].mxu0 }
 0x10b   : > { %v674_v4 = vadd.f32 %v673_v3, %v485_v2  ;;  %v675_v6 = vpop.f32.mrb[1].mxu1  ;;  %v489_v8 = vpop.f32.mrb[2].mxu0  ;;  %v2528_v2 = vld [vmem:[%s3123_s3 + $0x1b8] sm:$0xff]  }
 0x10c   : > { %v676_v7 = vadd.f32 %v675_v6, %v487_v5  ;;  %v677_v9 = vpop.f32.mrb[2].mxu1  ;;  %v490_v10 = vpop.f32.mrb[3].mxu0  ;;  %v2498_v3 = vld [vmem:[%s3123_s3 + $0x178] sm:$0xff]   ;;  %v1595_v5 = vrot.slane %v2944_v33, 1  ;;  %v2499_v6 = vld [vmem:[%s3123_s3 + $0x80] sm:$0xff]   ;;  %v2500_v8 = vld [vmem:[%s3123_s3 + $0x88] sm:$0xff]  }
 0x10d   : > { %v678_v11 = vpop.f32.mrb[3].mxu1  ;;  %v2501_v9 = vld [vmem:[%s3123_s3 + $0x90] sm:$0xff]   ;;  %v2502_v10 = vld [vmem:[%s3123_s3 + $0x98] sm:$0xff]  }
 0x10e   : > { %v2503_v11 = vld [vmem:[%s3123_s3 + $0xa0] sm:$0xff]  }
 0x139   : > { %v893_v20 = vpop.f32.mrb[4].mxu0 }
 0x13a   : > { %v900_v22 = vadd.f32 %v893_v20, %v674_v4  ;;  %v895_v23 = vpop.f32.mrb[5].mxu0  ;;  %v2523_v20 = vld [vmem:[%s3123_s3 + $0x220] sm:$0xff]  }
 0x13b   : > { %v2939_v24 = vadd.f32 %v895_v23, %v676_v7  ;;  %v897_v25 = vpop.f32.mrb[6].mxu0  ;;  %v2531_v23 = vld [vmem:[%s3123_s3 + $0x238] sm:$0xff]  }
 0x13c   : > { %v903_v26 = vadd.f32 %v902_v21, %v900_v22  ;;  %v898_v27 = vpop.f32.mrb[7].mxu0  ;;  %v2526_v21 = vld [vmem:[%s3123_s3 + $0x228] sm:$0xff]   ;;  %v2530_v22 = vld [vmem:[%s3123_s3 + $0x230] sm:$0xff]   ;;  %v1597_v25 = vrot.slane %v2934_v19, 1 }
 0x13e   : > { %v904_v28 = vmax.f32 %v903_v26, 0.0 }
 0x140   : > { %v905_v29 = vpack.c.bf16 %v904_v28, %v904_v28 }
 0x142   : > { %v929_v35 = vrot.slane %v905_v29, %v2931_v18 }
 0x144   : > { %v931_v31 = vshll.u32 %v929_v35, 16 }
 0x146   : > { %v938_v32 = vsel %vm936_vm2, %v931_v31, %v937_v30 }
 0x147   : > { %939 = vst [vmem:[#allocation2 + $0x2] sm:$0x1] %v938_v32 }
 0x14e   : > { %v2946_v34 = vld [vmem:[#allocation2] sm:$0x15] }
 0x14f   : > { %v1056_v36 = vrot.slane %v2946_v34, %v2931_v18  ;;  %v1049_v0 = vcombine.high %v2946_v34, %v2946_v34 }
 0x151   : > { %v1064_v38 = vcombine.high %v1056_v36, %v1056_v36  ;;  %v1066_v43 = vshrl.u32 %v1056_v36, 16  ;;  %v1063_v4 = vrot.slane %v1049_v0, %v2931_v18  ;;  %v2520_v18 = vld [vmem:[%s3123_s3 + $0x218] sm:$0xff]  }
 0x153   : > { %1480 = vmatprep.mubr.bf16.mxu0 %v1064_v38  ;;  %v1069_v41 = vshrl.u32 %v1064_v38, 16  ;;  %v1072_v7 = vshrl.u32 %v1063_v4, 16 }
 0x154   : > { %1481 = vmatmul.mubr.bf16.vlgmr.msra.gmra.mrb[8].mxu0 %v1056_v36 }
 0x155   : > { %1253 = vmatprep.mubr.bf16.mxu1 %v1069_v41  ;;  %2248 = vmatpush3.bf16.msra.mxu0 %v2507_v39 }
 0x156   : > { %1254 = vmatmul.mubr.bf16.vlgmr.msra.gmra.mrb[4].mxu1 %v1066_v43  ;;  %2249 = vmatprep.subr.bf16.mxu0 %v2509_v40 }
 0x157   : > { %2279 = vmatpush3.bf16.msra.mxu1 %v2491_v42  ;;  %2294 = vmatprep.mubr.msk.bf16.mxu1 %vm2543_vm3, %v2541_v1 }
 0x158   : > { %2280 = vmatprep.subr.bf16.mxu1 %v2541_v1  ;;  %1777 = vmatprep.mubr.bf16.mxu0 %v1596_v44 }
 0x159   : > { %2250 = vmatpush3.bf16.msra.mxu0 %v2510_v45 }
 0x15a   : > { %2251 = vmatprep.subr.bf16.mxu0 %v2512_v46 }
 0x15b   : > { %2281 = vmatpush3.bf16.msra.mxu1 %v2492_v47 }
 0x15c   : > { %2282 = vmatprep.subr.bf16.mxu1 %v2541_v1 }
 0x15d   : > { %2252 = vmatpush3.bf16.msra.mxu0 %v2513_v49 }
 0x15e   : > { %2253 = vmatprep.subr.bf16.mxu0 %v2515_v50 }
 0x15f   : > { %2283 = vmatpush3.bf16.msra.mxu1 %v2493_v51 }
 0x160   : > { %2284 = vmatprep.subr.bf16.mxu1 %v2541_v1 }
 0x161   : > { %2254 = vmatpush3.bf16.msra.mxu0 %v2516_v52 }
 0x162   : > { %2255 = vmatprep.subr.bf16.mxu0 %v2518_v53 }
 0x163   : > { %2285 = vmatpush3.bf16.msra.mxu1 %v2494_v54  ;;  %v906_v54 = vld [vmem:[%s3125_s5] sm:$0x1] }
 0x164   : > { %2286 = vmatprep.subr.bf16.mxu1 %v2541_v1 }
 0x165   : > { %2256 = vmatpush3.bf16.msra.mxu0 %v2519_v55  ;;  %v1826_v55 = vld [vmem:[%s3124_s4] sm:$0x1] }
 0x166   : > { %2257 = vmatprep.subr.bf16.mxu0 %v2521_v56 }
 0x167   : > { %2287 = vmatpush3.bf16.msra.mxu1 %v2495_v57 }
 0x168   : > { %2288 = vmatprep.subr.bf16.mxu1 %v2541_v1 }
 0x169   : > { %2258 = vmatpush3.bf16.msra.mxu0 %v2522_v58 }
 0x16a   : > { %2259 = vmatprep.subr.bf16.mxu0 %v2524_v59  ;;  %v907_v59 = vadd.f32 %v906_v54, %v2939_v24 }
 0x16b   : > { %2289 = vmatpush3.bf16.msra.mxu1 %v2496_v60 }
 0x16c   : > { %2290 = vmatprep.subr.bf16.mxu1 %v2541_v1 }
 0x16d   : > { %2260 = vmatpush3.bf16.msra.mxu0 %v2525_v61 }
 0x16e   : > { %2261 = vmatprep.subr.bf16.mxu0 %v2527_v62 }
 0x16f   : > { %2291 = vmatpush3.bf16.msra.mxu1 %v2497_v63  ;;  %v1831_v63 = vld [vmem:[%s249_s14] sm:$0x1] }
 0x170   : > { %2292 = vmatprep.subr.bf16.mxu1 %v2541_v1 }
 0x171   : > { %2262 = vmatpush3.bf16.msra.mxu0 %v2528_v2 }
 0x173   : > { %2293 = vmatpush3.bf16.msra.mxu1 %v2498_v3 }
 0x174   : > { %2298 = vmatprep.subr.bf16.mxu1 %v2541_v1  ;;  %1778 = vmatmul.mubr.bf16.vlgmr.msra.gmra.mrb[12].mxu0 %v1595_v5 }
 0x176   : > { %2295 = vmatmul.mubr.bf16.vlgmr.msra.gmra.mrb[8].mxu1 %v1072_v7 }
 0x177   : > { %2299 = vmatpush3.bf16.msra.mxu1 %v2499_v6  ;;  %2314 = vmatprep.mubr.msk.bf16.mxu1 %vm2543_vm3, %v2541_v1 }
 0x178   : > { %2300 = vmatprep.subr.bf16.mxu1 %v2541_v1 }
 0x17b   : > { %2301 = vmatpush3.bf16.msra.mxu1 %v2500_v8 }
 0x17c   : > { %2302 = vmatprep.subr.bf16.mxu1 %v2541_v1 }
 0x17f   : > { %2303 = vmatpush3.bf16.msra.mxu1 %v2501_v9 }
 0x180   : > { %2304 = vmatprep.subr.bf16.mxu1 %v2541_v1 }
 0x183   : > { %2305 = vmatpush3.bf16.msra.mxu1 %v2502_v10 }
 0x184   : > { %2306 = vmatprep.subr.bf16.mxu1 %v2541_v1 }
 0x187   : > { %2307 = vmatpush3.bf16.msra.mxu1 %v2503_v11 }
 0x188   : > { %2308 = vmatprep.subr.bf16.mxu1 %v2541_v1 }
 0x18b   : > { %2309 = vmatpush3.bf16.msra.mxu1 %v2504_v12 }
 0x18c   : > { %2310 = vmatprep.subr.bf16.mxu1 %v2541_v1 }
 0x18f   : > { %2311 = vmatpush3.bf16.msra.mxu1 %v2505_v13 }
 0x190   : > { %2312 = vmatprep.subr.bf16.mxu1 %v2541_v1 }
 0x193   : > { %2313 = vmatpush3.bf16.msra.mxu1 %v2508_v14 }
 0x194   : > { %2318 = vmatprep.subr.bf16.mxu1 %v2541_v1 }
 0x196   : > { %2315 = vmatmul.mubr.bf16.vlgmr.msra.gmra.mrb[12].mxu1 %v1063_v4 }
 0x197   : > { %2319 = vmatpush3.bf16.msra.mxu1 %v2511_v15  ;;  %2334 = vmatprep.mubr.msk.bf16.mxu1 %vm2543_vm3, %v2541_v1 }
 0x198   : > { %2320 = vmatprep.subr.bf16.mxu1 %v2541_v1 }
 0x19b   : > { %2321 = vmatpush3.bf16.msra.mxu1 %v2514_v16 }
 0x19c   : > { %2322 = vmatprep.subr.bf16.mxu1 %v2541_v1 }
 0x19f   : > { %2323 = vmatpush3.bf16.msra.mxu1 %v2517_v17 }
 0x1a0   : > { %2324 = vmatprep.subr.bf16.mxu1 %v2541_v1 }
 0x1a3   : > { %2325 = vmatpush3.bf16.msra.mxu1 %v2520_v18 }
 0x1a4   : > { %2326 = vmatprep.subr.bf16.mxu1 %v2541_v1 }
 0x1a7   : > { %2327 = vmatpush3.bf16.msra.mxu1 %v2523_v20 }
 0x1a8   : > { %2328 = vmatprep.subr.bf16.mxu1 %v2541_v1 }
 0x1ab   : > { %2329 = vmatpush3.bf16.msra.mxu1 %v2526_v21 }
 0x1ac   : > { %2330 = vmatprep.subr.bf16.mxu1 %v2541_v1 }
 0x1af   : > { %2331 = vmatpush3.bf16.msra.mxu1 %v2530_v22 }
 0x1b0   : > { %2332 = vmatprep.subr.bf16.mxu1 %v2541_v1 }
 0x1b3   : > { %2333 = vmatpush3.bf16.msra.mxu1 %v2531_v23 }
 0x1b6   : > { %2335 = vmatmul.mubr.bf16.vlgmr.msra.gmra.mrb[16].mxu1 %v1597_v25 }
 0x227   : > { %v2232_v26 = vpop.f32.mrb[8].mxu0 }
 0x228   : > { %v2233_v27 = vpop.f32.mrb[9].mxu0 }
 0x229   : > { %v2234_v28 = vadd.f32 %v2233_v27, %v2232_v26  ;;  %v2201_v29 = vpop.f32.mrb[4].mxu1  ;;  %v2235_v35 = vpop.f32.mrb[10].mxu0 }
 0x22a   : > { %v2202_v30 = vpop.f32.mrb[5].mxu1  ;;  %v2236_v31 = vpop.f32.mrb[11].mxu0 }
 0x22b   : > { %v2203_v32 = vadd.f32 %v2202_v30, %v2201_v29  ;;  %v2204_v33 = vpop.f32.mrb[6].mxu1 }
 0x22c   : > { %v2205_v34 = vpop.f32.mrb[7].mxu1 }
 0x247   : > { %v2263_v36 = vpop.f32.mrb[12].mxu0 }
 0x248   : > { %v2264_v37 = vpop.f32.mrb[13].mxu0 }
 0x249   : > { %v1295_v38 = vpop.f32.mrb[8].mxu1  ;;  %v2265_v39 = vadd.f32 %v2264_v37, %v2263_v36  ;;  %v2266_v1 = vpop.f32.mrb[14].mxu0 }
 0x24a   : > { %v1296_v40 = vadd.f32 %v2203_v32, %v1295_v38  ;;  %v2296_v19 = vpop.f32.mrb[9].mxu1  ;;  %v2267_v41 = vpop.f32.mrb[15].mxu0 }
 0x24b   : > { %v1298_v42 = vpop.f32.mrb[10].mxu1 }
 0x24c   : > { %v2297_v43 = vpop.f32.mrb[11].mxu1  ;;  %v1483_v44 = vadd.f32 %v2234_v28, %v1296_v40 }
 0x269   : > { %v1522_v45 = vpop.f32.mrb[12].mxu1 }
 0x26a   : > { %v1523_v46 = vadd.f32 %v1522_v45, %v1483_v44  ;;  %v2316_v47 = vpop.f32.mrb[13].mxu1 }
 0x26b   : > { %v1525_v49 = vpop.f32.mrb[14].mxu1 }
 0x26c   : > { %v2317_v50 = vpop.f32.mrb[15].mxu1 }
 0x289   : > { %v1819_v51 = vpop.f32.mrb[16].mxu1 }
 0x28a   : > { %v1820_v52 = vadd.f32 %v2265_v39, %v1819_v51  ;;  %v2336_v53 = vpop.f32.mrb[17].mxu1 }
 0x28b   : > { %v1822_v56 = vpop.f32.mrb[18].mxu1 }
 0x28c   : > { %v1825_v57 = vadd.f32 %v1820_v52, %v1523_v46  ;;  %v2337_v58 = vpop.f32.mrb[19].mxu1 }
 0x28e   : > { %v1827_v60 = vadd.f32 %v1826_v55, %v1825_v57 }
 0x290   : > { %v1828_v61 = vadd.f32 %v1827_v60, %v907_v59 }
 0x292   : > { %v1829_v62 = vmax.f32 %v1828_v61, 0.0 }
 0x294   : > { %v1830_v0 = vpack.c.bf16 %v1829_v62, %v1829_v62 }
 0x296   : > { %v1832_v2 = vsel %vm2883_vm14, %v1830_v0, %v1831_v63 }
 0x297   : > { %1833 = vst [vmem:[%s249_s14] sm:$0x1] %v1832_v2 }
 0x298 PF: > { %s16_s21 = sadd.s32 1, %s2538_s21  }
 0x299   : > { %p13_p5 = scmp.ge.s32.totalorder %s16_s21, 4  }
 0x29b   :  { %15 = sbr.rel (!%p13_p5) target bundleno = 1 (0x1), region = 79 }

// kernel: encode_uv.19
= control target key start
LH: loop header
LB: loop body
LE: loop exit
PB: predicated region body
PF: predicated region fallthrough
CT: control target
= control target key end

     0   :  { %s2983_s21 = smov 0   ;;  %s3573_s0 = inlined_call_operand.vmem [shape: bf16[2,3,384], index: 0, kind: input, shape index: {}]   ;;  %s3574_s1 = inlined_call_operand.vmem [shape: bf16[3,384,128], index: 1, kind: input, shape index: {}]   ;;  %s3575_s2 = inlined_call_operand.vmem [shape: f32[1,128], index: 2, kind: input, shape index: {}]   ;;  %s3576_s3 = inlined_call_operand.vmem [shape: bf16[3,384,128], index: 3, kind: input, shape index: {}]   ;;  %s3577_s4 = inlined_call_operand.vmem [shape: f32[1,128], index: 4, kind: input, shape index: {}]   ;;  %s3578_s5 = inlined_call_operand.vmem [shape: bf16[2,1,128], index: 5, kind: input, shape index: {}]   ;;  %s3579_s6 = inlined_call_operand.vmem [shape: bf16[2,1,128], index: 6, kind: output, shape index: {}]  }
   0x1 LB: > { %s2127_s22 = sadd.s32 4294967295, %s2943_s21   ;;  %p2131_p0 = scmp.ge.s32.totalorder %s2943_s21, 1  ;;  %s2943_s21 = sphi %s2983_s21, %s16_s21  }
   0x2   : > { %p220_p1 = scmp.lt.s32.totalorder %s2943_s21, 3 }
   0x4   : > { %p221_p2 = pnand %p2131_p0, %p220_p1 }
   0x5   : > { %v2789_v0 = vld [vmem:[%s3574_s1 + $0x100] sm:$0xff] (!%p221_p2)   ;;  %v2945_v1 = vmov (!%p221_p2), 0.0   ;;  %v2792_v4 = vld [vmem:[%s3574_s1 + $0x108] sm:$0xff] (!%p221_p2)   ;;  %v2795_v7 = vld [vmem:[%s3574_s1 + $0x110] sm:$0xff] (!%p221_p2)   ;;  %vm2946_vm0 = vmmov (!%p221_p2), 0   ;;  %p251_p3 = scmp.lt.s32.totalorder (!%p221_p2), %s2127_s22, 1  ;;  %v366_v20 = vlaneseq (!%p221_p2) }
   0x6   : > { %224 = sbr.rel (%p221_p2) target bundleno = 640 (0x280), region = 44  ;;  %2657 = vmatprep.subr.bf16.mxu1 (!%p221_p2), %v2945_v1  ;;  %v2790_v2 = vld [vmem:[%s3574_s1 + $0xc0] sm:$0xff] (!%p221_p2)   ;;  %2471 = vmatprep.subr.bf16.mxu0 (!%p221_p2), %v2789_v0  ;;  %v2793_v5 = vld [vmem:[%s3574_s1 + $0xc8] sm:$0xff] (!%p221_p2)   ;;  %v2796_v8 = vld [vmem:[%s3574_s1 + $0xd0] sm:$0xff] (!%p221_p2)   ;;  %v2947_v25 = vmov (!%p221_p2), 1983009808  }
   0x7   : > { %v2791_v3 = vld [vmem:[%s3574_s1 + $0x140] sm:$0xff] (!%p221_p2)   ;;  %2472 = vmatpush3.bf16.msra.mxu0 (!%p221_p2), %v2790_v2  ;;  %v2794_v6 = vld [vmem:[%s3574_s1 + $0x148] sm:$0xff] (!%p221_p2)   ;;  %2673 = vmatprep.mubr.msk.bf16.mxu1 (!%p221_p2), %vm2946_vm0, %v2945_v1  ;;  %v2797_v9 = vld [vmem:[%s3574_s1 + $0x150] sm:$0xff] (!%p221_p2)   ;;  %v364_v26 = vunpack.c.l.s4 (!%p221_p2), %v2947_v25  ;;  %v367_v27 = vshrl.u32 (!%p221_p2), %v366_v20, 7  ;;  %vm1145_vm1 = vcmask (!%p221_p2), 1041408   ;;  %vm1148_vm3 = vcmask (!%p221_p2), 1043458  }
   0x8   : > { %2658 = vmatpush3.bf16.msra.mxu1 (!%p221_p2), %v2791_v3  ;;  %2473 = vmatprep.subr.bf16.mxu0 (!%p221_p2), %v2792_v4  ;;  %v2798_v10 = vld [vmem:[%s3574_s1 + $0x118] sm:$0xff] (!%p221_p2)   ;;  %v2801_v13 = vld [vmem:[%s3574_s1 + $0x120] sm:$0xff] (!%p221_p2)   ;;  %v2804_v16 = vld [vmem:[%s3574_s1 + $0x128] sm:$0xff] (!%p221_p2)   ;;  %vm1146_vm2 = vsmask.f32 (!%p221_p2), 1280  ;;  %vm1152_vm6 = vcmask (!%p221_p2), 1045508  }
   0x9   : > { %2659 = vmatprep.subr.bf16.mxu1 (!%p221_p2), %v2945_v1  ;;  %v2799_v11 = vld [vmem:[%s3574_s1 + $0xd8] sm:$0xff] (!%p221_p2)   ;;  %v2802_v14 = vld [vmem:[%s3574_s1 + $0xe0] sm:$0xff] (!%p221_p2)   ;;  %v2805_v17 = vld [vmem:[%s3574_s1 + $0xe8] sm:$0xff] (!%p221_p2)   ;;  %v365_v30 = vunpack.c.0.s8 (!%p221_p2), %v364_v26  ;;  %vm1149_vm4 = vsmask.f32 (!%p221_p2), 3328  ;;  %vm1171_vm12 = vcmask (!%p221_p2), 1040384  }
   0xa   : > { %v2800_v12 = vld [vmem:[%s3574_s1 + $0x158] sm:$0xff] (!%p221_p2)   ;;  %v2803_v15 = vld [vmem:[%s3574_s1 + $0x160] sm:$0xff] (!%p221_p2)   ;;  %v2806_v18 = vld [vmem:[%s3574_s1 + $0x168] sm:$0xff] (!%p221_p2)   ;;  %vm1153_vm7 = vsmask.f32 (!%p221_p2), 5376  ;;  %vm1177_vm15 = vcmask (!%p221_p2), 1041409  }
   0xb   : > { %2474 = vmatpush3.bf16.msra.mxu0 (!%p221_p2), %v2793_v5  ;;  %v2807_v19 = vld [vmem:[%s3574_s1 + $0x130] sm:$0xff] (!%p221_p2)   ;;  %v2810_v23 = vld [vmem:[%s3574_s1 + $0x138] sm:$0xff] (!%p221_p2)   ;;  %v2813_v32 = vld [vmem:[%s3574_s1 + $0x40] sm:$0xff] (!%p221_p2)   ;;  %v3089_v33 = vsub.s32 (!%p221_p2), %v365_v30, %v367_v27  ;;  %vm1182_vm13 = vsmask.f32 (!%p221_p2), 256 }
   0xc   : > { %2660 = vmatpush3.bf16.msra.mxu1 (!%p221_p2), %v2794_v6  ;;  %2475 = vmatprep.subr.bf16.mxu0 (!%p221_p2), %v2795_v7  ;;  %v2808_v21 = vld [vmem:[%s3574_s1 + $0xf0] sm:$0xff] (!%p221_p2)   ;;  %v2811_v24 = vld [vmem:[%s3574_s1 + $0xf8] sm:$0xff] (!%p221_p2)   ;;  %v2816_v36 = vld [vmem:[%s3574_s1 + $0x80] sm:$0xff] (!%p221_p2)  }
   0xd   : > { %2661 = vmatprep.subr.bf16.mxu1 %v2945_v1  ;;  %s3585_s22 = smov (!%p251_p3, %s2127_s22), 1  ;;  %v2809_v22 = vld [vmem:[%s3574_s1 + $0x170] sm:$0xff]   ;;  %v2812_v29 = vld [vmem:[%s3574_s1 + $0x178] sm:$0xff]   ;;  %v2815_v40 = vld [vmem:[%s3574_s1] sm:$0xff]  }
   0xe   : > { %s2777_s13 = smul.u32 6, %s3585_s22  ;;  %v2817_v42 = vld [vmem:[%s3574_s1 + $0x48] sm:$0xff]   ;;  %v2820_v45 = vld [vmem:[%s3574_s1 + $0x50] sm:$0xff]   ;;  %v2823_v48 = vld [vmem:[%s3574_s1 + $0x58] sm:$0xff]   ;;  %s258_s12 = scalar_lea.vmem %s3578_s5, %s3585_s22 }
   0xf   : > { %2476 = vmatpush3.bf16.msra.mxu0 %v2796_v8  ;;  %v2819_v43 = vld [vmem:[%s3574_s1 + $0x88] sm:$0xff]   ;;  %v2822_v46 = vld [vmem:[%s3574_s1 + $0x90] sm:$0xff]   ;;  %v2825_v49 = vld [vmem:[%s3574_s1 + $0x98] sm:$0xff]   ;;  %s261_s16 = scalar_lea.vmem %s3579_s6, %s3585_s22 }
  0x10   : > { %2662 = vmatpush3.bf16.msra.mxu1 %v2797_v9  ;;  %2477 = vmatprep.subr.bf16.mxu0 %v2798_v10  ;;  %s3069_s20 = scalar_lea.vmem %s3573_s0, %s2777_s13  ;;  %v2818_v44 = vld [vmem:[%s3574_s1 + $0x8] sm:$0xff]   ;;  %v2821_v47 = vld [vmem:[%s3574_s1 + $0x10] sm:$0xff]   ;;  %v2824_v50 = vld [vmem:[%s3574_s1 + $0x18] sm:$0xff]  }
  0x11   : > { %2663 = vmatprep.subr.bf16.mxu1 %v2945_v1  ;;  %v263_v28 = vld [vmem:[%s3069_s20] sm:$0x15]  ;;  %v2829_v54 = vld [vmem:[%s3574_s1 + $0x68] sm:$0xff]   ;;  %v2832_v57 = vld [vmem:[%s3574_s1 + $0x70] sm:$0xff]  }
  0x12   : > { %v362_v31 = vcombine.high %v263_v28, %v263_v28  ;;  %v3092_v34 = vrot.slane %v263_v28, %v3089_v33  ;;  %v2826_v51 = vld [vmem:[%s3574_s1 + $0x60] sm:$0xff]   ;;  %v2831_v55 = vld [vmem:[%s3574_s1 + $0xa8] sm:$0xff]   ;;  %v2834_v58 = vld [vmem:[%s3574_s1 + $0xb0] sm:$0xff]  }
  0x13   : > { %2478 = vmatpush3.bf16.msra.mxu0 %v2799_v11  ;;  %v2828_v52 = vld [vmem:[%s3574_s1 + $0xa0] sm:$0xff]   ;;  %v2830_v56 = vld [vmem:[%s3574_s1 + $0x28] sm:$0xff]   ;;  %v2833_v59 = vld [vmem:[%s3574_s1 + $0x30] sm:$0xff]  }
  0x14   : > { %2664 = vmatpush3.bf16.msra.mxu1 %v2800_v12  ;;  %2479 = vmatprep.subr.bf16.mxu0 %v2801_v13  ;;  %v3095_v35 = vrot.slane %v362_v31, %v3089_v33  ;;  %v377_v37 = vcombine.high %v3092_v34, %v3092_v34  ;;  %v379_v38 = vshrl.u32 %v3092_v34, 16  ;;  %v2827_v53 = vld [vmem:[%s3574_s1 + $0x20] sm:$0xff]   ;;  %v2835_v60 = vld [vmem:[%s3574_s1 + $0x78] sm:$0xff]   ;;  %v2841_v3 = vld [vmem:[%s3574_s1 + $0x1c8] sm:$0xff]  }
  0x15   : > { %2665 = vmatprep.subr.bf16.mxu1 %v2945_v1  ;;  %v2837_v61 = vld [vmem:[%s3574_s1 + $0xb8] sm:$0xff]   ;;  %v2838_v63 = vld [vmem:[%s3574_s1 + $0x1c0] sm:$0xff]   ;;  %v2843_v4 = vld [vmem:[%s3574_s1 + $0x208] sm:$0xff]  }
  0x16   : > { %v385_v39 = vshrl.u32 %v3095_v35, 16  ;;  %v382_v41 = vshrl.u32 %v377_v37, 16  ;;  %v2836_v62 = vld [vmem:[%s3574_s1 + $0x38] sm:$0xff]   ;;  %v2840_v0 = vld [vmem:[%s3574_s1 + $0x200] sm:$0xff]   ;;  %v2842_v5 = vld [vmem:[%s3574_s1 + $0x188] sm:$0xff]  }
  0x17   : > { %2480 = vmatpush3.bf16.msra.mxu0 %v2802_v14  ;;  %v2839_v2 = vld [vmem:[%s3574_s1 + $0x180] sm:$0xff]   ;;  %v2844_v6 = vld [vmem:[%s3574_s1 + $0x1d0] sm:$0xff]   ;;  %v2847_v12 = vld [vmem:[%s3574_s1 + $0x1d8] sm:$0xff]  }
  0x18   : > { %2666 = vmatpush3.bf16.msra.mxu1 %v2803_v15  ;;  %2481 = vmatprep.subr.bf16.mxu0 %v2804_v16  ;;  %v2846_v7 = vld [vmem:[%s3574_s1 + $0x210] sm:$0xff]   ;;  %v841_v8 = vld [vmem:[%s3069_s20] sm:$0x2a]  ;;  %v2849_v13 = vld [vmem:[%s3574_s1 + $0x218] sm:$0xff]  }
  0x19   : > { %2667 = vmatprep.subr.bf16.mxu1 %v2945_v1  ;;  %566 = vmatprep.mubr.bf16.mxu0 %v382_v41  ;;  %v2845_v9 = vld [vmem:[%s3574_s1 + $0x190] sm:$0xff]   ;;  %v892_v10 = vcombine.high %v841_v8, %v841_v8  ;;  %v899_v11 = vrot.slane %v841_v8, %v3089_v33  ;;  %v2850_v20 = vld [vmem:[%s3574_s1 + $0x1e0] sm:$0xff]   ;;  %v2854_v25 = vld [vmem:[%s3574_s1 + $0x1a8] sm:$0xff]  }
  0x1a   : > { %v2856_v26 = vld [vmem:[%s3574_s1 + $0x1f0] sm:$0xff]   ;;  %v2861_v30 = vld [vmem:[%s3574_s1 + $0x238] sm:$0xff]   ;;  %vm3290_vm5 = vmand %vm1145_vm1, %vm1146_vm2 }
  0x1b   : > { %2482 = vmatpush3.bf16.msra.mxu0 %v2805_v17  ;;  %v907_v14 = vcombine.high %v899_v11, %v899_v11  ;;  %v908_v15 = vrot.slane %v899_v11, 1  ;;  %v906_v16 = vrot.slane %v892_v10, %v3089_v33  ;;  %v2848_v17 = vld [vmem:[%s3574_s1 + $0x198] sm:$0xff]   ;;  %v2858_v27 = vld [vmem:[%s3574_s1 + $0x230] sm:$0xff]   ;;  %vm1150_vm8 = vmand %vm1148_vm3, %vm1149_vm4 }
  0x1c   : > { %2668 = vmatpush3.bf16.msra.mxu1 %v2806_v18  ;;  %2483 = vmatprep.subr.bf16.mxu0 %v2807_v19  ;;  %v2857_v28 = vld [vmem:[%s3574_s1 + $0x1b0] sm:$0xff]   ;;  %v2860_v31 = vld [vmem:[%s3574_s1 + $0x1b8] sm:$0xff]   ;;  %vm1151_vm9 = vmor %vm1150_vm8, %vm3290_vm5 }
  0x1d   : > { %2669 = vmatprep.subr.bf16.mxu1 %v2945_v1  ;;  %v909_v18 = vrot.slane %v907_v14, 1  ;;  %v910_v19 = vrot.slane %v906_v16, 1  ;;  %v2870_v41 = vld [vmem:[%s3576_s3 + $0x150] sm:$0xff]   ;;  %vm1154_vm10 = vmand %vm1152_vm6, %vm1153_vm7 }
  0x1e   : > { %vm1155_vm11 = vmor %vm1154_vm10, %vm1151_vm9 }
  0x1f   : > { %2484 = vmatpush3.bf16.msra.mxu0 %v2808_v21  ;;  %v2852_v21 = vld [vmem:[%s3574_s1 + $0x220] sm:$0xff]   ;;  %vm3327_vm14 = vmand %vm1171_vm12, %vm1182_vm13 }
  0x20   : > { %2670 = vmatpush3.bf16.msra.mxu1 %v2809_v22  ;;  %2485 = vmatprep.subr.bf16.mxu0 %v2810_v23  ;;  %v2851_v22 = vld [vmem:[%s3574_s1 + $0x1a0] sm:$0xff]   ;;  %v2853_v23 = vld [vmem:[%s3574_s1 + $0x1e8] sm:$0xff]   ;;  %vm1178_vm1 = vmand %vm1177_vm15, %vm1146_vm2  ;;  %vm1172_vm2 = vsmask.f32 7938 }
  0x21   : > { %2671 = vmatprep.subr.bf16.mxu1 %v2945_v1  ;;  %vm1173_vm3 = vmand %vm1171_vm12, %vm1172_vm2 }
  0x23   : > { %2486 = vmatpush3.bf16.msra.mxu0 %v2811_v24  ;;  %v2855_v24 = vld [vmem:[%s3574_s1 + $0x228] sm:$0xff]  }
  0x24   : > { %2672 = vmatpush3.bf16.msra.mxu1 %v2812_v29  ;;  %2502 = vmatprep.subr.bf16.mxu0 %v2813_v32  ;;  %v2859_v29 = vld [vmem:[%s3574_s1 + $0x1f8] sm:$0xff]   ;;  %v2863_v32 = vld [vmem:[%s3576_s3 + $0x100] sm:$0xff]  }
  0x25   : > { %2677 = vmatprep.subr.bf16.mxu1 %v2945_v1 }
  0x26   : > { %567 = vmatmul.mubr.bf16.vlgmr.msra.gmra.mrb[0].mxu0 %v379_v38  ;;  %v2868_v38 = vld [vmem:[%s3576_s3 + $0xc8] sm:$0xff]  }
  0x27   : > { %2674 = vmatmul.mubr.bf16.vlgmr.msra.gmra.mrb[0].mxu1 %v385_v39  ;;  %2503 = vmatpush3.bf16.msra.mxu0 %v2815_v40  ;;  %v2869_v40 = vld [vmem:[%s3576_s3 + $0x110] sm:$0xff]  }
  0x28   : > { %2678 = vmatpush3.bf16.msra.mxu1 %v2816_v36  ;;  %2693 = vmatprep.mubr.msk.bf16.mxu1 %vm2946_vm0, %v2945_v1  ;;  %v2866_v36 = vld [vmem:[%s3576_s3 + $0x108] sm:$0xff]  }
  0x29   : > { %2679 = vmatprep.subr.bf16.mxu1 %v2945_v1  ;;  %793 = vmatprep.mubr.bf16.mxu0 %v377_v37  ;;  %v2867_v37 = vld [vmem:[%s3576_s3 + $0x148] sm:$0xff]  }
  0x2a   : > { %2504 = vmatprep.subr.bf16.mxu0 %v2817_v42  ;;  %v1156_v42 = vld [vmem:[#allocation2] sm:$0x3f] }
  0x2b   : > { %2505 = vmatpush3.bf16.msra.mxu0 %v2818_v44  ;;  %v1157_v44 = vsel %vm1155_vm11, 0, %v1156_v42 }
  0x2c   : > { %2680 = vmatpush3.bf16.msra.mxu1 %v2819_v43  ;;  %2506 = vmatprep.subr.bf16.mxu0 %v2820_v45  ;;  %v2871_v43 = vld [vmem:[%s3576_s3 + $0xd0] sm:$0xff]   ;;  %v2872_v45 = vld [vmem:[%s3576_s3 + $0x118] sm:$0xff]   ;;  %1158 = vst [vmem:[#allocation2] sm:$0x3f] %v1157_v44 }
  0x2d   : > { %2681 = vmatprep.subr.bf16.mxu1 %v2945_v1 }
  0x2f   : > { %2507 = vmatpush3.bf16.msra.mxu0 %v2821_v47  ;;  %v2874_v47 = vld [vmem:[%s3576_s3 + $0xd8] sm:$0xff]  }
  0x30   : > { %2682 = vmatpush3.bf16.msra.mxu1 %v2822_v46  ;;  %2508 = vmatprep.subr.bf16.mxu0 %v2823_v48  ;;  %v2873_v46 = vld [vmem:[%s3576_s3 + $0x158] sm:$0xff]   ;;  %v2875_v48 = vld [vmem:[%s3576_s3 + $0x120] sm:$0xff]  }
  0x31   : > { %2683 = vmatprep.subr.bf16.mxu1 %v2945_v1 }
  0x33   : > { %2509 = vmatpush3.bf16.msra.mxu0 %v2824_v50  ;;  %v2877_v50 = vld [vmem:[%s3576_s3 + $0xe0] sm:$0xff]  }
  0x34   : > { %2684 = vmatpush3.bf16.msra.mxu1 %v2825_v49  ;;  %2510 = vmatprep.subr.bf16.mxu0 %v2826_v51  ;;  %v2876_v49 = vld [vmem:[%s3576_s3 + $0x160] sm:$0xff]  }
  0x35   : > { %2685 = vmatprep.subr.bf16.mxu1 %v2945_v1 }
  0x37   : > { %2511 = vmatpush3.bf16.msra.mxu0 %v2827_v53  ;;  %v2878_v53 = vld [vmem:[%s3576_s3 + $0x128] sm:$0xff]  }
  0x38   : > { %2686 = vmatpush3.bf16.msra.mxu1 %v2828_v52  ;;  %2512 = vmatprep.subr.bf16.mxu0 %v2829_v54  ;;  %v1179_v52 = vld [vmem:[#allocation2] sm:$0x2]  ;;  %v1184_v54 = vld [vmem:[#allocation2 + $0x4] sm:$0x1] }
  0x39   : > { %2687 = vmatprep.subr.bf16.mxu1 %v2945_v1 }
  0x3b   : > { %2513 = vmatpush3.bf16.msra.mxu0 %v2830_v56  ;;  %v1180_v56 = vsel %vm1178_vm1, 0, %v1179_v52 }
  0x3c   : > { %2688 = vmatpush3.bf16.msra.mxu1 %v2831_v55  ;;  %2514 = vmatprep.subr.bf16.mxu0 %v2832_v57  ;;  %v2879_v55 = vld [vmem:[%s3576_s3 + $0x168] sm:$0xff]   ;;  %v1185_v57 = vsel %vm3327_vm14, 0, %v1184_v54  ;;  %1181 = vst [vmem:[#allocation2] sm:$0x2] %v1180_v56 }
  0x3d   : > { %2689 = vmatprep.subr.bf16.mxu1 %v2945_v1  ;;  %1186 = vst [vmem:[#allocation2 + $0x4] sm:$0x1] %v1185_v57  ;;  %v2892_v56 = vld [vmem:[%s3576_s3 + $0x88] sm:$0xff]  }
  0x3e   : > { %v2893_v57 = vld [vmem:[%s3576_s3 + $0x8] sm:$0xff]  }
  0x3f   : > { %2515 = vmatpush3.bf16.msra.mxu0 %v2833_v59  ;;  %v2881_v59 = vld [vmem:[%s3576_s3 + $0x130] sm:$0xff]  }
  0x40   : > { %2690 = vmatpush3.bf16.msra.mxu1 %v2834_v58  ;;  %2516 = vmatprep.subr.bf16.mxu0 %v2835_v60  ;;  %v2880_v58 = vld [vmem:[%s3576_s3 + $0xe8] sm:$0xff]   ;;  %v2882_v60 = vld [vmem:[%s3576_s3 + $0x170] sm:$0xff]  }
  0x41   : > { %2691 = vmatprep.subr.bf16.mxu1 %v2945_v1 }
  0x43   : > { %2517 = vmatpush3.bf16.msra.mxu0 %v2836_v62  ;;  %v2884_v62 = vld [vmem:[%s3576_s3 + $0x138] sm:$0xff]  }
  0x44   : > { %2692 = vmatpush3.bf16.msra.mxu1 %v2837_v61  ;;  %2533 = vmatprep.subr.bf16.mxu0 %v2838_v63  ;;  %v2883_v61 = vld [vmem:[%s3576_s3 + $0xf0] sm:$0xff]   ;;  %v2885_v63 = vld [vmem:[%s3576_s3 + $0x178] sm:$0xff]  }
  0x45   : > { %2697 = vmatprep.subr.bf16.mxu1 %v2945_v1 }
  0x46   : > { %794 = vmatmul.mubr.bf16.vlgmr.msra.gmra.mrb[4].mxu0 %v3092_v34  ;;  %v2864_v34 = vld [vmem:[%s3576_s3 + $0x140] sm:$0xff]  }
  0x47   : > { %2694 = vmatmul.mubr.bf16.vlgmr.msra.gmra.mrb[4].mxu1 %v3095_v35  ;;  %2534 = vmatpush3.bf16.msra.mxu0 %v2839_v2  ;;  %v2865_v35 = vld [vmem:[%s3576_s3 + $0xc0] sm:$0xff]  }
  0x48   : > { %2698 = vmatpush3.bf16.msra.mxu1 %v2840_v0  ;;  %2713 = vmatprep.mubr.msk.bf16.mxu1 %vm2946_vm0, %v2945_v1  ;;  %v2886_v0 = vld [vmem:[%s3576_s3 + $0xf8] sm:$0xff]   ;;  %v2888_v2 = vld [vmem:[%s3576_s3 + $0x40] sm:$0xff]  }
  0x49   : > { %2699 = vmatprep.subr.bf16.mxu1 %v2945_v1  ;;  %2535 = vmatprep.subr.bf16.mxu0 %v2841_v3 }
  0x4a   : > { %1090 = vmatprep.mubr.bf16.mxu0 %v909_v18 }
  0x4b   : > { %2536 = vmatpush3.bf16.msra.mxu0 %v2842_v5 }
  0x4c   : > { %2700 = vmatpush3.bf16.msra.mxu1 %v2843_v4  ;;  %2537 = vmatprep.subr.bf16.mxu0 %v2844_v6 }
  0x4d   : > { %2701 = vmatprep.subr.bf16.mxu1 %v2945_v1 }
  0x4f   : > { %2538 = vmatpush3.bf16.msra.mxu0 %v2845_v9 }
  0x50   : > { %2702 = vmatpush3.bf16.msra.mxu1 %v2846_v7  ;;  %2539 = vmatprep.subr.bf16.mxu0 %v2847_v12 }
  0x51   : > { %2703 = vmatprep.subr.bf16.mxu1 %v2945_v1 }
  0x53   : > { %2540 = vmatpush3.bf16.msra.mxu0 %v2848_v17 }
  0x54   : > { %2704 = vmatpush3.bf16.msra.mxu1 %v2849_v13  ;;  %2541 = vmatprep.subr.bf16.mxu0 %v2850_v20 }
  0x55   : > { %2705 = vmatprep.subr.bf16.mxu1 %v2945_v1 }
  0x57   : > { %2542 = vmatpush3.bf16.msra.mxu0 %v2851_v22 }
  0x58   : > { %2706 = vmatpush3.bf16.msra.mxu1 %v2852_v21  ;;  %2543 = vmatprep.subr.bf16.mxu0 %v2853_v23 }
  0x59   : > { %2707 = vmatprep.subr.bf16.mxu1 %v2945_v1 }
  0x5b   : > { %2544 = vmatpush3.bf16.msra.mxu0 %v2854_v25 }
  0x5c   : > { %2708 = vmatpush3.bf16.msra.mxu1 %v2855_v24  ;;  %2545 = vmatprep.subr.bf16.mxu0 %v2856_v26 }
  0x5d   : > { %2709 = vmatprep.subr.bf16.mxu1 %v2945_v1 }
  0x5f   : > { %2546 = vmatpush3.bf16.msra.mxu0 %v2857_v28 }
  0x60   : > { %2710 = vmatpush3.bf16.msra.mxu1 %v2858_v27  ;;  %2547 = vmatprep.subr.bf16.mxu0 %v2859_v29 }
  0x61   : > { %2711 = vmatprep.subr.bf16.mxu1 %v2945_v1 }
  0x63   : > { %2548 = vmatpush3.bf16.msra.mxu0 %v2860_v31 }
  0x64   : > { %2712 = vmatpush3.bf16.msra.mxu1 %v2861_v30  ;;  %2564 = vmatprep.subr.bf16.mxu0 %v2863_v32 }
  0x65   : > { %2717 = vmatprep.subr.bf16.mxu1 %v2945_v1 }
  0x66   : > { %1091 = vmatmul.mubr.bf16.vlgmr.msra.gmra.mrb[8].mxu0 %v908_v15 }
  0x67   : > { %2714 = vmatmul.mubr.bf16.vlgmr.msra.gmra.mrb[8].mxu1 %v910_v19  ;;  %2565 = vmatpush3.bf16.msra.mxu0 %v2865_v35  ;;  %v1139_v35 = vld [vmem:[%s3575_s2] sm:$0x1] }
  0x68   : > { %2733 = vmatprep.mubr.msk.bf16.mxu1 %vm2946_vm0, %v2945_v1  ;;  %2718 = vmatpush3.bf16.msra.mxu1 %v2864_v34 }
  0x69   : > { %2719 = vmatprep.subr.bf16.mxu1 %v2945_v1  ;;  %2566 = vmatprep.subr.bf16.mxu0 %v2866_v36 }
  0x6b   : > { %2567 = vmatpush3.bf16.msra.mxu0 %v2868_v38 }
  0x6c   : > { %2720 = vmatpush3.bf16.msra.mxu1 %v2867_v37  ;;  %2568 = vmatprep.subr.bf16.mxu0 %v2869_v40 }
  0x6d   : > { %2721 = vmatprep.subr.bf16.mxu1 %v2945_v1 }
  0x6f   : > { %2569 = vmatpush3.bf16.msra.mxu0 %v2871_v43 }
  0x70   : > { %2722 = vmatpush3.bf16.msra.mxu1 %v2870_v41  ;;  %2570 = vmatprep.subr.bf16.mxu0 %v2872_v45  ;;  %v1174_v41 = vld [vmem:[#allocation2 + $0x2] sm:$0x1] }
  0x71   : > { %2723 = vmatprep.subr.bf16.mxu1 %v2945_v1 }
  0x73   : > { %2571 = vmatpush3.bf16.msra.mxu0 %v2874_v47 }
  0x74   : > { %2724 = vmatpush3.bf16.msra.mxu1 %v2873_v46  ;;  %2572 = vmatprep.subr.bf16.mxu0 %v2875_v48 }
  0x75   : > { %2725 = vmatprep.subr.bf16.mxu1 %v2945_v1 }
  0x77   : > { %2573 = vmatpush3.bf16.msra.mxu0 %v2877_v50 }
  0x78   : > { %2726 = vmatpush3.bf16.msra.mxu1 %v2876_v49  ;;  %2574 = vmatprep.subr.bf16.mxu0 %v2878_v53  ;;  %v2889_v49 = vld [vmem:[%s3576_s3 + $0x80] sm:$0xff]  }
  0x79   : > { %2727 = vmatprep.subr.bf16.mxu1 %v2945_v1  ;;  %v2890_v53 = vld [vmem:[%s3576_s3] sm:$0xff]  }
  0x7b   : > { %2575 = vmatpush3.bf16.msra.mxu0 %v2880_v58  ;;  %v2894_v58 = vld [vmem:[%s3576_s3 + $0x50] sm:$0xff]  }
  0x7c   : > { %2728 = vmatpush3.bf16.msra.mxu1 %v2879_v55  ;;  %2576 = vmatprep.subr.bf16.mxu0 %v2881_v59  ;;  %v2891_v55 = vld [vmem:[%s3576_s3 + $0x48] sm:$0xff]   ;;  %v2895_v59 = vld [vmem:[%s3576_s3 + $0x90] sm:$0xff]  }
  0x7d   : > { %2729 = vmatprep.subr.bf16.mxu1 %v2945_v1 }
  0x7f   : > { %2577 = vmatpush3.bf16.msra.mxu0 %v2883_v61  ;;  %v2897_v61 = vld [vmem:[%s3576_s3 + $0x58] sm:$0xff]  }
  0x80   : > { %2730 = vmatpush3.bf16.msra.mxu1 %v2882_v60  ;;  %2578 = vmatprep.subr.bf16.mxu0 %v2884_v62  ;;  %v2896_v60 = vld [vmem:[%s3576_s3 + $0x10] sm:$0xff]   ;;  %v2898_v62 = vld [vmem:[%s3576_s3 + $0x98] sm:$0xff]  }
  0x81   : > { %2731 = vmatprep.subr.bf16.mxu1 %v2945_v1 }
  0x83   : > { %2579 = vmatpush3.bf16.msra.mxu0 %v2886_v0  ;;  %v2900_v0 = vld [vmem:[%s3576_s3 + $0x60] sm:$0xff]  }
  0x84   : > { %2732 = vmatpush3.bf16.msra.mxu1 %v2885_v63  ;;  %2595 = vmatprep.subr.bf16.mxu0 %v2888_v2  ;;  %v2899_v63 = vld [vmem:[%s3576_s3 + $0x18] sm:$0xff]   ;;  %v2901_v2 = vld [vmem:[%s3576_s3 + $0xa0] sm:$0xff]  }
  0x85   : > { %2737 = vmatprep.subr.bf16.mxu1 %v2945_v1 }
  0xf9   : > { %v2487_v6 = vpop.f32.mrb[0].mxu0 }
  0xfa   : > { %v608_v3 = vpop.f32.mrb[0].mxu1  ;;  %v2488_v8 = vpop.f32.mrb[1].mxu0 }
  0xfb   : > { %v2675_v4 = vpop.f32.mrb[1].mxu1  ;;  %v2489_v9 = vadd.f32 %v2488_v8, %v2487_v6  ;;  %v2490_v10 = vpop.f32.mrb[2].mxu0  ;;  %v2905_v6 = vld [vmem:[%s3576_s3 + $0x28] sm:$0xff]   ;;  %v3444_v8 = vld [vmem:[#allocation2] sm:$0x2a] }
  0xfc   : > { %v611_v5 = vpop.f32.mrb[2].mxu1  ;;  %v2491_v11 = vpop.f32.mrb[3].mxu0  ;;  %v2903_v4 = vld [vmem:[%s3576_s3 + $0x68] sm:$0xff]   ;;  %v2908_v10 = vld [vmem:[%s3576_s3 + $0x30] sm:$0xff]  }
  0xfd   : > { %v2676_v7 = vpop.f32.mrb[3].mxu1  ;;  %v609_v12 = vadd.f32 %v2489_v9, %v608_v3  ;;  %v2902_v3 = vld [vmem:[%s3576_s3 + $0x20] sm:$0xff]   ;;  %v2904_v5 = vld [vmem:[%s3576_s3 + $0xa8] sm:$0xff]   ;;  %v2907_v9 = vld [vmem:[%s3576_s3 + $0xb0] sm:$0xff]  }
  0xfe   : > { %v2906_v7 = vld [vmem:[%s3576_s3 + $0x70] sm:$0xff]   ;;  %v2909_v11 = vld [vmem:[%s3576_s3 + $0x78] sm:$0xff]  }
 0x119   : > { %v2518_v16 = vpop.f32.mrb[4].mxu0 }
 0x11a   : > { %v835_v13 = vpop.f32.mrb[4].mxu1  ;;  %v2519_v18 = vpop.f32.mrb[5].mxu0 }
 0x11b   : > { %v2695_v14 = vpop.f32.mrb[5].mxu1  ;;  %v2520_v19 = vadd.f32 %v2519_v18, %v2518_v16  ;;  %v2521_v20 = vpop.f32.mrb[6].mxu0  ;;  %v2913_v18 = vld [vmem:[%s3576_s3 + $0x180] sm:$0xff]  }
 0x11c   : > { %v838_v15 = vpop.f32.mrb[6].mxu1  ;;  %v2522_v21 = vpop.f32.mrb[7].mxu0  ;;  %v2911_v14 = vld [vmem:[%s3576_s3 + $0x38] sm:$0xff]  }
 0x11d   : > { %v2696_v17 = vpop.f32.mrb[7].mxu1  ;;  %v796_v22 = vadd.f32 %v2520_v19, %v609_v12  ;;  %v3458_v12 = vrot.slane %v3444_v8, %v3089_v33  ;;  %v2912_v15 = vld [vmem:[%s3576_s3 + $0x1c0] sm:$0xff]   ;;  %v2915_v19 = vld [vmem:[%s3576_s3 + $0x1c8] sm:$0xff]  }
 0x11e   : > { %v2914_v17 = vld [vmem:[%s3576_s3 + $0x200] sm:$0xff]   ;;  %v2917_v21 = vld [vmem:[%s3576_s3 + $0x208] sm:$0xff]  }
 0x11f   : > { %v836_v23 = vadd.f32 %v835_v13, %v796_v22  ;;  %v2910_v13 = vld [vmem:[%s3576_s3 + $0xb8] sm:$0xff]   ;;  %v1831_v16 = vcombine.high %v3458_v12, %v3458_v12  ;;  %v2916_v22 = vld [vmem:[%s3576_s3 + $0x188] sm:$0xff]  }
 0x121   : > { %v1833_v20 = vrot.slane %v1831_v16, 1 }
 0x139   : > { %v2549_v27 = vpop.f32.mrb[8].mxu0 }
 0x13a   : > { %v1132_v24 = vpop.f32.mrb[8].mxu1  ;;  %v2550_v29 = vpop.f32.mrb[9].mxu0 }
 0x13b   : > { %v2715_v25 = vpop.f32.mrb[9].mxu1  ;;  %v2551_v30 = vadd.f32 %v2550_v29, %v2549_v27  ;;  %v2552_v31 = vpop.f32.mrb[10].mxu0  ;;  %v2923_v27 = vld [vmem:[%s3576_s3 + $0x218] sm:$0xff]   ;;  %v2924_v29 = vld [vmem:[%s3576_s3 + $0x1e0] sm:$0xff]  }
 0x13c   : > { %v1135_v26 = vpop.f32.mrb[10].mxu1  ;;  %v2553_v32 = vpop.f32.mrb[11].mxu0  ;;  %v2919_v25 = vld [vmem:[%s3576_s3 + $0x190] sm:$0xff]   ;;  %v2925_v31 = vld [vmem:[%s3576_s3 + $0x1a0] sm:$0xff]  }
 0x13d   : > { %v2716_v28 = vpop.f32.mrb[11].mxu1  ;;  %v1133_v34 = vadd.f32 %v2551_v30, %v1132_v24  ;;  %v2920_v24 = vld [vmem:[%s3576_s3 + $0x210] sm:$0xff]   ;;  %v2921_v26 = vld [vmem:[%s3576_s3 + $0x1d8] sm:$0xff]   ;;  %v2926_v30 = vld [vmem:[%s3576_s3 + $0x220] sm:$0xff]  }
 0x13e   : > { %v2922_v28 = vld [vmem:[%s3576_s3 + $0x198] sm:$0xff]   ;;  %v2927_v32 = vld [vmem:[%s3576_s3 + $0x1e8] sm:$0xff]  }
 0x13f   : > { %v1138_v36 = vadd.f32 %v1133_v34, %v836_v23  ;;  %v2918_v23 = vld [vmem:[%s3576_s3 + $0x1d0] sm:$0xff]   ;;  %v2929_v34 = vld [vmem:[%s3576_s3 + $0x228] sm:$0xff]  }
 0x141   : > { %v1140_v37 = vadd.f32 %v1139_v35, %v1138_v36  ;;  %v2928_v35 = vld [vmem:[%s3576_s3 + $0x1a8] sm:$0xff]   ;;  %v2930_v36 = vld [vmem:[%s3576_s3 + $0x1f0] sm:$0xff]  }
 0x143   : > { %v1141_v38 = vmax.f32 %v1140_v37, 0.0  ;;  %v1816_v37 = vcombine.high %v3444_v8, %v3444_v8 }
 0x145   : > { %v1142_v39 = vpack.c.bf16 %v1141_v38, %v1141_v38  ;;  %v2932_v38 = vld [vmem:[%s3576_s3 + $0x230] sm:$0xff]  }
 0x147   : > { %v1166_v40 = vrot.slane %v1142_v39, %v3089_v33  ;;  %v2931_v39 = vld [vmem:[%s3576_s3 + $0x1b0] sm:$0xff]  }
 0x149   : > { %v1168_v42 = vshll.u32 %v1166_v40, 16  ;;  %v2933_v40 = vld [vmem:[%s3576_s3 + $0x1f8] sm:$0xff]  }
 0x14b   : > { %v1175_v43 = vsel %vm1173_vm3, %v1168_v42, %v1174_v41  ;;  %v1830_v41 = vrot.slane %v1816_v37, %v3089_v33  ;;  %v2935_v42 = vld [vmem:[%s3576_s3 + $0x238] sm:$0xff]  }
 0x14c   : > { %1176 = vst [vmem:[#allocation2 + $0x2] sm:$0x1] %v1175_v43  ;;  %v2934_v43 = vld [vmem:[%s3576_s3 + $0x1b8] sm:$0xff]  }
 0x153   : > { %v1187_v44 = vld [vmem:[#allocation2] sm:$0x15] }
 0x154   : > { %v3374_v45 = vrot.slane %v1187_v44, %v3089_v33  ;;  %v1286_v46 = vcombine.high %v1187_v44, %v1187_v44  ;;  %v1834_v44 = vrot.slane %v1830_v41, 1 }
 0x156   : > { %v1301_v47 = vcombine.high %v3374_v45, %v3374_v45  ;;  %v3379_v48 = vrot.slane %v1286_v46, %v3089_v33  ;;  %v1303_v54 = vshrl.u32 %v3374_v45, 16 }
 0x158   : > { %v1306_v50 = vshrl.u32 %v1301_v47, 16  ;;  %v1309_v52 = vshrl.u32 %v3379_v48, 16 }
 0x15a   : > { %1490 = vmatprep.mubr.bf16.mxu0 %v1306_v50  ;;  %2734 = vmatmul.mubr.bf16.vlgmr.msra.gmra.mrb[12].mxu1 %v1309_v52 }
 0x15b   : > { %2738 = vmatpush3.bf16.msra.mxu1 %v2889_v49  ;;  %1491 = vmatmul.mubr.bf16.vlgmr.msra.gmra.mrb[12].mxu0 %v1303_v54 }
 0x15c   : > { %2596 = vmatpush3.bf16.msra.mxu0 %v2890_v53  ;;  %1717 = vmatprep.mubr.bf16.mxu0 %v1301_v47 }
 0x15d   : > { %2739 = vmatprep.subr.bf16.mxu1 %v2945_v1  ;;  %2597 = vmatprep.subr.bf16.mxu0 %v2891_v55 }
 0x15e   : > { %2753 = vmatprep.mubr.msk.bf16.mxu1 %vm2946_vm0, %v2945_v1 }
 0x15f   : > { %2740 = vmatpush3.bf16.msra.mxu1 %v2892_v56 }
 0x160   : > { %2598 = vmatpush3.bf16.msra.mxu0 %v2893_v57  ;;  %2741 = vmatprep.subr.bf16.mxu1 %v2945_v1 }
 0x161   : > { %2599 = vmatprep.subr.bf16.mxu0 %v2894_v58 }
 0x163   : > { %2742 = vmatpush3.bf16.msra.mxu1 %v2895_v59 }
 0x164   : > { %2600 = vmatpush3.bf16.msra.mxu0 %v2896_v60  ;;  %2743 = vmatprep.subr.bf16.mxu1 %v2945_v1 }
 0x165   : > { %2601 = vmatprep.subr.bf16.mxu0 %v2897_v61 }
 0x167   : > { %2744 = vmatpush3.bf16.msra.mxu1 %v2898_v62 }
 0x168   : > { %2602 = vmatpush3.bf16.msra.mxu0 %v2899_v63  ;;  %2745 = vmatprep.subr.bf16.mxu1 %v2945_v1 }
 0x169   : > { %2603 = vmatprep.subr.bf16.mxu0 %v2900_v0 }
 0x16b   : > { %2746 = vmatpush3.bf16.msra.mxu1 %v2901_v2 }
 0x16c   : > { %2604 = vmatpush3.bf16.msra.mxu0 %v2902_v3  ;;  %2747 = vmatprep.subr.bf16.mxu1 %v2945_v1 }
 0x16d   : > { %2605 = vmatprep.subr.bf16.mxu0 %v2903_v4 }
 0x16f   : > { %2748 = vmatpush3.bf16.msra.mxu1 %v2904_v5 }
 0x170   : > { %2606 = vmatpush3.bf16.msra.mxu0 %v2905_v6  ;;  %2749 = vmatprep.subr.bf16.mxu1 %v2945_v1 }
 0x171   : > { %2607 = vmatprep.subr.bf16.mxu0 %v2906_v7 }
 0x173   : > { %2750 = vmatpush3.bf16.msra.mxu1 %v2907_v9 }
 0x174   : > { %2608 = vmatpush3.bf16.msra.mxu0 %v2908_v10  ;;  %2751 = vmatprep.subr.bf16.mxu1 %v2945_v1 }
 0x175   : > { %2609 = vmatprep.subr.bf16.mxu0 %v2909_v11  ;;  %v1143_v11 = vld [vmem:[%s258_s12] sm:$0x1] }
 0x177   : > { %2752 = vmatpush3.bf16.msra.mxu1 %v2910_v13 }
 0x178   : > { %2610 = vmatpush3.bf16.msra.mxu0 %v2911_v14  ;;  %2757 = vmatprep.subr.bf16.mxu1 %v2945_v1  ;;  %v2063_v14 = vld [vmem:[%s3577_s4] sm:$0x1] }
 0x179   : > { %2626 = vmatprep.subr.bf16.mxu0 %v2912_v15  ;;  %v1144_v15 = vunpack.c.l.bf16 %v1143_v11 }
 0x17a   : > { %2754 = vmatmul.mubr.bf16.vlgmr.msra.gmra.mrb[16].mxu1 %v3379_v48 }
 0x17b   : > { %1718 = vmatmul.mubr.bf16.vlgmr.msra.gmra.mrb[16].mxu0 %v3374_v45  ;;  %2758 = vmatpush3.bf16.msra.mxu1 %v2914_v17  ;;  %v1832_v45 = vrot.slane %v3458_v12, 1 }
 0x17c   : > { %2627 = vmatpush3.bf16.msra.mxu0 %v2913_v18  ;;  %2759 = vmatprep.subr.bf16.mxu1 %v2945_v1 }
 0x17d   : > { %2628 = vmatprep.subr.bf16.mxu0 %v2915_v19  ;;  %2014 = vmatprep.mubr.bf16.mxu0 %v1833_v20  ;;  %v2068_v20 = vld [vmem:[%s261_s16] sm:$0x1] }
 0x17e   : > { %2773 = vmatprep.mubr.msk.bf16.mxu1 %vm2946_vm0, %v2945_v1 }
 0x17f   : > { %2760 = vmatpush3.bf16.msra.mxu1 %v2917_v21 }
 0x180   : > { %2629 = vmatpush3.bf16.msra.mxu0 %v2916_v22  ;;  %2761 = vmatprep.subr.bf16.mxu1 %v2945_v1 }
 0x181   : > { %2630 = vmatprep.subr.bf16.mxu0 %v2918_v23 }
 0x183   : > { %2762 = vmatpush3.bf16.msra.mxu1 %v2920_v24 }
 0x184   : > { %2631 = vmatpush3.bf16.msra.mxu0 %v2919_v25  ;;  %2763 = vmatprep.subr.bf16.mxu1 %v2945_v1 }
 0x185   : > { %2632 = vmatprep.subr.bf16.mxu0 %v2921_v26 }
 0x187   : > { %2764 = vmatpush3.bf16.msra.mxu1 %v2923_v27 }
 0x188   : > { %2633 = vmatpush3.bf16.msra.mxu0 %v2922_v28  ;;  %2765 = vmatprep.subr.bf16.mxu1 %v2945_v1 }
 0x189   : > { %2634 = vmatprep.subr.bf16.mxu0 %v2924_v29 }
 0x18b   : > { %2766 = vmatpush3.bf16.msra.mxu1 %v2926_v30 }
 0x18c   : > { %2635 = vmatpush3.bf16.msra.mxu0 %v2925_v31  ;;  %2767 = vmatprep.subr.bf16.mxu1 %v2945_v1 }
 0x18d   : > { %2636 = vmatprep.subr.bf16.mxu0 %v2927_v32 }
 0x18f   : > { %2768 = vmatpush3.bf16.msra.mxu1 %v2929_v34 }
 0x190   : > { %2637 = vmatpush3.bf16.msra.mxu0 %v2928_v35  ;;  %2769 = vmatprep.subr.bf16.mxu1 %v2945_v1 }
 0x191   : > { %2638 = vmatprep.subr.bf16.mxu0 %v2930_v36 }
 0x193   : > { %2770 = vmatpush3.bf16.msra.mxu1 %v2932_v38 }
 0x194   : > { %2639 = vmatpush3.bf16.msra.mxu0 %v2931_v39  ;;  %2771 = vmatprep.subr.bf16.mxu1 %v2945_v1 }
 0x195   : > { %2640 = vmatprep.subr.bf16.mxu0 %v2933_v40 }
 0x197   : > { %2772 = vmatpush3.bf16.msra.mxu1 %v2935_v42 }
 0x198   : > { %2641 = vmatpush3.bf16.msra.mxu0 %v2934_v43 }
 0x19a   : > { %2774 = vmatmul.mubr.bf16.vlgmr.msra.gmra.mrb[20].mxu1 %v1834_v44 }
 0x19b   : > { %2015 = vmatmul.mubr.bf16.vlgmr.msra.gmra.mrb[20].mxu0 %v1832_v45 }
 0x22d   : > { %v1532_v33 = vpop.f32.mrb[12].mxu1 }
 0x22e   : > { %v2580_v46 = vpop.f32.mrb[12].mxu0  ;;  %v2735_v47 = vpop.f32.mrb[13].mxu1 }
 0x22f   : > { %v2581_v48 = vpop.f32.mrb[13].mxu0  ;;  %v1535_v49 = vpop.f32.mrb[14].mxu1 }
 0x230   : > { %v2582_v50 = vadd.f32 %v2581_v48, %v2580_v46  ;;  %v2583_v52 = vpop.f32.mrb[14].mxu0  ;;  %v2736_v1 = vpop.f32.mrb[15].mxu1 }
 0x231   : > { %v2584_v53 = vpop.f32.mrb[15].mxu0 }
 0x232   : > { %v1533_v54 = vadd.f32 %v2582_v50, %v1532_v33 }
 0x24d   : > { %v1759_v55 = vpop.f32.mrb[16].mxu1 }
 0x24e   : > { %v2611_v56 = vpop.f32.mrb[16].mxu0  ;;  %v2755_v57 = vpop.f32.mrb[17].mxu1 }
 0x24f   : > { %v2612_v58 = vpop.f32.mrb[17].mxu0  ;;  %v1762_v59 = vpop.f32.mrb[18].mxu1 }
 0x250   : > { %v2613_v60 = vadd.f32 %v2612_v58, %v2611_v56  ;;  %v2614_v61 = vpop.f32.mrb[18].mxu0  ;;  %v2756_v62 = vpop.f32.mrb[19].mxu1 }
 0x251   : > { %v2615_v63 = vpop.f32.mrb[19].mxu0 }
 0x252   : > { %v1720_v0 = vadd.f32 %v2613_v60, %v1533_v54 }
 0x254   : > { %v1760_v2 = vadd.f32 %v1759_v55, %v1720_v0 }
 0x26d   : > { %v2056_v3 = vpop.f32.mrb[20].mxu1 }
 0x26e   : > { %v2642_v4 = vpop.f32.mrb[20].mxu0  ;;  %v2775_v5 = vpop.f32.mrb[21].mxu1 }
 0x26f   : > { %v2643_v6 = vpop.f32.mrb[21].mxu0  ;;  %v2059_v7 = vpop.f32.mrb[22].mxu1 }
 0x270   : > { %v2644_v8 = vadd.f32 %v2643_v6, %v2642_v4  ;;  %v2645_v9 = vpop.f32.mrb[22].mxu0  ;;  %v2776_v10 = vpop.f32.mrb[23].mxu1 }
 0x271   : > { %v2646_v12 = vpop.f32.mrb[23].mxu0 }
 0x272   : > { %v2057_v13 = vadd.f32 %v2644_v8, %v2056_v3 }
 0x274   : > { %v2062_v16 = vadd.f32 %v2057_v13, %v1760_v2 }
 0x276   : > { %v2064_v17 = vadd.f32 %v2063_v14, %v2062_v16 }
 0x278   : > { %v2065_v18 = vadd.f32 %v2064_v17, %v1144_v15 }
 0x27a   : > { %v2066_v19 = vmax.f32 %v2065_v18, 0.0 }
 0x27c   : > { %v2067_v21 = vpack.c.bf16 %v2066_v19, %v2066_v19 }
 0x27e   : > { %v2069_v22 = vsel %vm3327_vm14, %v2067_v21, %v2068_v20 }
 0x27f   : > { %2070 = vst [vmem:[%s261_s16] sm:$0x1] %v2069_v22 }
 0x280 PF: > { %s16_s21 = sadd.s32 1, %s2943_s21  }
 0x281   : > { %p13_p4 = scmp.ge.s32.totalorder %s16_s21, 4  }
 0x283   :  { %15 = sbr.rel (!%p13_p4) target bundleno = 1 (0x1), region = 81 }

</bundles_post_ra>
